<compile_context>
chip_gen: v7x
topology: tpu7x:2x2x1
jax: 0.10.0
libtpu: 0.0.40
codegen_flags: <defaults>
</compile_context>

<pallas_src>
import functools

import jax
import jax.numpy as jnp
from jax.experimental import pallas as pl
from jax.experimental.pallas import tpu as pltpu

# ---- ViT-S/14 configuration (fixed by dinov2_vits14 + classifier shapes) ----
EMBED_DIM = 384
DEPTH = 12
NUM_HEADS = 6
HEAD_DIM = EMBED_DIM // NUM_HEADS        # 64
MLP_DIM = 4 * EMBED_DIM                  # 1536
PATCH = 14
LN_EPS = 1e-6
HIDDEN_CLS = 256
NUM_CLASSES = 5

# Scoped-VMEM budget: below v7x's 64 MiB physical VMEM, plenty for double-buffered
# per-layer weights (~7 MiB) + resident activations on every generation.
VMEM_LIMIT = 48 * 1024 * 1024


def _full_spec(shape):
    """BlockSpec covering the whole array, constant over a rank-1 grid."""
    return pl.BlockSpec(shape, lambda i, _n=len(shape): (0,) * _n)


def _layernorm_f32(x, w, b):
    mu = jnp.mean(x, axis=-1, keepdims=True)
    var = jnp.mean(jnp.square(x - mu), axis=-1, keepdims=True)
    return (x - mu) * jax.lax.rsqrt(var + LN_EPS) * w + b


# ============================== Pallas kernels ==============================

def _embed_kernel(p_ref, w_ref, b_ref, cls_ref, pos_ref, o_ref):
    """Per-patch flatten @ W (conv k=14,s=14 equivalent) + bias, fused with
    [cls ; tokens ; zero-pad] + pos_embed (pos_embed pre-padded with zeros)."""
    tok = jnp.dot(p_ref[0].astype(jnp.bfloat16), w_ref[...],
                  preferred_element_type=jnp.float32) + b_ref[...]        # (N, D)
    t_pad, d = pos_ref.shape
    n = tok.shape[0]
    pieces = [cls_ref[...], tok]
    pad = t_pad - 1 - n
    if pad > 0:
        pieces.append(jnp.zeros((pad, d), jnp.float32))
    o_ref[0] = jnp.concatenate(pieces, axis=0) + pos_ref[...]


def _transformer_kernel(x_ref, ln1w_ref, ln1b_ref, wqkv_ref, bqkv_ref,
                        wo_ref, bo_ref, ls1_ref, ln2w_ref, ln2b_ref,
                        w1_ref, b1_ref, w2_ref, b2_ref, ls2_ref,
                        o_ref, seq_ref, *, num_heads, head_dim, t_real, scale):
    """One grid step == one transformer block (pre-LN, LayerScale, residual).

    Activations live in the f32 VMEM scratch `seq_ref` for the whole grid; the
    cls tokens are written to the (resident) output each step.
    """
    layer = pl.program_id(0)

    @pl.when(layer == 0)
    def _():
        seq_ref[...] = x_ref[...].astype(jnp.float32)

    B, T, D = seq_ref.shape
    x = seq_ref[...]                                                     # (B, T, D) f32

    # ---------------- attention sub-block ----------------
    y = _layernorm_f32(x, ln1w_ref[0], ln1b_ref[0])
    y2 = y.reshape(B * T, D).astype(jnp.bfloat16)
    qkv = jnp.dot(y2, wqkv_ref[0],
                  preferred_element_type=jnp.float32) + bqkv_ref[0]      # (B*T, 3D)

    # pad-key mask (keys with index >= t_real are padding)
    key_ids = jax.lax.broadcasted_iota(jnp.int32, (T, T), 1)
    key_mask = key_ids < t_real

    attn_rows = []
    for b in range(B):
        rows = slice(b * T, (b + 1) * T)
        qb = qkv[rows, 0:D] * scale                                      # (T, D) f32
        kb = qkv[rows, D:2 * D]
        vb = qkv[rows, 2 * D:3 * D]
        heads = []
        for h in range(num_heads):
            cs = slice(h * head_dim, (h + 1) * head_dim)
            q = qb[:, cs].astype(jnp.bfloat16)                           # (T, Dh)
            k = kb[:, cs].astype(jnp.bfloat16)
            v = vb[:, cs].astype(jnp.bfloat16)
            # scores: contract the head dim directly (no explicit transpose)
            s = jax.lax.dot_general(q, k, (((1,), (1,)), ((), ())),
                                    preferred_element_type=jnp.float32)  # (T, T)
            s = jnp.where(key_mask, s, -1e30)
            s = s - jnp.max(s, axis=-1, keepdims=True)
            p = jnp.exp(s)
            p = p * pl.reciprocal(jnp.sum(p, axis=-1, keepdims=True), approx=True)
            heads.append(jnp.dot(p.astype(jnp.bfloat16), v,
                                 preferred_element_type=jnp.float32))    # (T, Dh)
        attn_rows.append(jnp.concatenate(heads, axis=-1))                # (T, D)

    attn = jnp.concatenate(attn_rows, axis=0).astype(jnp.bfloat16)       # (B*T, D)
    proj = jnp.dot(attn, wo_ref[0],
                   preferred_element_type=jnp.float32) + bo_ref[0]       # (B*T, D)
    x = x + ls1_ref[0] * proj.reshape(B, T, D)

    # ---------------- MLP sub-block ----------------
    y = _layernorm_f32(x, ln2w_ref[0], ln2b_ref[0])
    y2 = y.reshape(B * T, D).astype(jnp.bfloat16)
    hid = jnp.dot(y2, w1_ref[0],
                  preferred_element_type=jnp.float32) + b1_ref[0]        # (B*T, 4D)
    # tanh-approximate GELU (routes through the EUP slot)
    hid = 0.5 * hid * (1.0 + jnp.tanh(0.7978845608028654 *
                                      (hid + 0.044715 * hid * hid * hid)))
    out = jnp.dot(hid.astype(jnp.bfloat16), w2_ref[0],
                  preferred_element_type=jnp.float32) + b2_ref[0]        # (B*T, D)
    x = x + ls2_ref[0] * out.reshape(B, T, D)

    seq_ref[...] = x
    o_ref[...] = x[:, 0:1, :]                                            # cls tokens


def _head_kernel(x_ref, nw_ref, nb_ref, w1_ref, b1_ref, w2_ref, b2_ref, o_ref):
    """Fused: transformer final norm + wrapper's extra norm + Linear/ReLU/Linear."""
    x = x_ref[...].astype(jnp.float32)                                   # (B, D)
    # self.transformer(x) applies norm; forward() applies transformer.norm again.
    for _ in range(2):
        x = _layernorm_f32(x, nw_ref[...], nb_ref[...])
    h = jnp.dot(x.astype(jnp.bfloat16), w1_ref[...],
                preferred_element_type=jnp.float32) + b1_ref[...]
    h = jnp.maximum(h, 0.0)
    y = jnp.dot(h.astype(jnp.bfloat16), w2_ref[...],
                preferred_element_type=jnp.float32) + b2_ref[...]
    o_ref[...] = y.astype(o_ref.dtype)


# ============================== Kernel wrappers ==============================

def embed_tokens(patches, params):
    B, N, K = patches.shape
    T_pad, D = params["pos_embed"].shape
    return pl.pallas_call(
        _embed_kernel,
        out_shape=jax.ShapeDtypeStruct((B, T_pad, D), jnp.float32),
        grid=(B,),
        in_specs=[pl.BlockSpec((1, N, K), lambda b: (b, 0, 0)),
                  _full_spec((K, D)),            # patch W
                  _full_spec((1, D)),            # patch bias
                  _full_spec((1, D)),            # cls token
                  _full_spec((T_pad, D))],       # pos embed (zero-padded)
        out_specs=pl.BlockSpec((1, T_pad, D), lambda b: (b, 0, 0)),
        compiler_params=pltpu.CompilerParams(
            dimension_semantics=("parallel",), vmem_limit_bytes=VMEM_LIMIT),
    )(patches, params["patch_w"], params["patch_b"],
      params["cls_token"], params["pos_embed"])


def transformer_stack(seq0, params, t_real):
    B, T_pad, D = seq0.shape

    def dspec(shape):
        blk = (1,) + tuple(shape[1:])
        return pl.BlockSpec(blk, lambda l, _n=len(shape): (l,) + (0,) * (_n - 1))

    kernel = functools.partial(_transformer_kernel, num_heads=NUM_HEADS,
                               head_dim=HEAD_DIM, t_real=t_real,
                               scale=HEAD_DIM ** -0.5)

    return pl.pallas_call(
        kernel,
        out_shape=jax.ShapeDtypeStruct((B, 1, D), jnp.float32),
        grid=(DEPTH,),
        in_specs=[
            pl.BlockSpec((B, T_pad, D), lambda l: (0, 0, 0)),            # activations in
            dspec((DEPTH, 1, D)), dspec((DEPTH, 1, D)),                  # ln1 w, b
            dspec((DEPTH, D, 3 * D)), dspec((DEPTH, 1, 3 * D)),          # W_qkv, b_qkv
            dspec((DEPTH, D, D)), dspec((DEPTH, 1, D)),                  # W_o, b_o
            dspec((DEPTH, 1, D)),                                        # ls1
            dspec((DEPTH, 1, D)), dspec((DEPTH, 1, D)),                  # ln2 w, b
            dspec((DEPTH, D, MLP_DIM)), dspec((DEPTH, 1, MLP_DIM)),      # fc1
            dspec((DEPTH, MLP_DIM, D)), dspec((DEPTH, 1, D)),            # fc2
            dspec((DEPTH, 1, D)),                                        # ls2
        ],
        out_specs=pl.BlockSpec((B, 1, D), lambda l: (0, 0, 0)),
        scratch_shapes=[pltpu.VMEM((B, T_pad, D), jnp.float32)],
        compiler_params=pltpu.CompilerParams(
            dimension_semantics=("arbitrary",), vmem_limit_bytes=VMEM_LIMIT),
    )(seq0, params["ln1_w"], params["ln1_b"], params["wqkv"], params["bqkv"],
      params["wo"], params["bo"], params["ls1"], params["ln2_w"], params["ln2_b"],
      params["fc1_w"], params["fc1_b"], params["fc2_w"], params["fc2_b"],
      params["ls2"])


def classifier_head(cls_tok, params):
    B, D = cls_tok.shape
    return pl.pallas_call(
        _head_kernel,
        out_shape=jax.ShapeDtypeStruct((B, NUM_CLASSES), jnp.float32),
        grid=(1,),
        in_specs=[_full_spec((B, D)),
                  _full_spec((1, D)), _full_spec((1, D)),
                  _full_spec((D, HIDDEN_CLS)), _full_spec((1, HIDDEN_CLS)),
                  _full_spec((HIDDEN_CLS, NUM_CLASSES)), _full_spec((1, NUM_CLASSES))],
        out_specs=_full_spec((B, NUM_CLASSES)),
        compiler_params=pltpu.CompilerParams(
            dimension_semantics=("arbitrary",), vmem_limit_bytes=VMEM_LIMIT),
    )(cls_tok, params["norm_w"], params["norm_b"],
      params["cls_fc1_w"], params["cls_fc1_b"],
      params["cls_fc2_w"], params["cls_fc2_b"])


# ============================== Model forward ===============================

def dino_classifier_forward(params, x):
    # layout: x is NCHW (B, 3, H, W), identical to the PyTorch module input.
    B, C, H, W = x.shape
    nh, nw = H // PATCH, W // PATCH
    N = nh * nw

    # Patch embed: conv(k=14, s=14) == per-patch flatten (C,kh,kw order) @ W.
    # (im2col reshape/transpose is plain-JAX glue.)
    patches = x.reshape(B, C, nh, PATCH, nw, PATCH)
    patches = patches.transpose(0, 2, 4, 1, 3, 5).reshape(B, N, C * PATCH * PATCH)

    seq0 = embed_tokens(patches, params)                  # (B, T_pad, D), cls+pos fused
    cls_tok = transformer_stack(seq0, params, t_real=N + 1)   # (B, 1, D) cls tokens
    return classifier_head(cls_tok.reshape(B, EMBED_DIM), params)   # (B, 5)


# ============================ Parameter creation ============================

def init_params(key, num_patches):
    T = num_patches + 1
    T_pad = ((T + 7) // 8) * 8
    D = EMBED_DIM

    ks = jax.random.split(key, 10)

    def dense(k, shape):
        return jax.random.normal(k, shape, jnp.float32) * 0.02

    pos = jnp.zeros((T_pad, D), jnp.float32)
    pos = pos.at[:T].set(dense(ks[2], (T, D)))            # pad rows stay zero

    return {
        # patch embed / tokens
        "patch_w": dense(ks[0], (3 * PATCH * PATCH, D)).astype(jnp.bfloat16),
        "patch_b": jnp.zeros((1, D), jnp.float32),
        "cls_token": dense(ks[1], (1, D)),
        "pos_embed": pos,
        # final norm (used twice, per the PyTorch wrapper) + classifier head
        "norm_w": jnp.ones((1, D), jnp.float32),
        "norm_b": jnp.zeros((1, D), jnp.float32),
        "cls_fc1_w": dense(ks[3], (D, HIDDEN_CLS)).astype(jnp.bfloat16),
        "cls_fc1_b": jnp.zeros((1, HIDDEN_CLS), jnp.float32),
        "cls_fc2_w": dense(ks[4], (HIDDEN_CLS, NUM_CLASSES)).astype(jnp.bfloat16),
        "cls_fc2_b": jnp.zeros((1, NUM_CLASSES), jnp.float32),
        # transformer blocks, stacked along a leading DEPTH axis
        "ln1_w": jnp.ones((DEPTH, 1, D), jnp.float32),
        "ln1_b": jnp.zeros((DEPTH, 1, D), jnp.float32),
        "wqkv": dense(ks[5], (DEPTH, D, 3 * D)).astype(jnp.bfloat16),   # [q|k|v] cols
        "bqkv": jnp.zeros((DEPTH, 1, 3 * D), jnp.float32),
        "wo": dense(ks[6], (DEPTH, D, D)).astype(jnp.bfloat16),
        "bo": jnp.zeros((DEPTH, 1, D), jnp.float32),
        "ls1": jnp.full((DEPTH, 1, D), 0.1, jnp.float32),               # LayerScale
        "ln2_w": jnp.ones((DEPTH, 1, D), jnp.float32),
        "ln2_b": jnp.zeros((DEPTH, 1, D), jnp.float32),
        "fc1_w": dense(ks[7], (DEPTH, D, MLP_DIM)).astype(jnp.bfloat16),
        "fc1_b": jnp.zeros((DEPTH, 1, MLP_DIM), jnp.float32),
        "fc2_w": dense(ks[8], (DEPTH, MLP_DIM, D)).astype(jnp.bfloat16),
        "fc2_b": jnp.zeros((DEPTH, 1, D), jnp.float32),
        "ls2": jnp.full((DEPTH, 1, D), 0.1, jnp.float32),
    }


# =================================== Main ===================================

if __name__ == "__main__":
    key = jax.random.PRNGKey(0)
    k_param, k_x = jax.random.split(key)

    B, C, H, W = 2, 3, 28, 28          # small image: 2x2 = 4 patches of 14x14
    num_patches = (H // PATCH) * (W // PATCH)

    params = init_params(k_param, num_patches)
    x = jax.random.normal(k_x, (B, C, H, W), jnp.float32)  # NCHW, like PyTorch

    fwd = jax.jit(dino_classifier_forward)
    logits = fwd(params, x)
    jax.block_until_ready(logits)

    assert logits.shape == (B, NUM_CLASSES)
    assert bool(jnp.all(jnp.isfinite(logits)))
    print("KERNEL_OK")
</pallas_src>

<mosaic_0001>
module attributes {stable_mosaic.version = 11 : i64} {
  func.func @_embed_kernel(%arg0: i32, %arg1: memref<1x4x588xf32, #tpu.memory_space<vmem>>, %arg2: memref<588x384xbf16, #tpu.memory_space<vmem>>, %arg3: memref<1x384xf32, #tpu.memory_space<vmem>>, %arg4: memref<1x384xf32, #tpu.memory_space<vmem>>, %arg5: memref<8x384xf32, #tpu.memory_space<vmem>>, %arg6: memref<1x8x384xf32, #tpu.memory_space<vmem>>) attributes {dimension_semantics = [#tpu.dimension_semantics<parallel>], iteration_bounds = array<i64: 2>, scalar_prefetch = 0 : i64, scratch_operands = 0 : i64, tpu.core_type = #tpu.core_type<tc>, window_params = [{transform_indices = @transform_0, window_bounds = array<i64: 1, 4, 588>}, {pipeline_mode = #tpu.pipeline_mode<synchronous>, transform_indices = @transform_1, window_bounds = array<i64: 588, 384>}, {pipeline_mode = #tpu.pipeline_mode<synchronous>, transform_indices = @transform_2, window_bounds = array<i64: 1, 384>}, {pipeline_mode = #tpu.pipeline_mode<synchronous>, transform_indices = @transform_3, window_bounds = array<i64: 1, 384>}, {pipeline_mode = #tpu.pipeline_mode<synchronous>, transform_indices = @transform_4, window_bounds = array<i64: 8, 384>}, {transform_indices = @transform_5, window_bounds = array<i64: 1, 8, 384>}]} {
    %c0 = arith.constant 0 : index
    %c0_0 = arith.constant 0 : index
    %c0_1 = arith.constant 0 : index
    %0 = vector.load %arg1[%c0, %c0_0, %c0_1] : memref<1x4x588xf32, #tpu.memory_space<vmem>>, vector<1x4x588xf32>
    %1 = vector.shape_cast %0 : vector<1x4x588xf32> to vector<4x588xf32>
    %2 = arith.truncf %1 : vector<4x588xf32> to vector<4x588xbf16>
    %c0_2 = arith.constant 0 : index
    %c0_3 = arith.constant 0 : index
    %3 = vector.load %arg2[%c0_2, %c0_3] : memref<588x384xbf16, #tpu.memory_space<vmem>>, vector<588x384xbf16>
    %cst = arith.constant dense<0.000000e+00> : vector<4x384xf32>
    %4 = tpu.matmul %2, %3, %cst {dimension_numbers = #tpu.dot_dimension_numbers<[1], [0], [0], [1], [0, 0, 1, 1], [], []>} : vector<4x588xbf16>, vector<588x384xbf16>, vector<4x384xf32> -> vector<4x384xf32>
    %c0_4 = arith.constant 0 : index
    %c0_5 = arith.constant 0 : index
    %5 = vector.load %arg3[%c0_4, %c0_5] : memref<1x384xf32, #tpu.memory_space<vmem>>, vector<1x384xf32>
    %6 = vector.broadcast %5 : vector<1x384xf32> to vector<4x384xf32>
    %7 = arith.addf %4, %6 : vector<4x384xf32>
    %c0_6 = arith.constant 0 : index
    %c0_7 = arith.constant 0 : index
    %8 = vector.load %arg4[%c0_6, %c0_7] : memref<1x384xf32, #tpu.memory_space<vmem>>, vector<1x384xf32>
    %cst_8 = arith.constant 0.000000e+00 : f32
    %9 = vector.broadcast %cst_8 : f32 to vector<3x384xf32>
    %10 = tpu.concatenate %8, %7, %9 in 0 : vector<1x384xf32>, vector<4x384xf32>, vector<3x384xf32> -> vector<8x384xf32>
    %c0_9 = arith.constant 0 : index
    %c0_10 = arith.constant 0 : index
    %11 = vector.load %arg5[%c0_9, %c0_10] : memref<8x384xf32, #tpu.memory_space<vmem>>, vector<8x384xf32>
    %12 = arith.addf %10, %11 : vector<8x384xf32>
    %c0_11 = arith.constant 0 : index
    %c0_12 = arith.constant 0 : index
    %c0_13 = arith.constant 0 : index
    %13 = vector.load %arg6[%c0_11, %c0_12, %c0_13] : memref<1x8x384xf32, #tpu.memory_space<vmem>>, vector<1x8x384xf32>
    %14 = vector.shape_cast %13 : vector<1x8x384xf32> to vector<8x384xf32>
    %15 = vector.shape_cast %12 : vector<8x384xf32> to vector<1x8x384xf32>
    tpu.vector_store %arg6[%c0_11, %c0_12, %c0_13], %15 {strides = array<i32>} : memref<1x8x384xf32, #tpu.memory_space<vmem>>, vector<1x8x384xf32>,
    return
  }
  func.func @transform_0(%arg0: i32) -> (i32, i32, i32) {
    %c0_i32 = arith.constant 0 : i32
    %c0_i32_0 = arith.constant 0 : i32
    %c0_i32_1 = arith.constant 0 : i32
    return %arg0, %c0_i32, %c0_i32_0 : i32, i32, i32
  }
  func.func @transform_1(%arg0: i32) -> (i32, i32) {
    %c0_i32 = arith.constant 0 : i32
    %c0_i32_0 = arith.constant 0 : i32
    %c0_i32_1 = arith.constant 0 : i32
    return %c0_i32, %c0_i32_0 : i32, i32
  }
  func.func @transform_2(%arg0: i32) -> (i32, i32) {
    %c0_i32 = arith.constant 0 : i32
    %c0_i32_0 = arith.constant 0 : i32
    %c0_i32_1 = arith.constant 0 : i32
    return %c0_i32, %c0_i32_0 : i32, i32
  }
  func.func @transform_3(%arg0: i32) -> (i32, i32) {
    %c0_i32 = arith.constant 0 : i32
    %c0_i32_0 = arith.constant 0 : i32
    %c0_i32_1 = arith.constant 0 : i32
    return %c0_i32, %c0_i32_0 : i32, i32
  }
  func.func @transform_4(%arg0: i32) -> (i32, i32) {
    %c0_i32 = arith.constant 0 : i32
    %c0_i32_0 = arith.constant 0 : i32
    %c0_i32_1 = arith.constant 0 : i32
    return %c0_i32, %c0_i32_0 : i32, i32
  }
  func.func @transform_5(%arg0: i32) -> (i32, i32, i32) {
    %c0_i32 = arith.constant 0 : i32
    %c0_i32_0 = arith.constant 0 : i32
    %c0_i32_1 = arith.constant 0 : i32
    return %arg0, %c0_i32, %c0_i32_0 : i32, i32, i32
  }
}

module attributes {stable_mosaic.version = 11 : i64} {
  func.func @_transformer_kernel(%arg0: i32, %arg1: memref<2x8x384xf32, #tpu.memory_space<vmem>>, %arg2: memref<1x1x384xf32, #tpu.memory_space<vmem>>, %arg3: memref<1x1x384xf32, #tpu.memory_space<vmem>>, %arg4: memref<1x384x1152xbf16, #tpu.memory_space<vmem>>, %arg5: memref<1x1x1152xf32, #tpu.memory_space<vmem>>, %arg6: memref<1x384x384xbf16, #tpu.memory_space<vmem>>, %arg7: memref<1x1x384xf32, #tpu.memory_space<vmem>>, %arg8: memref<1x1x384xf32, #tpu.memory_space<vmem>>, %arg9: memref<1x1x384xf32, #tpu.memory_space<vmem>>, %arg10: memref<1x1x384xf32, #tpu.memory_space<vmem>>, %arg11: memref<1x384x1536xbf16, #tpu.memory_space<vmem>>, %arg12: memref<1x1x1536xf32, #tpu.memory_space<vmem>>, %arg13: memref<1x1536x384xbf16, #tpu.memory_space<vmem>>, %arg14: memref<1x1x384xf32, #tpu.memory_space<vmem>>, %arg15: memref<1x1x384xf32, #tpu.memory_space<vmem>>, %arg16: memref<2x1x384xf32, #tpu.memory_space<vmem>>, %arg17: memref<2x8x384xf32, #tpu.memory_space<vmem>>) attributes {dimension_semantics = [#tpu.dimension_semantics<arbitrary>], iteration_bounds = array<i64: 12>, scalar_prefetch = 0 : i64, scratch_operands = 1 : i64, tpu.core_type = #tpu.core_type<tc>, window_params = [{pipeline_mode = #tpu.pipeline_mode<synchronous>, transform_indices = @transform_0, window_bounds = array<i64: 2, 8, 384>}, {transform_indices = @transform_1, window_bounds = array<i64: 1, 1, 384>}, {transform_indices = @transform_2, window_bounds = array<i64: 1, 1, 384>}, {transform_indices = @transform_3, window_bounds = array<i64: 1, 384, 1152>}, {transform_indices = @transform_4, window_bounds = array<i64: 1, 1, 1152>}, {transform_indices = @transform_5, window_bounds = array<i64: 1, 384, 384>}, {transform_indices = @transform_6, window_bounds = array<i64: 1, 1, 384>}, {transform_indices = @transform_7, window_bounds = array<i64: 1, 1, 384>}, {transform_indices = @transform_8, window_bounds = array<i64: 1, 1, 384>}, {transform_indices = @transform_9, window_bounds = array<i64: 1, 1, 384>}, {transform_indices = @transform_10, window_bounds = array<i64: 1, 384, 1536>}, {transform_indices = @transform_11, window_bounds = array<i64: 1, 1, 1536>}, {transform_indices = @transform_12, window_bounds = array<i64: 1, 1536, 384>}, {transform_indices = @transform_13, window_bounds = array<i64: 1, 1, 384>}, {transform_indices = @transform_14, window_bounds = array<i64: 1, 1, 384>}, {pipeline_mode = #tpu.pipeline_mode<synchronous>, transform_indices = @transform_15, window_bounds = array<i64: 2, 1, 384>}]} {
    %c0_i32 = arith.constant 0 : i32
    %0 = arith.cmpi eq, %arg0, %c0_i32 : i32
    %1 = arith.extui %0 : i1 to i32
    %c0_i32_0 = arith.constant 0 : i32
    %2 = arith.cmpi ne, %1, %c0_i32_0 : i32
    scf.if %2 {
      %c0_130 = arith.constant 0 : index
      %c0_131 = arith.constant 0 : index
      %c0_132 = arith.constant 0 : index
      %392 = vector.load %arg1[%c0_130, %c0_131, %c0_132] : memref<2x8x384xf32, #tpu.memory_space<vmem>>, vector<2x8x384xf32>
      %c0_133 = arith.constant 0 : index
      %c0_134 = arith.constant 0 : index
      %c0_135 = arith.constant 0 : index
      %393 = vector.load %arg17[%c0_133, %c0_134, %c0_135] : memref<2x8x384xf32, #tpu.memory_space<vmem>>, vector<2x8x384xf32>
      tpu.vector_store %arg17[%c0_133, %c0_134, %c0_135], %392 {strides = array<i32>} : memref<2x8x384xf32, #tpu.memory_space<vmem>>, vector<2x8x384xf32>,
    } else {
    }
    %c0 = arith.constant 0 : index
    %c0_1 = arith.constant 0 : index
    %c0_2 = arith.constant 0 : index
    %3 = vector.load %arg17[%c0, %c0_1, %c0_2] : memref<2x8x384xf32, #tpu.memory_space<vmem>>, vector<2x8x384xf32>
    %c0_3 = arith.constant 0 : index
    %c0_4 = arith.constant 0 : index
    %c0_5 = arith.constant 0 : index
    %4 = vector.load %arg2[%c0_3, %c0_4, %c0_5] : memref<1x1x384xf32, #tpu.memory_space<vmem>>, vector<1x1x384xf32>
    %5 = vector.shape_cast %4 : vector<1x1x384xf32> to vector<1x384xf32>
    %c0_6 = arith.constant 0 : index
    %c0_7 = arith.constant 0 : index
    %c0_8 = arith.constant 0 : index
    %6 = vector.load %arg3[%c0_6, %c0_7, %c0_8] : memref<1x1x384xf32, #tpu.memory_space<vmem>>, vector<1x1x384xf32>
    %7 = vector.shape_cast %6 : vector<1x1x384xf32> to vector<1x384xf32>
    %cst = arith.constant dense<0.000000e+00> : vector<2x8xf32>
    %8 = vector.multi_reduction <add>, %3, %cst [2] : vector<2x8x384xf32> to vector<2x8xf32>
    %9 = vector.shape_cast %8 : vector<2x8xf32> to vector<2x8x1xf32>
    %cst_9 = arith.constant 3.840000e+02 : f32
    %10 = vector.broadcast %cst_9 : f32 to vector<2x8x1xf32>
    %11 = arith.divf %9, %10 : vector<2x8x1xf32>
    %12 = vector.broadcast %11 : vector<2x8x1xf32> to vector<2x8x384xf32>
    %13 = arith.subf %3, %12 : vector<2x8x384xf32>
    %14 = arith.mulf %13, %13 : vector<2x8x384xf32>
    %cst_10 = arith.constant dense<0.000000e+00> : vector<2x8xf32>
    %15 = vector.multi_reduction <add>, %14, %cst_10 [2] : vector<2x8x384xf32> to vector<2x8xf32>
    %16 = vector.shape_cast %15 : vector<2x8xf32> to vector<2x8x1xf32>
    %cst_11 = arith.constant 3.840000e+02 : f32
    %17 = vector.broadcast %cst_11 : f32 to vector<2x8x1xf32>
    %18 = arith.divf %16, %17 : vector<2x8x1xf32>
    %19 = vector.broadcast %11 : vector<2x8x1xf32> to vector<2x8x384xf32>
    %20 = arith.subf %3, %19 : vector<2x8x384xf32>
    %cst_12 = arith.constant 9.99999997E-7 : f32
    %21 = vector.broadcast %cst_12 : f32 to vector<2x8x1xf32>
    %22 = arith.addf %18, %21 : vector<2x8x1xf32>
    %23 = math.rsqrt %22 : vector<2x8x1xf32>
    %24 = vector.broadcast %23 : vector<2x8x1xf32> to vector<2x8x384xf32>
    %25 = arith.mulf %20, %24 : vector<2x8x384xf32>
    %26 = vector.shape_cast %5 : vector<1x384xf32> to vector<1x1x384xf32>
    %27 = vector.broadcast %26 : vector<1x1x384xf32> to vector<2x8x384xf32>
    %28 = arith.mulf %25, %27 : vector<2x8x384xf32>
    %29 = vector.shape_cast %7 : vector<1x384xf32> to vector<1x1x384xf32>
    %30 = vector.broadcast %29 : vector<1x1x384xf32> to vector<2x8x384xf32>
    %31 = arith.addf %28, %30 : vector<2x8x384xf32>
    %32 = vector.shape_cast %31 : vector<2x8x384xf32> to vector<16x384xf32>
    %33 = arith.truncf %32 : vector<16x384xf32> to vector<16x384xbf16>
    %c0_13 = arith.constant 0 : index
    %c0_14 = arith.constant 0 : index
    %c0_15 = arith.constant 0 : index
    %34 = vector.load %arg4[%c0_13, %c0_14, %c0_15] : memref<1x384x1152xbf16, #tpu.memory_space<vmem>>, vector<1x384x1152xbf16>
    %35 = vector.shape_cast %34 : vector<1x384x1152xbf16> to vector<384x1152xbf16>
    %cst_16 = arith.constant dense<0.000000e+00> : vector<16x1152xf32>
    %36 = tpu.matmul %33, %35, %cst_16 {dimension_numbers = #tpu.dot_dimension_numbers<[1], [0], [0], [1], [0, 0, 1, 1], [], []>} : vector<16x384xbf16>, vector<384x1152xbf16>, vector<16x1152xf32> -> vector<16x1152xf32>
    %c0_17 = arith.constant 0 : index
    %c0_18 = arith.constant 0 : index
    %c0_19 = arith.constant 0 : index
    %37 = vector.load %arg5[%c0_17, %c0_18, %c0_19] : memref<1x1x1152xf32, #tpu.memory_space<vmem>>, vector<1x1x1152xf32>
    %38 = vector.shape_cast %37 : vector<1x1x1152xf32> to vector<1x1152xf32>
    %39 = vector.broadcast %38 : vector<1x1152xf32> to vector<16x1152xf32>
    %40 = arith.addf %36, %39 : vector<16x1152xf32>
    %41 = tpu.iota {dimensions = array<i32: 1>} : vector<8x8xi32>
    %c5_i32 = arith.constant 5 : i32
    %42 = vector.broadcast %c5_i32 : i32 to vector<8x8xi32>
    %43 = arith.cmpi slt, %41, %42 : vector<8x8xi32>
    %44 = vector.extract_strided_slice %40 {offsets = [0, 0], sizes = [8, 384], strides = [1, 1]} : vector<16x1152xf32> to vector<8x384xf32>
    %cst_20 = arith.constant 1.250000e-01 : f32
    %45 = vector.broadcast %cst_20 : f32 to vector<8x384xf32>
    %46 = arith.mulf %44, %45 : vector<8x384xf32>
    %47 = vector.extract_strided_slice %40 {offsets = [0, 384], sizes = [8, 384], strides = [1, 1]} : vector<16x1152xf32> to vector<8x384xf32>
    %48 = vector.extract_strided_slice %40 {offsets = [0, 768], sizes = [8, 384], strides = [1, 1]} : vector<16x1152xf32> to vector<8x384xf32>
    %49 = vector.extract_strided_slice %46 {offsets = [0, 0], sizes = [8, 64], strides = [1, 1]} : vector<8x384xf32> to vector<8x64xf32>
    %50 = arith.truncf %49 : vector<8x64xf32> to vector<8x64xbf16>
    %51 = vector.extract_strided_slice %47 {offsets = [0, 0], sizes = [8, 64], strides = [1, 1]} : vector<8x384xf32> to vector<8x64xf32>
    %52 = arith.truncf %51 : vector<8x64xf32> to vector<8x64xbf16>
    %53 = vector.extract_strided_slice %48 {offsets = [0, 0], sizes = [8, 64], strides = [1, 1]} : vector<8x384xf32> to vector<8x64xf32>
    %54 = arith.truncf %53 : vector<8x64xf32> to vector<8x64xbf16>
    %cst_21 = arith.constant dense<0.000000e+00> : vector<8x8xf32>
    %55 = tpu.matmul %50, %52, %cst_21 {dimension_numbers = #tpu.dot_dimension_numbers<[1], [1], [0], [0], [0, 0, 1, 0], [], []>} : vector<8x64xbf16>, vector<8x64xbf16>, vector<8x8xf32> -> vector<8x8xf32>
    %cst_22 = arith.constant -1.000000e+30 : f32
    %56 = vector.broadcast %cst_22 : f32 to vector<8x8xf32>
    %57 = arith.select %43, %55, %56 : vector<8x8xi1>, vector<8x8xf32>
    %cst_23 = arith.constant dense<0xFF800000> : vector<8xf32>
    %58 = vector.multi_reduction <maximumf>, %57, %cst_23 [1] : vector<8x8xf32> to vector<8xf32>
    %59 = vector.shape_cast %58 : vector<8xf32> to vector<8x1xf32>
    %60 = vector.broadcast %59 : vector<8x1xf32> to vector<8x8xf32>
    %61 = arith.subf %57, %60 : vector<8x8xf32>
    %62 = math.exp %61 : vector<8x8xf32>
    %cst_24 = arith.constant dense<0.000000e+00> : vector<8xf32>
    %63 = vector.multi_reduction <add>, %62, %cst_24 [1] : vector<8x8xf32> to vector<8xf32>
    %64 = vector.shape_cast %63 : vector<8xf32> to vector<8x1xf32>
    %65 = tpu.reciprocal %64 {approx = true} : vector<8x1xf32> -> vector<8x1xf32>
    %66 = vector.broadcast %65 : vector<8x1xf32> to vector<8x8xf32>
    %67 = arith.mulf %62, %66 : vector<8x8xf32>
    %68 = arith.truncf %67 : vector<8x8xf32> to vector<8x8xbf16>
    %cst_25 = arith.constant dense<0.000000e+00> : vector<8x64xf32>
    %69 = tpu.matmul %68, %54, %cst_25 {dimension_numbers = #tpu.dot_dimension_numbers<[1], [0], [0], [1], [0, 0, 1, 1], [], []>} : vector<8x8xbf16>, vector<8x64xbf16>, vector<8x64xf32> -> vector<8x64xf32>
    %70 = vector.extract_strided_slice %46 {offsets = [0, 64], sizes = [8, 64], strides = [1, 1]} : vector<8x384xf32> to vector<8x64xf32>
    %71 = arith.truncf %70 : vector<8x64xf32> to vector<8x64xbf16>
    %72 = vector.extract_strided_slice %47 {offsets = [0, 64], sizes = [8, 64], strides = [1, 1]} : vector<8x384xf32> to vector<8x64xf32>
    %73 = arith.truncf %72 : vector<8x64xf32> to vector<8x64xbf16>
    %74 = vector.extract_strided_slice %48 {offsets = [0, 64], sizes = [8, 64], strides = [1, 1]} : vector<8x384xf32> to vector<8x64xf32>
    %75 = arith.truncf %74 : vector<8x64xf32> to vector<8x64xbf16>
    %cst_26 = arith.constant dense<0.000000e+00> : vector<8x8xf32>
    %76 = tpu.matmul %71, %73, %cst_26 {dimension_numbers = #tpu.dot_dimension_numbers<[1], [1], [0], [0], [0, 0, 1, 0], [], []>} : vector<8x64xbf16>, vector<8x64xbf16>, vector<8x8xf32> -> vector<8x8xf32>
    %cst_27 = arith.constant -1.000000e+30 : f32
    %77 = vector.broadcast %cst_27 : f32 to vector<8x8xf32>
    %78 = arith.select %43, %76, %77 : vector<8x8xi1>, vector<8x8xf32>
    %cst_28 = arith.constant dense<0xFF800000> : vector<8xf32>
    %79 = vector.multi_reduction <maximumf>, %78, %cst_28 [1] : vector<8x8xf32> to vector<8xf32>
    %80 = vector.shape_cast %79 : vector<8xf32> to vector<8x1xf32>
    %81 = vector.broadcast %80 : vector<8x1xf32> to vector<8x8xf32>
    %82 = arith.subf %78, %81 : vector<8x8xf32>
    %83 = math.exp %82 : vector<8x8xf32>
    %cst_29 = arith.constant dense<0.000000e+00> : vector<8xf32>
    %84 = vector.multi_reduction <add>, %83, %cst_29 [1] : vector<8x8xf32> to vector<8xf32>
    %85 = vector.shape_cast %84 : vector<8xf32> to vector<8x1xf32>
    %86 = tpu.reciprocal %85 {approx = true} : vector<8x1xf32> -> vector<8x1xf32>
    %87 = vector.broadcast %86 : vector<8x1xf32> to vector<8x8xf32>
    %88 = arith.mulf %83, %87 : vector<8x8xf32>
    %89 = arith.truncf %88 : vector<8x8xf32> to vector<8x8xbf16>
    %cst_30 = arith.constant dense<0.000000e+00> : vector<8x64xf32>
    %90 = tpu.matmul %89, %75, %cst_30 {dimension_numbers = #tpu.dot_dimension_numbers<[1], [0], [0], [1], [0, 0, 1, 1], [], []>} : vector<8x8xbf16>, vector<8x64xbf16>, vector<8x64xf32> -> vector<8x64xf32>
    %91 = vector.extract_strided_slice %46 {offsets = [0, 128], sizes = [8, 64], strides = [1, 1]} : vector<8x384xf32> to vector<8x64xf32>
    %92 = arith.truncf %91 : vector<8x64xf32> to vector<8x64xbf16>
    %93 = vector.extract_strided_slice %47 {offsets = [0, 128], sizes = [8, 64], strides = [1, 1]} : vector<8x384xf32> to vector<8x64xf32>
    %94 = arith.truncf %93 : vector<8x64xf32> to vector<8x64xbf16>
    %95 = vector.extract_strided_slice %48 {offsets = [0, 128], sizes = [8, 64], strides = [1, 1]} : vector<8x384xf32> to vector<8x64xf32>
    %96 = arith.truncf %95 : vector<8x64xf32> to vector<8x64xbf16>
    %cst_31 = arith.constant dense<0.000000e+00> : vector<8x8xf32>
    %97 = tpu.matmul %92, %94, %cst_31 {dimension_numbers = #tpu.dot_dimension_numbers<[1], [1], [0], [0], [0, 0, 1, 0], [], []>} : vector<8x64xbf16>, vector<8x64xbf16>, vector<8x8xf32> -> vector<8x8xf32>
    %cst_32 = arith.constant -1.000000e+30 : f32
    %98 = vector.broadcast %cst_32 : f32 to vector<8x8xf32>
    %99 = arith.select %43, %97, %98 : vector<8x8xi1>, vector<8x8xf32>
    %cst_33 = arith.constant dense<0xFF800000> : vector<8xf32>
    %100 = vector.multi_reduction <maximumf>, %99, %cst_33 [1] : vector<8x8xf32> to vector<8xf32>
    %101 = vector.shape_cast %100 : vector<8xf32> to vector<8x1xf32>
    %102 = vector.broadcast %101 : vector<8x1xf32> to vector<8x8xf32>
    %103 = arith.subf %99, %102 : vector<8x8xf32>
    %104 = math.exp %103 : vector<8x8xf32>
    %cst_34 = arith.constant dense<0.000000e+00> : vector<8xf32>
    %105 = vector.multi_reduction <add>, %104, %cst_34 [1] : vector<8x8xf32> to vector<8xf32>
    %106 = vector.shape_cast %105 : vector<8xf32> to vector<8x1xf32>
    %107 = tpu.reciprocal %106 {approx = true} : vector<8x1xf32> -> vector<8x1xf32>
    %108 = vector.broadcast %107 : vector<8x1xf32> to vector<8x8xf32>
    %109 = arith.mulf %104, %108 : vector<8x8xf32>
    %110 = arith.truncf %109 : vector<8x8xf32> to vector<8x8xbf16>
    %cst_35 = arith.constant dense<0.000000e+00> : vector<8x64xf32>
    %111 = tpu.matmul %110, %96, %cst_35 {dimension_numbers = #tpu.dot_dimension_numbers<[1], [0], [0], [1], [0, 0, 1, 1], [], []>} : vector<8x8xbf16>, vector<8x64xbf16>, vector<8x64xf32> -> vector<8x64xf32>
    %112 = vector.extract_strided_slice %46 {offsets = [0, 192], sizes = [8, 64], strides = [1, 1]} : vector<8x384xf32> to vector<8x64xf32>
    %113 = arith.truncf %112 : vector<8x64xf32> to vector<8x64xbf16>
    %114 = vector.extract_strided_slice %47 {offsets = [0, 192], sizes = [8, 64], strides = [1, 1]} : vector<8x384xf32> to vector<8x64xf32>
    %115 = arith.truncf %114 : vector<8x64xf32> to vector<8x64xbf16>
    %116 = vector.extract_strided_slice %48 {offsets = [0, 192], sizes = [8, 64], strides = [1, 1]} : vector<8x384xf32> to vector<8x64xf32>
    %117 = arith.truncf %116 : vector<8x64xf32> to vector<8x64xbf16>
    %cst_36 = arith.constant dense<0.000000e+00> : vector<8x8xf32>
    %118 = tpu.matmul %113, %115, %cst_36 {dimension_numbers = #tpu.dot_dimension_numbers<[1], [1], [0], [0], [0, 0, 1, 0], [], []>} : vector<8x64xbf16>, vector<8x64xbf16>, vector<8x8xf32> -> vector<8x8xf32>
    %cst_37 = arith.constant -1.000000e+30 : f32
    %119 = vector.broadcast %cst_37 : f32 to vector<8x8xf32>
    %120 = arith.select %43, %118, %119 : vector<8x8xi1>, vector<8x8xf32>
    %cst_38 = arith.constant dense<0xFF800000> : vector<8xf32>
    %121 = vector.multi_reduction <maximumf>, %120, %cst_38 [1] : vector<8x8xf32> to vector<8xf32>
    %122 = vector.shape_cast %121 : vector<8xf32> to vector<8x1xf32>
    %123 = vector.broadcast %122 : vector<8x1xf32> to vector<8x8xf32>
    %124 = arith.subf %120, %123 : vector<8x8xf32>
    %125 = math.exp %124 : vector<8x8xf32>
    %cst_39 = arith.constant dense<0.000000e+00> : vector<8xf32>
    %126 = vector.multi_reduction <add>, %125, %cst_39 [1] : vector<8x8xf32> to vector<8xf32>
    %127 = vector.shape_cast %126 : vector<8xf32> to vector<8x1xf32>
    %128 = tpu.reciprocal %127 {approx = true} : vector<8x1xf32> -> vector<8x1xf32>
    %129 = vector.broadcast %128 : vector<8x1xf32> to vector<8x8xf32>
    %130 = arith.mulf %125, %129 : vector<8x8xf32>
    %131 = arith.truncf %130 : vector<8x8xf32> to vector<8x8xbf16>
    %cst_40 = arith.constant dense<0.000000e+00> : vector<8x64xf32>
    %132 = tpu.matmul %131, %117, %cst_40 {dimension_numbers = #tpu.dot_dimension_numbers<[1], [0], [0], [1], [0, 0, 1, 1], [], []>} : vector<8x8xbf16>, vector<8x64xbf16>, vector<8x64xf32> -> vector<8x64xf32>
    %133 = vector.extract_strided_slice %46 {offsets = [0, 256], sizes = [8, 64], strides = [1, 1]} : vector<8x384xf32> to vector<8x64xf32>
    %134 = arith.truncf %133 : vector<8x64xf32> to vector<8x64xbf16>
    %135 = vector.extract_strided_slice %47 {offsets = [0, 256], sizes = [8, 64], strides = [1, 1]} : vector<8x384xf32> to vector<8x64xf32>
    %136 = arith.truncf %135 : vector<8x64xf32> to vector<8x64xbf16>
    %137 = vector.extract_strided_slice %48 {offsets = [0, 256], sizes = [8, 64], strides = [1, 1]} : vector<8x384xf32> to vector<8x64xf32>
    %138 = arith.truncf %137 : vector<8x64xf32> to vector<8x64xbf16>
    %cst_41 = arith.constant dense<0.000000e+00> : vector<8x8xf32>
    %139 = tpu.matmul %134, %136, %cst_41 {dimension_numbers = #tpu.dot_dimension_numbers<[1], [1], [0], [0], [0, 0, 1, 0], [], []>} : vector<8x64xbf16>, vector<8x64xbf16>, vector<8x8xf32> -> vector<8x8xf32>
    %cst_42 = arith.constant -1.000000e+30 : f32
    %140 = vector.broadcast %cst_42 : f32 to vector<8x8xf32>
    %141 = arith.select %43, %139, %140 : vector<8x8xi1>, vector<8x8xf32>
    %cst_43 = arith.constant dense<0xFF800000> : vector<8xf32>
    %142 = vector.multi_reduction <maximumf>, %141, %cst_43 [1] : vector<8x8xf32> to vector<8xf32>
    %143 = vector.shape_cast %142 : vector<8xf32> to vector<8x1xf32>
    %144 = vector.broadcast %143 : vector<8x1xf32> to vector<8x8xf32>
    %145 = arith.subf %141, %144 : vector<8x8xf32>
    %146 = math.exp %145 : vector<8x8xf32>
    %cst_44 = arith.constant dense<0.000000e+00> : vector<8xf32>
    %147 = vector.multi_reduction <add>, %146, %cst_44 [1] : vector<8x8xf32> to vector<8xf32>
    %148 = vector.shape_cast %147 : vector<8xf32> to vector<8x1xf32>
    %149 = tpu.reciprocal %148 {approx = true} : vector<8x1xf32> -> vector<8x1xf32>
    %150 = vector.broadcast %149 : vector<8x1xf32> to vector<8x8xf32>
    %151 = arith.mulf %146, %150 : vector<8x8xf32>
    %152 = arith.truncf %151 : vector<8x8xf32> to vector<8x8xbf16>
    %cst_45 = arith.constant dense<0.000000e+00> : vector<8x64xf32>
    %153 = tpu.matmul %152, %138, %cst_45 {dimension_numbers = #tpu.dot_dimension_numbers<[1], [0], [0], [1], [0, 0, 1, 1], [], []>} : vector<8x8xbf16>, vector<8x64xbf16>, vector<8x64xf32> -> vector<8x64xf32>
    %154 = vector.extract_strided_slice %46 {offsets = [0, 320], sizes = [8, 64], strides = [1, 1]} : vector<8x384xf32> to vector<8x64xf32>
    %155 = arith.truncf %154 : vector<8x64xf32> to vector<8x64xbf16>
    %156 = vector.extract_strided_slice %47 {offsets = [0, 320], sizes = [8, 64], strides = [1, 1]} : vector<8x384xf32> to vector<8x64xf32>
    %157 = arith.truncf %156 : vector<8x64xf32> to vector<8x64xbf16>
    %158 = vector.extract_strided_slice %48 {offsets = [0, 320], sizes = [8, 64], strides = [1, 1]} : vector<8x384xf32> to vector<8x64xf32>
    %159 = arith.truncf %158 : vector<8x64xf32> to vector<8x64xbf16>
    %cst_46 = arith.constant dense<0.000000e+00> : vector<8x8xf32>
    %160 = tpu.matmul %155, %157, %cst_46 {dimension_numbers = #tpu.dot_dimension_numbers<[1], [1], [0], [0], [0, 0, 1, 0], [], []>} : vector<8x64xbf16>, vector<8x64xbf16>, vector<8x8xf32> -> vector<8x8xf32>
    %cst_47 = arith.constant -1.000000e+30 : f32
    %161 = vector.broadcast %cst_47 : f32 to vector<8x8xf32>
    %162 = arith.select %43, %160, %161 : vector<8x8xi1>, vector<8x8xf32>
    %cst_48 = arith.constant dense<0xFF800000> : vector<8xf32>
    %163 = vector.multi_reduction <maximumf>, %162, %cst_48 [1] : vector<8x8xf32> to vector<8xf32>
    %164 = vector.shape_cast %163 : vector<8xf32> to vector<8x1xf32>
    %165 = vector.broadcast %164 : vector<8x1xf32> to vector<8x8xf32>
    %166 = arith.subf %162, %165 : vector<8x8xf32>
    %167 = math.exp %166 : vector<8x8xf32>
    %cst_49 = arith.constant dense<0.000000e+00> : vector<8xf32>
    %168 = vector.multi_reduction <add>, %167, %cst_49 [1] : vector<8x8xf32> to vector<8xf32>
    %169 = vector.shape_cast %168 : vector<8xf32> to vector<8x1xf32>
    %170 = tpu.reciprocal %169 {approx = true} : vector<8x1xf32> -> vector<8x1xf32>
    %171 = vector.broadcast %170 : vector<8x1xf32> to vector<8x8xf32>
    %172 = arith.mulf %167, %171 : vector<8x8xf32>
    %173 = arith.truncf %172 : vector<8x8xf32> to vector<8x8xbf16>
    %cst_50 = arith.constant dense<0.000000e+00> : vector<8x64xf32>
    %174 = tpu.matmul %173, %159, %cst_50 {dimension_numbers = #tpu.dot_dimension_numbers<[1], [0], [0], [1], [0, 0, 1, 1], [], []>} : vector<8x8xbf16>, vector<8x64xbf16>, vector<8x64xf32> -> vector<8x64xf32>
    %175 = tpu.concatenate %69, %90, %111, %132, %153, %174 in 1 : vector<8x64xf32>, vector<8x64xf32>, vector<8x64xf32>, vector<8x64xf32>, vector<8x64xf32>, vector<8x64xf32> -> vector<8x384xf32>
    %176 = vector.extract_strided_slice %40 {offsets = [8, 0], sizes = [8, 384], strides = [1, 1]} : vector<16x1152xf32> to vector<8x384xf32>
    %cst_51 = arith.constant 1.250000e-01 : f32
    %177 = vector.broadcast %cst_51 : f32 to vector<8x384xf32>
    %178 = arith.mulf %176, %177 : vector<8x384xf32>
    %179 = vector.extract_strided_slice %40 {offsets = [8, 384], sizes = [8, 384], strides = [1, 1]} : vector<16x1152xf32> to vector<8x384xf32>
    %180 = vector.extract_strided_slice %40 {offsets = [8, 768], sizes = [8, 384], strides = [1, 1]} : vector<16x1152xf32> to vector<8x384xf32>
    %181 = vector.extract_strided_slice %178 {offsets = [0, 0], sizes = [8, 64], strides = [1, 1]} : vector<8x384xf32> to vector<8x64xf32>
    %182 = arith.truncf %181 : vector<8x64xf32> to vector<8x64xbf16>
    %183 = vector.extract_strided_slice %179 {offsets = [0, 0], sizes = [8, 64], strides = [1, 1]} : vector<8x384xf32> to vector<8x64xf32>
    %184 = arith.truncf %183 : vector<8x64xf32> to vector<8x64xbf16>
    %185 = vector.extract_strided_slice %180 {offsets = [0, 0], sizes = [8, 64], strides = [1, 1]} : vector<8x384xf32> to vector<8x64xf32>
    %186 = arith.truncf %185 : vector<8x64xf32> to vector<8x64xbf16>
    %cst_52 = arith.constant dense<0.000000e+00> : vector<8x8xf32>
    %187 = tpu.matmul %182, %184, %cst_52 {dimension_numbers = #tpu.dot_dimension_numbers<[1], [1], [0], [0], [0, 0, 1, 0], [], []>} : vector<8x64xbf16>, vector<8x64xbf16>, vector<8x8xf32> -> vector<8x8xf32>
    %cst_53 = arith.constant -1.000000e+30 : f32
    %188 = vector.broadcast %cst_53 : f32 to vector<8x8xf32>
    %189 = arith.select %43, %187, %188 : vector<8x8xi1>, vector<8x8xf32>
    %cst_54 = arith.constant dense<0xFF800000> : vector<8xf32>
    %190 = vector.multi_reduction <maximumf>, %189, %cst_54 [1] : vector<8x8xf32> to vector<8xf32>
    %191 = vector.shape_cast %190 : vector<8xf32> to vector<8x1xf32>
    %192 = vector.broadcast %191 : vector<8x1xf32> to vector<8x8xf32>
    %193 = arith.subf %189, %192 : vector<8x8xf32>
    %194 = math.exp %193 : vector<8x8xf32>
    %cst_55 = arith.constant dense<0.000000e+00> : vector<8xf32>
    %195 = vector.multi_reduction <add>, %194, %cst_55 [1] : vector<8x8xf32> to vector<8xf32>
    %196 = vector.shape_cast %195 : vector<8xf32> to vector<8x1xf32>
    %197 = tpu.reciprocal %196 {approx = true} : vector<8x1xf32> -> vector<8x1xf32>
    %198 = vector.broadcast %197 : vector<8x1xf32> to vector<8x8xf32>
    %199 = arith.mulf %194, %198 : vector<8x8xf32>
    %200 = arith.truncf %199 : vector<8x8xf32> to vector<8x8xbf16>
    %cst_56 = arith.constant dense<0.000000e+00> : vector<8x64xf32>
    %201 = tpu.matmul %200, %186, %cst_56 {dimension_numbers = #tpu.dot_dimension_numbers<[1], [0], [0], [1], [0, 0, 1, 1], [], []>} : vector<8x8xbf16>, vector<8x64xbf16>, vector<8x64xf32> -> vector<8x64xf32>
    %202 = vector.extract_strided_slice %178 {offsets = [0, 64], sizes = [8, 64], strides = [1, 1]} : vector<8x384xf32> to vector<8x64xf32>
    %203 = arith.truncf %202 : vector<8x64xf32> to vector<8x64xbf16>
    %204 = vector.extract_strided_slice %179 {offsets = [0, 64], sizes = [8, 64], strides = [1, 1]} : vector<8x384xf32> to vector<8x64xf32>
    %205 = arith.truncf %204 : vector<8x64xf32> to vector<8x64xbf16>
    %206 = vector.extract_strided_slice %180 {offsets = [0, 64], sizes = [8, 64], strides = [1, 1]} : vector<8x384xf32> to vector<8x64xf32>
    %207 = arith.truncf %206 : vector<8x64xf32> to vector<8x64xbf16>
    %cst_57 = arith.constant dense<0.000000e+00> : vector<8x8xf32>
    %208 = tpu.matmul %203, %205, %cst_57 {dimension_numbers = #tpu.dot_dimension_numbers<[1], [1], [0], [0], [0, 0, 1, 0], [], []>} : vector<8x64xbf16>, vector<8x64xbf16>, vector<8x8xf32> -> vector<8x8xf32>
    %cst_58 = arith.constant -1.000000e+30 : f32
    %209 = vector.broadcast %cst_58 : f32 to vector<8x8xf32>
    %210 = arith.select %43, %208, %209 : vector<8x8xi1>, vector<8x8xf32>
    %cst_59 = arith.constant dense<0xFF800000> : vector<8xf32>
    %211 = vector.multi_reduction <maximumf>, %210, %cst_59 [1] : vector<8x8xf32> to vector<8xf32>
    %212 = vector.shape_cast %211 : vector<8xf32> to vector<8x1xf32>
    %213 = vector.broadcast %212 : vector<8x1xf32> to vector<8x8xf32>
    %214 = arith.subf %210, %213 : vector<8x8xf32>
    %215 = math.exp %214 : vector<8x8xf32>
    %cst_60 = arith.constant dense<0.000000e+00> : vector<8xf32>
    %216 = vector.multi_reduction <add>, %215, %cst_60 [1] : vector<8x8xf32> to vector<8xf32>
    %217 = vector.shape_cast %216 : vector<8xf32> to vector<8x1xf32>
    %218 = tpu.reciprocal %217 {approx = true} : vector<8x1xf32> -> vector<8x1xf32>
    %219 = vector.broadcast %218 : vector<8x1xf32> to vector<8x8xf32>
    %220 = arith.mulf %215, %219 : vector<8x8xf32>
    %221 = arith.truncf %220 : vector<8x8xf32> to vector<8x8xbf16>
    %cst_61 = arith.constant dense<0.000000e+00> : vector<8x64xf32>
    %222 = tpu.matmul %221, %207, %cst_61 {dimension_numbers = #tpu.dot_dimension_numbers<[1], [0], [0], [1], [0, 0, 1, 1], [], []>} : vector<8x8xbf16>, vector<8x64xbf16>, vector<8x64xf32> -> vector<8x64xf32>
    %223 = vector.extract_strided_slice %178 {offsets = [0, 128], sizes = [8, 64], strides = [1, 1]} : vector<8x384xf32> to vector<8x64xf32>
    %224 = arith.truncf %223 : vector<8x64xf32> to vector<8x64xbf16>
    %225 = vector.extract_strided_slice %179 {offsets = [0, 128], sizes = [8, 64], strides = [1, 1]} : vector<8x384xf32> to vector<8x64xf32>
    %226 = arith.truncf %225 : vector<8x64xf32> to vector<8x64xbf16>
    %227 = vector.extract_strided_slice %180 {offsets = [0, 128], sizes = [8, 64], strides = [1, 1]} : vector<8x384xf32> to vector<8x64xf32>
    %228 = arith.truncf %227 : vector<8x64xf32> to vector<8x64xbf16>
    %cst_62 = arith.constant dense<0.000000e+00> : vector<8x8xf32>
    %229 = tpu.matmul %224, %226, %cst_62 {dimension_numbers = #tpu.dot_dimension_numbers<[1], [1], [0], [0], [0, 0, 1, 0], [], []>} : vector<8x64xbf16>, vector<8x64xbf16>, vector<8x8xf32> -> vector<8x8xf32>
    %cst_63 = arith.constant -1.000000e+30 : f32
    %230 = vector.broadcast %cst_63 : f32 to vector<8x8xf32>
    %231 = arith.select %43, %229, %230 : vector<8x8xi1>, vector<8x8xf32>
    %cst_64 = arith.constant dense<0xFF800000> : vector<8xf32>
    %232 = vector.multi_reduction <maximumf>, %231, %cst_64 [1] : vector<8x8xf32> to vector<8xf32>
    %233 = vector.shape_cast %232 : vector<8xf32> to vector<8x1xf32>
    %234 = vector.broadcast %233 : vector<8x1xf32> to vector<8x8xf32>
    %235 = arith.subf %231, %234 : vector<8x8xf32>
    %236 = math.exp %235 : vector<8x8xf32>
    %cst_65 = arith.constant dense<0.000000e+00> : vector<8xf32>
    %237 = vector.multi_reduction <add>, %236, %cst_65 [1] : vector<8x8xf32> to vector<8xf32>
    %238 = vector.shape_cast %237 : vector<8xf32> to vector<8x1xf32>
    %239 = tpu.reciprocal %238 {approx = true} : vector<8x1xf32> -> vector<8x1xf32>
    %240 = vector.broadcast %239 : vector<8x1xf32> to vector<8x8xf32>
    %241 = arith.mulf %236, %240 : vector<8x8xf32>
    %242 = arith.truncf %241 : vector<8x8xf32> to vector<8x8xbf16>
    %cst_66 = arith.constant dense<0.000000e+00> : vector<8x64xf32>
    %243 = tpu.matmul %242, %228, %cst_66 {dimension_numbers = #tpu.dot_dimension_numbers<[1], [0], [0], [1], [0, 0, 1, 1], [], []>} : vector<8x8xbf16>, vector<8x64xbf16>, vector<8x64xf32> -> vector<8x64xf32>
    %244 = vector.extract_strided_slice %178 {offsets = [0, 192], sizes = [8, 64], strides = [1, 1]} : vector<8x384xf32> to vector<8x64xf32>
    %245 = arith.truncf %244 : vector<8x64xf32> to vector<8x64xbf16>
    %246 = vector.extract_strided_slice %179 {offsets = [0, 192], sizes = [8, 64], strides = [1, 1]} : vector<8x384xf32> to vector<8x64xf32>
    %247 = arith.truncf %246 : vector<8x64xf32> to vector<8x64xbf16>
    %248 = vector.extract_strided_slice %180 {offsets = [0, 192], sizes = [8, 64], strides = [1, 1]} : vector<8x384xf32> to vector<8x64xf32>
    %249 = arith.truncf %248 : vector<8x64xf32> to vector<8x64xbf16>
    %cst_67 = arith.constant dense<0.000000e+00> : vector<8x8xf32>
    %250 = tpu.matmul %245, %247, %cst_67 {dimension_numbers = #tpu.dot_dimension_numbers<[1], [1], [0], [0], [0, 0, 1, 0], [], []>} : vector<8x64xbf16>, vector<8x64xbf16>, vector<8x8xf32> -> vector<8x8xf32>
    %cst_68 = arith.constant -1.000000e+30 : f32
    %251 = vector.broadcast %cst_68 : f32 to vector<8x8xf32>
    %252 = arith.select %43, %250, %251 : vector<8x8xi1>, vector<8x8xf32>
    %cst_69 = arith.constant dense<0xFF800000> : vector<8xf32>
    %253 = vector.multi_reduction <maximumf>, %252, %cst_69 [1] : vector<8x8xf32> to vector<8xf32>
    %254 = vector.shape_cast %253 : vector<8xf32> to vector<8x1xf32>
    %255 = vector.broadcast %254 : vector<8x1xf32> to vector<8x8xf32>
    %256 = arith.subf %252, %255 : vector<8x8xf32>
    %257 = math.exp %256 : vector<8x8xf32>
    %cst_70 = arith.constant dense<0.000000e+00> : vector<8xf32>
    %258 = vector.multi_reduction <add>, %257, %cst_70 [1] : vector<8x8xf32> to vector<8xf32>
    %259 = vector.shape_cast %258 : vector<8xf32> to vector<8x1xf32>
    %260 = tpu.reciprocal %259 {approx = true} : vector<8x1xf32> -> vector<8x1xf32>
    %261 = vector.broadcast %260 : vector<8x1xf32> to vector<8x8xf32>
    %262 = arith.mulf %257, %261 : vector<8x8xf32>
    %263 = arith.truncf %262 : vector<8x8xf32> to vector<8x8xbf16>
    %cst_71 = arith.constant dense<0.000000e+00> : vector<8x64xf32>
    %264 = tpu.matmul %263, %249, %cst_71 {dimension_numbers = #tpu.dot_dimension_numbers<[1], [0], [0], [1], [0, 0, 1, 1], [], []>} : vector<8x8xbf16>, vector<8x64xbf16>, vector<8x64xf32> -> vector<8x64xf32>
    %265 = vector.extract_strided_slice %178 {offsets = [0, 256], sizes = [8, 64], strides = [1, 1]} : vector<8x384xf32> to vector<8x64xf32>
    %266 = arith.truncf %265 : vector<8x64xf32> to vector<8x64xbf16>
    %267 = vector.extract_strided_slice %179 {offsets = [0, 256], sizes = [8, 64], strides = [1, 1]} : vector<8x384xf32> to vector<8x64xf32>
    %268 = arith.truncf %267 : vector<8x64xf32> to vector<8x64xbf16>
    %269 = vector.extract_strided_slice %180 {offsets = [0, 256], sizes = [8, 64], strides = [1, 1]} : vector<8x384xf32> to vector<8x64xf32>
    %270 = arith.truncf %269 : vector<8x64xf32> to vector<8x64xbf16>
    %cst_72 = arith.constant dense<0.000000e+00> : vector<8x8xf32>
    %271 = tpu.matmul %266, %268, %cst_72 {dimension_numbers = #tpu.dot_dimension_numbers<[1], [1], [0], [0], [0, 0, 1, 0], [], []>} : vector<8x64xbf16>, vector<8x64xbf16>, vector<8x8xf32> -> vector<8x8xf32>
    %cst_73 = arith.constant -1.000000e+30 : f32
    %272 = vector.broadcast %cst_73 : f32 to vector<8x8xf32>
    %273 = arith.select %43, %271, %272 : vector<8x8xi1>, vector<8x8xf32>
    %cst_74 = arith.constant dense<0xFF800000> : vector<8xf32>
    %274 = vector.multi_reduction <maximumf>, %273, %cst_74 [1] : vector<8x8xf32> to vector<8xf32>
    %275 = vector.shape_cast %274 : vector<8xf32> to vector<8x1xf32>
    %276 = vector.broadcast %275 : vector<8x1xf32> to vector<8x8xf32>
    %277 = arith.subf %273, %276 : vector<8x8xf32>
    %278 = math.exp %277 : vector<8x8xf32>
    %cst_75 = arith.constant dense<0.000000e+00> : vector<8xf32>
    %279 = vector.multi_reduction <add>, %278, %cst_75 [1] : vector<8x8xf32> to vector<8xf32>
    %280 = vector.shape_cast %279 : vector<8xf32> to vector<8x1xf32>
    %281 = tpu.reciprocal %280 {approx = true} : vector<8x1xf32> -> vector<8x1xf32>
    %282 = vector.broadcast %281 : vector<8x1xf32> to vector<8x8xf32>
    %283 = arith.mulf %278, %282 : vector<8x8xf32>
    %284 = arith.truncf %283 : vector<8x8xf32> to vector<8x8xbf16>
    %cst_76 = arith.constant dense<0.000000e+00> : vector<8x64xf32>
    %285 = tpu.matmul %284, %270, %cst_76 {dimension_numbers = #tpu.dot_dimension_numbers<[1], [0], [0], [1], [0, 0, 1, 1], [], []>} : vector<8x8xbf16>, vector<8x64xbf16>, vector<8x64xf32> -> vector<8x64xf32>
    %286 = vector.extract_strided_slice %178 {offsets = [0, 320], sizes = [8, 64], strides = [1, 1]} : vector<8x384xf32> to vector<8x64xf32>
    %287 = arith.truncf %286 : vector<8x64xf32> to vector<8x64xbf16>
    %288 = vector.extract_strided_slice %179 {offsets = [0, 320], sizes = [8, 64], strides = [1, 1]} : vector<8x384xf32> to vector<8x64xf32>
    %289 = arith.truncf %288 : vector<8x64xf32> to vector<8x64xbf16>
    %290 = vector.extract_strided_slice %180 {offsets = [0, 320], sizes = [8, 64], strides = [1, 1]} : vector<8x384xf32> to vector<8x64xf32>
    %291 = arith.truncf %290 : vector<8x64xf32> to vector<8x64xbf16>
    %cst_77 = arith.constant dense<0.000000e+00> : vector<8x8xf32>
    %292 = tpu.matmul %287, %289, %cst_77 {dimension_numbers = #tpu.dot_dimension_numbers<[1], [1], [0], [0], [0, 0, 1, 0], [], []>} : vector<8x64xbf16>, vector<8x64xbf16>, vector<8x8xf32> -> vector<8x8xf32>
    %cst_78 = arith.constant -1.000000e+30 : f32
    %293 = vector.broadcast %cst_78 : f32 to vector<8x8xf32>
    %294 = arith.select %43, %292, %293 : vector<8x8xi1>, vector<8x8xf32>
    %cst_79 = arith.constant dense<0xFF800000> : vector<8xf32>
    %295 = vector.multi_reduction <maximumf>, %294, %cst_79 [1] : vector<8x8xf32> to vector<8xf32>
    %296 = vector.shape_cast %295 : vector<8xf32> to vector<8x1xf32>
    %297 = vector.broadcast %296 : vector<8x1xf32> to vector<8x8xf32>
    %298 = arith.subf %294, %297 : vector<8x8xf32>
    %299 = math.exp %298 : vector<8x8xf32>
    %cst_80 = arith.constant dense<0.000000e+00> : vector<8xf32>
    %300 = vector.multi_reduction <add>, %299, %cst_80 [1] : vector<8x8xf32> to vector<8xf32>
    %301 = vector.shape_cast %300 : vector<8xf32> to vector<8x1xf32>
    %302 = tpu.reciprocal %301 {approx = true} : vector<8x1xf32> -> vector<8x1xf32>
    %303 = vector.broadcast %302 : vector<8x1xf32> to vector<8x8xf32>
    %304 = arith.mulf %299, %303 : vector<8x8xf32>
    %305 = arith.truncf %304 : vector<8x8xf32> to vector<8x8xbf16>
    %cst_81 = arith.constant dense<0.000000e+00> : vector<8x64xf32>
    %306 = tpu.matmul %305, %291, %cst_81 {dimension_numbers = #tpu.dot_dimension_numbers<[1], [0], [0], [1], [0, 0, 1, 1], [], []>} : vector<8x8xbf16>, vector<8x64xbf16>, vector<8x64xf32> -> vector<8x64xf32>
    %307 = tpu.concatenate %201, %222, %243, %264, %285, %306 in 1 : vector<8x64xf32>, vector<8x64xf32>, vector<8x64xf32>, vector<8x64xf32>, vector<8x64xf32>, vector<8x64xf32> -> vector<8x384xf32>
    %308 = tpu.concatenate %175, %307 in 0 : vector<8x384xf32>, vector<8x384xf32> -> vector<16x384xf32>
    %309 = arith.truncf %308 : vector<16x384xf32> to vector<16x384xbf16>
    %c0_82 = arith.constant 0 : index
    %c0_83 = arith.constant 0 : index
    %c0_84 = arith.constant 0 : index
    %310 = vector.load %arg6[%c0_82, %c0_83, %c0_84] : memref<1x384x384xbf16, #tpu.memory_space<vmem>>, vector<1x384x384xbf16>
    %311 = vector.shape_cast %310 : vector<1x384x384xbf16> to vector<384x384xbf16>
    %cst_85 = arith.constant dense<0.000000e+00> : vector<16x384xf32>
    %312 = tpu.matmul %309, %311, %cst_85 {dimension_numbers = #tpu.dot_dimension_numbers<[1], [0], [0], [1], [0, 0, 1, 1], [], []>} : vector<16x384xbf16>, vector<384x384xbf16>, vector<16x384xf32> -> vector<16x384xf32>
    %c0_86 = arith.constant 0 : index
    %c0_87 = arith.constant 0 : index
    %c0_88 = arith.constant 0 : index
    %313 = vector.load %arg7[%c0_86, %c0_87, %c0_88] : memref<1x1x384xf32, #tpu.memory_space<vmem>>, vector<1x1x384xf32>
    %314 = vector.shape_cast %313 : vector<1x1x384xf32> to vector<1x384xf32>
    %315 = vector.broadcast %314 : vector<1x384xf32> to vector<16x384xf32>
    %316 = arith.addf %312, %315 : vector<16x384xf32>
    %c0_89 = arith.constant 0 : index
    %c0_90 = arith.constant 0 : index
    %c0_91 = arith.constant 0 : index
    %317 = vector.load %arg8[%c0_89, %c0_90, %c0_91] : memref<1x1x384xf32, #tpu.memory_space<vmem>>, vector<1x1x384xf32>
    %318 = vector.shape_cast %317 : vector<1x1x384xf32> to vector<1x384xf32>
    %319 = vector.shape_cast %316 : vector<16x384xf32> to vector<2x8x384xf32>
    %320 = vector.shape_cast %318 : vector<1x384xf32> to vector<1x1x384xf32>
    %321 = vector.broadcast %320 : vector<1x1x384xf32> to vector<2x8x384xf32>
    %322 = arith.mulf %321, %319 : vector<2x8x384xf32>
    %323 = arith.addf %3, %322 : vector<2x8x384xf32>
    %c0_92 = arith.constant 0 : index
    %c0_93 = arith.constant 0 : index
    %c0_94 = arith.constant 0 : index
    %324 = vector.load %arg9[%c0_92, %c0_93, %c0_94] : memref<1x1x384xf32, #tpu.memory_space<vmem>>, vector<1x1x384xf32>
    %325 = vector.shape_cast %324 : vector<1x1x384xf32> to vector<1x384xf32>
    %c0_95 = arith.constant 0 : index
    %c0_96 = arith.constant 0 : index
    %c0_97 = arith.constant 0 : index
    %326 = vector.load %arg10[%c0_95, %c0_96, %c0_97] : memref<1x1x384xf32, #tpu.memory_space<vmem>>, vector<1x1x384xf32>
    %327 = vector.shape_cast %326 : vector<1x1x384xf32> to vector<1x384xf32>
    %cst_98 = arith.constant dense<0.000000e+00> : vector<2x8xf32>
    %328 = vector.multi_reduction <add>, %323, %cst_98 [2] : vector<2x8x384xf32> to vector<2x8xf32>
    %329 = vector.shape_cast %328 : vector<2x8xf32> to vector<2x8x1xf32>
    %cst_99 = arith.constant 3.840000e+02 : f32
    %330 = vector.broadcast %cst_99 : f32 to vector<2x8x1xf32>
    %331 = arith.divf %329, %330 : vector<2x8x1xf32>
    %332 = vector.broadcast %331 : vector<2x8x1xf32> to vector<2x8x384xf32>
    %333 = arith.subf %323, %332 : vector<2x8x384xf32>
    %334 = arith.mulf %333, %333 : vector<2x8x384xf32>
    %cst_100 = arith.constant dense<0.000000e+00> : vector<2x8xf32>
    %335 = vector.multi_reduction <add>, %334, %cst_100 [2] : vector<2x8x384xf32> to vector<2x8xf32>
    %336 = vector.shape_cast %335 : vector<2x8xf32> to vector<2x8x1xf32>
    %cst_101 = arith.constant 3.840000e+02 : f32
    %337 = vector.broadcast %cst_101 : f32 to vector<2x8x1xf32>
    %338 = arith.divf %336, %337 : vector<2x8x1xf32>
    %339 = vector.broadcast %331 : vector<2x8x1xf32> to vector<2x8x384xf32>
    %340 = arith.subf %323, %339 : vector<2x8x384xf32>
    %cst_102 = arith.constant 9.99999997E-7 : f32
    %341 = vector.broadcast %cst_102 : f32 to vector<2x8x1xf32>
    %342 = arith.addf %338, %341 : vector<2x8x1xf32>
    %343 = math.rsqrt %342 : vector<2x8x1xf32>
    %344 = vector.broadcast %343 : vector<2x8x1xf32> to vector<2x8x384xf32>
    %345 = arith.mulf %340, %344 : vector<2x8x384xf32>
    %346 = vector.shape_cast %325 : vector<1x384xf32> to vector<1x1x384xf32>
    %347 = vector.broadcast %346 : vector<1x1x384xf32> to vector<2x8x384xf32>
    %348 = arith.mulf %345, %347 : vector<2x8x384xf32>
    %349 = vector.shape_cast %327 : vector<1x384xf32> to vector<1x1x384xf32>
    %350 = vector.broadcast %349 : vector<1x1x384xf32> to vector<2x8x384xf32>
    %351 = arith.addf %348, %350 : vector<2x8x384xf32>
    %352 = vector.shape_cast %351 : vector<2x8x384xf32> to vector<16x384xf32>
    %353 = arith.truncf %352 : vector<16x384xf32> to vector<16x384xbf16>
    %c0_103 = arith.constant 0 : index
    %c0_104 = arith.constant 0 : index
    %c0_105 = arith.constant 0 : index
    %354 = vector.load %arg11[%c0_103, %c0_104, %c0_105] : memref<1x384x1536xbf16, #tpu.memory_space<vmem>>, vector<1x384x1536xbf16>
    %355 = vector.shape_cast %354 : vector<1x384x1536xbf16> to vector<384x1536xbf16>
    %cst_106 = arith.constant dense<0.000000e+00> : vector<16x1536xf32>
    %356 = tpu.matmul %353, %355, %cst_106 {dimension_numbers = #tpu.dot_dimension_numbers<[1], [0], [0], [1], [0, 0, 1, 1], [], []>} : vector<16x384xbf16>, vector<384x1536xbf16>, vector<16x1536xf32> -> vector<16x1536xf32>
    %c0_107 = arith.constant 0 : index
    %c0_108 = arith.constant 0 : index
    %c0_109 = arith.constant 0 : index
    %357 = vector.load %arg12[%c0_107, %c0_108, %c0_109] : memref<1x1x1536xf32, #tpu.memory_space<vmem>>, vector<1x1x1536xf32>
    %358 = vector.shape_cast %357 : vector<1x1x1536xf32> to vector<1x1536xf32>
    %359 = vector.broadcast %358 : vector<1x1536xf32> to vector<16x1536xf32>
    %360 = arith.addf %356, %359 : vector<16x1536xf32>
    %cst_110 = arith.constant 5.000000e-01 : f32
    %361 = vector.broadcast %cst_110 : f32 to vector<16x1536xf32>
    %362 = arith.mulf %361, %360 : vector<16x1536xf32>
    %cst_111 = arith.constant 4.471500e-02 : f32
    %363 = vector.broadcast %cst_111 : f32 to vector<16x1536xf32>
    %364 = arith.mulf %363, %360 : vector<16x1536xf32>
    %365 = arith.mulf %364, %360 : vector<16x1536xf32>
    %366 = arith.mulf %365, %360 : vector<16x1536xf32>
    %367 = arith.addf %360, %366 : vector<16x1536xf32>
    %cst_112 = arith.constant 0.797884583 : f32
    %368 = vector.broadcast %cst_112 : f32 to vector<16x1536xf32>
    %369 = arith.mulf %368, %367 : vector<16x1536xf32>
    %370 = math.tanh %369 : vector<16x1536xf32>
    %cst_113 = arith.constant 1.000000e+00 : f32
    %371 = vector.broadcast %cst_113 : f32 to vector<16x1536xf32>
    %372 = arith.addf %371, %370 : vector<16x1536xf32>
    %373 = arith.mulf %362, %372 : vector<16x1536xf32>
    %374 = arith.truncf %373 : vector<16x1536xf32> to vector<16x1536xbf16>
    %c0_114 = arith.constant 0 : index
    %c0_115 = arith.constant 0 : index
    %c0_116 = arith.constant 0 : index
    %375 = vector.load %arg13[%c0_114, %c0_115, %c0_116] : memref<1x1536x384xbf16, #tpu.memory_space<vmem>>, vector<1x1536x384xbf16>
    %376 = vector.shape_cast %375 : vector<1x1536x384xbf16> to vector<1536x384xbf16>
    %cst_117 = arith.constant dense<0.000000e+00> : vector<16x384xf32>
    %377 = tpu.matmul %374, %376, %cst_117 {dimension_numbers = #tpu.dot_dimension_numbers<[1], [0], [0], [1], [0, 0, 1, 1], [], []>} : vector<16x1536xbf16>, vector<1536x384xbf16>, vector<16x384xf32> -> vector<16x384xf32>
    %c0_118 = arith.constant 0 : index
    %c0_119 = arith.constant 0 : index
    %c0_120 = arith.constant 0 : index
    %378 = vector.load %arg14[%c0_118, %c0_119, %c0_120] : memref<1x1x384xf32, #tpu.memory_space<vmem>>, vector<1x1x384xf32>
    %379 = vector.shape_cast %378 : vector<1x1x384xf32> to vector<1x384xf32>
    %380 = vector.broadcast %379 : vector<1x384xf32> to vector<16x384xf32>
    %381 = arith.addf %377, %380 : vector<16x384xf32>
    %c0_121 = arith.constant 0 : index
    %c0_122 = arith.constant 0 : index
    %c0_123 = arith.constant 0 : index
    %382 = vector.load %arg15[%c0_121, %c0_122, %c0_123] : memref<1x1x384xf32, #tpu.memory_space<vmem>>, vector<1x1x384xf32>
    %383 = vector.shape_cast %382 : vector<1x1x384xf32> to vector<1x384xf32>
    %384 = vector.shape_cast %381 : vector<16x384xf32> to vector<2x8x384xf32>
    %385 = vector.shape_cast %383 : vector<1x384xf32> to vector<1x1x384xf32>
    %386 = vector.broadcast %385 : vector<1x1x384xf32> to vector<2x8x384xf32>
    %387 = arith.mulf %386, %384 : vector<2x8x384xf32>
    %388 = arith.addf %323, %387 : vector<2x8x384xf32>
    %c0_124 = arith.constant 0 : index
    %c0_125 = arith.constant 0 : index
    %c0_126 = arith.constant 0 : index
    %389 = vector.load %arg17[%c0_124, %c0_125, %c0_126] : memref<2x8x384xf32, #tpu.memory_space<vmem>>, vector<2x8x384xf32>
    tpu.vector_store %arg17[%c0_124, %c0_125, %c0_126], %388 {strides = array<i32>} : memref<2x8x384xf32, #tpu.memory_space<vmem>>, vector<2x8x384xf32>,
    %390 = vector.extract_strided_slice %388 {offsets = [0, 0, 0], sizes = [2, 1, 384], strides = [1, 1, 1]} : vector<2x8x384xf32> to vector<2x1x384xf32>
    %c0_127 = arith.constant 0 : index
    %c0_128 = arith.constant 0 : index
    %c0_129 = arith.constant 0 : index
    %391 = vector.load %arg16[%c0_127, %c0_128, %c0_129] : memref<2x1x384xf32, #tpu.memory_space<vmem>>, vector<2x1x384xf32>
    tpu.vector_store %arg16[%c0_127, %c0_128, %c0_129], %390 {strides = array<i32>} : memref<2x1x384xf32, #tpu.memory_space<vmem>>, vector<2x1x384xf32>,
    return
  }
  func.func @transform_0(%arg0: i32) -> (i32, i32, i32) {
    %c0_i32 = arith.constant 0 : i32
    %c0_i32_0 = arith.constant 0 : i32
    %c0_i32_1 = arith.constant 0 : i32
    %c0_i32_2 = arith.constant 0 : i32
    return %c0_i32, %c0_i32_0, %c0_i32_1 : i32, i32, i32
  }
  func.func @transform_1(%arg0: i32) -> (i32, i32, i32) {
    %c0_i32 = arith.constant 0 : i32
    %c0_i32_0 = arith.constant 0 : i32
    %c0_i32_1 = arith.constant 0 : i32
    return %arg0, %c0_i32, %c0_i32_0 : i32, i32, i32
  }
  func.func @transform_2(%arg0: i32) -> (i32, i32, i32) {
    %c0_i32 = arith.constant 0 : i32
    %c0_i32_0 = arith.constant 0 : i32
    %c0_i32_1 = arith.constant 0 : i32
    return %arg0, %c0_i32, %c0_i32_0 : i32, i32, i32
  }
  func.func @transform_3(%arg0: i32) -> (i32, i32, i32) {
    %c0_i32 = arith.constant 0 : i32
    %c0_i32_0 = arith.constant 0 : i32
    %c0_i32_1 = arith.constant 0 : i32
    return %arg0, %c0_i32, %c0_i32_0 : i32, i32, i32
  }
  func.func @transform_4(%arg0: i32) -> (i32, i32, i32) {
    %c0_i32 = arith.constant 0 : i32
    %c0_i32_0 = arith.constant 0 : i32
    %c0_i32_1 = arith.constant 0 : i32
    return %arg0, %c0_i32, %c0_i32_0 : i32, i32, i32
  }
  func.func @transform_5(%arg0: i32) -> (i32, i32, i32) {
    %c0_i32 = arith.constant 0 : i32
    %c0_i32_0 = arith.constant 0 : i32
    %c0_i32_1 = arith.constant 0 : i32
    return %arg0, %c0_i32, %c0_i32_0 : i32, i32, i32
  }
  func.func @transform_6(%arg0: i32) -> (i32, i32, i32) {
    %c0_i32 = arith.constant 0 : i32
    %c0_i32_0 = arith.constant 0 : i32
    %c0_i32_1 = arith.constant 0 : i32
    return %arg0, %c0_i32, %c0_i32_0 : i32, i32, i32
  }
  func.func @transform_7(%arg0: i32) -> (i32, i32, i32) {
    %c0_i32 = arith.constant 0 : i32
    %c0_i32_0 = arith.constant 0 : i32
    %c0_i32_1 = arith.constant 0 : i32
    return %arg0, %c0_i32, %c0_i32_0 : i32, i32, i32
  }
  func.func @transform_8(%arg0: i32) -> (i32, i32, i32) {
    %c0_i32 = arith.constant 0 : i32
    %c0_i32_0 = arith.constant 0 : i32
    %c0_i32_1 = arith.constant 0 : i32
    return %arg0, %c0_i32, %c0_i32_0 : i32, i32, i32
  }
  func.func @transform_9(%arg0: i32) -> (i32, i32, i32) {
    %c0_i32 = arith.constant 0 : i32
    %c0_i32_0 = arith.constant 0 : i32
    %c0_i32_1 = arith.constant 0 : i32
    return %arg0, %c0_i32, %c0_i32_0 : i32, i32, i32
  }
  func.func @transform_10(%arg0: i32) -> (i32, i32, i32) {
    %c0_i32 = arith.constant 0 : i32
    %c0_i32_0 = arith.constant 0 : i32
    %c0_i32_1 = arith.constant 0 : i32
    return %arg0, %c0_i32, %c0_i32_0 : i32, i32, i32
  }
  func.func @transform_11(%arg0: i32) -> (i32, i32, i32) {
    %c0_i32 = arith.constant 0 : i32
    %c0_i32_0 = arith.constant 0 : i32
    %c0_i32_1 = arith.constant 0 : i32
    return %arg0, %c0_i32, %c0_i32_0 : i32, i32, i32
  }
  func.func @transform_12(%arg0: i32) -> (i32, i32, i32) {
    %c0_i32 = arith.constant 0 : i32
    %c0_i32_0 = arith.constant 0 : i32
    %c0_i32_1 = arith.constant 0 : i32
    return %arg0, %c0_i32, %c0_i32_0 : i32, i32, i32
  }
  func.func @transform_13(%arg0: i32) -> (i32, i32, i32) {
    %c0_i32 = arith.constant 0 : i32
    %c0_i32_0 = arith.constant 0 : i32
    %c0_i32_1 = arith.constant 0 : i32
    return %arg0, %c0_i32, %c0_i32_0 : i32, i32, i32
  }
  func.func @transform_14(%arg0: i32) -> (i32, i32, i32) {
    %c0_i32 = arith.constant 0 : i32
    %c0_i32_0 = arith.constant 0 : i32
    %c0_i32_1 = arith.constant 0 : i32
    return %arg0, %c0_i32, %c0_i32_0 : i32, i32, i32
  }
  func.func @transform_15(%arg0: i32) -> (i32, i32, i32) {
    %c0_i32 = arith.constant 0 : i32
    %c0_i32_0 = arith.constant 0 : i32
    %c0_i32_1 = arith.constant 0 : i32
    %c0_i32_2 = arith.constant 0 : i32
    return %c0_i32, %c0_i32_0, %c0_i32_1 : i32, i32, i32
  }
}

module attributes {stable_mosaic.version = 11 : i64} {
  func.func @_head_kernel(%arg0: i32, %arg1: memref<2x384xf32, #tpu.memory_space<vmem>>, %arg2: memref<1x384xf32, #tpu.memory_space<vmem>>, %arg3: memref<1x384xf32, #tpu.memory_space<vmem>>, %arg4: memref<384x256xbf16, #tpu.memory_space<vmem>>, %arg5: memref<1x256xf32, #tpu.memory_space<vmem>>, %arg6: memref<256x5xbf16, #tpu.memory_space<vmem>>, %arg7: memref<1x5xf32, #tpu.memory_space<vmem>>, %arg8: memref<2x5xf32, #tpu.memory_space<vmem>>) attributes {dimension_semantics = [#tpu.dimension_semantics<arbitrary>], iteration_bounds = array<i64: 1>, scalar_prefetch = 0 : i64, scratch_operands = 0 : i64, tpu.core_type = #tpu.core_type<tc>, window_params = [{pipeline_mode = #tpu.pipeline_mode<synchronous>, transform_indices = @transform_0, window_bounds = array<i64: 2, 384>}, {pipeline_mode = #tpu.pipeline_mode<synchronous>, transform_indices = @transform_1, window_bounds = array<i64: 1, 384>}, {pipeline_mode = #tpu.pipeline_mode<synchronous>, transform_indices = @transform_2, window_bounds = array<i64: 1, 384>}, {pipeline_mode = #tpu.pipeline_mode<synchronous>, transform_indices = @transform_3, window_bounds = array<i64: 384, 256>}, {pipeline_mode = #tpu.pipeline_mode<synchronous>, transform_indices = @transform_4, window_bounds = array<i64: 1, 256>}, {pipeline_mode = #tpu.pipeline_mode<synchronous>, transform_indices = @transform_5, window_bounds = array<i64: 256, 5>}, {pipeline_mode = #tpu.pipeline_mode<synchronous>, transform_indices = @transform_6, window_bounds = array<i64: 1, 5>}, {pipeline_mode = #tpu.pipeline_mode<synchronous>, transform_indices = @transform_7, window_bounds = array<i64: 2, 5>}]} {
    %c0 = arith.constant 0 : index
    %c0_0 = arith.constant 0 : index
    %0 = vector.load %arg1[%c0, %c0_0] : memref<2x384xf32, #tpu.memory_space<vmem>>, vector<2x384xf32>
    %c0_1 = arith.constant 0 : index
    %c0_2 = arith.constant 0 : index
    %1 = vector.load %arg2[%c0_1, %c0_2] : memref<1x384xf32, #tpu.memory_space<vmem>>, vector<1x384xf32>
    %c0_3 = arith.constant 0 : index
    %c0_4 = arith.constant 0 : index
    %2 = vector.load %arg3[%c0_3, %c0_4] : memref<1x384xf32, #tpu.memory_space<vmem>>, vector<1x384xf32>
    %cst = arith.constant dense<0.000000e+00> : vector<2xf32>
    %3 = vector.multi_reduction <add>, %0, %cst [1] : vector<2x384xf32> to vector<2xf32>
    %4 = vector.shape_cast %3 : vector<2xf32> to vector<2x1xf32>
    %cst_5 = arith.constant 3.840000e+02 : f32
    %5 = vector.broadcast %cst_5 : f32 to vector<2x1xf32>
    %6 = arith.divf %4, %5 : vector<2x1xf32>
    %7 = vector.broadcast %6 : vector<2x1xf32> to vector<2x384xf32>
    %8 = arith.subf %0, %7 : vector<2x384xf32>
    %9 = arith.mulf %8, %8 : vector<2x384xf32>
    %cst_6 = arith.constant dense<0.000000e+00> : vector<2xf32>
    %10 = vector.multi_reduction <add>, %9, %cst_6 [1] : vector<2x384xf32> to vector<2xf32>
    %11 = vector.shape_cast %10 : vector<2xf32> to vector<2x1xf32>
    %cst_7 = arith.constant 3.840000e+02 : f32
    %12 = vector.broadcast %cst_7 : f32 to vector<2x1xf32>
    %13 = arith.divf %11, %12 : vector<2x1xf32>
    %14 = vector.broadcast %6 : vector<2x1xf32> to vector<2x384xf32>
    %15 = arith.subf %0, %14 : vector<2x384xf32>
    %cst_8 = arith.constant 9.99999997E-7 : f32
    %16 = vector.broadcast %cst_8 : f32 to vector<2x1xf32>
    %17 = arith.addf %13, %16 : vector<2x1xf32>
    %18 = math.rsqrt %17 : vector<2x1xf32>
    %19 = vector.broadcast %18 : vector<2x1xf32> to vector<2x384xf32>
    %20 = arith.mulf %15, %19 : vector<2x384xf32>
    %21 = vector.broadcast %1 : vector<1x384xf32> to vector<2x384xf32>
    %22 = arith.mulf %20, %21 : vector<2x384xf32>
    %23 = vector.broadcast %2 : vector<1x384xf32> to vector<2x384xf32>
    %24 = arith.addf %22, %23 : vector<2x384xf32>
    %c0_9 = arith.constant 0 : index
    %c0_10 = arith.constant 0 : index
    %25 = vector.load %arg2[%c0_9, %c0_10] : memref<1x384xf32, #tpu.memory_space<vmem>>, vector<1x384xf32>
    %c0_11 = arith.constant 0 : index
    %c0_12 = arith.constant 0 : index
    %26 = vector.load %arg3[%c0_11, %c0_12] : memref<1x384xf32, #tpu.memory_space<vmem>>, vector<1x384xf32>
    %cst_13 = arith.constant dense<0.000000e+00> : vector<2xf32>
    %27 = vector.multi_reduction <add>, %24, %cst_13 [1] : vector<2x384xf32> to vector<2xf32>
    %28 = vector.shape_cast %27 : vector<2xf32> to vector<2x1xf32>
    %cst_14 = arith.constant 3.840000e+02 : f32
    %29 = vector.broadcast %cst_14 : f32 to vector<2x1xf32>
    %30 = arith.divf %28, %29 : vector<2x1xf32>
    %31 = vector.broadcast %30 : vector<2x1xf32> to vector<2x384xf32>
    %32 = arith.subf %24, %31 : vector<2x384xf32>
    %33 = arith.mulf %32, %32 : vector<2x384xf32>
    %cst_15 = arith.constant dense<0.000000e+00> : vector<2xf32>
    %34 = vector.multi_reduction <add>, %33, %cst_15 [1] : vector<2x384xf32> to vector<2xf32>
    %35 = vector.shape_cast %34 : vector<2xf32> to vector<2x1xf32>
    %cst_16 = arith.constant 3.840000e+02 : f32
    %36 = vector.broadcast %cst_16 : f32 to vector<2x1xf32>
    %37 = arith.divf %35, %36 : vector<2x1xf32>
    %38 = vector.broadcast %30 : vector<2x1xf32> to vector<2x384xf32>
    %39 = arith.subf %24, %38 : vector<2x384xf32>
    %cst_17 = arith.constant 9.99999997E-7 : f32
    %40 = vector.broadcast %cst_17 : f32 to vector<2x1xf32>
    %41 = arith.addf %37, %40 : vector<2x1xf32>
    %42 = math.rsqrt %41 : vector<2x1xf32>
    %43 = vector.broadcast %42 : vector<2x1xf32> to vector<2x384xf32>
    %44 = arith.mulf %39, %43 : vector<2x384xf32>
    %45 = vector.broadcast %25 : vector<1x384xf32> to vector<2x384xf32>
    %46 = arith.mulf %44, %45 : vector<2x384xf32>
    %47 = vector.broadcast %26 : vector<1x384xf32> to vector<2x384xf32>
    %48 = arith.addf %46, %47 : vector<2x384xf32>
    %49 = arith.truncf %48 : vector<2x384xf32> to vector<2x384xbf16>
    %c0_18 = arith.constant 0 : index
    %c0_19 = arith.constant 0 : index
    %50 = vector.load %arg4[%c0_18, %c0_19] : memref<384x256xbf16, #tpu.memory_space<vmem>>, vector<384x256xbf16>
    %cst_20 = arith.constant dense<0.000000e+00> : vector<2x256xf32>
    %51 = tpu.matmul %49, %50, %cst_20 {dimension_numbers = #tpu.dot_dimension_numbers<[1], [0], [0], [1], [0, 0, 1, 1], [], []>} : vector<2x384xbf16>, vector<384x256xbf16>, vector<2x256xf32> -> vector<2x256xf32>
    %c0_21 = arith.constant 0 : index
    %c0_22 = arith.constant 0 : index
    %52 = vector.load %arg5[%c0_21, %c0_22] : memref<1x256xf32, #tpu.memory_space<vmem>>, vector<1x256xf32>
    %53 = vector.broadcast %52 : vector<1x256xf32> to vector<2x256xf32>
    %54 = arith.addf %51, %53 : vector<2x256xf32>
    %cst_23 = arith.constant 0.000000e+00 : f32
    %55 = vector.broadcast %cst_23 : f32 to vector<2x256xf32>
    %56 = arith.maximumf %54, %55 : vector<2x256xf32>
    %57 = arith.truncf %56 : vector<2x256xf32> to vector<2x256xbf16>
    %c0_24 = arith.constant 0 : index
    %c0_25 = arith.constant 0 : index
    %58 = vector.load %arg6[%c0_24, %c0_25] : memref<256x5xbf16, #tpu.memory_space<vmem>>, vector<256x5xbf16>
    %cst_26 = arith.constant dense<0.000000e+00> : vector<2x5xf32>
    %59 = tpu.matmul %57, %58, %cst_26 {dimension_numbers = #tpu.dot_dimension_numbers<[1], [0], [0], [1], [0, 0, 1, 1], [], []>} : vector<2x256xbf16>, vector<256x5xbf16>, vector<2x5xf32> -> vector<2x5xf32>
    %c0_27 = arith.constant 0 : index
    %c0_28 = arith.constant 0 : index
    %60 = vector.load %arg7[%c0_27, %c0_28] : memref<1x5xf32, #tpu.memory_space<vmem>>, vector<1x5xf32>
    %61 = vector.broadcast %60 : vector<1x5xf32> to vector<2x5xf32>
    %62 = arith.addf %59, %61 : vector<2x5xf32>
    %c0_29 = arith.constant 0 : index
    %c0_30 = arith.constant 0 : index
    %63 = vector.load %arg8[%c0_29, %c0_30] : memref<2x5xf32, #tpu.memory_space<vmem>>, vector<2x5xf32>
    tpu.vector_store %arg8[%c0_29, %c0_30], %62 {strides = array<i32>} : memref<2x5xf32, #tpu.memory_space<vmem>>, vector<2x5xf32>,
    return
  }
  func.func @transform_0(%arg0: i32) -> (i32, i32) {
    %c0_i32 = arith.constant 0 : i32
    %c0_i32_0 = arith.constant 0 : i32
    %c0_i32_1 = arith.constant 0 : i32
    return %c0_i32, %c0_i32_0 : i32, i32
  }
  func.func @transform_1(%arg0: i32) -> (i32, i32) {
    %c0_i32 = arith.constant 0 : i32
    %c0_i32_0 = arith.constant 0 : i32
    %c0_i32_1 = arith.constant 0 : i32
    return %c0_i32, %c0_i32_0 : i32, i32
  }
  func.func @transform_2(%arg0: i32) -> (i32, i32) {
    %c0_i32 = arith.constant 0 : i32
    %c0_i32_0 = arith.constant 0 : i32
    %c0_i32_1 = arith.constant 0 : i32
    return %c0_i32, %c0_i32_0 : i32, i32
  }
  func.func @transform_3(%arg0: i32) -> (i32, i32) {
    %c0_i32 = arith.constant 0 : i32
    %c0_i32_0 = arith.constant 0 : i32
    %c0_i32_1 = arith.constant 0 : i32
    return %c0_i32, %c0_i32_0 : i32, i32
  }
  func.func @transform_4(%arg0: i32) -> (i32, i32) {
    %c0_i32 = arith.constant 0 : i32
    %c0_i32_0 = arith.constant 0 : i32
    %c0_i32_1 = arith.constant 0 : i32
    return %c0_i32, %c0_i32_0 : i32, i32
  }
  func.func @transform_5(%arg0: i32) -> (i32, i32) {
    %c0_i32 = arith.constant 0 : i32
    %c0_i32_0 = arith.constant 0 : i32
    %c0_i32_1 = arith.constant 0 : i32
    return %c0_i32, %c0_i32_0 : i32, i32
  }
  func.func @transform_6(%arg0: i32) -> (i32, i32) {
    %c0_i32 = arith.constant 0 : i32
    %c0_i32_0 = arith.constant 0 : i32
    %c0_i32_1 = arith.constant 0 : i32
    return %c0_i32, %c0_i32_0 : i32, i32
  }
  func.func @transform_7(%arg0: i32) -> (i32, i32) {
    %c0_i32 = arith.constant 0 : i32
    %c0_i32_0 = arith.constant 0 : i32
    %c0_i32_1 = arith.constant 0 : i32
    return %c0_i32, %c0_i32_0 : i32, i32
  }
}

</mosaic_0001>

<bundles_post_ra>
// kernel: dino_classifier_forward.3
= control target key start
LH: loop header
LB: loop body
LE: loop exit
PB: predicated region body
PF: predicated region fallthrough
CT: control target
= control target key end

     0   :  { %10 = vsyncpa [#allocation3], 0  ;;  %s2203_s0 = inlined_call_operand.vmem [shape: f32[2,4,588], index: 0, kind: input, shape index: {}]   ;;  %s2204_s1 = inlined_call_operand.hbm [shape: bf16[588,384], index: 1, kind: input, shape index: {}]   ;;  %s2205_s2 = inlined_call_operand.hbm [shape: f32[1,384], index: 2, kind: input, shape index: {}]   ;;  %s2206_s3 = inlined_call_operand.hbm [shape: f32[1,384], index: 3, kind: input, shape index: {}]   ;;  %s2207_s4 = inlined_call_operand.hbm [shape: f32[8,384], index: 4, kind: input, shape index: {}]   ;;  %s2208_s5 = inlined_call_operand.vmem [shape: f32[2,8,384], index: 5, kind: output, shape index: {}]  }
   0x1   :  { %11 = vsyncpa [#allocation5], 0 }
   0x2   :  { %12 = vsyncpa [#allocation8], 0  ;;  %s2023_s18 = smov 0  }
   0x3 LB: > { %s1984_s19 = smov [#allocation4]   ;;  %s2029_s21 = sadd.s32 4294967295, %s1982_s18   ;;  %s1982_s18 = sphi %s2023_s18, %s18_s18  }
   0x4   : > { %s185_s20 = sshll.u32 %s1984_s19, 4  ;;  %p1445_p0 = scmp.ge.s32.totalorder %s1982_s18, 1  ;;  %s2034_s20 = int_to_ptr.vmem [resolvable:$true] %s185_s20 }
   0x5   : > { %p159_p1 = scmp.lt.s32.totalorder %s1982_s18, 3  ;;  %p2209_p2 = scmp.eq.s32.totalorder %s2029_s21, 0 }
   0x6   : > { %s1985_s23 = smov [#allocation2]   ;;  %s1986_s26 = smov [#allocation6]  }
   0x7   : > { %p2036_p3 = pnand %p1445_p0, %p159_p1  ;;  %s171_s24 = sshll.u32 %s1985_s23, 4  ;;  %s2042_s24 = int_to_ptr.vmem [resolvable:$true] %s171_s24 }
   0x8   : > { %s196_s27 = sshll.u32 %s1986_s26, 4  ;;  %s1987_s28 = smov [#allocation7]   ;;  %s2050_s27 = int_to_ptr.vmem [resolvable:$true] %s196_s27 }
   0x9   : > { %s2211_s22 = scalar_select %p2036_p3, 1, 0 }
   0xa   : > { %p1664_p4 = pneg %p2036_p3  ;;  %s2052_s29 = sshll.u32 %s1987_s28, 4  ;;  %s208_s29 = int_to_ptr.vmem [resolvable:$true] %s2052_s29 }
   0xb   : > { %s1852_s7 = scalar_lea.hbm %s2205_s2, 48 }
   0xc   : > { %p2046_p5 = pnand %p2209_p2, %p1664_p4  ;;  %p1853_p6 = scmp.ne.s32.totalorder %s2205_s2, %s1852_s7 }
   0xd   : > { %p1859_p10 = scmp.lt.u32.totalorder %s1852_s7, %s2205_s2 }
   0xe   : > { %p2062_p7 = pneg %p2046_p5 }
  0x10   : > { %p1855_p8 = pnand %p2062_p7, %p1853_p6 }
  0x12   : > { %p1856_p9 = pneg %p1855_p8 }
  0x14   : > { %p1861_p11 = pnand %p1859_p10, %p1856_p9 }
  0x16   : > { %1864 = shalt.err (!%p1861_p11)
}
  0x17   : > { %s1865_s13 = scalar_lea.vmem %s2034_s20, 48  ;;  %s1872_s14 = scalar_lea.vmem %s2034_s20, 64 }
  0x18   : > { %p1866_p12 = scmp.ne.s32.totalorder %s2034_s20, %s1865_s13  ;;  %p1873_p1 = scmp.lt.s32.totalorder %s2034_s20, %s2034_s20 }
  0x19   : > { %p1874_p4 = scmp.lt.s32.totalorder %s1872_s14, %s1865_s13 }
  0x1a   : > { %p1868_p13 = pnand %p1866_p12, %p2062_p7 }
  0x1b   : > { %p1875_p6 = por %p1874_p4, %p1873_p1 }
  0x1c   : > { %p1869_p0 = pneg %p1868_p13 }
  0x1e   : > { %p1876_p8 = pnand %p1875_p6, %p1869_p0 }
  0x20   : > { %1879 = shalt.err (!%p1876_p8)
}
  0x21   : > { %1670 = dma.hbm_to_vmem [thread:$0]  (!%p2046_p5), %s2205_s2, 48, %s2034_s20, [#allocation5]  }
  0x22   : > { %s1880_s23 = scalar_lea.hbm %s2204_s1, 14208 }
  0x23   : > { %p1881_p9 = scmp.ne.s32.totalorder %s2204_s1, %s1880_s23  ;;  %p1887_p12 = scmp.lt.u32.totalorder %s1880_s23, %s2204_s1 }
  0x25   : > { %p1883_p10 = pnand %p1881_p9, %p2062_p7 }
  0x27   : > { %p1884_p11 = pneg %p1883_p10 }
  0x29   : > { %p1889_p13 = pnand %p1887_p12, %p1884_p11 }
  0x2b   : > { %1892 = shalt.err (!%p1889_p13)
}
  0x2c   : > { %s1893_s20 = scalar_lea.vmem %s2042_s24, 14208  ;;  %p1901_p6 = scmp.lt.s32.totalorder %s2042_s24, %s2042_s24 }
  0x2d   : > { %p1894_p0 = scmp.ne.s32.totalorder %s2042_s24, %s1893_s20  ;;  %p1902_p8 = scmp.lt.s32.totalorder %s1893_s20, %s1893_s20 }
  0x2f   : > { %p1896_p1 = pnand %p1894_p0, %p2062_p7  ;;  %p1903_p9 = por %p1902_p8, %p1901_p6 }
  0x31   : > { %p1897_p4 = pneg %p1896_p1 }
  0x33   : > { %p1904_p10 = pnand %p1903_p9, %p1897_p4 }
  0x35   : > { %1907 = shalt.err (!%p1904_p10)
}
  0x36   : > { %s1988_s7 = smov 192   ;;  %s1989_s8 = smov 12  }
  0x37   : > { %1667 = dma.hbm_to_vmem [thread:$0]  (!%p2046_p5), %s2204_s1, 14208, %s2042_s24, [#allocation3], %s1988_s7, %s1988_s7, %s1989_s8  }
  0x38   : > { %s1908_s14 = scalar_lea.hbm %s2206_s3, 48 }
  0x39   : > { %p1909_p11 = scmp.ne.s32.totalorder %s2206_s3, %s1908_s14  ;;  %p1915_p0 = scmp.lt.u32.totalorder %s1908_s14, %s2206_s3 }
  0x3b   : > { %p1911_p12 = pnand %p1909_p11, %p2062_p7 }
  0x3d   : > { %p1912_p13 = pneg %p1911_p12 }
  0x3f   : > { %p1917_p1 = pnand %p1915_p0, %p1912_p13 }
  0x41   : > { %1920 = shalt.err (!%p1917_p1)
}
  0x42   : > { %s1921_s24 = scalar_lea.vmem %s2050_s27, 48  ;;  %s1928_s23 = scalar_lea.vmem %s2050_s27, 64 }
  0x43   : > { %p1922_p4 = scmp.ne.s32.totalorder %s2050_s27, %s1921_s24  ;;  %p1929_p9 = scmp.lt.s32.totalorder %s2050_s27, %s2050_s27 }
  0x44   : > { %p1930_p10 = scmp.lt.s32.totalorder %s1928_s23, %s1921_s24 }
  0x45   : > { %p1924_p6 = pnand %p1922_p4, %p2062_p7 }
  0x46   : > { %p1931_p11 = por %p1930_p10, %p1929_p9 }
  0x47   : > { %p1925_p8 = pneg %p1924_p6 }
  0x49   : > { %p1932_p12 = pnand %p1931_p11, %p1925_p8 }
  0x4b   : > { %1935 = shalt.err (!%p1932_p12)
}
  0x4c   : > { %1673 = dma.hbm_to_vmem [thread:$0]  (!%p2046_p5), %s2206_s3, 48, %s2050_s27, [#allocation5]  }
  0x4d   : > { %s1936_s20 = scalar_lea.hbm %s2207_s4, 384 }
  0x4e   : > { %p1937_p13 = scmp.ne.s32.totalorder %s2207_s4, %s1936_s20  ;;  %p1943_p4 = scmp.lt.u32.totalorder %s1936_s20, %s2207_s4 }
  0x50   : > { %p1939_p0 = pnand %p1937_p13, %p2062_p7 }
  0x52   : > { %p1940_p1 = pneg %p1939_p0 }
  0x54   : > { %p1945_p6 = pnand %p1943_p4, %p1940_p1 }
  0x56   : > { %1948 = shalt.err (!%p1945_p6)
}
  0x57   : > { %s1949_s12 = scalar_lea.vmem %s208_s29, 384  ;;  %p1957_p11 = scmp.lt.s32.totalorder %s208_s29, %s208_s29 }
  0x58   : > { %p1950_p8 = scmp.ne.s32.totalorder %s208_s29, %s1949_s12  ;;  %p1958_p12 = scmp.lt.s32.totalorder %s1949_s12, %s1949_s12 }
  0x5a   : > { %p1952_p9 = pnand %p1950_p8, %p2062_p7  ;;  %p1959_p2 = por %p1958_p12, %p1957_p11 }
  0x5c   : > { %p1953_p10 = pneg %p1952_p9 }
  0x5e   : > { %p1960_p3 = pnand %p1959_p2, %p1953_p10 }
  0x60   : > { %1963 = shalt.err (!%p1960_p3)
}
  0x61   : > { %1676 = dma.hbm_to_vmem [thread:$0]  (!%p2046_p5), %s2207_s4, 384, %s208_s29, [#allocation8]  }
  0x62   : > { %p2214_p13 = scmp.ne.s32.totalorder %s2211_s22, 0 }
  0x63   : > { %p2215_p0 = scmp.eq.s32.totalorder (!%p2214_p13), %s2029_s21, 0 }
  0x64   : > { %228 = sbr.rel (%p2214_p13) target bundleno = 467 (0x1d3), region = 40 }
  0x6b   : > { %1969 = dma.done.wait (%p2215_p0), [#allocation3], 14208   ;;  %p2216_p7 = pmov %p2215_p0 }
  0x6c   : > { %p2217_p1 = pmov %p2215_p0 }
  0x6d   : > { %1971 = vsyncadd (%p2216_p7), [#allocation3], 4294953088 }
  0x6e   : > { %1973 = dma.done.wait (%p2217_p1), [#allocation5], 96   ;;  %p2218_p2 = pmov %p2215_p0 }
  0x6f   : > { %p2219_p3 = pmov %p2215_p0 }
  0x70   : > { %1975 = vsyncadd (%p2218_p2), [#allocation5], 4294967200 }
  0x71   : > { %1977 = dma.done.wait (%p2219_p3), [#allocation8], 384   ;;  %p2220_p5 = pmov %p2215_p0 }
  0x72   : > { %v1990_v0 = vmov 0   ;;  %v1702_v1 = vld [vmem:[#allocation2 + $0x4] ss:$12 sps:$4 sm:$0xff]   ;;  %p268_p4 = scmp.lt.s32.totalorder %s2029_s21, 1  ;;  %v1706_v3 = vld [vmem:[#allocation2] ss:$12 sps:$4 sm:$0xff]  }
  0x73   : > { %1979 = vsyncadd (%p2220_p5), [#allocation8], 4294966912  ;;  %1175 = vmatprep.mubr.bf16.mxu1 %v1990_v0  ;;  %v1704_v2 = vld [vmem:[#allocation2 + $0x304] ss:$12 sps:$4 sm:$0xff]   ;;  %1061 = vmatprep.subr.bf16.mxu0 %v1702_v1  ;;  %v1707_v4 = vld [vmem:[#allocation2 + $0x300] ss:$12 sps:$4 sm:$0xff]  }
  0x74   : > { %1143 = vmatprep.subr.bf16.mxu1 %v1704_v2  ;;  %v1708_v5 = vld [vmem:[#allocation2 + $0x1c] ss:$12 sps:$4 sm:$0xff]   ;;  %1062 = vmatpush1.bf16.msra.mxu0 %v1706_v3  ;;  %v1712_v7 = vld [vmem:[#allocation2 + $0x18] ss:$12 sps:$4 sm:$0xff]   ;;  %s2222_s21 = smov (!%p268_p4, %s2029_s21), 1  ;;  %vm1051_vm0 = vcmask 1045504  }
  0x75   : > { %1144 = vmatpush1.bf16.msra.mxu1 %v1707_v4  ;;  %v1710_v6 = vld [vmem:[#allocation2 + $0x31c] ss:$12 sps:$4 sm:$0xff]   ;;  %1063 = vmatprep.subr.bf16.mxu0 %v1708_v5  ;;  %v1713_v8 = vld [vmem:[#allocation2 + $0x318] ss:$12 sps:$4 sm:$0xff]   ;;  %v1714_v9 = vld [vmem:[#allocation2 + $0x34] ss:$12 sps:$4 sm:$0xff]  }
  0x76   : > { %1145 = vmatprep.subr.bf16.mxu1 %v1710_v6  ;;  %v1716_v10 = vld [vmem:[#allocation2 + $0x334] ss:$12 sps:$4 sm:$0xff]   ;;  %v1718_v11 = vld [vmem:[#allocation2 + $0x30] ss:$12 sps:$4 sm:$0xff]   ;;  %v1720_v13 = vld [vmem:[#allocation2 + $0x4c] ss:$12 sps:$4 sm:$0xff]  }
  0x77   : > { %v1719_v12 = vld [vmem:[#allocation2 + $0x330] ss:$12 sps:$4 sm:$0xff]   ;;  %v1722_v14 = vld [vmem:[#allocation2 + $0x34c] ss:$12 sps:$4 sm:$0xff]   ;;  %s1646_s22 = smul.u32 20, %s2222_s21  ;;  %vm1047_vm1 = vcmask 621568  }
  0x78   : > { %1064 = vmatpush1.bf16.msra.mxu0 %v1712_v7  ;;  %v1724_v15 = vld [vmem:[#allocation2 + $0x48] ss:$12 sps:$4 sm:$0xff]   ;;  %v1728_v17 = vld [vmem:[#allocation2 + $0x364] ss:$12 sps:$4 sm:$0x3f]   ;;  %vm1992_vm2 = vmmov 0  }
  0x79   : > { %1146 = vmatpush1.bf16.msra.mxu1 %v1713_v8  ;;  %1065 = vmatprep.subr.bf16.mxu0 %v1714_v9  ;;  %v1725_v16 = vld [vmem:[#allocation2 + $0x348] ss:$12 sps:$4 sm:$0xff]   ;;  %v1726_v18 = vld [vmem:[#allocation2 + $0x64] ss:$12 sps:$4 sm:$0xff]   ;;  %s2172_s10 = scalar_lea.vmem %s2203_s0, %s1646_s22  ;;  %v1730_v20 = vld [vmem:[#allocation2 + $0x60] ss:$12 sps:$4 sm:$0xff]  }
  0x7a   : > { %1147 = vmatprep.subr.bf16.mxu1 %v1716_v10  ;;  %v1731_v19 = vld [vmem:[#allocation2 + $0x360] ss:$12 sps:$4 sm:$0x3f]   ;;  %v281_v21 = vld [vmem:[%s2172_s10 + $0x10] sm:$0xf]  ;;  %s1647_s14 = smul.u32 24, %s2222_s21 }
  0x7b   : > { %v1053_v22 = vsel %vm1051_vm0, %v1731_v19, 0  ;;  %v1732_v23 = vld [vmem:[#allocation2 + $0x7c] ss:$12 sps:$4 sm:$0xff]   ;;  %v1735_v25 = vld [vmem:[#allocation2 + $0x78] ss:$12 sps:$4 sm:$0xff]   ;;  %v2177_v26 = vpack.c.bf16 %v281_v21, %v281_v21  ;;  %vm1330_vm3 = vcmask 1040384  }
  0x7c   : > { %1066 = vmatpush1.bf16.msra.mxu0 %v1718_v11  ;;  %v1734_v24 = vld [vmem:[#allocation2 + $0xc8] ss:$12 sps:$4 sm:$0xff]   ;;  %v1739_v29 = vld [vmem:[#allocation2 + $0xe0] ss:$12 sps:$4 sm:$0xff]   ;;  %v1740_v30 = vld [vmem:[#allocation2 + $0x90] ss:$12 sps:$4 sm:$0xff]   ;;  %s277_s17 = scalar_lea.vmem %s2208_s5, %s1647_s14 }
  0x7d   : > { %1148 = vmatpush1.bf16.msra.mxu1 %v1719_v12  ;;  %1067 = vmatprep.subr.bf16.mxu0 %v1720_v13  ;;  %v1736_v27 = vld [vmem:[#allocation2 + $0x8] ss:$12 sps:$4 sm:$0xff]   ;;  %v1741_v31 = vld [vmem:[#allocation2 + $0x20] ss:$12 sps:$4 sm:$0xff]   ;;  %v1744_v33 = vld [vmem:[#allocation2 + $0xf8] ss:$12 sps:$4 sm:$0xff]  }
  0x7e   : > { %1149 = vmatprep.subr.bf16.mxu1 %v1722_v14  ;;  %v1737_v28 = vld [vmem:[#allocation2 + $0x94] ss:$12 sps:$4 sm:$0xff]   ;;  %v1742_v32 = vld [vmem:[#allocation2 + $0xac] ss:$12 sps:$4 sm:$0xff]   ;;  %v1747_v36 = vld [vmem:[#allocation2 + $0xc4] ss:$12 sps:$4 sm:$0xff]  }
  0x7f   : > { %v1745_v34 = vld [vmem:[#allocation2 + $0xa8] ss:$12 sps:$4 sm:$0xff]   ;;  %v1746_v35 = vld [vmem:[#allocation2 + $0x38] ss:$12 sps:$4 sm:$0xff]   ;;  %v1749_v37 = vld [vmem:[#allocation2 + $0x110] ss:$12 sps:$4 sm:$0xff]  }
  0x80   : > { %1068 = vmatpush1.bf16.msra.mxu0 %v1724_v15  ;;  %v1750_v38 = vld [vmem:[#allocation2 + $0xc0] ss:$12 sps:$4 sm:$0xff]   ;;  %v1751_v39 = vld [vmem:[#allocation2 + $0x50] ss:$12 sps:$4 sm:$0xff]   ;;  %v1754_v41 = vld [vmem:[#allocation2 + $0x128] ss:$12 sps:$4 sm:$0xff]  }
  0x81   : > { %1150 = vmatpush1.bf16.msra.mxu1 %v1725_v16  ;;  %1069 = vmatprep.subr.bf16.mxu0 %v1726_v18  ;;  %v1752_v40 = vld [vmem:[#allocation2 + $0xdc] ss:$12 sps:$4 sm:$0xff]   ;;  %v1755_v42 = vld [vmem:[#allocation2 + $0xd8] ss:$12 sps:$4 sm:$0xff]   ;;  %v1757_v44 = vld [vmem:[#allocation2 + $0xf4] ss:$12 sps:$4 sm:$0xff]  }
  0x82   : > { %1569 = vmatprep.subr.msk.bf16.mxu1 %vm1051_vm0, %v1728_v17  ;;  %v1756_v43 = vld [vmem:[#allocation2 + $0x68] ss:$12 sps:$4 sm:$0xff]   ;;  %v1759_v45 = vld [vmem:[#allocation2 + $0x140] ss:$12 sps:$4 sm:$0xff]   ;;  %v1760_v46 = vld [vmem:[#allocation2 + $0xf0] ss:$12 sps:$4 sm:$0xff]  }
  0x83   : > { %v1761_v47 = vld [vmem:[#allocation2 + $0x80] ss:$12 sps:$4 sm:$0xff]   ;;  %v1764_v49 = vld [vmem:[#allocation2 + $0x158] ss:$12 sps:$4 sm:$0xff]   ;;  %v1765_v51 = vld [vmem:[#allocation2 + $0x108] ss:$12 sps:$4 sm:$0xff]  }
  0x84   : > { %1070 = vmatpush1.bf16.msra.mxu0 %v1730_v20  ;;  %v1762_v48 = vld [vmem:[#allocation2 + $0x10c] ss:$12 sps:$4 sm:$0xff]   ;;  %v279_v50 = vld [vmem:[%s2172_s10] sm:$0xff]  ;;  %v1769_v56 = vld [vmem:[#allocation2 + $0x170] ss:$12 sps:$4 sm:$0xff]   ;;  %vm1334_vm4 = vcmask 1044480  }
  0x85   : > { %1152 = vmatpush1.bf16.msra.mxu1 %v1053_v22  ;;  %1071 = vmatprep.subr.bf16.mxu0 %v1732_v23  ;;  %v284_v52 = vcombine.high %v279_v50, %v279_v50  ;;  %v1766_v53 = vld [vmem:[#allocation2 + $0x98] ss:$12 sps:$4 sm:$0xff]   ;;  %v1770_v57 = vld [vmem:[#allocation2 + $0x120] ss:$12 sps:$4 sm:$0xff]   ;;  %v1771_v58 = vld [vmem:[#allocation2 + $0xb0] ss:$12 sps:$4 sm:$0xff]   ;;  %v288_v61 = vpack.c.bf16 %v279_v50, %v279_v50 }
  0x86   : > { %1574 = vmatprep.subr.bf16.mxu1 %v1734_v24  ;;  %v1767_v54 = vld [vmem:[#allocation2 + $0x124] ss:$12 sps:$4 sm:$0xff]   ;;  %v1772_v59 = vld [vmem:[#allocation2 + $0x13c] ss:$12 sps:$4 sm:$0xff]   ;;  %v1778_v0 = vld [vmem:[#allocation2 + $0x154] ss:$12 sps:$4 sm:$0xff]  }
  0x87   : > { %v289_v55 = vpack.c.bf16 %v284_v52, %v284_v52  ;;  %v1775_v60 = vld [vmem:[#allocation2 + $0x248] ss:$12 sps:$4 sm:$0xff]   ;;  %v1776_v62 = vld [vmem:[#allocation2 + $0x138] ss:$12 sps:$4 sm:$0xff]   ;;  %v1780_v1 = vld [vmem:[#allocation2 + $0x260] ss:$12 sps:$4 sm:$0xff]  }
  0x88   : > { %1570 = vmatmul.mubr.msk.bf16.vlgmr.msra.gmra.mrb[0].mxu1 %vm1047_vm1, %v2177_v26  ;;  %1072 = vmatpush1.bf16.msra.mxu0 %v1735_v25  ;;  %v1777_v63 = vld [vmem:[#allocation2 + $0x188] ss:$12 sps:$4 sm:$0xff]   ;;  %v1781_v2 = vld [vmem:[#allocation2 + $0x150] ss:$12 sps:$4 sm:$0xff]   ;;  %v1782_v3 = vld [vmem:[#allocation2 + $0x1a0] ss:$12 sps:$4 sm:$0xff]  }
  0x89   : > { %1575 = vmatpush3.bf16.msra.mxu1 %v1736_v27  ;;  %1073 = vmatprep.subr.bf16.mxu0 %v1737_v28  ;;  %v1783_v4 = vld [vmem:[#allocation2 + $0x16c] ss:$12 sps:$4 sm:$0xff]   ;;  %v1786_v6 = vld [vmem:[#allocation2 + $0x168] ss:$12 sps:$4 sm:$0xff]   ;;  %v1790_v8 = vld [vmem:[#allocation2 + $0x184] ss:$12 sps:$4 sm:$0xff]  }
  0x8a   : > { %1576 = vmatprep.subr.bf16.mxu1 %v1739_v29  ;;  %1216 = vmatprep.mubr.bf16.mxu1 %v289_v55  ;;  %v1785_v5 = vld [vmem:[#allocation2 + $0x278] ss:$12 sps:$4 sm:$0xff]   ;;  %v1791_v9 = vld [vmem:[#allocation2 + $0x290] ss:$12 sps:$4 sm:$0xff]   ;;  %v1788_v10 = vld [vmem:[#allocation2 + $0x180] ss:$12 sps:$4 sm:$0xff]  }
  0x8b   : > { %1093 = vmatprep.mubr.bf16.mxu0 %v289_v55  ;;  %v1787_v7 = vld [vmem:[#allocation2 + $0x1b8] ss:$12 sps:$4 sm:$0xff]   ;;  %v1792_v11 = vld [vmem:[#allocation2 + $0x1d0] ss:$12 sps:$4 sm:$0xff]   ;;  %v1796_v13 = vld [vmem:[#allocation2 + $0x2a8] ss:$12 sps:$4 sm:$0xff]  }
  0x8c   : > { %1074 = vmatpush1.bf16.msra.mxu0 %v1740_v30  ;;  %v1795_v12 = vld [vmem:[#allocation2 + $0x19c] ss:$12 sps:$4 sm:$0xff]   ;;  %v1793_v14 = vld [vmem:[#allocation2 + $0x198] ss:$12 sps:$4 sm:$0xff]   ;;  %v1800_v17 = vld [vmem:[#allocation2 + $0x1b4] ss:$12 sps:$4 sm:$0xff]  }
  0x8d   : > { %1577 = vmatpush3.bf16.msra.mxu1 %v1741_v31  ;;  %1075 = vmatprep.subr.bf16.mxu0 %v1742_v32  ;;  %v280_v15 = vld [vmem:[%s2172_s10 + $0x8] sm:$0xff]  ;;  %v1798_v21 = vld [vmem:[#allocation2 + $0x1b0] ss:$12 sps:$4 sm:$0xff]   ;;  %v1806_v24 = vld [vmem:[#allocation2 + $0x2d8] ss:$12 sps:$4 sm:$0xff]  }
  0x8e   : > { %1578 = vmatprep.subr.bf16.mxu1 %v1744_v33  ;;  %v1797_v16 = vld [vmem:[#allocation2 + $0x1e8] ss:$12 sps:$4 sm:$0xff]   ;;  %v285_v18 = vcombine.high %v280_v15, %v280_v15  ;;  %v1801_v19 = vld [vmem:[#allocation2 + $0x2c0] ss:$12 sps:$4 sm:$0xff]   ;;  %v1807_v27 = vld [vmem:[#allocation2 + $0x218] ss:$12 sps:$4 sm:$0xff]   ;;  %v2183_v33 = vpack.c.bf16 %v280_v15, %v280_v15 }
  0x8f   : > { %v1802_v22 = vld [vmem:[#allocation2 + $0x200] ss:$12 sps:$4 sm:$0xff]   ;;  %v1803_v25 = vld [vmem:[#allocation2 + $0x1c8] ss:$12 sps:$4 sm:$0xff]   ;;  %v1810_v28 = vld [vmem:[#allocation2 + $0x1e4] ss:$12 sps:$4 sm:$0xff]  }
  0x90   : > { %1076 = vmatpush1.bf16.msra.mxu0 %v1745_v34  ;;  %v291_v20 = vpack.c.bf16 %v285_v18, %v285_v18  ;;  %v1805_v23 = vld [vmem:[#allocation2 + $0x1cc] ss:$12 sps:$4 sm:$0xff]   ;;  %v1811_v29 = vld [vmem:[#allocation2 + $0x2f0] ss:$12 sps:$4 sm:$0xff]   ;;  %v1836_v50 = vld [vmem:[#allocation2 + $0x274] ss:$12 sps:$4 sm:$0xff]  }
  0x91   : > { %1579 = vmatpush3.bf16.msra.mxu1 %v1746_v35  ;;  %1077 = vmatprep.subr.bf16.mxu0 %v1747_v36  ;;  %v1808_v30 = vld [vmem:[#allocation2 + $0x1e0] ss:$12 sps:$4 sm:$0xff]   ;;  %v1812_v31 = vld [vmem:[#allocation2 + $0x230] ss:$12 sps:$4 sm:$0xff]   ;;  %v1814_v34 = vld [vmem:[#allocation2 + $0x1f8] ss:$12 sps:$4 sm:$0xff]  }
  0x92   : > { %1580 = vmatprep.subr.bf16.mxu1 %v1749_v37  ;;  %v1816_v32 = vld [vmem:[#allocation2 + $0x1fc] ss:$12 sps:$4 sm:$0xff]   ;;  %v1991_v36 = vmov 0.0   ;;  %v1820_v37 = vld [vmem:[#allocation2 + $0x214] ss:$12 sps:$4 sm:$0xff]  }
  0x93   : > { %v1817_v35 = vld [vmem:[#allocation2 + $0x308] ss:$12 sps:$4 sm:$0xff]   ;;  %v1839_v52 = vld [vmem:[#allocation2 + $0x28c] ss:$12 sps:$4 sm:$0xff]   ;;  %v1304_v18 = vld [vmem:[#allocation6] sm:$0x7] }
  0x94   : > { %1078 = vmatpush1.bf16.msra.mxu0 %v1750_v38  ;;  %v1818_v38 = vld [vmem:[#allocation2 + $0x210] ss:$12 sps:$4 sm:$0xff]   ;;  %v1840_v55 = vld [vmem:[#allocation2 + $0x2a0] ss:$12 sps:$4 sm:$0xff]  }
  0x95   : > { %1581 = vmatpush3.bf16.msra.mxu1 %v1751_v39  ;;  %1079 = vmatprep.subr.bf16.mxu0 %v1752_v40  ;;  %v1821_v39 = vld [vmem:[#allocation2 + $0x320] ss:$12 sps:$4 sm:$0xff]  }
  0x96   : > { %1582 = vmatprep.subr.bf16.mxu1 %v1754_v41  ;;  %v1824_v40 = vld [vmem:[#allocation2 + $0x22c] ss:$12 sps:$4 sm:$0xff]   ;;  %v1822_v41 = vld [vmem:[#allocation2 + $0x228] ss:$12 sps:$4 sm:$0xff]  }
  0x98   : > { %1080 = vmatpush1.bf16.msra.mxu0 %v1755_v42  ;;  %v1825_v42 = vld [vmem:[#allocation2 + $0x338] ss:$12 sps:$4 sm:$0xff]  }
  0x99   : > { %1583 = vmatpush3.bf16.msra.mxu1 %v1756_v43  ;;  %1081 = vmatprep.subr.bf16.mxu0 %v1757_v44  ;;  %v1828_v43 = vld [vmem:[#allocation2 + $0x244] ss:$12 sps:$4 sm:$0xff]   ;;  %v1826_v44 = vld [vmem:[#allocation2 + $0x240] ss:$12 sps:$4 sm:$0xff]  }
  0x9a   : > { %1584 = vmatprep.subr.bf16.mxu1 %v1759_v45  ;;  %v1829_v45 = vld [vmem:[#allocation2 + $0x350] ss:$12 sps:$4 sm:$0xff]  }
  0x9c   : > { %1082 = vmatpush1.bf16.msra.mxu0 %v1760_v46  ;;  %v1832_v46 = vld [vmem:[#allocation2 + $0x25c] ss:$12 sps:$4 sm:$0xff]  }
  0x9d   : > { %1585 = vmatpush3.bf16.msra.mxu1 %v1761_v47  ;;  %1083 = vmatprep.subr.bf16.mxu0 %v1762_v48  ;;  %v1833_v47 = vld [vmem:[#allocation2 + $0x368] ss:$12 sps:$4 sm:$0x3f]   ;;  %v1830_v48 = vld [vmem:[#allocation2 + $0x258] ss:$12 sps:$4 sm:$0xff]  }
  0x9e   : > { %1586 = vmatprep.subr.bf16.mxu1 %v1764_v49  ;;  %v1059_v49 = vsel %vm1051_vm0, %v1833_v47, 0 }
  0xa0   : > { %1084 = vmatpush1.bf16.msra.mxu0 %v1765_v51  ;;  %v1834_v51 = vld [vmem:[#allocation2 + $0x270] ss:$12 sps:$4 sm:$0xff]  }
  0xa1   : > { %1587 = vmatpush3.bf16.msra.mxu1 %v1766_v53  ;;  %1085 = vmatprep.subr.bf16.mxu0 %v1767_v54  ;;  %v1837_v53 = vld [vmem:[#allocation2 + $0x288] ss:$12 sps:$4 sm:$0xff]   ;;  %v1842_v54 = vld [vmem:[#allocation2 + $0x2a4] ss:$12 sps:$4 sm:$0xff]  }
  0xa2   : > { %1588 = vmatprep.subr.bf16.mxu1 %v1769_v56  ;;  %v1845_v56 = vld [vmem:[#allocation2 + $0x2bc] ss:$12 sps:$4 sm:$0xff]  }
  0xa4   : > { %1086 = vmatpush1.bf16.msra.mxu0 %v1770_v57  ;;  %v1843_v57 = vld [vmem:[#allocation2 + $0x2b8] ss:$12 sps:$4 sm:$0xff]  }
  0xa5   : > { %1589 = vmatpush3.bf16.msra.mxu1 %v1771_v58  ;;  %1087 = vmatprep.subr.bf16.mxu0 %v1772_v59  ;;  %v1848_v58 = vld [vmem:[#allocation2 + $0x2d4] ss:$12 sps:$4 sm:$0xff]   ;;  %v1846_v59 = vld [vmem:[#allocation2 + $0x2d0] ss:$12 sps:$4 sm:$0xff]  }
  0xa6   : > { %1596 = vmatprep.subr.bf16.mxu1 %v1775_v60  ;;  %v1851_v60 = vld [vmem:[#allocation2 + $0x2ec] ss:$12 sps:$4 sm:$0xff]  }
  0xa8   : > { %1217 = vmatmul.mubr.bf16.vlgmr.msra.gmra.mrb[4].mxu1 %v288_v61  ;;  %1088 = vmatpush1.bf16.msra.mxu0 %v1776_v62 }
  0xa9   : > { %1597 = vmatpush3.bf16.msra.mxu1 %v1777_v63  ;;  %1089 = vmatprep.subr.bf16.mxu0 %v1778_v0 }
  0xaa   : > { %1598 = vmatprep.subr.bf16.mxu1 %v1780_v1  ;;  %1256 = vmatprep.mubr.bf16.mxu1 %v291_v20 }
  0xac   : > { %1090 = vmatpush1.bf16.msra.mxu0 %v1781_v2 }
  0xad   : > { %1599 = vmatpush3.bf16.msra.mxu1 %v1782_v3  ;;  %1091 = vmatprep.subr.bf16.mxu0 %v1783_v4 }
  0xae   : > { %1600 = vmatprep.subr.bf16.mxu1 %v1785_v5 }
  0xb0   : > { %1092 = vmatpush1.bf16.msra.mxu0 %v1786_v6  ;;  %v443_v6 = vlaneseq }
  0xb1   : > { %1601 = vmatpush3.bf16.msra.mxu1 %v1787_v7  ;;  %1102 = vmatprep.subr.bf16.mxu0 %v1790_v8 }
  0xb2   : > { %1602 = vmatprep.subr.bf16.mxu1 %v1791_v9  ;;  %v444_v7 = vshrl.u32 %v443_v6, 7  ;;  %v441_v9 = vld [vmem:[#allocation4] sm:$0x7] }
  0xb3   : > { %1094 = vmatmul.mubr.bf16.vlgmr.msra.gmra.mrb[0].mxu0 %v288_v61  ;;  %v1849_v61 = vld [vmem:[#allocation2 + $0x2e8] ss:$12 sps:$4 sm:$0xff]  }
  0xb4   : > { %1103 = vmatpush1.bf16.msra.mxu0 %v1788_v10  ;;  %1134 = vmatprep.mubr.bf16.mxu0 %v291_v20  ;;  %v453_v8 = vsub.s32 2, %v444_v7 }
  0xb5   : > { %1603 = vmatpush3.bf16.msra.mxu1 %v1792_v11  ;;  %1104 = vmatprep.subr.bf16.mxu0 %v1795_v12 }
  0xb6   : > { %1604 = vmatprep.subr.bf16.mxu1 %v1796_v13  ;;  %v454_v10 = vrot.slane %v441_v9, %v453_v8  ;;  %v1317_v20 = vrot.slane %v1304_v18, %v453_v8 }
  0xb8   : > { %1105 = vmatpush1.bf16.msra.mxu0 %v1793_v14 }
  0xb9   : > { %1605 = vmatpush3.bf16.msra.mxu1 %v1797_v16  ;;  %1106 = vmatprep.subr.bf16.mxu0 %v1800_v17 }
  0xba   : > { %1606 = vmatprep.subr.bf16.mxu1 %v1801_v19 }
  0xbc   : > { %1107 = vmatpush1.bf16.msra.mxu0 %v1798_v21 }
  0xbd   : > { %1607 = vmatpush3.bf16.msra.mxu1 %v1802_v22  ;;  %1108 = vmatprep.subr.bf16.mxu0 %v1805_v23 }
  0xbe   : > { %1608 = vmatprep.subr.bf16.mxu1 %v1806_v24 }
  0xc0   : > { %1109 = vmatpush1.bf16.msra.mxu0 %v1803_v25 }
  0xc1   : > { %1609 = vmatpush3.bf16.msra.mxu1 %v1807_v27  ;;  %1110 = vmatprep.subr.bf16.mxu0 %v1810_v28  ;;  %v1340_v27 = vld [vmem:[#allocation7 + $0x10] sm:$0xff] }
  0xc2   : > { %1610 = vmatprep.subr.bf16.mxu1 %v1811_v29 }
  0xc4   : > { %1111 = vmatpush1.bf16.msra.mxu0 %v1808_v30 }
  0xc5   : > { %1611 = vmatpush3.bf16.msra.mxu1 %v1812_v31  ;;  %1112 = vmatprep.subr.bf16.mxu0 %v1816_v32  ;;  %v445_v31 = vsub.s32 0, %v444_v7  ;;  %v449_v32 = vsub.s32 1, %v444_v7 }
  0xc6   : > { %1624 = vmatprep.subr.bf16.mxu1 %v1991_v36 }
  0xc8   : > { %1257 = vmatmul.mubr.bf16.vlgmr.msra.gmra.mrb[8].mxu1 %v2183_v33  ;;  %1113 = vmatpush1.bf16.msra.mxu0 %v1814_v34  ;;  %v450_v34 = vrot.slane %v441_v9, %v449_v32 }
  0xc9   : > { %1625 = vmatpush3.bf16.msra.mxu1 %v1817_v35  ;;  %1114 = vmatprep.subr.bf16.mxu0 %v1820_v37 }
  0xca   : > { %1626 = vmatprep.subr.bf16.mxu1 %v1991_v36  ;;  %1634 = vmatprep.mubr.msk.bf16.mxu1 %vm1992_vm2, %v1991_v36 }
  0xcc   : > { %1115 = vmatpush1.bf16.msra.mxu0 %v1818_v38 }
  0xcd   : > { %1627 = vmatpush3.bf16.msra.mxu1 %v1821_v39  ;;  %1116 = vmatprep.subr.bf16.mxu0 %v1824_v40 }
  0xce   : > { %1628 = vmatprep.subr.bf16.mxu1 %v1991_v36 }
  0xd0   : > { %1117 = vmatpush1.bf16.msra.mxu0 %v1822_v41  ;;  %v1309_v41 = vrot.slane %v1304_v18, %v445_v31 }
  0xd1   : > { %1629 = vmatpush3.bf16.msra.mxu1 %v1825_v42  ;;  %1118 = vmatprep.subr.bf16.mxu0 %v1828_v43 }
  0xd2   : > { %1630 = vmatprep.subr.bf16.mxu1 %v1991_v36 }
  0xd4   : > { %1119 = vmatpush1.bf16.msra.mxu0 %v1826_v44  ;;  %v1313_v44 = vrot.slane %v1304_v18, %v449_v32 }
  0xd5   : > { %1631 = vmatpush3.bf16.msra.mxu1 %v1829_v45  ;;  %1120 = vmatprep.subr.bf16.mxu0 %v1832_v46  ;;  %v1338_v46 = vld [vmem:[#allocation7] sm:$0xff] }
  0xd6   : > { %1632 = vmatprep.subr.bf16.mxu1 %v1991_v36 }
  0xd8   : > { %1121 = vmatpush1.bf16.msra.mxu0 %v1830_v48 }
  0xd9   : > { %1633 = vmatpush3.bf16.msra.mxu1 %v1059_v49  ;;  %1122 = vmatprep.subr.bf16.mxu0 %v1836_v50  ;;  %v1339_v49 = vld [vmem:[#allocation7 + $0x8] sm:$0xff] }
  0xdc   : > { %1635 = vmatmul.mubr.msk.bf16.vlgmr.msra.gmra.mrb[12].mxu1 %vm1047_vm1, %v2177_v26  ;;  %1123 = vmatpush1.bf16.msra.mxu0 %v1834_v51 }
  0xdd   : > { %1124 = vmatprep.subr.bf16.mxu0 %v1839_v52 }
  0xe0   : > { %1125 = vmatpush1.bf16.msra.mxu0 %v1837_v53 }
  0xe1   : > { %1126 = vmatprep.subr.bf16.mxu0 %v1842_v54 }
  0xe4   : > { %1127 = vmatpush1.bf16.msra.mxu0 %v1840_v55 }
  0xe5   : > { %1128 = vmatprep.subr.bf16.mxu0 %v1845_v56 }
  0xe8   : > { %1129 = vmatpush1.bf16.msra.mxu0 %v1843_v57 }
  0xe9   : > { %1130 = vmatprep.subr.bf16.mxu0 %v1848_v58 }
  0xec   : > { %1131 = vmatpush1.bf16.msra.mxu0 %v1846_v59 }
  0xed   : > { %1132 = vmatprep.subr.bf16.mxu0 %v1851_v60 }
  0xf0   : > { %1133 = vmatpush1.bf16.msra.mxu0 %v1849_v61 }
  0xf3   : > { %1135 = vmatmul.mubr.bf16.vlgmr.msra.gmra.mrb[0].mxu0 %v2183_v33  ;;  %v446_v33 = vrot.slane %v441_v9, %v445_v31 }
 0x15b   : > { %v1177_v26 = vpop.f32.mrb[0].mxu1 }
 0x15c   : > { %v1179_v62 = vpop.f32.mrb[1].mxu1 }
 0x15d   : > { %v1181_v63 = vpop.f32.mrb[2].mxu1 }
 0x15e   : > { %v1182_v0 = vpop.f32.mrb[3].mxu1 }
 0x17b   : > { %v1590_v1 = vpop.f32.mrb[4].mxu1 }
 0x17c   : > { %v1591_v2 = vpop.f32.mrb[5].mxu1 }
 0x17d   : > { %v1592_v3 = vadd.f32 %v1591_v2, %v1590_v1  ;;  %v1593_v4 = vpop.f32.mrb[6].mxu1 }
 0x17e   : > { %v1594_v5 = vpop.f32.mrb[7].mxu1 }
 0x17f   : > { %v1219_v13 = vadd.f32 %v1592_v3, %v454_v10 }
 0x19b   : > { %v1612_v11 = vpop.f32.mrb[8].mxu1 }
 0x19c   : > { %v1613_v12 = vpop.f32.mrb[9].mxu1 }
 0x19d   : > { %v1614_v14 = vadd.f32 %v1613_v12, %v1612_v11  ;;  %v1615_v15 = vpop.f32.mrb[10].mxu1 }
 0x19e   : > { %v1616_v16 = vpop.f32.mrb[11].mxu1 }
 0x19f   : > { %v1259_v17 = vadd.f32 %v1614_v14, %v1219_v13 }
 0x1af   : > { %v1298_v19 = vpop.f32.mrb[12].mxu1 }
 0x1b0   : > { %v1299_v21 = vadd.f32 %v1298_v19, %v1259_v17  ;;  %v1636_v22 = vpop.f32.mrb[13].mxu1 }
 0x1b1   : > { %v1301_v23 = vpop.f32.mrb[14].mxu1 }
 0x1b2   : > { %v1326_v24 = vrot.slane %v1299_v21, 7  ;;  %v1637_v25 = vpop.f32.mrb[15].mxu1 }
 0x1b4   : > { %v1333_v28 = vsel %vm1330_vm3, %v1317_v20, %v1326_v24 }
 0x1b5   : > { %v1337_v29 = vsel %vm1334_vm4, %v1333_v28, 0.0 }
 0x1b6   : > { %v1343_v30 = vadd.f32 %v1340_v27, %v1337_v29 }
 0x1b8   : > { %1346 = vst [vmem:[%s277_s17 + $0x10] sm:$0xff] %v1343_v30 }
 0x1c6   : > { %v1136_v35 = vpop.f32.mrb[0].mxu0 }
 0x1c7   : > { %v1638_v36 = vadd.f32 %v1136_v35, %v446_v33  ;;  %v1138_v37 = vpop.f32.mrb[1].mxu0 }
 0x1c8   : > { %v1640_v38 = vadd.f32 %v1138_v37, %v450_v34  ;;  %v1140_v39 = vpop.f32.mrb[2].mxu0 }
 0x1c9   : > { %v1639_v40 = vadd.f32 %v1638_v36, %v1177_v26  ;;  %v1141_v42 = vpop.f32.mrb[3].mxu0 }
 0x1ca   : > { %v1641_v43 = vadd.f32 %v1640_v38, %v1179_v62 }
 0x1cb   : > { %v1324_v45 = vrot.slane %v1639_v40, 7 }
 0x1cc   : > { %v1325_v47 = vrot.slane %v1641_v43, 7 }
 0x1cd   : > { %v1331_v48 = vsel %vm1330_vm3, %v1309_v41, %v1324_v45 }
 0x1ce   : > { %v1335_v50 = vsel %vm1334_vm4, %v1331_v48, 0.0  ;;  %v1332_v51 = vsel %vm1330_vm3, %v1313_v44, %v1325_v47 }
 0x1cf   : > { %v1341_v52 = vadd.f32 %v1338_v46, %v1335_v50  ;;  %v1336_v53 = vsel %vm1334_vm4, %v1332_v51, 0.0 }
 0x1d0   : > { %v1342_v54 = vadd.f32 %v1339_v49, %v1336_v53 }
 0x1d1   : > { %1344 = vst [vmem:[%s277_s17] sm:$0xff] %v1341_v52 }
 0x1d2   : > { %1345 = vst [vmem:[%s277_s17 + $0x8] sm:$0xff] %v1342_v54 }
 0x1d3 PF: > { %s18_s18 = sadd.s32 1, %s1982_s18  }
 0x1d4   : > { %p15_p6 = scmp.ge.s32.totalorder %s18_s18, 4  }
 0x1d6   :  { %17 = sbr.rel (!%p15_p6) target bundleno = 3 (0x3), region = 87 }
 0x1dd   :  { %1368 = vsyncpa [#allocation3], 1 }
 0x1de   :  { %1370 = vsyncpa [#allocation3 + $0x1], 1 }
 0x1df   :  { %1371 = vsyncpa [#allocation5], 1 }
 0x1e0   :  { %1372 = vsyncpa [#allocation8], 1 }

// kernel: dino_classifier_forward.5
= control target key start
LH: loop header
LB: loop body
LE: loop exit
PB: predicated region body
PF: predicated region fallthrough
CT: control target
= control target key end

     0   :  { %v36_v1 = vlaneseq  ;;  %v1067_v2 = vmov 1983009808   ;;  %vm51_vm0 = vcmask 1041408   ;;  %s1387_s0 = inlined_call_operand.vmem [shape: f32[2,384], index: 0, kind: input, shape index: {}]   ;;  %s1388_s1 = inlined_call_operand.vmem [shape: f32[1,384], index: 1, kind: input, shape index: {}]   ;;  %s1389_s2 = inlined_call_operand.vmem [shape: f32[1,384], index: 2, kind: input, shape index: {}]   ;;  %s1390_s3 = inlined_call_operand.vmem [shape: bf16[384,256], index: 3, kind: input, shape index: {}]   ;;  %s1391_s4 = inlined_call_operand.vmem [shape: f32[1,256], index: 4, kind: input, shape index: {}]   ;;  %s1392_s5 = inlined_call_operand.vmem [shape: bf16[256,5], index: 5, kind: input, shape index: {}]   ;;  %s1393_s6 = inlined_call_operand.vmem [shape: f32[1,5], index: 6, kind: input, shape index: {}]   ;;  %s1394_s7 = inlined_call_operand.hbm [shape: f32[2,5], index: 7, kind: output, shape index: {}]  }
   0x1   :  { %v28_v0 = vld [vmem:[%s1387_s0] sm:$0x3f]  ;;  %v34_v3 = vunpack.c.l.s4 %v1067_v2 }
   0x2   :  { %v37_v4 = vshrl.u32 %v36_v1, 7  ;;  %v32_v5 = vcombine.high %v28_v0, %v28_v0 }
   0x3   :  { %v35_v6 = vunpack.c.0.s8 %v34_v3 }
   0x5   :  { %v1114_v7 = vsub.s32 %v35_v6, %v37_v4 }
   0x7   :  { %v39_v8 = vrot.slane %v28_v0, %v1114_v7  ;;  %v46_v9 = vrot.slane %v32_v5, %v1114_v7 }
   0x9   :  { %v47_v10 = vcombine.high %v39_v8, %v39_v8  ;;  %v52_v11 = vsel %vm51_vm0, %v39_v8, 0.0  ;;  %v55_v13 = vsel %vm51_vm0, %v46_v9, 0.0 }
   0xb   :  { %v53_v12 = vsel %vm51_vm0, %v47_v10, 0.0 }
   0xc   :  { %v54_v14 = vadd.f32 %v53_v12, %v52_v11 }
   0xe   :  { %v56_v15 = vadd.f32 %v55_v13, %v54_v14 }
  0x10   :  { %57 = vadd.xlane.f32.xlu0 %v56_v15 }
  0x11   :  { %12 = vsyncpa [#allocation3], 0  ;;  %v1068_v16 = vmov 269488144   ;;  %v1129_v35 = vsub.s32 0, %v37_v4  ;;  %v1131_v36 = vsub.s32 1, %v37_v4 }
  0x12   :  { %v63_v17 = vunpack.c.l.s4 %v1068_v16  ;;  %v29_v38 = vld [vmem:[%s1388_s1] sm:$0x7]  ;;  %v123_v43 = vsub.s32 2, %v37_v4  ;;  %v951_v6 = vld [vmem:[%s1390_s3 + $0x4] ss:$8 sps:$4 sm:$0xff]   ;;  %s1070_s27 = smov [#allocation2]  }
  0x13   :  { %v30_v40 = vld [vmem:[%s1389_s2] sm:$0x7]  ;;  %v116_v41 = vrot.slane %v29_v38, %v1129_v35  ;;  %v120_v42 = vrot.slane %v29_v38, %v1131_v36  ;;  %v954_v9 = vld [vmem:[%s1390_s3 + $0x14] ss:$8 sps:$4 sm:$0xff]   ;;  %578 = vmatprep.subr.bf16.mxu0 %v951_v6  ;;  %v956_v10 = vld [vmem:[%s1390_s3 + $0x10] ss:$8 sps:$4 sm:$0xff]  }
  0x14   :  { %v64_v18 = vunpack.c.0.s8 %v63_v17  ;;  %v147_v44 = vrot.slane %v30_v40, %v1129_v35  ;;  %v151_v45 = vrot.slane %v30_v40, %v1131_v36  ;;  %v124_v46 = vrot.slane %v29_v38, %v123_v43  ;;  %v953_v8 = vld [vmem:[%s1390_s3] ss:$8 sps:$4 sm:$0xff]   ;;  %v957_v11 = vld [vmem:[%s1390_s3 + $0x24] ss:$8 sps:$4 sm:$0xff]   ;;  %v960_v15 = vld [vmem:[%s1390_s3 + $0x34] ss:$8 sps:$4 sm:$0xff]  }
  0x15   :  { %v125_v47 = vcombine.low %v116_v41, %v120_v42  ;;  %v155_v48 = vrot.slane %v30_v40, %v123_v43  ;;  %579 = vmatpush1.bf16.msra.mxu0 %v953_v8  ;;  %v975_v12 = vld [vmem:[%s1390_s3 + $0x104] ss:$8 sps:$4 sm:$0xff]   ;;  %v979_v13 = vld [vmem:[%s1390_s3 + $0x100] ss:$8 sps:$4 sm:$0xff]   ;;  %v962_v16 = vld [vmem:[%s1390_s3 + $0x30] ss:$8 sps:$4 sm:$0xff]  }
  0x16   :  { %v1121_v19 = vsub.s32 %v64_v18, %v37_v4  ;;  %v156_v49 = vcombine.low %v147_v44, %v151_v45  ;;  %v139_v51 = vrot.slane %v124_v46, %v1114_v7  ;;  %580 = vmatprep.subr.bf16.mxu0 %v954_v9  ;;  %v959_v14 = vld [vmem:[%s1390_s3 + $0x20] ss:$8 sps:$4 sm:$0xff]   ;;  %619 = vmatprep.subr.bf16.mxu1 %v975_v12  ;;  %v963_v17 = vld [vmem:[%s1390_s3 + $0x44] ss:$8 sps:$4 sm:$0xff]   ;;  %v981_v44 = vld [vmem:[%s1390_s3 + $0x114] ss:$8 sps:$4 sm:$0xff]  }
  0x17   :  { %v132_v50 = vrot.slane %v125_v47, %v1114_v7  ;;  %v170_v53 = vrot.slane %v155_v48, %v1114_v7  ;;  %620 = vmatpush1.bf16.msra.mxu1 %v979_v13  ;;  %v965_v18 = vld [vmem:[%s1390_s3 + $0x40] ss:$8 sps:$4 sm:$0xff]   ;;  %v983_v45 = vld [vmem:[%s1390_s3 + $0x94] ss:$8 sps:$4 sm:$0xff]   ;;  %v985_v46 = vld [vmem:[%s1390_s3 + $0x110] ss:$8 sps:$4 sm:$0xff]  }
  0x18   :  { %v163_v52 = vrot.slane %v156_v49, %v1114_v7  ;;  %621 = vmatprep.subr.bf16.mxu1 %v981_v44  ;;  %v986_v47 = vld [vmem:[%s1390_s3 + $0x90] ss:$8 sps:$4 sm:$0xff]   ;;  %v987_v48 = vld [vmem:[%s1390_s3 + $0x124] ss:$8 sps:$4 sm:$0xff]   ;;  %v1016_v6 = vld [vmem:[%s1390_s3 + $0xe0] ss:$8 sps:$4 sm:$0xff]  }
  0x19   :  { %v1148_v56 = vcombine.low %v132_v50, %v139_v51  ;;  %581 = vmatpush1.bf16.msra.mxu0 %v956_v10  ;;  %v989_v49 = vld [vmem:[%s1390_s3 + $0xa4] ss:$8 sps:$4 sm:$0xff]   ;;  %v991_v50 = vld [vmem:[%s1390_s3 + $0x120] ss:$8 sps:$4 sm:$0xff]   ;;  %v1017_v8 = vld [vmem:[%s1390_s3 + $0x174] ss:$8 sps:$4 sm:$0xff]  }
  0x1a   :  { %v1150_v58 = vcombine.low %v163_v52, %v170_v53  ;;  %582 = vmatprep.subr.bf16.mxu0 %v957_v11  ;;  %v992_v51 = vld [vmem:[%s1390_s3 + $0xa0] ss:$8 sps:$4 sm:$0xff]   ;;  %v993_v52 = vld [vmem:[%s1390_s3 + $0x134] ss:$8 sps:$4 sm:$0xff]   ;;  %v1021_v10 = vld [vmem:[%s1390_s3 + $0x170] ss:$8 sps:$4 sm:$0xff]  }
  0x1b   :  { %622 = vmatpush1.bf16.msra.mxu1 %v985_v46  ;;  %v995_v53 = vld [vmem:[%s1390_s3 + $0xb4] ss:$8 sps:$4 sm:$0xff]   ;;  %v1022_v11 = vld [vmem:[%s1390_s3 + $0xf0] ss:$8 sps:$4 sm:$0xff]   ;;  %v1023_v12 = vld [vmem:[%s1392_s5 + $0x40] sm:$0xff]   ;;  %s847_s28 = sshll.u32 %s1070_s27, 4  ;;  %s848_s28 = int_to_ptr.vmem [resolvable:$true] %s847_s28 }
  0x1c   :  { %623 = vmatprep.subr.bf16.mxu1 %v987_v48  ;;  %v1019_v9 = vld [vmem:[%s1390_s3 + $0xf4] ss:$8 sps:$4 sm:$0xff]   ;;  %vm839_vm1 = vcmask 33792   ;;  %s1043_s1 = scalar_lea.vmem %s848_s28, 32  ;;  %p1048_p1 = scmp.lt.s32.totalorder %s848_s28, %s848_s28 }
  0x1d   :  { %583 = vmatpush1.bf16.msra.mxu0 %v959_v14  ;;  %p1044_p0 = scmp.ne.s32.totalorder %s848_s28, %s1043_s1  ;;  %p1049_p2 = scmp.lt.s32.totalorder %s1043_s1, %s1043_s1 }
  0x1e   :  { %584 = vmatprep.subr.bf16.mxu0 %v960_v15 }
  0x1f   :  { %624 = vmatpush1.bf16.msra.mxu1 %v991_v50  ;;  %p1050_p3 = por %p1049_p2, %p1048_p1 }
  0x20   :  { %625 = vmatprep.subr.bf16.mxu1 %v993_v52 }
  0x21   :  { %585 = vmatpush1.bf16.msra.mxu0 %v962_v16  ;;  %p1051_p4 = pnand %p1050_p3, %p1044_p0 }
  0x22   :  { %586 = vmatprep.subr.bf16.mxu0 %v963_v17 }
  0x25   :  { %587 = vmatpush1.bf16.msra.mxu0 %v965_v18 }
  0x9d   :  { %v58_v20 = vpop.xlane.xlu0 %57 }
  0x9e   :  { %v60_v21 = vmul.f32 0.0026041667, %v58_v20  ;;  %v966_v20 = vld [vmem:[%s1390_s3 + $0x54] ss:$8 sps:$4 sm:$0xff]  }
  0x9f   :  { %588 = vmatprep.subr.bf16.mxu0 %v966_v20 }
  0xa0   :  { %v68_v22 = vrot.slane %v60_v21, %v1121_v19  ;;  %v968_v21 = vld [vmem:[%s1390_s3 + $0x50] ss:$8 sps:$4 sm:$0xff]  }
  0xa1   :  { %589 = vmatpush1.bf16.msra.mxu0 %v968_v21 }
  0xa2   :  { %v70_v23 = vsub.f32 %v28_v0, %v68_v22  ;;  %v969_v22 = vld [vmem:[%s1390_s3 + $0x64] ss:$8 sps:$4 sm:$0xff]  }
  0xa3   :  { %590 = vmatprep.subr.bf16.mxu0 %v969_v22 }
  0xa4   :  { %v71_v24 = vmul.f32 %v70_v23, %v70_v23 }
  0xa6   :  { %v73_v25 = vcombine.high %v71_v24, %v71_v24  ;;  %v80_v26 = vrot.slane %v71_v24, %v1114_v7  ;;  %v972_v24 = vld [vmem:[%s1390_s3 + $0x74] ss:$8 sps:$4 sm:$0xff]  }
  0xa8   :  { %v87_v27 = vrot.slane %v73_v25, %v1114_v7  ;;  %v88_v28 = vcombine.high %v80_v26, %v80_v26  ;;  %v92_v29 = vsel %vm51_vm0, %v80_v26, 0.0  ;;  %v974_v25 = vld [vmem:[%s1390_s3 + $0x70] ss:$8 sps:$4 sm:$0xff]   ;;  %v977_v26 = vld [vmem:[%s1390_s3 + $0x84] ss:$8 sps:$4 sm:$0xff]  }
  0xaa   :  { %v93_v30 = vsel %vm51_vm0, %v88_v28, 0.0  ;;  %v95_v32 = vsel %vm51_vm0, %v87_v27, 0.0  ;;  %v980_v27 = vld [vmem:[%s1390_s3 + $0x80] ss:$8 sps:$4 sm:$0xff]  }
  0xab   :  { %v94_v31 = vadd.f32 %v93_v30, %v92_v29 }
  0xad   :  { %v96_v33 = vadd.f32 %v95_v32, %v94_v31 }
  0xaf   :  { %97 = vadd.xlane.f32.xlu0 %v96_v33 }
 0x13c   :  { %v98_v34 = vpop.xlane.xlu0 %97 }
 0x13d   :  { %v99_v37 = vmul.f32 0.0026041667, %v98_v34 }
 0x13f   :  { %v100_v39 = vadd.f32 1e-06, %v99_v37 }
 0x141   :  { %1039 = vrsqrt.f32 %v100_v39 }
 0x14b   :  { %v1040_v54 = vpop.eup %1039 }
 0x14c   :  { %v109_v55 = vrot.slane %v1040_v54, %v1121_v19  ;;  %v997_v54 = vld [vmem:[%s1390_s3 + $0x130] ss:$8 sps:$4 sm:$0xff]  }
 0x14d   :  { %626 = vmatpush1.bf16.msra.mxu1 %v997_v54 }
 0x14e   :  { %v111_v57 = vmul.f32 %v109_v55, %v70_v23  ;;  %v971_v23 = vld [vmem:[%s1390_s3 + $0x60] ss:$8 sps:$4 sm:$0xff]   ;;  %v998_v55 = vld [vmem:[%s1390_s3 + $0xb0] ss:$8 sps:$4 sm:$0xff]  }
 0x14f   :  { %591 = vmatpush1.bf16.msra.mxu0 %v971_v23 }
 0x150   :  { %v142_v59 = vmul.f32 %v1148_v56, %v111_v57  ;;  %592 = vmatprep.subr.bf16.mxu0 %v972_v24  ;;  %v999_v57 = vld [vmem:[%s1390_s3 + $0x144] ss:$8 sps:$4 sm:$0xff]  }
 0x151   :  { %627 = vmatprep.subr.bf16.mxu1 %v999_v57 }
 0x152   :  { %v173_v60 = vadd.f32 %v1150_v58, %v142_v59  ;;  %v1001_v59 = vld [vmem:[%s1390_s3 + $0xc4] ss:$8 sps:$4 sm:$0xff]  }
 0x153   :  { %593 = vmatpush1.bf16.msra.mxu0 %v974_v25 }
 0x154   :  { %v175_v61 = vcombine.high %v173_v60, %v173_v60  ;;  %v182_v62 = vrot.slane %v173_v60, %v1114_v7  ;;  %594 = vmatprep.subr.bf16.mxu0 %v977_v26  ;;  %v1024_v26 = vld [vmem:[%s1392_s5] sm:$0xff]  }
 0x156   :  { %v189_v63 = vrot.slane %v175_v61, %v1114_v7  ;;  %v190_v0 = vcombine.high %v182_v62, %v182_v62  ;;  %v194_v1 = vsel %vm51_vm0, %v182_v62, 0.0  ;;  %v1004_v61 = vld [vmem:[%s1390_s3 + $0xc0] ss:$8 sps:$4 sm:$0xff]   ;;  %v1005_v62 = vld [vmem:[%s1390_s3 + $0x154] ss:$8 sps:$4 sm:$0xff]  }
 0x157   :  { %595 = vmatpush1.bf16.msra.mxu0 %v980_v27 }
 0x158   :  { %v195_v2 = vsel %vm51_vm0, %v190_v0, 0.0  ;;  %v197_v4 = vsel %vm51_vm0, %v189_v63, 0.0  ;;  %596 = vmatprep.subr.bf16.mxu0 %v983_v45  ;;  %v1007_v63 = vld [vmem:[%s1390_s3 + $0xd4] ss:$8 sps:$4 sm:$0xff]   ;;  %v1069_v0 = vmov 0  }
 0x159   :  { %v196_v3 = vadd.f32 %v195_v2, %v194_v1  ;;  %651 = vmatprep.mubr.bf16.mxu1 %v1069_v0  ;;  %v1009_v1 = vld [vmem:[%s1390_s3 + $0x150] ss:$8 sps:$4 sm:$0xff]  }
 0x15a   :  { %v1010_v2 = vld [vmem:[%s1390_s3 + $0xd0] ss:$8 sps:$4 sm:$0xff]  }
 0x15b   :  { %v198_v5 = vadd.f32 %v197_v4, %v196_v3  ;;  %597 = vmatpush1.bf16.msra.mxu0 %v986_v47  ;;  %v1011_v3 = vld [vmem:[%s1390_s3 + $0x164] ss:$8 sps:$4 sm:$0xff]  }
 0x15c   :  { %598 = vmatprep.subr.bf16.mxu0 %v989_v49  ;;  %v1013_v4 = vld [vmem:[%s1390_s3 + $0xe4] ss:$8 sps:$4 sm:$0xff]  }
 0x15d   :  { %199 = vadd.xlane.f32.xlu1 %v198_v5  ;;  %v1015_v5 = vld [vmem:[%s1390_s3 + $0x160] ss:$8 sps:$4 sm:$0xff]  }
 0x15f   :  { %599 = vmatpush1.bf16.msra.mxu0 %v992_v51 }
 0x160   :  { %600 = vmatprep.subr.bf16.mxu0 %v995_v53 }
 0x163   :  { %601 = vmatpush1.bf16.msra.mxu0 %v998_v55 }
 0x164   :  { %602 = vmatprep.subr.bf16.mxu0 %v1001_v59 }
 0x167   :  { %603 = vmatpush1.bf16.msra.mxu0 %v1004_v61 }
 0x168   :  { %604 = vmatprep.subr.bf16.mxu0 %v1007_v63 }
 0x16b   :  { %605 = vmatpush1.bf16.msra.mxu0 %v1010_v2 }
 0x16c   :  { %606 = vmatprep.subr.bf16.mxu0 %v1013_v4 }
 0x16f   :  { %607 = vmatpush1.bf16.msra.mxu0 %v1016_v6 }
 0x170   :  { %608 = vmatprep.subr.bf16.mxu0 %v1019_v9 }
 0x173   :  { %609 = vmatpush1.bf16.msra.mxu0 %v1022_v11 }
 0x1ea   :  { %v200_v28 = vpop.xlane.xlu1 %199 }
 0x1eb   :  { %v201_v29 = vmul.f32 0.0026041667, %v200_v28 }
 0x1ed   :  { %v209_v30 = vrot.slane %v201_v29, %v1121_v19 }
 0x1ef   :  { %v1220_v31 = vsub.f32 %v173_v60, %v209_v30  ;;  %v1003_v60 = vld [vmem:[%s1390_s3 + $0x140] ss:$8 sps:$4 sm:$0xff]   ;;  %v1029_v30 = vld [vmem:[%s1392_s5 + $0x58] sm:$0xff]  }
 0x1f0   :  { %628 = vmatpush1.bf16.msra.mxu1 %v1003_v60 }
 0x1f1   :  { %v212_v32 = vmul.f32 %v1220_v31, %v1220_v31  ;;  %629 = vmatprep.subr.bf16.mxu1 %v1005_v62 }
 0x1f3   :  { %v214_v33 = vcombine.high %v212_v32, %v212_v32  ;;  %v221_v34 = vrot.slane %v212_v32, %v1114_v7  ;;  %v1031_v32 = vld [vmem:[%s1392_s5 + $0x60] sm:$0xff]  }
 0x1f4   :  { %630 = vmatpush1.bf16.msra.mxu1 %v1009_v1 }
 0x1f5   :  { %v228_v37 = vrot.slane %v214_v33, %v1114_v7  ;;  %v229_v38 = vcombine.high %v221_v34, %v221_v34  ;;  %v233_v39 = vsel %vm51_vm0, %v221_v34, 0.0  ;;  %631 = vmatprep.subr.bf16.mxu1 %v1011_v3  ;;  %v1032_v33 = vld [vmem:[%s1392_s5 + $0x20] sm:$0xff]   ;;  %v1033_v34 = vld [vmem:[%s1392_s5 + $0x68] sm:$0xff]  }
 0x1f7   :  { %v234_v40 = vsel %vm51_vm0, %v229_v38, 0.0  ;;  %v236_v42 = vsel %vm51_vm0, %v228_v37, 0.0  ;;  %v1034_v37 = vld [vmem:[%s1392_s5 + $0x28] sm:$0xff]   ;;  %v1035_v38 = vld [vmem:[%s1392_s5 + $0x70] sm:$0xff]  }
 0x1f8   :  { %v235_v41 = vadd.f32 %v234_v40, %v233_v39  ;;  %632 = vmatpush1.bf16.msra.mxu1 %v1015_v5  ;;  %v1036_v39 = vld [vmem:[%s1392_s5 + $0x30] sm:$0xff]   ;;  %v1037_v40 = vld [vmem:[%s1392_s5 + $0x78] sm:$0xff]  }
 0x1f9   :  { %633 = vmatprep.subr.bf16.mxu1 %v1017_v8 }
 0x1fa   :  { %v237_v43 = vadd.f32 %v236_v42, %v235_v41  ;;  %v1038_v41 = vld [vmem:[%s1392_s5 + $0x38] sm:$0xff]   ;;  %v326_v42 = vld [vmem:[%s1391_s4] sm:$0x3] }
 0x1fb   :  { %v335_v44 = vrot.slane %v326_v42, %v1131_v36  ;;  %v903_v36 = vld [vmem:[%s1393_s6] ss:$0 sm:$0xff] }
 0x1fc   :  { %238 = vadd.xlane.f32.xlu1 %v237_v43  ;;  %634 = vmatpush1.bf16.msra.mxu1 %v1021_v10  ;;  %v331_v43 = vrot.slane %v326_v42, %v1129_v35 }
 0x1fd   :  { %920 = vmatprep.subr.bf16.mxu1 %v1023_v12 }
 0x289   :  { %v239_v13 = vpop.xlane.xlu1 %238 }
 0x28a   :  { %v240_v14 = vmul.f32 0.0026041667, %v239_v13 }
 0x28c   :  { %v241_v15 = vadd.f32 1e-06, %v240_v14 }
 0x28e   :  { %1041 = vrsqrt.f32 %v241_v15 }
 0x298   :  { %v1042_v16 = vpop.eup %1041 }
 0x299   :  { %v250_v17 = vrot.slane %v1042_v16, %v1121_v19  ;;  %v1025_v19 = vld [vmem:[%s1392_s5 + $0x48] sm:$0xff]  }
 0x29b   :  { %v252_v18 = vmul.f32 %v250_v17, %v1220_v31  ;;  %v1030_v31 = vld [vmem:[%s1392_s5 + $0x18] sm:$0xff]  }
 0x29d   :  { %v253_v20 = vmul.f32 %v252_v18, %v1148_v56  ;;  %v1026_v56 = vld [vmem:[%s1392_s5 + $0x8] sm:$0xff]  }
 0x29f   :  { %v254_v21 = vadd.f32 %v253_v20, %v1150_v58  ;;  %v1028_v58 = vld [vmem:[%s1392_s5 + $0x10] sm:$0xff]  }
 0x2a1   :  { %v263_v22 = vrot.slane %v254_v21, %v1114_v7  ;;  %v256_v23 = vcombine.high %v254_v21, %v254_v21 }
 0x2a3   :  { %v271_v24 = vcombine.high %v263_v22, %v263_v22  ;;  %v270_v25 = vrot.slane %v256_v23, %v1114_v7  ;;  %v275_v29 = vpack.c.bf16 %v263_v22, %v263_v22  ;;  %v1027_v7 = vld [vmem:[%s1392_s5 + $0x50] sm:$0xff]  }
 0x2a5   :  { %v276_v27 = vpack.c.bf16 %v271_v24, %v271_v24  ;;  %v277_v28 = vpack.c.bf16 %v270_v25, %v270_v25 }
 0x2a7   :  { %610 = vmatprep.mubr.bf16.mxu0 %v276_v27  ;;  %652 = vmatmul.mubr.bf16.vlgmr.msra.gmra.mrb[0].mxu1 %v277_v28 }
 0x2a8   :  { %611 = vmatmul.mubr.bf16.vlgmr.msra.gmra.mrb[0].mxu0 %v275_v29  ;;  %921 = vmatpush3.bf16.msra.mxu1 %v1024_v26 }
 0x2a9   :  { %922 = vmatprep.subr.bf16.mxu1 %v1025_v19 }
 0x2ac   :  { %923 = vmatpush3.bf16.msra.mxu1 %v1026_v56 }
 0x2ad   :  { %924 = vmatprep.subr.bf16.mxu1 %v1027_v7 }
 0x2b0   :  { %925 = vmatpush3.bf16.msra.mxu1 %v1028_v58 }
 0x2b1   :  { %926 = vmatprep.subr.bf16.mxu1 %v1029_v30 }
 0x2b4   :  { %927 = vmatpush3.bf16.msra.mxu1 %v1030_v31 }
 0x2b5   :  { %928 = vmatprep.subr.bf16.mxu1 %v1031_v32 }
 0x2b8   :  { %929 = vmatpush3.bf16.msra.mxu1 %v1032_v33 }
 0x2b9   :  { %930 = vmatprep.subr.bf16.mxu1 %v1033_v34 }
 0x2bc   :  { %931 = vmatpush3.bf16.msra.mxu1 %v1034_v37 }
 0x2bd   :  { %932 = vmatprep.subr.bf16.mxu1 %v1035_v38 }
 0x2c0   :  { %933 = vmatpush3.bf16.msra.mxu1 %v1036_v39 }
 0x2c1   :  { %934 = vmatprep.subr.bf16.mxu1 %v1037_v40 }
 0x2c4   :  { %935 = vmatpush3.bf16.msra.mxu1 %v1038_v41 }
 0x37a   :  { %v653_v45 = vpop.f32.mrb[0].mxu1 }
 0x37b   :  { %v612_v46 = vpop.f32.mrb[0].mxu0  ;;  %v655_v47 = vpop.f32.mrb[1].mxu1 }
 0x37c   :  { %v613_v48 = vadd.f32 %v612_v46, %v331_v43  ;;  %v614_v49 = vpop.f32.mrb[1].mxu0  ;;  %v657_v50 = vpop.f32.mrb[2].mxu1 }
 0x37d   :  { %v615_v51 = vadd.f32 %v614_v49, %v335_v44  ;;  %v616_v52 = vpop.f32.mrb[2].mxu0  ;;  %v658_v53 = vpop.f32.mrb[3].mxu1 }
 0x37e   :  { %v654_v54 = vadd.f32 %v653_v45, %v613_v48  ;;  %v617_v55 = vpop.f32.mrb[3].mxu0 }
 0x37f   :  { %v656_v57 = vadd.f32 %v655_v47, %v615_v51 }
 0x380   :  { %v660_v59 = vmax.f32 %v654_v54, 0.0 }
 0x381   :  { %v661_v60 = vmax.f32 %v656_v57, 0.0 }
 0x382   :  { %v662_v62 = vpack.c.bf16 %v660_v59, %v660_v59 }
 0x383   :  { %v663_v61 = vpack.c.bf16 %v661_v60, %v661_v60 }
 0x385   :  { %831 = vmatprep.mubr.bf16.mxu1 %v663_v61 }
 0x386   :  { %832 = vmatmul.mubr.bf16.vlgmr.msra.gmra.mrb[4].mxu1 %v662_v62 }
 0x459   :  { %v936_v35 = vpop.f32.mrb[4].mxu1 }
 0x45a   :  { %v937_v63 = vpop.f32.mrb[5].mxu1 }
 0x45b   :  { %v938_v0 = vadd.f32 %v937_v63, %v936_v35  ;;  %v939_v1 = vpop.f32.mrb[6].mxu1 }
 0x45c   :  { %v940_v2 = vpop.f32.mrb[7].mxu1 }
 0x45d   :  { %v834_v3 = vadd.f32 %v938_v0, %v903_v36 }
 0x45f   :  { %840 = vst.msk [vmem:[#allocation2] sm:$0x3] %vm839_vm1, %v834_v3 }
 0x460   :  { %1054 = shalt.err (!%p1051_p4)
}
 0x461   :  { %s1055_s6 = scalar_lea.hbm %s1394_s7, 32 }
 0x462   :  { %p1056_p5 = scmp.ne.s32.totalorder %s1394_s7, %s1055_s6  ;;  %p1059_p6 = scmp.lt.u32.totalorder %s1055_s6, %s1394_s7 }
 0x464   :  { %p1061_p7 = pnand %p1059_p6, %p1056_p5 }
 0x466   :  { %1064 = shalt.err (!%p1061_p7)
}
 0x467   :  { %850 = dma.vmem_to_hbm [thread:$0]  %s848_s28, 32, %s1394_s7, [#allocation3]  }
 0x468   :  { %1065 = dma.done.wait [#allocation3], 32  }
 0x469   :  { %1066 = vsyncadd [#allocation3], 4294967264 }
 0x46a   :  { %854 = vsyncpa [#allocation3], 1 }

// kernel: dino_classifier_forward.4
= control target key start
LH: loop header
LB: loop body
LE: loop exit
PB: predicated region body
PF: predicated region fallthrough
CT: control target
= control target key end

     0   :  { %s16291_s0 = inlined_call_operand.vmem [shape: f32[2,8,384], index: 0, kind: input, shape index: {}]   ;;  %s16292_s1 = inlined_call_operand.hbm [shape: f32[12,1,384], index: 1, kind: input, shape index: {}]   ;;  %s16293_s2 = inlined_call_operand.hbm [shape: f32[12,1,384], index: 2, kind: input, shape index: {}]   ;;  %s16294_s3 = inlined_call_operand.hbm [shape: bf16[12,384,1152], index: 3, kind: input, shape index: {}]   ;;  %s16295_s4 = inlined_call_operand.hbm [shape: f32[12,1,1152], index: 4, kind: input, shape index: {}]   ;;  %s16296_s5 = inlined_call_operand.hbm [shape: bf16[12,384,384], index: 5, kind: input, shape index: {}]   ;;  %s16297_s6 = inlined_call_operand.hbm [shape: f32[12,1,384], index: 6, kind: input, shape index: {}]   ;;  %s16298_s7 = inlined_call_operand.hbm [shape: f32[12,1,384], index: 7, kind: input, shape index: {}]   ;;  %s16299_s8 = inlined_call_operand.hbm [shape: f32[12,1,384], index: 8, kind: input, shape index: {}]   ;;  %s16300_s9 = inlined_call_operand.hbm [shape: f32[12,1,384], index: 9, kind: input, shape index: {}]   ;;  %s16301_s10 = inlined_call_operand.hbm [shape: bf16[12,384,1536], index: 10, kind: input, shape index: {}]   ;;  %s16302_s11 = inlined_call_operand.hbm [shape: f32[12,1,1536], index: 11, kind: input, shape index: {}]   ;;  %s16303_s12 = inlined_call_operand.hbm [shape: bf16[12,1536,384], index: 12, kind: input, shape index: {}]   ;;  %s16304_s13 = inlined_call_operand.hbm [shape: f32[12,1,384], index: 13, kind: input, shape index: {}]   ;;  %s16305_s14 = inlined_call_operand.hbm [shape: f32[12,1,384], index: 14, kind: input, shape index: {}]   ;;  %s16306_s15 = inlined_call_operand.vmem [shape: f32[2,1,384], index: 15, kind: output, shape index: {}]  }
   0x1   :  { %16326 = sst [smem:[#allocation39_spill]] %s16291_s0 }
   0x2   :  { %16327 = sst [smem:[#allocation40_spill]] %s16292_s1 }
   0x3   :  { %16328 = sst [smem:[#allocation41_spill]] %s16293_s2 }
   0x4   :  { %16329 = sst [smem:[#allocation42_spill]] %s16294_s3 }
   0x5   :  { %16330 = sst [smem:[#allocation43_spill]] %s16295_s4 }
   0x6   :  { %16331 = sst [smem:[#allocation44_spill]] %s16305_s14 }
   0x7   :  { %16332 = sst [smem:[#allocation45_spill]] %s16306_s15 }
   0x8   :  { %20 = vsyncpa [#allocation4], 0 }
   0x9   :  { %22 = vsyncpa [#allocation4 + $0x1], 0 }
   0xa   :  { %23 = vsyncpa [#allocation6], 0 }
   0xb   :  { %25 = vsyncpa [#allocation6 + $0x1], 0 }
   0xc   :  { %26 = vsyncpa [#allocation9], 0 }
   0xd   :  { %28 = vsyncpa [#allocation9 + $0x1], 0 }
   0xe   :  { %29 = vsyncpa [#allocation12], 0 }
   0xf   :  { %31 = vsyncpa [#allocation12 + $0x1], 0 }
  0x10   :  { %32 = vsyncpa [#allocation15], 0 }
  0x11   :  { %34 = vsyncpa [#allocation15 + $0x1], 0 }
  0x12   :  { %35 = vsyncpa [#allocation18], 0 }
  0x13   :  { %37 = vsyncpa [#allocation18 + $0x1], 0 }
  0x14   :  { %38 = vsyncpa [#allocation21], 0 }
  0x15   :  { %40 = vsyncpa [#allocation21 + $0x1], 0 }
  0x16   :  { %41 = vsyncpa [#allocation24], 0 }
  0x17   :  { %43 = vsyncpa [#allocation24 + $0x1], 0  ;;  %s13933_s18 = smov 0   ;;  %s13935_s19 = smov 0  }
  0x18   :  { %s13937_s20 = smov 0   ;;  %s13939_s21 = smov 0  }
  0x19 LB: > { %16333 = sst [smem:[#allocation33_spill]] %s13818_s19  ;;  %s13952_s22 = sadd.s32 4294967295, %s13826_s21   ;;  %s13826_s21 = sphi %s13939_s21, %s16366_s21   ;;  %s13822_s20 = sphi %s13937_s20, %s16369_s20   ;;  %s13818_s19 = sphi %s13935_s19, %s16368_s19   ;;  %s13814_s18 = sphi %s13933_s18, %s16367_s18  }
  0x1a   : > { %16334 = sst [smem:[#allocation34_spill]] %s13822_s20  ;;  %s13955_s23 = sadd.s32 1, %s13826_s21  }
  0x1b   : > { %16335 = sst [smem:[#allocation35_spill]] %s13952_s22  ;;  %s74_s24 = ssub.s32 %s13826_s21, %s13955_s23 }
  0x1c   : > { %16336 = sst [smem:[#allocation36_spill]] %s13955_s23  ;;  %s77_s25 = sadd.s32 1, %s13822_s20 }
  0x1d   : > { %p75_p0 = scmp.eq.s32.totalorder %s74_s24, 0  ;;  %p84_p1 = scmp.ne.s32.totalorder %s13822_s20, %s13818_s19 }
  0x1e   : > { %p85_p2 = scmp.eq.s32.totalorder %s13826_s21, 0  ;;  %p90_p3 = scmp.ne.s32.totalorder %s13818_s19, %s13814_s18 }
  0x1f   : > { %s13965_s26 = scalar_select %p75_p0, %s13822_s20, %s77_s25  }
  0x20   : > { %p13967_p4 = por %p85_p2, %p84_p1  ;;  %p91_p5 = scmp.eq.s32.totalorder %s13952_s22, 0 }
  0x21   : > { %16337 = sst [smem:[#allocation37_spill]] %s13965_s26  ;;  %p10472_p7 = scmp.ge.s32.totalorder %s13826_s21, 12 }
  0x22   : > { %p13972_p6 = por %p91_p5, %p90_p3  ;;  %s13978_s29 = sand.u32 (!%p10472_p7), 1, %s13822_s20  }
  0x23   : > { %472 = sbr.rel (%p10472_p7) target bundleno = 396 (0x18c), region = 20  ;;  %s13987_s17 = sand.u32 (!%p10472_p7), 1, %s13826_s21  }
  0x24   : > { %s16339_s28 = scalar_select %p13972_p6, 1, 0 }
  0x25   : > { %s13981_s30 = smul.u32 (!%p10472_p7), 48, %s13826_s21  ;;  %s16341_s2 = sld [smem:[#allocation41_spill]] (!%p10472_p7) }
  0x26   : > { %16340 = sst [smem:[#allocation38_spill]] %s16339_s28  ;;  %s13984_s16 = smul.u32 (!%p10472_p7), 3, %s13978_s29 }
  0x27   : > { %s11924_s23 = smul.u32 (!%p10472_p7), 9, %s13978_s29  ;;  %s16318_s0 = scalar_lea.sflag (!%p10472_p7), [#allocation6], %s13987_s17 }
  0x28   : > { %s499_s26 = scalar_lea.vmem (!%p10472_p7), [#allocation5], %s13984_s16  ;;  %s11925_s15 = smul.u32 (!%p10472_p7), 144, %s13826_s21 }
  0x29   : > { %s507_s20 = sshll.u32 (!%p10472_p7), %s499_s26, 4  ;;  %s13997_s20 = int_to_ptr.vmem [resolvable:$true] %s507_s20 }
  0x2b   : > { %s13993_s25 = scalar_lea.hbm %s16341_s2, %s13981_s30  ;;  %s13376_s28 = scalar_lea.hbm %s16341_s2, 576 }
  0x2c   : > { %s13372_s22 = scalar_lea.hbm %s13993_s25, 48  ;;  %p13377_p11 = scmp.lt.u32.totalorder %s13993_s25, %s16341_s2 }
  0x2d   : > { %p13373_p8 = scmp.ne.s32.totalorder %s13993_s25, %s13372_s22  ;;  %p13378_p12 = scmp.lt.u32.totalorder %s13376_s28, %s13372_s22 }
  0x2e   : > { %p13380_p0 = scmp.lt.u32.totalorder %s13372_s22, %s13993_s25 }
  0x2f   : > { %p13374_p9 = pnand %p13373_p8, %p13967_p4  ;;  %p13379_p13 = por %p13378_p12, %p13377_p11 }
  0x31   : > { %p13375_p10 = pneg %p13374_p9  ;;  %p13381_p1 = por %p13380_p0, %p13379_p13 }
  0x33   : > { %p13382_p2 = pnand %p13381_p1, %p13375_p10 }
  0x35   : > { %13385 = shalt.err (!%p13382_p2)
}
  0x36   : > { %s13386_s26 = scalar_lea.vmem %s13997_s20, 48  ;;  %s13828_s18 = smov [#allocation5]  }
  0x37   : > { %p13387_p3 = scmp.ne.s32.totalorder %s13997_s20, %s13386_s26  ;;  %s13390_s24 = sshll.u32 %s13828_s18, 4  ;;  %s13391_s24 = int_to_ptr.vmem [resolvable:$false] %s13390_s24 }
  0x38   : > { %s13392_s14 = scalar_lea.vmem %s13391_s24, 96  ;;  %p13393_p8 = scmp.lt.s32.totalorder %s13997_s20, %s13391_s24 }
  0x39   : > { %p13388_p5 = pnand %p13387_p3, %p13967_p4  ;;  %p13394_p9 = scmp.lt.s32.totalorder %s13392_s14, %s13386_s26 }
  0x3b   : > { %p13389_p7 = pneg %p13388_p5  ;;  %p13395_p11 = por %p13394_p9, %p13393_p8 }
  0x3d   : > { %p13396_p12 = pnand %p13395_p11, %p13389_p7 }
  0x3f   : > { %13399 = shalt.err (!%p13396_p12)
}
  0x40   : > { %11953 = dma.hbm_to_vmem [thread:$0]  (%p13967_p4), %s13993_s25, 48, %s13997_s20, %s16318_s0  }
  0x41   : > { %s16342_s4 = sld [smem:[#allocation43_spill]]  ;;  %s539_s26 = scalar_lea.vmem [#allocation8], %s11924_s23 }
  0x42   : > { %s547_s18 = sshll.u32 %s539_s26, 4  ;;  %s16320_s24 = scalar_lea.sflag [#allocation9], %s13987_s17  ;;  %s548_s18 = int_to_ptr.vmem [resolvable:$true] %s547_s18 }
  0x47   : > { %s14029_s28 = scalar_lea.hbm %s16342_s4, %s11925_s15  ;;  %s13404_s19 = scalar_lea.hbm %s16342_s4, 1728 }
  0x48   : > { %s13400_s14 = scalar_lea.hbm %s14029_s28, 144  ;;  %p13405_p1 = scmp.lt.u32.totalorder %s14029_s28, %s16342_s4 }
  0x49   : > { %p13401_p10 = scmp.ne.s32.totalorder %s14029_s28, %s13400_s14  ;;  %p13406_p2 = scmp.lt.u32.totalorder %s13404_s19, %s13400_s14 }
  0x4a   : > { %p13408_p5 = scmp.lt.u32.totalorder %s13400_s14, %s14029_s28 }
  0x4b   : > { %p13402_p13 = pnand %p13401_p10, %p13967_p4  ;;  %p13407_p3 = por %p13406_p2, %p13405_p1 }
  0x4d   : > { %p13403_p0 = pneg %p13402_p13  ;;  %p13409_p7 = por %p13408_p5, %p13407_p3 }
  0x4f   : > { %p13410_p8 = pnand %p13409_p7, %p13403_p0 }
  0x51   : > { %13413 = shalt.err (!%p13410_p8)
}
  0x52   : > { %s13414_s23 = scalar_lea.vmem %s548_s18, 144  ;;  %s13829_s26 = smov [#allocation8]  }
  0x53   : > { %p13415_p9 = scmp.ne.s32.totalorder %s548_s18, %s13414_s23  ;;  %s13418_s0 = sshll.u32 %s13829_s26, 4  ;;  %s13419_s0 = int_to_ptr.vmem [resolvable:$false] %s13418_s0 }
  0x54   : > { %s13420_s20 = scalar_lea.vmem %s13419_s0, 288  ;;  %p13421_p10 = scmp.lt.s32.totalorder %s548_s18, %s13419_s0 }
  0x55   : > { %p13416_p11 = pnand %p13415_p9, %p13967_p4  ;;  %p13422_p13 = scmp.lt.s32.totalorder %s13420_s20, %s13414_s23 }
  0x57   : > { %p13417_p12 = pneg %p13416_p11  ;;  %p13423_p6 = por %p13422_p13, %p13421_p10 }
  0x59   : > { %p13424_p1 = pnand %p13423_p6, %p13417_p12 }
  0x5b   : > { %13427 = shalt.err (!%p13424_p1)
}
  0x5c   : > { %11955 = dma.hbm_to_vmem [thread:$0]  (%p13967_p4), %s14029_s28, 144, %s548_s18, %s16320_s24  }
  0x5d   : > { %s14057_s19 = scalar_lea.hbm %s16297_s6, %s13981_s30  ;;  %s579_s0 = scalar_lea.vmem [#allocation11], %s13984_s16 }
  0x5e   : > { %s587_s15 = sshll.u32 %s579_s0, 4  ;;  %s16321_s22 = scalar_lea.sflag [#allocation12], %s13987_s17  ;;  %s588_s15 = int_to_ptr.vmem [resolvable:$true] %s587_s15 }
  0x5f   : > { %s13428_s23 = scalar_lea.hbm %s14057_s19, 48  ;;  %s13432_s18 = scalar_lea.hbm %s16297_s6, 576 }
  0x60   : > { %p13429_p6 = scmp.ne.s32.totalorder %s14057_s19, %s13428_s23  ;;  %p13433_p3 = scmp.lt.u32.totalorder %s14057_s19, %s16297_s6 }
  0x61   : > { %p13434_p5 = scmp.lt.u32.totalorder %s13432_s18, %s13428_s23  ;;  %p13436_p8 = scmp.lt.u32.totalorder %s13428_s23, %s14057_s19 }
  0x62   : > { %p13430_p0 = pnand %p13429_p6, %p13967_p4 }
  0x63   : > { %p13435_p7 = por %p13434_p5, %p13433_p3 }
  0x64   : > { %p13431_p2 = pneg %p13430_p0 }
  0x65   : > { %p13437_p9 = por %p13436_p8, %p13435_p7 }
  0x67   : > { %p13438_p11 = pnand %p13437_p9, %p13431_p2 }
  0x69   : > { %13441 = shalt.err (!%p13438_p11)
}
  0x6a   : > { %s13442_s25 = scalar_lea.vmem %s588_s15, 48  ;;  %s13830_s0 = smov [#allocation11]  }
  0x6b   : > { %p13443_p12 = scmp.ne.s32.totalorder %s588_s15, %s13442_s25  ;;  %s13446_s24 = sshll.u32 %s13830_s0, 4  ;;  %s13447_s24 = int_to_ptr.vmem [resolvable:$false] %s13446_s24 }
  0x6c   : > { %s13448_s26 = scalar_lea.vmem %s13447_s24, 96  ;;  %p13449_p1 = scmp.lt.s32.totalorder %s588_s15, %s13447_s24 }
  0x6d   : > { %p13444_p10 = pnand %p13443_p12, %p13967_p4  ;;  %p13450_p6 = scmp.lt.s32.totalorder %s13448_s26, %s13442_s25 }
  0x6f   : > { %p13445_p13 = pneg %p13444_p10  ;;  %p13451_p0 = por %p13450_p6, %p13449_p1 }
  0x71   : > { %p13452_p3 = pnand %p13451_p0, %p13445_p13 }
  0x73   : > { %13455 = shalt.err (!%p13452_p3)
}
  0x74   : > { %11957 = dma.hbm_to_vmem [thread:$0]  (%p13967_p4), %s14057_s19, 48, %s588_s15, %s16321_s22  }
  0x75   : > { %s14084_s18 = scalar_lea.hbm %s16299_s8, %s13981_s30  ;;  %s617_s24 = scalar_lea.vmem [#allocation14], %s13984_s16 }
  0x76   : > { %s625_s20 = sshll.u32 %s617_s24, 4  ;;  %s11936_s14 = smul.u32 2304, %s13978_s29  ;;  %s14087_s20 = int_to_ptr.vmem [resolvable:$true] %s625_s20 }
  0x77   : > { %s16322_s25 = scalar_lea.sflag [#allocation15], %s13987_s17  ;;  %s13456_s0 = scalar_lea.hbm %s14084_s18, 48 }
  0x78   : > { %p13457_p2 = scmp.ne.s32.totalorder %s14084_s18, %s13456_s0  ;;  %s13460_s26 = scalar_lea.hbm %s16299_s8, 576 }
  0x79   : > { %p13461_p8 = scmp.lt.u32.totalorder %s14084_s18, %s16299_s8  ;;  %p13462_p9 = scmp.lt.u32.totalorder %s13460_s26, %s13456_s0 }
  0x7a   : > { %p13458_p5 = pnand %p13457_p2, %p13967_p4  ;;  %p13464_p12 = scmp.lt.u32.totalorder %s13456_s0, %s14084_s18 }
  0x7b   : > { %p13463_p11 = por %p13462_p9, %p13461_p8 }
  0x7c   : > { %p13459_p7 = pneg %p13458_p5 }
  0x7d   : > { %p13465_p10 = por %p13464_p12, %p13463_p11 }
  0x7f   : > { %p13466_p13 = pnand %p13465_p10, %p13459_p7 }
  0x81   : > { %13469 = shalt.err (!%p13466_p13)
}
  0x82   : > { %s13470_s24 = scalar_lea.vmem %s14087_s20, 48  ;;  %s13831_s19 = smov [#allocation14]  }
  0x83   : > { %p13471_p1 = scmp.ne.s32.totalorder %s14087_s20, %s13470_s24  ;;  %s13474_s15 = sshll.u32 %s13831_s19, 4  ;;  %s13475_s15 = int_to_ptr.vmem [resolvable:$false] %s13474_s15 }
  0x84   : > { %s13476_s23 = scalar_lea.vmem %s13475_s15, 96  ;;  %p13477_p3 = scmp.lt.s32.totalorder %s14087_s20, %s13475_s15 }
  0x85   : > { %p13472_p6 = pnand %p13471_p1, %p13967_p4  ;;  %p13478_p2 = scmp.lt.s32.totalorder %s13476_s23, %s13470_s24 }
  0x87   : > { %p13473_p0 = pneg %p13472_p6  ;;  %p13479_p5 = por %p13478_p2, %p13477_p3 }
  0x89   : > { %p13480_p8 = pnand %p13479_p5, %p13473_p0 }
  0x8b   : > { %13483 = shalt.err (!%p13480_p8)
}
  0x8c   : > { %11959 = dma.hbm_to_vmem [thread:$0]  (%p13967_p4), %s14084_s18, 48, %s14087_s20, %s16322_s25  }
  0x8d   : > { %s11937_s0 = smul.u32 36864, %s13826_s21  ;;  %s655_s26 = scalar_lea.vmem [#allocation17], %s11936_s14 }
  0x8e   : > { %s662_s28 = sshll.u32 %s655_s26, 4  ;;  %s16324_s23 = scalar_lea.sflag [#allocation18], %s13987_s17  ;;  %s14124_s28 = int_to_ptr.vmem [resolvable:$true] %s662_s28 }
  0x8f   : > { %s14122_s15 = scalar_lea.hbm %s16301_s10, %s11937_s0  ;;  %s13488_s26 = scalar_lea.hbm %s16301_s10, 442368 }
  0x90   : > { %s13484_s22 = scalar_lea.hbm %s14122_s15, 36864  ;;  %p13489_p12 = scmp.lt.u32.totalorder %s14122_s15, %s16301_s10 }
  0x91   : > { %p13485_p7 = scmp.ne.s32.totalorder %s14122_s15, %s13484_s22  ;;  %p13490_p10 = scmp.lt.u32.totalorder %s13488_s26, %s13484_s22 }
  0x92   : > { %p13492_p1 = scmp.lt.u32.totalorder %s13484_s22, %s14122_s15 }
  0x93   : > { %p13486_p9 = pnand %p13485_p7, %p13967_p4  ;;  %p13491_p13 = por %p13490_p10, %p13489_p12 }
  0x95   : > { %p13487_p11 = pneg %p13486_p9  ;;  %p13493_p6 = por %p13492_p1, %p13491_p13 }
  0x97   : > { %p13494_p0 = pnand %p13493_p6, %p13487_p11 }
  0x99   : > { %13497 = shalt.err (!%p13494_p0)
}
  0x9a   : > { %s13498_s19 = scalar_lea.vmem %s14124_s28, 36864  ;;  %s13832_s18 = smov [#allocation17]  }
  0x9b   : > { %p13499_p3 = scmp.ne.s32.totalorder %s14124_s28, %s13498_s19  ;;  %s13502_s20 = sshll.u32 %s13832_s18, 4  ;;  %s13503_s20 = int_to_ptr.vmem [resolvable:$false] %s13502_s20 }
  0x9c   : > { %s13504_s25 = scalar_lea.vmem %s13503_s20, 73728  ;;  %p13505_p8 = scmp.lt.s32.totalorder %s14124_s28, %s13503_s20 }
  0x9d   : > { %p13500_p2 = pnand %p13499_p3, %p13967_p4  ;;  %p13506_p7 = scmp.lt.s32.totalorder %s13504_s25, %s13498_s19 }
  0x9f   : > { %p13501_p5 = pneg %p13500_p2  ;;  %p13507_p9 = por %p13506_p7, %p13505_p8 }
  0xa1   : > { %p13508_p12 = pnand %p13507_p9, %p13501_p5 }
  0xa3   : > { %13511 = shalt.err (!%p13508_p12)
}
  0xa4   : > { %s13833_s22 = smov 768   ;;  %s13834_s26 = smov 48  }
  0xa5   : > { %11961 = dma.hbm_to_vmem [thread:$0]  (%p13967_p4), %s14122_s15, 36864, %s14124_s28, %s16324_s23, %s13833_s22, %s13833_s22, %s13834_s26  }
  0xa6   : > { %s14155_s19 = scalar_lea.hbm %s16303_s12, %s11937_s0  ;;  %s695_s20 = scalar_lea.vmem [#allocation20], %s11936_s14 }
  0xa7   : > { %s702_s25 = sshll.u32 %s695_s20, 4  ;;  %s16323_s2 = scalar_lea.sflag [#allocation21], %s13987_s17  ;;  %s14159_s25 = int_to_ptr.vmem [resolvable:$true] %s702_s25 }
  0xa8   : > { %s13512_s4 = scalar_lea.hbm %s14155_s19, 36864  ;;  %s13516_s0 = scalar_lea.hbm %s16303_s12, 442368 }
  0xa9   : > { %p13513_p11 = scmp.ne.s32.totalorder %s14155_s19, %s13512_s4  ;;  %p13517_p1 = scmp.lt.u32.totalorder %s14155_s19, %s16303_s12 }
  0xaa   : > { %p13518_p6 = scmp.lt.u32.totalorder %s13516_s0, %s13512_s4  ;;  %p13520_p3 = scmp.lt.u32.totalorder %s13512_s4, %s14155_s19 }
  0xab   : > { %p13514_p10 = pnand %p13513_p11, %p13967_p4 }
  0xac   : > { %p13519_p0 = por %p13518_p6, %p13517_p1 }
  0xad   : > { %p13515_p13 = pneg %p13514_p10 }
  0xae   : > { %p13521_p2 = por %p13520_p3, %p13519_p0 }
  0xb0   : > { %p13522_p5 = pnand %p13521_p2, %p13515_p13 }
  0xb2   : > { %13525 = shalt.err (!%p13522_p5)
}
  0xb3   : > { %s13526_s14 = scalar_lea.vmem %s14159_s25, 36864  ;;  %s13835_s24 = smov [#allocation20]  }
  0xb4   : > { %p13527_p8 = scmp.ne.s32.totalorder %s14159_s25, %s13526_s14  ;;  %s13530_s18 = sshll.u32 %s13835_s24, 4  ;;  %s13531_s18 = int_to_ptr.vmem [resolvable:$false] %s13530_s18 }
  0xb5   : > { %s13532_s20 = scalar_lea.vmem %s13531_s18, 73728  ;;  %p13533_p12 = scmp.lt.s32.totalorder %s14159_s25, %s13531_s18 }
  0xb6   : > { %p13528_p7 = pnand %p13527_p8, %p13967_p4  ;;  %p13534_p11 = scmp.lt.s32.totalorder %s13532_s20, %s13526_s14 }
  0xb8   : > { %p13529_p9 = pneg %p13528_p7  ;;  %p13535_p10 = por %p13534_p11, %p13533_p12 }
  0xba   : > { %p13536_p1 = pnand %p13535_p10, %p13529_p9 }
  0xbc   : > { %13539 = shalt.err (!%p13536_p1)
}
  0xbd   : > { %s16325_s4 = smov 192   ;;  %s13837_s28 = smov 12  }
  0xbe   : > { %11963 = dma.hbm_to_vmem [thread:$0]  (%p13967_p4), %s14155_s19, 36864, %s14159_s25, %s16323_s2, %s16325_s4, %s16325_s4, %s13837_s28  }
  0xbf   : > { %s16343_s1 = sld [smem:[#allocation40_spill]]  ;;  %s480_s26 = scalar_lea.vmem [#allocation3], %s13984_s16 }
  0xc0   : > { %s488_s14 = sshll.u32 %s480_s26, 4  ;;  %s11922_s24 = smul.u32 1728, %s13978_s29  ;;  %s14195_s14 = int_to_ptr.vmem [resolvable:$true] %s488_s14 }
  0xc1   : > { %s477_s18 = scalar_lea.sflag [#allocation4], %s13978_s29 }
  0xc5   : > { %s14192_s22 = scalar_lea.hbm %s16343_s1, %s13981_s30  ;;  %s13544_s15 = scalar_lea.hbm %s16343_s1, 576 }
  0xc6   : > { %s13540_s20 = scalar_lea.hbm %s14192_s22, 48  ;;  %p13545_p3 = scmp.lt.u32.totalorder %s14192_s22, %s16343_s1 }
  0xc7   : > { %p13541_p13 = scmp.ne.s32.totalorder %s14192_s22, %s13540_s20  ;;  %p13546_p2 = scmp.lt.u32.totalorder %s13544_s15, %s13540_s20 }
  0xc8   : > { %p13548_p8 = scmp.lt.u32.totalorder %s13540_s20, %s14192_s22 }
  0xc9   : > { %p13542_p6 = pnand %p13541_p13, %p13967_p4  ;;  %p13547_p5 = por %p13546_p2, %p13545_p3 }
  0xcb   : > { %p13543_p0 = pneg %p13542_p6  ;;  %p13549_p7 = por %p13548_p8, %p13547_p5 }
  0xcd   : > { %p13550_p9 = pnand %p13549_p7, %p13543_p0 }
  0xcf   : > { %13553 = shalt.err (!%p13550_p9)
}
  0xd0   : > { %s13554_s26 = scalar_lea.vmem %s14195_s14, 48  ;;  %s13838_s19 = smov [#allocation3]  }
  0xd1   : > { %p13555_p12 = scmp.ne.s32.totalorder %s14195_s14, %s13554_s26  ;;  %s13558_s25 = sshll.u32 %s13838_s19, 4  ;;  %s13559_s25 = int_to_ptr.vmem [resolvable:$false] %s13558_s25 }
  0xd2   : > { %s13560_s2 = scalar_lea.vmem %s13559_s25, 96  ;;  %p13561_p1 = scmp.lt.s32.totalorder %s14195_s14, %s13559_s25 }
  0xd3   : > { %p13556_p11 = pnand %p13555_p12, %p13967_p4  ;;  %p13562_p13 = scmp.lt.s32.totalorder %s13560_s2, %s13554_s26 }
  0xd5   : > { %p13557_p10 = pneg %p13556_p11  ;;  %p13563_p6 = por %p13562_p13, %p13561_p1 }
  0xd7   : > { %p13564_p3 = pnand %p13563_p6, %p13557_p10 }
  0xd9   : > { %13567 = shalt.err (!%p13564_p3)
}
  0xda   : > { %11952 = dma.hbm_to_vmem [thread:$0]  (%p13967_p4), %s14192_s22, 48, %s14195_s14, %s477_s18  }
  0xdb   : > { %s11923_s20 = smul.u32 27648, %s13826_s21  ;;  %s518_s15 = scalar_lea.vmem [#allocation7], %s11922_s24 }
  0xdc   : > { %s525_s0 = sshll.u32 %s518_s15, 4  ;;  %s16344_s3 = sld [smem:[#allocation42_spill]]  ;;  %s14228_s0 = int_to_ptr.vmem [resolvable:$true] %s525_s0 }
  0xdd   : > { %s11926_s25 = smul.u32 576, %s13978_s29 }
  0xe2   : > { %s14226_s26 = scalar_lea.hbm %s16344_s3, %s11923_s20  ;;  %s13572_s24 = scalar_lea.hbm %s16344_s3, 331776 }
  0xe3   : > { %s13568_s2 = scalar_lea.hbm %s14226_s26, 27648  ;;  %p13573_p8 = scmp.lt.u32.totalorder %s14226_s26, %s16344_s3 }
  0xe4   : > { %p13569_p0 = scmp.ne.s32.totalorder %s14226_s26, %s13568_s2  ;;  %p13574_p7 = scmp.lt.u32.totalorder %s13572_s24, %s13568_s2 }
  0xe5   : > { %p13576_p12 = scmp.lt.u32.totalorder %s13568_s2, %s14226_s26 }
  0xe6   : > { %p13570_p2 = pnand %p13569_p0, %p13967_p4  ;;  %p13575_p9 = por %p13574_p7, %p13573_p8 }
  0xe8   : > { %p13571_p5 = pneg %p13570_p2  ;;  %p13577_p11 = por %p13576_p12, %p13575_p9 }
  0xea   : > { %p13578_p10 = pnand %p13577_p11, %p13571_p5 }
  0xec   : > { %13581 = shalt.err (!%p13578_p10)
}
  0xed   : > { %s13582_s20 = scalar_lea.vmem %s14228_s0, 27648  ;;  %s13839_s15 = smov [#allocation7]  }
  0xee   : > { %p13583_p1 = scmp.ne.s32.totalorder %s14228_s0, %s13582_s20  ;;  %s13586_s19 = sshll.u32 %s13839_s15, 4  ;;  %s13587_s19 = int_to_ptr.vmem [resolvable:$false] %s13586_s19 }
  0xef   : > { %s13588_s22 = scalar_lea.vmem %s13587_s19, 55296  ;;  %p13589_p3 = scmp.lt.s32.totalorder %s14228_s0, %s13587_s19 }
  0xf0   : > { %p13584_p13 = pnand %p13583_p1, %p13967_p4  ;;  %p13590_p0 = scmp.lt.s32.totalorder %s13588_s22, %s13582_s20 }
  0xf2   : > { %p13585_p6 = pneg %p13584_p13  ;;  %p13591_p2 = por %p13590_p0, %p13589_p3 }
  0xf4   : > { %p13592_p8 = pnand %p13591_p2, %p13585_p6 }
  0xf6   : > { %13595 = shalt.err (!%p13592_p8)
}
  0xf7   : > { %s13840_s2 = smov 576   ;;  %s13841_s14 = smov 36  }
  0xf8   : > { %s16345_s24 = scalar_lea.sflag [#allocation6], %s13987_s17  ;;  %s11927_s18 = smul.u32 9216, %s13826_s21 }
  0xf9   : > { %11954 = dma.hbm_to_vmem [thread:$0]  (%p13967_p4), %s14226_s26, 27648, %s14228_s0, %s16345_s24, %s13840_s2, %s13840_s2, %s13841_s14  }
  0xfa   : > { %s558_s23 = scalar_lea.vmem [#allocation10], %s11926_s25  ;;  %s14260_s22 = scalar_lea.hbm %s16296_s5, %s11927_s18 }
  0xfb   : > { %s565_s15 = sshll.u32 %s558_s23, 4  ;;  %s13596_s4 = scalar_lea.hbm %s14260_s22, 9216  ;;  %s14262_s15 = int_to_ptr.vmem [resolvable:$true] %s565_s15 }
  0xfc   : > { %p13597_p5 = scmp.ne.s32.totalorder %s14260_s22, %s13596_s4  ;;  %s13600_s25 = scalar_lea.hbm %s16296_s5, 110592 }
  0xfd   : > { %p13601_p12 = scmp.lt.u32.totalorder %s14260_s22, %s16296_s5  ;;  %p13602_p11 = scmp.lt.u32.totalorder %s13600_s25, %s13596_s4 }
  0xfe   : > { %p13598_p7 = pnand %p13597_p5, %p13967_p4  ;;  %p13604_p1 = scmp.lt.u32.totalorder %s13596_s4, %s14260_s22 }
  0xff   : > { %p13603_p10 = por %p13602_p11, %p13601_p12 }
 0x100   : > { %p13599_p9 = pneg %p13598_p7 }
 0x101   : > { %p13605_p13 = por %p13604_p1, %p13603_p10 }
 0x103   : > { %p13606_p6 = pnand %p13605_p13, %p13599_p9 }
 0x105   : > { %13609 = shalt.err (!%p13606_p6)
}
 0x106   : > { %s13610_s24 = scalar_lea.vmem %s14262_s15, 9216  ;;  %s13842_s18 = smov [#allocation10]  }
 0x107   : > { %p13611_p3 = scmp.ne.s32.totalorder %s14262_s15, %s13610_s24  ;;  %s13614_s23 = sshll.u32 %s13842_s18, 4  ;;  %s13615_s23 = int_to_ptr.vmem [resolvable:$false] %s13614_s23 }
 0x108   : > { %s13616_s20 = scalar_lea.vmem %s13615_s23, 18432  ;;  %p13617_p8 = scmp.lt.s32.totalorder %s14262_s15, %s13615_s23 }
 0x109   : > { %p13612_p0 = pnand %p13611_p3, %p13967_p4  ;;  %p13618_p5 = scmp.lt.s32.totalorder %s13616_s20, %s13610_s24 }
 0x10b   : > { %p13613_p2 = pneg %p13612_p0  ;;  %p13619_p7 = por %p13618_p5, %p13617_p8 }
 0x10d   : > { %p13620_p12 = pnand %p13619_p7, %p13613_p2 }
 0x10f   : > { %13623 = shalt.err (!%p13620_p12)
}
 0x110   : > { %s16346_s4 = smov 192   ;;  %s16347_s19 = scalar_lea.sflag [#allocation9], %s13987_s17 }
 0x111   : > { %11956 = dma.hbm_to_vmem [thread:$0]  (%p13967_p4), %s14260_s22, 9216, %s14262_s15, %s16347_s19, %s16346_s4, %s16346_s4, %s13837_s28  }
 0x112   : > { %s14294_s25 = scalar_lea.hbm %s16298_s7, %s13981_s30  ;;  %s598_s2 = scalar_lea.vmem [#allocation13], %s13984_s16 }
 0x113   : > { %s606_s14 = sshll.u32 %s598_s2, 4  ;;  %s13624_s24 = scalar_lea.hbm %s14294_s25, 48  ;;  %s607_s14 = int_to_ptr.vmem [resolvable:$true] %s606_s14 }
 0x114   : > { %p13625_p9 = scmp.ne.s32.totalorder %s14294_s25, %s13624_s24  ;;  %s13628_s28 = scalar_lea.hbm %s16298_s7, 576 }
 0x115   : > { %p13629_p1 = scmp.lt.u32.totalorder %s14294_s25, %s16298_s7  ;;  %p13630_p13 = scmp.lt.u32.totalorder %s13628_s28, %s13624_s24 }
 0x116   : > { %p13626_p11 = pnand %p13625_p9, %p13967_p4  ;;  %p13632_p3 = scmp.lt.u32.totalorder %s13624_s24, %s14294_s25 }
 0x117   : > { %p13631_p6 = por %p13630_p13, %p13629_p1 }
 0x118   : > { %p13627_p10 = pneg %p13626_p11 }
 0x119   : > { %p13633_p0 = por %p13632_p3, %p13631_p6 }
 0x11b   : > { %p13634_p2 = pnand %p13633_p0, %p13627_p10 }
 0x11d   : > { %13637 = shalt.err (!%p13634_p2)
}
 0x11e   : > { %s13638_s20 = scalar_lea.vmem %s607_s14, 48  ;;  %s13843_s4 = smov [#allocation13]  }
 0x11f   : > { %p13639_p8 = scmp.ne.s32.totalorder %s607_s14, %s13638_s20  ;;  %s13642_s19 = sshll.u32 %s13843_s4, 4  ;;  %s13643_s19 = int_to_ptr.vmem [resolvable:$false] %s13642_s19 }
 0x120   : > { %s13644_s0 = scalar_lea.vmem %s13643_s19, 96  ;;  %p13645_p12 = scmp.lt.s32.totalorder %s607_s14, %s13643_s19 }
 0x121   : > { %p13640_p5 = pnand %p13639_p8, %p13967_p4  ;;  %p13646_p9 = scmp.lt.s32.totalorder %s13644_s0, %s13638_s20 }
 0x123   : > { %p13641_p7 = pneg %p13640_p5  ;;  %p13647_p11 = por %p13646_p9, %p13645_p12 }
 0x125   : > { %p13648_p1 = pnand %p13647_p11, %p13641_p7 }
 0x127   : > { %13651 = shalt.err (!%p13648_p1)
}
 0x128   : > { %s16348_s26 = scalar_lea.sflag [#allocation12], %s13987_s17  ;;  %s14320_s18 = scalar_lea.hbm %s16300_s9, %s13981_s30 }
 0x129   : > { %11958 = dma.hbm_to_vmem [thread:$0]  (%p13967_p4), %s14294_s25, 48, %s607_s14, %s16348_s26  }
 0x12a   : > { %s636_s23 = scalar_lea.vmem [#allocation16], %s13984_s16  ;;  %s11938_s15 = smul.u32 12, %s13978_s29 }
 0x12b   : > { %s644_s28 = sshll.u32 %s636_s23, 4  ;;  %s13652_s22 = scalar_lea.hbm %s14320_s18, 48  ;;  %s645_s28 = int_to_ptr.vmem [resolvable:$true] %s644_s28 }
 0x12c   : > { %p13653_p10 = scmp.ne.s32.totalorder %s14320_s18, %s13652_s22  ;;  %s13656_s14 = scalar_lea.hbm %s16300_s9, 576 }
 0x12d   : > { %p13657_p3 = scmp.lt.u32.totalorder %s14320_s18, %s16300_s9  ;;  %p13658_p0 = scmp.lt.u32.totalorder %s13656_s14, %s13652_s22 }
 0x12e   : > { %p13654_p13 = pnand %p13653_p10, %p13967_p4  ;;  %p13660_p8 = scmp.lt.u32.totalorder %s13652_s22, %s14320_s18 }
 0x12f   : > { %p13659_p2 = por %p13658_p0, %p13657_p3 }
 0x130   : > { %p13655_p6 = pneg %p13654_p13 }
 0x131   : > { %p13661_p5 = por %p13660_p8, %p13659_p2 }
 0x133   : > { %p13662_p7 = pnand %p13661_p5, %p13655_p6 }
 0x135   : > { %13665 = shalt.err (!%p13662_p7)
}
 0x136   : > { %s13666_s0 = scalar_lea.vmem %s645_s28, 48  ;;  %s13844_s26 = smov [#allocation16]  }
 0x137   : > { %p13667_p12 = scmp.ne.s32.totalorder %s645_s28, %s13666_s0  ;;  %s13670_s2 = sshll.u32 %s13844_s26, 4  ;;  %s13671_s2 = int_to_ptr.vmem [resolvable:$false] %s13670_s2 }
 0x138   : > { %s13672_s24 = scalar_lea.vmem %s13671_s2, 96  ;;  %p13673_p1 = scmp.lt.s32.totalorder %s645_s28, %s13671_s2 }
 0x139   : > { %p13668_p9 = pnand %p13667_p12, %p13967_p4  ;;  %p13674_p10 = scmp.lt.s32.totalorder %s13672_s24, %s13666_s0 }
 0x13b   : > { %p13669_p11 = pneg %p13668_p9  ;;  %p13675_p13 = por %p13674_p10, %p13673_p1 }
 0x13d   : > { %p13676_p0 = pnand %p13675_p13, %p13669_p11 }
 0x13f   : > { %13679 = shalt.err (!%p13676_p0)
}
 0x140   : > { %s16349_s23 = scalar_lea.sflag [#allocation15], %s13987_s17  ;;  %s11939_s22 = smul.u32 192, %s13826_s21 }
 0x141   : > { %11960 = dma.hbm_to_vmem [thread:$0]  (%p13967_p4), %s14320_s18, 48, %s645_s28, %s16349_s23  }
 0x142   : > { %s676_s20 = scalar_lea.vmem [#allocation19], %s11938_s15  ;;  %s682_s19 = scalar_lea.hbm %s16302_s11, %s11939_s22 }
 0x143   : > { %s684_s25 = sshll.u32 %s676_s20, 4  ;;  %s13680_s0 = scalar_lea.hbm %s682_s19, 192  ;;  %s685_s25 = int_to_ptr.vmem [resolvable:$true] %s684_s25 }
 0x144   : > { %p13681_p6 = scmp.ne.s32.totalorder %s682_s19, %s13680_s0  ;;  %s13684_s24 = scalar_lea.hbm %s16302_s11, 2304 }
 0x145   : > { %p13685_p8 = scmp.lt.u32.totalorder %s682_s19, %s16302_s11  ;;  %p13686_p5 = scmp.lt.u32.totalorder %s13684_s24, %s13680_s0 }
 0x146   : > { %p13682_p3 = pnand %p13681_p6, %p13967_p4  ;;  %p13688_p12 = scmp.lt.u32.totalorder %s13680_s0, %s682_s19 }
 0x147   : > { %p13687_p7 = por %p13686_p5, %p13685_p8 }
 0x148   : > { %p13683_p2 = pneg %p13682_p3 }
 0x149   : > { %p13689_p9 = por %p13688_p12, %p13687_p7 }
 0x14b   : > { %p13690_p11 = pnand %p13689_p9, %p13683_p2 }
 0x14d   : > { %13693 = shalt.err (!%p13690_p11)
}
 0x14e   : > { %s13694_s18 = scalar_lea.vmem %s685_s25, 192  ;;  %s13845_s28 = smov [#allocation19]  }
 0x14f   : > { %p13695_p1 = scmp.ne.s32.totalorder %s685_s25, %s13694_s18  ;;  %s13698_s15 = sshll.u32 %s13845_s28, 4  ;;  %s13699_s15 = int_to_ptr.vmem [resolvable:$false] %s13698_s15 }
 0x150   : > { %s13700_s23 = scalar_lea.vmem %s13699_s15, 384  ;;  %p13701_p0 = scmp.lt.s32.totalorder %s685_s25, %s13699_s15 }
 0x151   : > { %p13696_p10 = pnand %p13695_p1, %p13967_p4  ;;  %p13702_p6 = scmp.lt.s32.totalorder %s13700_s23, %s13694_s18 }
 0x153   : > { %p13697_p13 = pneg %p13696_p10  ;;  %p13703_p3 = por %p13702_p6, %p13701_p0 }
 0x155   : > { %p13704_p5 = pnand %p13703_p3, %p13697_p13 }
 0x157   : > { %13707 = shalt.err (!%p13704_p5)
}
 0x158   : > { %s16350_s1 = scalar_lea.sflag [#allocation18], %s13987_s17  ;;  %s14365_s20 = scalar_lea.hbm %s16304_s13, %s13981_s30 }
 0x159   : > { %11962 = dma.hbm_to_vmem [thread:$0]  (%p13967_p4), %s682_s19, 192, %s685_s25, %s16350_s1  }
 0x15a   : > { %s716_s14 = scalar_lea.vmem [#allocation22], %s13984_s16  ;;  %s13708_s0 = scalar_lea.hbm %s14365_s20, 48 }
 0x15b   : > { %s724_s4 = sshll.u32 %s716_s14, 4  ;;  %p13709_p2 = scmp.ne.s32.totalorder %s14365_s20, %s13708_s0  ;;  %s725_s4 = int_to_ptr.vmem [resolvable:$true] %s724_s4 }
 0x15c   : > { %s13712_s25 = scalar_lea.hbm %s16304_s13, 576  ;;  %p13713_p12 = scmp.lt.u32.totalorder %s14365_s20, %s16304_s13 }
 0x15d   : > { %p13710_p8 = pnand %p13709_p2, %p13967_p4  ;;  %p13714_p9 = scmp.lt.u32.totalorder %s13712_s25, %s13708_s0 }
 0x15e   : > { %p13716_p1 = scmp.lt.u32.totalorder %s13708_s0, %s14365_s20 }
 0x15f   : > { %p13711_p7 = pneg %p13710_p8  ;;  %p13715_p11 = por %p13714_p9, %p13713_p12 }
 0x161   : > { %p13717_p10 = por %p13716_p1, %p13715_p11 }
 0x163   : > { %p13718_p13 = pnand %p13717_p10, %p13711_p7 }
 0x165   : > { %13721 = shalt.err (!%p13718_p13)
}
 0x166   : > { %s13722_s18 = scalar_lea.vmem %s725_s4, 48  ;;  %s13846_s28 = smov [#allocation22]  }
 0x167   : > { %p13723_p0 = scmp.ne.s32.totalorder %s725_s4, %s13722_s18  ;;  %s13726_s15 = sshll.u32 %s13846_s28, 4  ;;  %s13727_s15 = int_to_ptr.vmem [resolvable:$false] %s13726_s15 }
 0x168   : > { %s13728_s23 = scalar_lea.vmem %s13727_s15, 96  ;;  %p13729_p5 = scmp.lt.s32.totalorder %s725_s4, %s13727_s15 }
 0x169   : > { %p13724_p6 = pnand %p13723_p0, %p13967_p4  ;;  %p13730_p2 = scmp.lt.s32.totalorder %s13728_s23, %s13722_s18 }
 0x16b   : > { %p13725_p3 = pneg %p13724_p6  ;;  %p13731_p8 = por %p13730_p2, %p13729_p5 }
 0x16d   : > { %p13732_p9 = pnand %p13731_p8, %p13725_p3 }
 0x16f   : > { %13735 = shalt.err (!%p13732_p9)
}
 0x170   : > { %s16351_s1 = scalar_lea.sflag [#allocation21], %s13987_s17  ;;  %s16352_s14 = sld [smem:[#allocation44_spill]] }
 0x171   : > { %11964 = dma.hbm_to_vmem [thread:$0]  (%p13967_p4), %s14365_s20, 48, %s725_s4, %s16351_s1  }
 0x172   : > { %s735_s26 = scalar_lea.vmem [#allocation23], %s13984_s16  ;;  %s732_s25 = scalar_lea.sflag [#allocation24], %s13978_s29 }
 0x173   : > { %s743_s2 = sshll.u32 %s735_s26, 4  ;;  %s744_s2 = int_to_ptr.vmem [resolvable:$true] %s743_s2 }
 0x176   : > { %s14391_s0 = scalar_lea.hbm %s16352_s14, %s13981_s30  ;;  %s13740_s4 = scalar_lea.hbm %s16352_s14, 576 }
 0x177   : > { %s13736_s17 = scalar_lea.hbm %s14391_s0, 48  ;;  %p13741_p1 = scmp.lt.u32.totalorder %s14391_s0, %s16352_s14 }
 0x178   : > { %p13737_p7 = scmp.ne.s32.totalorder %s14391_s0, %s13736_s17  ;;  %p13742_p10 = scmp.lt.u32.totalorder %s13740_s4, %s13736_s17 }
 0x179   : > { %p13744_p0 = scmp.lt.u32.totalorder %s13736_s17, %s14391_s0 }
 0x17a   : > { %p13738_p12 = pnand %p13737_p7, %p13967_p4  ;;  %p13743_p13 = por %p13742_p10, %p13741_p1 }
 0x17c   : > { %p13739_p11 = pneg %p13738_p12  ;;  %p13745_p6 = por %p13744_p0, %p13743_p13 }
 0x17e   : > { %p13746_p3 = pnand %p13745_p6, %p13739_p11 }
 0x180   : > { %13749 = shalt.err (!%p13746_p3)
}
 0x181   : > { %s13750_s29 = scalar_lea.vmem %s744_s2, 48  ;;  %s13847_s16 = smov [#allocation23]  }
 0x182   : > { %p13751_p5 = scmp.ne.s32.totalorder %s744_s2, %s13750_s29  ;;  %s13754_s18 = sshll.u32 %s13847_s16, 4  ;;  %s13755_s18 = int_to_ptr.vmem [resolvable:$false] %s13754_s18 }
 0x183   : > { %s13756_s28 = scalar_lea.vmem %s13755_s18, 96  ;;  %p13757_p9 = scmp.lt.s32.totalorder %s744_s2, %s13755_s18 }
 0x184   : > { %p13752_p2 = pnand %p13751_p5, %p13967_p4  ;;  %p13758_p7 = scmp.lt.s32.totalorder %s13756_s28, %s13750_s29 }
 0x186   : > { %p13753_p8 = pneg %p13752_p2  ;;  %p13759_p12 = por %p13758_p7, %p13757_p9 }
 0x188   : > { %p13760_p1 = pnand %p13759_p12, %p13753_p8 }
 0x18a   : > { %13763 = shalt.err (!%p13760_p1)
}
 0x18b   : > { %11965 = dma.hbm_to_vmem [thread:$0]  (%p13967_p4), %s14391_s0, 48, %s744_s2, %s732_s25  }
 0x18c PF: > { %p10487_p11 = scmp.ge.s32.totalorder %s13826_s21, 1  ;;  %p748_p10 = scmp.lt.s32.totalorder %s13826_s21, 13 }
 0x18e   : > { %p749_p13 = pnand %p10487_p11, %p748_p10 }
 0x18f   : > { %s16353_s15 = sld [smem:[#allocation33_spill]] (!%p749_p13)  ;;  %s16354_s23 = sld [smem:[#allocation38_spill]] (!%p749_p13) }
 0x190   : > { %752 = sbr.rel (%p749_p13) target bundleno = 4567 (0x11d7), region = 80 }
 0x195   : > { %s14415_s1 = sand.u32 (!%p749_p13), 1, %s16353_s15   ;;  %p16355_p0 = scmp.ne.s32.totalorder (!%p749_p13), %s16354_s23, 0 }
 0x196   : > { %s14418_s3 = smul.u32 (!%p749_p13), 3, %s14415_s1  ;;  %s755_s22 = scalar_lea.sflag (!%p749_p13), [#allocation4], %s14415_s1 }
 0x198   : > { %s758_s27 = scalar_lea.vmem [#allocation3], %s14418_s3 }
 0x199   : > { %13781 = dma.done.wait (%p16355_p0), %s755_s22, 48  }
 0x19a   : > { %13783 = vsyncadd (%p16355_p0), %s755_s22, 4294967248  ;;  %s16356_s0 = sld [smem:[#allocation35_spill]] }
 0x1a0   : > { %s14427_s21 = sand.u32 1, %s16356_s0  }
 0x1a1   : > { %s764_s26 = scalar_lea.sflag [#allocation6], %s14427_s21 }
 0x1a2   : > { %13785 = dma.done.wait (%p16355_p0), %s764_s26, 27696  }
 0x1a3   : > { %13787 = vsyncadd (%p16355_p0), %s764_s26, 4294939600  ;;  %s11947_s25 = smul.u32 1728, %s14415_s1  ;;  %s782_s20 = scalar_lea.sflag [#allocation9], %s14427_s21 }
 0x1a4   : > { %s11948_s17 = smul.u32 9, %s14415_s1 }
 0x1a5   : > { %s14437_s19 = scalar_lea.vmem [#allocation7], %s11947_s25 }
 0x1a6   : > { %s14440_s4 = scalar_lea.vmem [#allocation8], %s11948_s17 }
 0x1a7   : > { %13789 = dma.done.wait (%p16355_p0), %s782_s20, 9360  }
 0x1a8   : > { %13791 = vsyncadd (%p16355_p0), %s782_s20, 4294957936  ;;  %s11949_s24 = smul.u32 576, %s14415_s1  ;;  %s800_s29 = scalar_lea.sflag [#allocation12], %s14427_s21 }
 0x1aa   : > { %s14447_s30 = scalar_lea.vmem [#allocation10], %s11949_s24 }
 0x1ab   : > { %13793 = dma.done.wait (%p16355_p0), %s800_s29, 96  }
 0x1ac   : > { %13795 = vsyncadd (%p16355_p0), %s800_s29, 4294967200  ;;  %s818_s28 = scalar_lea.sflag [#allocation15], %s14427_s21 }
 0x1ad   : > { %13797 = dma.done.wait (%p16355_p0), %s818_s28, 96  }
 0x1ae   : > { %13799 = vsyncadd (%p16355_p0), %s818_s28, 4294967200  ;;  %s11950_s22 = smul.u32 2304, %s14415_s1  ;;  %s836_s25 = scalar_lea.sflag [#allocation18], %s14427_s21 }
 0x1b0   : > { %s14465_s17 = scalar_lea.vmem [#allocation17], %s11950_s22 }
 0x1b1   : > { %13801 = dma.done.wait (%p16355_p0), %s836_s25, 37056  }
 0x1b2   : > { %13803 = vsyncadd (%p16355_p0), %s836_s25, 4294930240  ;;  %s11951_s20 = smul.u32 12, %s14415_s1  ;;  %s854_s29 = scalar_lea.sflag [#allocation21], %s14427_s21 }
 0x1b3   : > { %s14475_s28 = scalar_lea.vmem [#allocation20], %s11950_s22 }
 0x1b4   : > { %s14472_s24 = scalar_lea.vmem [#allocation19], %s11951_s20 }
 0x1b5   : > { %13805 = dma.done.wait (%p16355_p0), %s854_s29, 36912  }
 0x1b6   : > { %13807 = vsyncadd (%p16355_p0), %s854_s29, 4294930384  ;;  %s872_s25 = scalar_lea.sflag [#allocation24], %s14415_s1  ;;  %s875_s15 = scalar_lea.vmem [#allocation23], %s14418_s3 }
 0x1b7   : > { %13809 = dma.done.wait (%p16355_p0), %s872_s25, 48  }
 0x1b8   : > { %13811 = vsyncadd (%p16355_p0), %s872_s25, 4294967248  ;;  %p10488_p4 = scmp.ne.s32.totalorder %s16356_s0, 0 }
 0x1b9   : > { %s16357_s20 = sld [smem:[#allocation39_spill]] (!%p10488_p4) }
 0x1ba   : > { %986 = sbr.rel (%p10488_p4) target bundleno = 452 (0x1c4), region = 140 }
 0x1bf   : > { %s16358_s16 = smov (!%p10488_p4), %s16357_s20  ;;  %v987_v0 = vld [vmem:[%s16357_s20] sm:$0xff] (!%p10488_p4) }
 0x1c0   : > { %v988_v1 = vld [vmem:[%s16358_s16 + $0x8] sm:$0xff] (!%p10488_p4)  ;;  %v989_v2 = vld [vmem:[%s16358_s16 + $0x10] sm:$0xff] (!%p10488_p4)  ;;  %993 = vst [vmem:[#allocation2] sm:$0xff] (!%p10488_p4), %v987_v0  ;;  %v990_v3 = vld [vmem:[%s16358_s16 + $0x18] sm:$0xff] (!%p10488_p4) }
 0x1c1   : > { %994 = vst [vmem:[#allocation2 + $0x8] sm:$0xff] %v988_v1  ;;  %995 = vst [vmem:[#allocation2 + $0x10] sm:$0xff] %v989_v2  ;;  %v991_v4 = vld [vmem:[%s16358_s16 + $0x20] sm:$0xff]  ;;  %v992_v5 = vld [vmem:[%s16358_s16 + $0x28] sm:$0xff] }
 0x1c2   : > { %996 = vst [vmem:[#allocation2 + $0x18] sm:$0xff] %v990_v3  ;;  %997 = vst [vmem:[#allocation2 + $0x20] sm:$0xff] %v991_v4 }
 0x1c3   : > { %998 = vst [vmem:[#allocation2 + $0x28] sm:$0xff] %v992_v5 }
 0x1c4 PF: > { %v12038_v16 = vld [vmem:[%s14437_s19 + $0x4] ss:$36 sps:$4 sm:$0xff]   ;;  %v12041_v18 = vld [vmem:[%s14437_s19 + $0x4c] ss:$36 sps:$4 sm:$0xff]   ;;  %v12044_v20 = vld [vmem:[%s14437_s19 + $0x94] ss:$36 sps:$4 sm:$0xff]  }
 0x1c5   : > { %v12040_v17 = vld [vmem:[%s14437_s19] ss:$36 sps:$4 sm:$0xff]   ;;  %2490 = vmatprep.subr.bf16.mxu0 %v12038_v16  ;;  %v12043_v19 = vld [vmem:[%s14437_s19 + $0x48] ss:$36 sps:$4 sm:$0xff]   ;;  %v12046_v22 = vld [vmem:[%s14437_s19 + $0x90] ss:$36 sps:$4 sm:$0xff]  }
 0x1c6   : > { %2491 = vmatpush1.bf16.msra.mxu0 %v12040_v17  ;;  %v12062_v21 = vld [vmem:[%s14437_s19 + $0x48c] ss:$36 sps:$4 sm:$0xff]   ;;  %v12068_v24 = vld [vmem:[%s14437_s19 + $0x4d4] ss:$36 sps:$4 sm:$0xff]   ;;  %v12047_v25 = vld [vmem:[%s14437_s19 + $0xdc] ss:$36 sps:$4 sm:$0xff]  }
 0x1c7   : > { %2492 = vmatprep.subr.bf16.mxu0 %v12041_v18  ;;  %v12066_v23 = vld [vmem:[%s14437_s19 + $0x488] ss:$36 sps:$4 sm:$0xff]   ;;  %2619 = vmatprep.subr.bf16.mxu1 %v12062_v21  ;;  %v12072_v26 = vld [vmem:[%s14437_s19 + $0x4d0] ss:$36 sps:$4 sm:$0xff]   ;;  %v12049_v27 = vld [vmem:[%s14437_s19 + $0xd8] ss:$36 sps:$4 sm:$0xff]  }
 0x1c8   : > { %2620 = vmatpush1.bf16.msra.mxu1 %v12066_v23  ;;  %v12050_v28 = vld [vmem:[%s14437_s19 + $0x124] ss:$36 sps:$4 sm:$0xff]   ;;  %v12053_v30 = vld [vmem:[%s14437_s19 + $0x16c] ss:$36 sps:$4 sm:$0xff]   ;;  %v12056_v32 = vld [vmem:[%s14437_s19 + $0x1b4] ss:$36 sps:$4 sm:$0xff]  }
 0x1c9   : > { %v14507_v10 = vld [vmem:[#allocation2 + $0x18] sm:$0xff]  ;;  %v14509_v11 = vld [vmem:[#allocation2 + $0x20] sm:$0xff]  ;;  %2621 = vmatprep.subr.bf16.mxu1 %v12068_v24  ;;  %v12058_v33 = vld [vmem:[%s14437_s19 + $0x1b0] ss:$36 sps:$4 sm:$0xff]   ;;  %v13848_v17 = vmov 0   ;;  %s16359_s2 = scalar_lea.vmem [#allocation5], %s14418_s3 }
 0x1ca   : > { %v999_v6 = vld [vmem:[#allocation2] sm:$0xff]  ;;  %v14511_v12 = vld [vmem:[#allocation2 + $0x28] sm:$0xff]  ;;  %v1011_v13 = vadd.f32 %v14509_v11, %v14507_v10  ;;  %2493 = vmatpush1.bf16.msra.mxu0 %v12043_v19  ;;  %v12059_v34 = vld [vmem:[%s14437_s19 + $0x1fc] ss:$36 sps:$4 sm:$0xff]   ;;  %2651 = vmatprep.mubr.bf16.mxu1 %v13848_v17  ;;  %vm13850_vm0 = vmmov 0   ;;  %vm2989_vm1 = vcmask 1043456  }
 0x1cb   : > { %v1000_v7 = vld [vmem:[#allocation2 + $0x8] sm:$0xff]  ;;  %v1001_v8 = vld [vmem:[#allocation2 + $0x10] sm:$0xff]  ;;  %2494 = vmatprep.subr.bf16.mxu0 %v12044_v20  ;;  %v12052_v29 = vld [vmem:[%s14437_s19 + $0x120] ss:$36 sps:$4 sm:$0xff]   ;;  %vm2925_vm2 = vcmask 523264   ;;  %vm2973_vm4 = vcmask 64512  }
 0x1cc   : > { %v1007_v9 = vadd.f32 %v1000_v7, %v999_v6  ;;  %v1012_v15 = vadd.f32 %v1011_v13, %v14511_v12  ;;  %2622 = vmatpush1.bf16.msra.mxu1 %v12072_v26  ;;  %v12055_v31 = vld [vmem:[%s14437_s19 + $0x168] ss:$36 sps:$4 sm:$0xff]   ;;  %v12061_v35 = vld [vmem:[%s14437_s19 + $0x1f8] ss:$36 sps:$4 sm:$0xff]   ;;  %v12067_v37 = vld [vmem:[%s14437_s19 + $0x240] ss:$36 sps:$4 sm:$0xff]   ;;  %v1051_v26 = vlaneseq }
 0x1cd   : > { %v12064_v36 = vld [vmem:[%s14437_s19 + $0x244] ss:$36 sps:$4 sm:$0xff]   ;;  %v12070_v38 = vld [vmem:[%s14437_s19 + $0x28c] ss:$36 sps:$4 sm:$0xff]   ;;  %v12074_v60 = vld [vmem:[%s14437_s19 + $0x51c] ss:$36 sps:$4 sm:$0xff]  }
 0x1ce   : > { %v1008_v14 = vadd.f32 %v1007_v9, %v1001_v8  ;;  %2495 = vmatpush1.bf16.msra.mxu0 %v12046_v22  ;;  %v12073_v59 = vld [vmem:[%s14437_s19 + $0x288] ss:$36 sps:$4 sm:$0xff]   ;;  %v12076_v61 = vld [vmem:[%s14437_s19 + $0x2d4] ss:$36 sps:$4 sm:$0xff]   ;;  %2623 = vmatprep.subr.bf16.mxu1 %v12074_v60  ;;  %v12082_v1 = vld [vmem:[%s14437_s19 + $0x31c] ss:$36 sps:$4 sm:$0xff]  }
 0x1cf   : > { %2496 = vmatprep.subr.bf16.mxu0 %v12047_v25  ;;  %v12078_v62 = vld [vmem:[%s14437_s19 + $0x518] ss:$36 sps:$4 sm:$0xff]   ;;  %v12079_v63 = vld [vmem:[%s14437_s19 + $0x2d0] ss:$36 sps:$4 sm:$0xff]   ;;  %v12080_v0 = vld [vmem:[%s14437_s19 + $0x564] ss:$36 sps:$4 sm:$0xff]  }
 0x1d0   : > { %1009 = vadd.xlane.f32.xlu0 %v1008_v14  ;;  %2624 = vmatpush1.bf16.msra.mxu1 %v12078_v62  ;;  %v12084_v2 = vld [vmem:[%s14437_s19 + $0x560] ss:$36 sps:$4 sm:$0xff]   ;;  %v12085_v3 = vld [vmem:[%s14437_s19 + $0x318] ss:$36 sps:$4 sm:$0xff]   ;;  %v12086_v4 = vld [vmem:[%s14437_s19 + $0x5ac] ss:$36 sps:$4 sm:$0xff]  }
 0x1d1   : > { %2625 = vmatprep.subr.bf16.mxu1 %v12080_v0  ;;  %v12088_v5 = vld [vmem:[%s14437_s19 + $0x364] ss:$36 sps:$4 sm:$0xff]   ;;  %v12094_v9 = vld [vmem:[%s14437_s19 + $0x3ac] ss:$36 sps:$4 sm:$0xff]   ;;  %v12100_v13 = vld [vmem:[%s14437_s19 + $0x3f4] ss:$36 sps:$4 sm:$0xff]  }
 0x1d2   : > { %2497 = vmatpush1.bf16.msra.mxu0 %v12049_v27  ;;  %v12102_v14 = vld [vmem:[%s14437_s19 + $0x638] ss:$36 sps:$4 sm:$0xff]   ;;  %v12104_v16 = vld [vmem:[%s14437_s19 + $0x684] ss:$36 sps:$4 sm:$0xff]   ;;  %s16363_s18 = scalar_lea.vmem [#allocation16], %s14418_s3  ;;  %s16364_s26 = scalar_lea.vmem [#allocation22], %s14418_s3 }
 0x1d3   : > { %2498 = vmatprep.subr.bf16.mxu0 %v12050_v28  ;;  %v12106_v18 = vld [vmem:[%s14437_s19 + $0x43c] ss:$36 sps:$4 sm:$0xff]   ;;  %v12115_v22 = vld [vmem:[%s14437_s19 + $0x484] ss:$36 sps:$4 sm:$0xff]   ;;  %vm10146_vm5 = vcmp.lt.s32.totalorder %v1051_v26, 384 }
 0x1d4   : > { %1013 = vadd.xlane.f32.xlu0 %v1012_v15  ;;  %2626 = vmatpush1.bf16.msra.mxu1 %v12084_v2  ;;  %v12103_v15 = vld [vmem:[%s14437_s19 + $0x3f0] ss:$36 sps:$4 sm:$0xff]   ;;  %v12108_v19 = vld [vmem:[%s14437_s19 + $0x680] ss:$36 sps:$4 sm:$0xff]   ;;  %v12109_v20 = vld [vmem:[%s14437_s19 + $0x438] ss:$36 sps:$4 sm:$0xff]  }
 0x1d5   : > { %2627 = vmatprep.subr.bf16.mxu1 %v12086_v4  ;;  %v12112_v21 = vld [vmem:[%s14437_s19 + $0x1c] ss:$36 sps:$4 sm:$0xff]  }
 0x1d6   : > { %2499 = vmatpush1.bf16.msra.mxu0 %v12052_v29  ;;  %v12116_v4 = vld [vmem:[%s14437_s19 + $0x60] ss:$36 sps:$4 sm:$0xff]  }
 0x1d7   : > { %2500 = vmatprep.subr.bf16.mxu0 %v12053_v30  ;;  %v14595_v30 = vshrl.u32 %v1051_v26, 7 }
 0x1da   : > { %2501 = vmatpush1.bf16.msra.mxu0 %v12055_v31  ;;  %v1005_v31 = vld [vmem:[%s758_s27] sm:$0x7]  ;;  %s13851_s27 = smov 64  }
 0x1db   : > { %2502 = vmatprep.subr.bf16.mxu0 %v12056_v32  ;;  %v14600_v32 = vsub.s32 1, %v14595_v30 }
 0x1de   : > { %2503 = vmatpush1.bf16.msra.mxu0 %v12058_v33  ;;  %v14603_v33 = vsub.s32 2, %v14595_v30 }
 0x1df   : > { %2504 = vmatprep.subr.bf16.mxu0 %v12059_v34  ;;  %v14606_v34 = vsub.s32 0, %v14595_v30 }
 0x1e2   : > { %2505 = vmatpush1.bf16.msra.mxu0 %v12061_v35 }
 0x1e3   : > { %2506 = vmatprep.subr.bf16.mxu0 %v12064_v36  ;;  %v1006_v36 = vld [vmem:[%s16359_s2] sm:$0x7] }
 0x1e6   : > { %2507 = vmatpush1.bf16.msra.mxu0 %v12067_v37 }
 0x1e7   : > { %2508 = vmatprep.subr.bf16.mxu0 %v12070_v38  ;;  %v1058_v38 = vrot.slane %v1005_v31, %v14600_v32 }
 0x1ea   : > { %2509 = vmatpush1.bf16.msra.mxu0 %v12073_v59 }
 0x1eb   : > { %2510 = vmatprep.subr.bf16.mxu0 %v12076_v61 }
 0x1ee   : > { %2511 = vmatpush1.bf16.msra.mxu0 %v12079_v63 }
 0x1ef   : > { %2512 = vmatprep.subr.bf16.mxu0 %v12082_v1 }
 0x1f2   : > { %2513 = vmatpush1.bf16.msra.mxu0 %v12085_v3 }
 0x1f3   : > { %2514 = vmatprep.subr.bf16.mxu0 %v12088_v5  ;;  %v12121_v5 = vld [vmem:[%s14437_s19 + $0x4cc] ss:$36 sps:$4 sm:$0xff]  }
 0x25d   : > { %v1010_v39 = vpop.xlane.xlu0 %1009 }
 0x25e   : > { %v1016_v40 = vmul.f32 0.0026041667, %v1010_v39 }
 0x260   : > { %v14539_v41 = vsub.f32 %v999_v6, %v1016_v40  ;;  %v14541_v42 = vsub.f32 %v1000_v7, %v1016_v40  ;;  %v14543_v43 = vsub.f32 %v1001_v8, %v1016_v40  ;;  %v12090_v6 = vld [vmem:[%s14437_s19 + $0x5a8] ss:$36 sps:$4 sm:$0xff]   ;;  %v12091_v7 = vld [vmem:[%s14437_s19 + $0x360] ss:$36 sps:$4 sm:$0xff]   ;;  %v12092_v8 = vld [vmem:[%s14437_s19 + $0x5f4] ss:$36 sps:$4 sm:$0xff]   ;;  %v1062_v40 = vrot.slane %v1005_v31, %v14603_v33 }
 0x261   : > { %v1014_v44 = vpop.xlane.xlu0 %1013  ;;  %2628 = vmatpush1.bf16.msra.mxu1 %v12090_v6  ;;  %2515 = vmatpush1.bf16.msra.mxu0 %v12091_v7  ;;  %v12119_v6 = vld [vmem:[%s14437_s19 + $0x4c8] ss:$36 sps:$4 sm:$0xff]  }
 0x262   : > { %v1017_v45 = vmul.f32 0.0026041667, %v1014_v44  ;;  %v1024_v46 = vmul.f32 %v14539_v41, %v14539_v41  ;;  %v1025_v47 = vmul.f32 %v14541_v42, %v14541_v42  ;;  %v1026_v48 = vmul.f32 %v14543_v43, %v14543_v43  ;;  %2629 = vmatprep.subr.bf16.mxu1 %v12092_v8  ;;  %2516 = vmatprep.subr.bf16.mxu0 %v12094_v9  ;;  %v12124_v7 = vld [vmem:[%s14437_s19 + $0xac] ss:$36 sps:$4 sm:$0xff]   ;;  %v12127_v8 = vld [vmem:[%s14437_s19 + $0x514] ss:$36 sps:$4 sm:$0xff]  }
 0x263   : > { %v12122_v9 = vld [vmem:[%s14437_s19 + $0xa8] ss:$36 sps:$4 sm:$0xff]  }
 0x264   : > { %v14552_v49 = vsub.f32 %v14507_v10, %v1017_v45  ;;  %v14555_v50 = vsub.f32 %v14509_v11, %v1017_v45  ;;  %v14558_v51 = vsub.f32 %v14511_v12, %v1017_v45  ;;  %v1030_v52 = vadd.f32 %v1025_v47, %v1024_v46  ;;  %v12096_v10 = vld [vmem:[%s14437_s19 + $0x5f0] ss:$36 sps:$4 sm:$0xff]   ;;  %v12097_v11 = vld [vmem:[%s14437_s19 + $0x3a8] ss:$36 sps:$4 sm:$0xff]   ;;  %v12098_v12 = vld [vmem:[%s14437_s19 + $0x63c] ss:$36 sps:$4 sm:$0xff]  }
 0x265   : > { %2630 = vmatpush1.bf16.msra.mxu1 %v12096_v10  ;;  %2517 = vmatpush1.bf16.msra.mxu0 %v12097_v11  ;;  %v1054_v45 = vrot.slane %v1005_v31, %v14606_v34  ;;  %v1080_v47 = vrot.slane %v1006_v36, %v14600_v32  ;;  %v12125_v10 = vld [vmem:[%s14437_s19 + $0x510] ss:$36 sps:$4 sm:$0xff]   ;;  %v12157_v31 = vld [vmem:[%s14437_s19 + $0x67c] ss:$36 sps:$4 sm:$0xff]  }
 0x266   : > { %v1031_v53 = vadd.f32 %v1030_v52, %v1026_v48  ;;  %v1027_v54 = vmul.f32 %v14552_v49, %v14552_v49  ;;  %v1028_v55 = vmul.f32 %v14555_v50, %v14555_v50  ;;  %v1029_v56 = vmul.f32 %v14558_v51, %v14558_v51  ;;  %2631 = vmatprep.subr.bf16.mxu1 %v12098_v12  ;;  %v12130_v11 = vld [vmem:[%s14437_s19 + $0xf4] ss:$36 sps:$4 sm:$0xff]   ;;  %v12133_v12 = vld [vmem:[%s14437_s19 + $0x55c] ss:$36 sps:$4 sm:$0xff]  }
 0x267   : > { %2518 = vmatprep.subr.bf16.mxu0 %v12100_v13  ;;  %v1084_v48 = vrot.slane %v1006_v36, %v14603_v33  ;;  %v12128_v13 = vld [vmem:[%s14437_s19 + $0xf0] ss:$36 sps:$4 sm:$0xff]  }
 0x268   : > { %1032 = vadd.xlane.f32.xlu1 %v1031_v53  ;;  %v1034_v57 = vadd.f32 %v1028_v55, %v1027_v54 }
 0x269   : > { %2632 = vmatpush1.bf16.msra.mxu1 %v12102_v14  ;;  %2519 = vmatpush1.bf16.msra.mxu0 %v12103_v15  ;;  %v12131_v14 = vld [vmem:[%s14437_s19 + $0x558] ss:$36 sps:$4 sm:$0xff]  }
 0x26a   : > { %v1035_v58 = vadd.f32 %v1034_v57, %v1029_v56  ;;  %2633 = vmatprep.subr.bf16.mxu1 %v12104_v16  ;;  %2520 = vmatprep.subr.bf16.mxu0 %v12106_v18  ;;  %v12136_v15 = vld [vmem:[%s14437_s19 + $0x13c] ss:$36 sps:$4 sm:$0xff]   ;;  %v12139_v16 = vld [vmem:[%s14437_s19 + $0x5a4] ss:$36 sps:$4 sm:$0xff]  }
 0x26b   : > { %v12134_v18 = vld [vmem:[%s14437_s19 + $0x138] ss:$36 sps:$4 sm:$0xff]  }
 0x26c   : > { %1036 = vadd.xlane.f32.xlu1 %v1035_v58  ;;  %v12110_v58 = vld [vmem:[%s14437_s19 + $0x18] ss:$36 sps:$4 sm:$0xff]  }
 0x26d   : > { %2634 = vmatpush1.bf16.msra.mxu1 %v12108_v19  ;;  %2521 = vmatpush1.bf16.msra.mxu0 %v12109_v20  ;;  %v12137_v19 = vld [vmem:[%s14437_s19 + $0x5a0] ss:$36 sps:$4 sm:$0xff]  }
 0x26e   : > { %2748 = vmatprep.subr.bf16.mxu1 %v12112_v21  ;;  %2533 = vmatprep.subr.bf16.mxu0 %v12115_v22  ;;  %v12142_v20 = vld [vmem:[%s14437_s19 + $0x184] ss:$36 sps:$4 sm:$0xff]   ;;  %v12145_v21 = vld [vmem:[%s14437_s19 + $0x5ec] ss:$36 sps:$4 sm:$0xff]  }
 0x26f   : > { %v12140_v22 = vld [vmem:[%s14437_s19 + $0x180] ss:$36 sps:$4 sm:$0xff]  }
 0x2f5   : > { %v1033_v23 = vpop.xlane.xlu1 %1032 }
 0x2f6   : > { %v1038_v24 = vmul.f32 0.0026041667, %v1033_v23  ;;  %v12143_v23 = vld [vmem:[%s14437_s19 + $0x5e8] ss:$36 sps:$4 sm:$0xff]  }
 0x2f8   : > { %v1040_v25 = vadd.f32 1e-06, %v1038_v24  ;;  %v12148_v24 = vld [vmem:[%s14437_s19 + $0x1cc] ss:$36 sps:$4 sm:$0xff]  }
 0x2f9   : > { %v1037_v27 = vpop.xlane.xlu1 %1036 }
 0x2fa   : > { %13262 = vrsqrt.f32 %v1040_v25  ;;  %v1039_v28 = vmul.f32 0.0026041667, %v1037_v27  ;;  %v12151_v25 = vld [vmem:[%s14437_s19 + $0x634] ss:$36 sps:$4 sm:$0xff]   ;;  %v12146_v27 = vld [vmem:[%s14437_s19 + $0x1c8] ss:$36 sps:$4 sm:$0xff]  }
 0x2fc   : > { %v1041_v29 = vadd.f32 1e-06, %v1039_v28  ;;  %v12149_v28 = vld [vmem:[%s14437_s19 + $0x630] ss:$36 sps:$4 sm:$0xff]  }
 0x2fe   : > { %13264 = vrsqrt.f32 %v1041_v29  ;;  %v12154_v29 = vld [vmem:[%s14437_s19 + $0x214] ss:$36 sps:$4 sm:$0xff]  }
 0x304   : > { %v13263_v35 = vpop.eup %13262 }
 0x305   : > { %v1045_v37 = vmul.f32 %v13263_v35, %v14541_v42  ;;  %v1046_v39 = vmul.f32 %v13263_v35, %v14543_v43  ;;  %v1044_v44 = vmul.f32 %v13263_v35, %v14539_v41  ;;  %v1076_v41 = vrot.slane %v1006_v36, %v14606_v34  ;;  %v12152_v35 = vld [vmem:[%s14437_s19 + $0x210] ss:$36 sps:$4 sm:$0xff]   ;;  %v12155_v36 = vld [vmem:[%s14437_s19 + $0x678] ss:$36 sps:$4 sm:$0xff]  }
 0x307   : > { %v1067_v42 = vmul.f32 %v1058_v38, %v1045_v37  ;;  %v1068_v43 = vmul.f32 %v1062_v40, %v1046_v39  ;;  %v1066_v55 = vmul.f32 %v1054_v45, %v1044_v44  ;;  %v12160_v37 = vld [vmem:[%s14437_s19 + $0x25c] ss:$36 sps:$4 sm:$0xff]   ;;  %v12166_v44 = vld [vmem:[%s14437_s19 + $0x2a4] ss:$36 sps:$4 sm:$0xff]  }
 0x308   : > { %v13265_v46 = vpop.eup %13264  ;;  %v12158_v39 = vld [vmem:[%s14437_s19 + $0x258] ss:$36 sps:$4 sm:$0xff]  }
 0x309   : > { %v1048_v52 = vmul.f32 %v13265_v46, %v14555_v50  ;;  %v1049_v53 = vmul.f32 %v13265_v46, %v14558_v51  ;;  %v1047_v54 = vmul.f32 %v13265_v46, %v14552_v49  ;;  %v1089_v60 = vadd.f32 %v1080_v47, %v1067_v42  ;;  %v12113_v50 = vld [vmem:[%s14437_s19 + $0x480] ss:$36 sps:$4 sm:$0xff]   ;;  %v12169_v46 = vld [vmem:[%s14437_s19 + $0x54] ss:$36 sps:$4 sm:$0xff]   ;;  %v12170_v42 = vld [vmem:[%s14437_s19 + $0x2e8] ss:$36 sps:$4 sm:$0xff]  }
 0x30a   : > { %v1090_v62 = vadd.f32 %v1084_v48, %v1068_v43  ;;  %v1088_v51 = vadd.f32 %v1076_v41, %v1066_v55  ;;  %v12118_v49 = vld [vmem:[%s14437_s19 + $0x64] ss:$36 sps:$4 sm:$0xff]   ;;  %v12178_v43 = vld [vmem:[%s14437_s19 + $0x334] ss:$36 sps:$4 sm:$0xff]  }
 0x30b   : > { %v1070_v56 = vmul.f32 %v1058_v38, %v1048_v52  ;;  %v1071_v57 = vmul.f32 %v1062_v40, %v1049_v53  ;;  %v1069_v59 = vmul.f32 %v1054_v45, %v1047_v54  ;;  %v12163_v38 = vld [vmem:[%s14437_s19 + $0xc] ss:$36 sps:$4 sm:$0xff]   ;;  %v12164_v45 = vld [vmem:[%s14437_s19 + $0x2a0] ss:$36 sps:$4 sm:$0xff]   ;;  %v12173_v53 = vld [vmem:[%s14437_s19 + $0x98] ss:$36 sps:$4 sm:$0xff]  }
 0x30c   : > { %v12161_v40 = vld [vmem:[%s14437_s19 + $0x8] ss:$36 sps:$4 sm:$0xff]   ;;  %v12175_v52 = vld [vmem:[%s14437_s19 + $0x9c] ss:$36 sps:$4 sm:$0xff]   ;;  %v12176_v55 = vld [vmem:[%s14437_s19 + $0x330] ss:$36 sps:$4 sm:$0xff]  }
 0x30d   : > { %v1092_v61 = vadd.f32 %v1080_v47, %v1070_v56  ;;  %v1093_v63 = vadd.f32 %v1084_v48, %v1071_v57  ;;  %v1091_v0 = vadd.f32 %v1076_v41, %v1069_v59  ;;  %v12167_v47 = vld [vmem:[%s14437_s19 + $0x50] ss:$36 sps:$4 sm:$0xff]   ;;  %v12181_v54 = vld [vmem:[%s14437_s19 + $0xe4] ss:$36 sps:$4 sm:$0xff]   ;;  %v12184_v56 = vld [vmem:[%s14437_s19 + $0x37c] ss:$36 sps:$4 sm:$0xff]  }
 0x30e   : > { %v12172_v48 = vld [vmem:[%s14437_s19 + $0x2ec] ss:$36 sps:$4 sm:$0xff]   ;;  %v12179_v41 = vld [vmem:[%s14437_s19 + $0xe0] ss:$36 sps:$4 sm:$0xff]  }
 0x30f   : > { %v14625_v1 = vpack.c.bf16 %v1092_v61, %v1089_v60  ;;  %v14627_v2 = vpack.c.bf16 %v1093_v63, %v1090_v62  ;;  %v14629_v3 = vpack.c.bf16 %v1091_v0, %v1088_v51  ;;  %v12187_v57 = vld [vmem:[%s14437_s19 + $0x12c] ss:$36 sps:$4 sm:$0xff]   ;;  %v12190_v60 = vld [vmem:[%s14437_s19 + $0x3c4] ss:$36 sps:$4 sm:$0xff]   ;;  %v12193_v61 = vld [vmem:[%s14437_s19 + $0x174] ss:$36 sps:$4 sm:$0xff]  }
 0x310   : > { %v12185_v59 = vld [vmem:[%s14437_s19 + $0x128] ss:$36 sps:$4 sm:$0xff]   ;;  %v12191_v62 = vld [vmem:[%s14437_s19 + $0x170] ss:$36 sps:$4 sm:$0xff]   ;;  %v12199_v51 = vld [vmem:[%s14437_s19 + $0x1bc] ss:$36 sps:$4 sm:$0xff]  }
 0x311   : > { %2522 = vmatprep.mubr.bf16.mxu0 %v14625_v1  ;;  %2652 = vmatmul.mubr.bf16.vlgmr.msra.gmra.mrb[0].mxu1 %v14627_v2  ;;  %v12196_v63 = vld [vmem:[%s14437_s19 + $0x40c] ss:$36 sps:$4 sm:$0xff]  }
 0x312   : > { %2749 = vmatpush1.bf16.msra.mxu1 %v12110_v58  ;;  %2523 = vmatmul.mubr.bf16.vlgmr.msra.gmra.mrb[0].mxu0 %v14629_v3  ;;  %v12182_v58 = vld [vmem:[%s14437_s19 + $0x378] ss:$36 sps:$4 sm:$0xff]   ;;  %v12194_v0 = vld [vmem:[%s14437_s19 + $0x408] ss:$36 sps:$4 sm:$0xff]  }
 0x313   : > { %2534 = vmatpush1.bf16.msra.mxu0 %v12113_v50  ;;  %2780 = vmatprep.mubr.bf16.mxu1 %v14625_v1  ;;  %v12188_v50 = vld [vmem:[%s14437_s19 + $0x3c0] ss:$36 sps:$4 sm:$0xff]  }
 0x314   : > { %2750 = vmatprep.subr.bf16.mxu1 %v12118_v49  ;;  %2535 = vmatprep.subr.bf16.mxu0 %v12121_v5  ;;  %v12197_v49 = vld [vmem:[%s14437_s19 + $0x1b8] ss:$36 sps:$4 sm:$0xff]   ;;  %v12205_v5 = vld [vmem:[%s14437_s19 + $0x204] ss:$36 sps:$4 sm:$0xff]  }
 0x315   : > { %2565 = vmatprep.mubr.bf16.mxu0 %v13848_v17 }
 0x316   : > { %2751 = vmatpush1.bf16.msra.mxu1 %v12116_v4  ;;  %v12202_v4 = vld [vmem:[%s14437_s19 + $0x454] ss:$36 sps:$4 sm:$0xff]  }
 0x317   : > { %2536 = vmatpush1.bf16.msra.mxu0 %v12119_v6  ;;  %2752 = vmatprep.subr.bf16.mxu1 %v12124_v7  ;;  %v12200_v6 = vld [vmem:[%s14437_s19 + $0x450] ss:$36 sps:$4 sm:$0xff]   ;;  %v12203_v7 = vld [vmem:[%s14437_s19 + $0x200] ss:$36 sps:$4 sm:$0xff]  }
 0x318   : > { %2537 = vmatprep.subr.bf16.mxu0 %v12127_v8  ;;  %v12208_v8 = vld [vmem:[%s14437_s19 + $0x49c] ss:$36 sps:$4 sm:$0xff]  }
 0x31a   : > { %2753 = vmatpush1.bf16.msra.mxu1 %v12122_v9  ;;  %v12211_v9 = vld [vmem:[%s14437_s19 + $0x24c] ss:$36 sps:$4 sm:$0xff]  }
 0x31b   : > { %2538 = vmatpush1.bf16.msra.mxu0 %v12125_v10  ;;  %2754 = vmatprep.subr.bf16.mxu1 %v12130_v11  ;;  %v12206_v10 = vld [vmem:[%s14437_s19 + $0x498] ss:$36 sps:$4 sm:$0xff]   ;;  %v12209_v11 = vld [vmem:[%s14437_s19 + $0x248] ss:$36 sps:$4 sm:$0xff]  }
 0x31c   : > { %2539 = vmatprep.subr.bf16.mxu0 %v12133_v12  ;;  %v12214_v12 = vld [vmem:[%s14437_s19 + $0x4e4] ss:$36 sps:$4 sm:$0xff]  }
 0x31e   : > { %2755 = vmatpush1.bf16.msra.mxu1 %v12128_v13  ;;  %v12212_v13 = vld [vmem:[%s14437_s19 + $0x4e0] ss:$36 sps:$4 sm:$0xff]  }
 0x31f   : > { %2540 = vmatpush1.bf16.msra.mxu0 %v12131_v14  ;;  %2756 = vmatprep.subr.bf16.mxu1 %v12136_v15  ;;  %v12217_v14 = vld [vmem:[%s14437_s19 + $0x294] ss:$36 sps:$4 sm:$0xff]  }
 0x320   : > { %2541 = vmatprep.subr.bf16.mxu0 %v12139_v16  ;;  %v12215_v15 = vld [vmem:[%s14437_s19 + $0x290] ss:$36 sps:$4 sm:$0xff]  }
 0x321   : > { %v12220_v16 = vld [vmem:[%s14437_s19 + $0x52c] ss:$36 sps:$4 sm:$0xff]  }
 0x322   : > { %2757 = vmatpush1.bf16.msra.mxu1 %v12134_v18  ;;  %v12218_v18 = vld [vmem:[%s14437_s19 + $0x528] ss:$36 sps:$4 sm:$0xff]  }
 0x323   : > { %2542 = vmatpush1.bf16.msra.mxu0 %v12137_v19  ;;  %2758 = vmatprep.subr.bf16.mxu1 %v12142_v20  ;;  %v12223_v19 = vld [vmem:[%s14437_s19 + $0x2dc] ss:$36 sps:$4 sm:$0xff]  }
 0x324   : > { %2543 = vmatprep.subr.bf16.mxu0 %v12145_v21  ;;  %v12221_v20 = vld [vmem:[%s14437_s19 + $0x2d8] ss:$36 sps:$4 sm:$0xff]  }
 0x325   : > { %v12226_v21 = vld [vmem:[%s14437_s19 + $0x574] ss:$36 sps:$4 sm:$0xff]  }
 0x326   : > { %2759 = vmatpush1.bf16.msra.mxu1 %v12140_v22  ;;  %v12224_v22 = vld [vmem:[%s14437_s19 + $0x570] ss:$36 sps:$4 sm:$0xff]  }
 0x327   : > { %2544 = vmatpush1.bf16.msra.mxu0 %v12143_v23  ;;  %2760 = vmatprep.subr.bf16.mxu1 %v12148_v24  ;;  %v12229_v23 = vld [vmem:[%s14437_s19 + $0x324] ss:$36 sps:$4 sm:$0xff]  }
 0x328   : > { %2545 = vmatprep.subr.bf16.mxu0 %v12151_v25  ;;  %v12227_v24 = vld [vmem:[%s14437_s19 + $0x320] ss:$36 sps:$4 sm:$0xff]  }
 0x329   : > { %v12232_v25 = vld [vmem:[%s14437_s19 + $0x5bc] ss:$36 sps:$4 sm:$0xff]  }
 0x32a   : > { %2761 = vmatpush1.bf16.msra.mxu1 %v12146_v27  ;;  %v12230_v27 = vld [vmem:[%s14437_s19 + $0x5b8] ss:$36 sps:$4 sm:$0xff]  }
 0x32b   : > { %2546 = vmatpush1.bf16.msra.mxu0 %v12149_v28  ;;  %2762 = vmatprep.subr.bf16.mxu1 %v12154_v29  ;;  %v12235_v28 = vld [vmem:[%s14437_s19 + $0x36c] ss:$36 sps:$4 sm:$0xff]  }
 0x32c   : > { %2547 = vmatprep.subr.bf16.mxu0 %v12157_v31  ;;  %v12233_v29 = vld [vmem:[%s14437_s19 + $0x368] ss:$36 sps:$4 sm:$0xff]  }
 0x32d   : > { %v12238_v31 = vld [vmem:[%s14437_s19 + $0x604] ss:$36 sps:$4 sm:$0xff]  }
 0x32e   : > { %2763 = vmatpush1.bf16.msra.mxu1 %v12152_v35  ;;  %v12236_v35 = vld [vmem:[%s14437_s19 + $0x600] ss:$36 sps:$4 sm:$0xff]  }
 0x32f   : > { %2548 = vmatpush1.bf16.msra.mxu0 %v12155_v36  ;;  %2764 = vmatprep.subr.bf16.mxu1 %v12160_v37  ;;  %v12241_v36 = vld [vmem:[%s14437_s19 + $0x3b4] ss:$36 sps:$4 sm:$0xff]  }
 0x330   : > { %2576 = vmatprep.subr.bf16.mxu0 %v12163_v38  ;;  %v12239_v37 = vld [vmem:[%s14437_s19 + $0x3b0] ss:$36 sps:$4 sm:$0xff]  }
 0x331   : > { %v12244_v38 = vld [vmem:[%s14437_s19 + $0x64c] ss:$36 sps:$4 sm:$0xff]  }
 0x332   : > { %2566 = vmatmul.mubr.bf16.vlgmr.msra.gmra.mrb[0].mxu0 %v14627_v2  ;;  %2765 = vmatpush1.bf16.msra.mxu1 %v12158_v39  ;;  %v12247_v39 = vld [vmem:[%s14437_s19 + $0x3fc] ss:$36 sps:$4 sm:$0xff]  }
 0x333   : > { %2577 = vmatpush1.bf16.msra.mxu0 %v12161_v40  ;;  %2608 = vmatprep.mubr.bf16.mxu0 %v14625_v1  ;;  %v12242_v40 = vld [vmem:[%s14437_s19 + $0x648] ss:$36 sps:$4 sm:$0xff]  }
 0x334   : > { %2766 = vmatprep.subr.bf16.mxu1 %v12166_v44  ;;  %2578 = vmatprep.subr.bf16.mxu0 %v12169_v46  ;;  %v12245_v44 = vld [vmem:[%s14437_s19 + $0x3f8] ss:$36 sps:$4 sm:$0xff]   ;;  %v12253_v46 = vld [vmem:[%s14437_s19 + $0x444] ss:$36 sps:$4 sm:$0xff]  }
 0x336   : > { %2767 = vmatpush1.bf16.msra.mxu1 %v12164_v45  ;;  %v12250_v45 = vld [vmem:[%s14437_s19 + $0x694] ss:$36 sps:$4 sm:$0xff]  }
 0x337   : > { %2579 = vmatpush1.bf16.msra.mxu0 %v12167_v47  ;;  %2768 = vmatprep.subr.bf16.mxu1 %v12172_v48  ;;  %v12248_v47 = vld [vmem:[%s14437_s19 + $0x690] ss:$36 sps:$4 sm:$0xff]   ;;  %v12251_v48 = vld [vmem:[%s14437_s19 + $0x440] ss:$36 sps:$4 sm:$0xff]  }
 0x338   : > { %2580 = vmatprep.subr.bf16.mxu0 %v12175_v52  ;;  %v12256_v52 = vld [vmem:[%s14437_s19 + $0x14] ss:$36 sps:$4 sm:$0xff]  }
 0x33a   : > { %2769 = vmatpush1.bf16.msra.mxu1 %v12170_v42  ;;  %v12257_v42 = vld [vmem:[%s14437_s19 + $0x4a0] ss:$36 sps:$4 sm:$0xff]  }
 0x33b   : > { %2581 = vmatpush1.bf16.msra.mxu0 %v12173_v53  ;;  %2770 = vmatprep.subr.bf16.mxu1 %v12178_v43  ;;  %v13849_v53 = vmov 0.0   ;;  %v12254_v43 = vld [vmem:[%s14437_s19 + $0x10] ss:$36 sps:$4 sm:$0xff]  }
 0x33c   : > { %2582 = vmatprep.subr.bf16.mxu0 %v12181_v54  ;;  %v12260_v54 = vld [vmem:[%s14437_s19 + $0x5c] ss:$36 sps:$4 sm:$0xff]  }
 0x33e   : > { %2771 = vmatpush1.bf16.msra.mxu1 %v12176_v55  ;;  %v12261_v55 = vld [vmem:[%s14437_s19 + $0x4e8] ss:$36 sps:$4 sm:$0xff]  }
 0x33f   : > { %2583 = vmatpush1.bf16.msra.mxu0 %v12179_v41  ;;  %2772 = vmatprep.subr.bf16.mxu1 %v12184_v56  ;;  %v12258_v41 = vld [vmem:[%s14437_s19 + $0x58] ss:$36 sps:$4 sm:$0xff]   ;;  %v12264_v56 = vld [vmem:[%s14437_s19 + $0xa4] ss:$36 sps:$4 sm:$0xff]  }
 0x340   : > { %2584 = vmatprep.subr.bf16.mxu0 %v12187_v57  ;;  %v12265_v57 = vld [vmem:[%s14437_s19 + $0x530] ss:$36 sps:$4 sm:$0xff]  }
 0x342   : > { %2773 = vmatpush1.bf16.msra.mxu1 %v12182_v58  ;;  %v12262_v58 = vld [vmem:[%s14437_s19 + $0xa0] ss:$36 sps:$4 sm:$0xff]  }
 0x343   : > { %2585 = vmatpush1.bf16.msra.mxu0 %v12185_v59  ;;  %2774 = vmatprep.subr.bf16.mxu1 %v12190_v60  ;;  %v12268_v59 = vld [vmem:[%s14437_s19 + $0xec] ss:$36 sps:$4 sm:$0xff]   ;;  %v12269_v60 = vld [vmem:[%s14437_s19 + $0x578] ss:$36 sps:$4 sm:$0xff]  }
 0x344   : > { %2586 = vmatprep.subr.bf16.mxu0 %v12193_v61  ;;  %v12266_v61 = vld [vmem:[%s14437_s19 + $0xe8] ss:$36 sps:$4 sm:$0xff]  }
 0x346   : > { %2775 = vmatpush1.bf16.msra.mxu1 %v12188_v50  ;;  %v12272_v50 = vld [vmem:[%s14437_s19 + $0x134] ss:$36 sps:$4 sm:$0xff]  }
 0x347   : > { %2587 = vmatpush1.bf16.msra.mxu0 %v12191_v62  ;;  %2776 = vmatprep.subr.bf16.mxu1 %v12196_v63  ;;  %v12273_v62 = vld [vmem:[%s14437_s19 + $0x5c0] ss:$36 sps:$4 sm:$0xff]   ;;  %v12270_v63 = vld [vmem:[%s14437_s19 + $0x130] ss:$36 sps:$4 sm:$0xff]  }
 0x348   : > { %2588 = vmatprep.subr.bf16.mxu0 %v12199_v51  ;;  %v12276_v51 = vld [vmem:[%s14437_s19 + $0x17c] ss:$36 sps:$4 sm:$0xff]  }
 0x34a   : > { %2777 = vmatpush1.bf16.msra.mxu1 %v12194_v0  ;;  %v12277_v0 = vld [vmem:[%s14437_s19 + $0x608] ss:$36 sps:$4 sm:$0xff]  }
 0x34b   : > { %2589 = vmatpush1.bf16.msra.mxu0 %v12197_v49  ;;  %2778 = vmatprep.subr.bf16.mxu1 %v12202_v4  ;;  %v12274_v49 = vld [vmem:[%s14437_s19 + $0x178] ss:$36 sps:$4 sm:$0xff]   ;;  %v12280_v4 = vld [vmem:[%s14437_s19 + $0x1c4] ss:$36 sps:$4 sm:$0xff]  }
 0x34c   : > { %2590 = vmatprep.subr.bf16.mxu0 %v12205_v5  ;;  %v12281_v5 = vld [vmem:[%s14437_s19 + $0x650] ss:$36 sps:$4 sm:$0xff]  }
 0x34e   : > { %2779 = vmatpush1.bf16.msra.mxu1 %v12200_v6  ;;  %v12278_v6 = vld [vmem:[%s14437_s19 + $0x1c0] ss:$36 sps:$4 sm:$0xff]  }
 0x34f   : > { %2591 = vmatpush1.bf16.msra.mxu0 %v12203_v7  ;;  %2791 = vmatprep.subr.bf16.mxu1 %v12208_v8  ;;  %v12284_v7 = vld [vmem:[%s14437_s19 + $0x20c] ss:$36 sps:$4 sm:$0xff]   ;;  %v12285_v8 = vld [vmem:[%s14437_s19 + $0x698] ss:$36 sps:$4 sm:$0xff]  }
 0x350   : > { %2592 = vmatprep.subr.bf16.mxu0 %v12211_v9  ;;  %v12282_v9 = vld [vmem:[%s14437_s19 + $0x208] ss:$36 sps:$4 sm:$0xff]  }
 0x351   : > { %2781 = vmatmul.mubr.bf16.vlgmr.msra.gmra.mrb[4].mxu1 %v14629_v3 }
 0x352   : > { %2792 = vmatpush1.bf16.msra.mxu1 %v12206_v10  ;;  %2823 = vmatprep.mubr.bf16.mxu1 %v13848_v17  ;;  %v12288_v10 = vld [vmem:[%s14437_s19 + $0x254] ss:$36 sps:$4 sm:$0xff]  }
 0x353   : > { %2593 = vmatpush1.bf16.msra.mxu0 %v12209_v11  ;;  %2793 = vmatprep.subr.bf16.mxu1 %v12214_v12  ;;  %v12286_v11 = vld [vmem:[%s14437_s19 + $0x250] ss:$36 sps:$4 sm:$0xff]   ;;  %v12291_v12 = vld [vmem:[%s14437_s19 + $0x29c] ss:$36 sps:$4 sm:$0xff]  }
 0x354   : > { %2594 = vmatprep.subr.bf16.mxu0 %v12217_v14  ;;  %v12294_v14 = vld [vmem:[%s14437_s19 + $0x2e4] ss:$36 sps:$4 sm:$0xff]  }
 0x356   : > { %2794 = vmatpush1.bf16.msra.mxu1 %v12212_v13  ;;  %v12289_v13 = vld [vmem:[%s14437_s19 + $0x298] ss:$36 sps:$4 sm:$0xff]  }
 0x357   : > { %2595 = vmatpush1.bf16.msra.mxu0 %v12215_v15  ;;  %2795 = vmatprep.subr.bf16.mxu1 %v12220_v16  ;;  %v12292_v15 = vld [vmem:[%s14437_s19 + $0x2e0] ss:$36 sps:$4 sm:$0xff]   ;;  %v12297_v16 = vld [vmem:[%s14437_s19 + $0x32c] ss:$36 sps:$4 sm:$0xff]  }
 0x358   : > { %2596 = vmatprep.subr.bf16.mxu0 %v12223_v19  ;;  %v12300_v19 = vld [vmem:[%s14437_s19 + $0x374] ss:$36 sps:$4 sm:$0xff]  }
 0x35a   : > { %2796 = vmatpush1.bf16.msra.mxu1 %v12218_v18  ;;  %v12295_v18 = vld [vmem:[%s14437_s19 + $0x328] ss:$36 sps:$4 sm:$0xff]  }
 0x35b   : > { %2597 = vmatpush1.bf16.msra.mxu0 %v12221_v20  ;;  %2797 = vmatprep.subr.bf16.mxu1 %v12226_v21  ;;  %v12298_v20 = vld [vmem:[%s14437_s19 + $0x370] ss:$36 sps:$4 sm:$0xff]   ;;  %v12303_v21 = vld [vmem:[%s14437_s19 + $0x3bc] ss:$36 sps:$4 sm:$0xff]  }
 0x35c   : > { %2598 = vmatprep.subr.bf16.mxu0 %v12229_v23  ;;  %v12306_v23 = vld [vmem:[%s14437_s19 + $0x404] ss:$36 sps:$4 sm:$0xff]  }
 0x35e   : > { %2798 = vmatpush1.bf16.msra.mxu1 %v12224_v22  ;;  %v12301_v22 = vld [vmem:[%s14437_s19 + $0x3b8] ss:$36 sps:$4 sm:$0xff]  }
 0x35f   : > { %2599 = vmatpush1.bf16.msra.mxu0 %v12227_v24  ;;  %2799 = vmatprep.subr.bf16.mxu1 %v12232_v25  ;;  %v12304_v24 = vld [vmem:[%s14437_s19 + $0x400] ss:$36 sps:$4 sm:$0xff]   ;;  %v12309_v25 = vld [vmem:[%s14437_s19 + $0x44c] ss:$36 sps:$4 sm:$0xff]  }
 0x360   : > { %2600 = vmatprep.subr.bf16.mxu0 %v12235_v28  ;;  %v12312_v28 = vld [vmem:[%s14437_s19 + $0x494] ss:$36 sps:$4 sm:$0xff]  }
 0x362   : > { %2800 = vmatpush1.bf16.msra.mxu1 %v12230_v27  ;;  %v12307_v27 = vld [vmem:[%s14437_s19 + $0x448] ss:$36 sps:$4 sm:$0xff]  }
 0x363   : > { %2601 = vmatpush1.bf16.msra.mxu0 %v12233_v29  ;;  %2801 = vmatprep.subr.bf16.mxu1 %v12238_v31  ;;  %v12310_v29 = vld [vmem:[%s14437_s19 + $0x490] ss:$36 sps:$4 sm:$0xff]   ;;  %v12315_v31 = vld [vmem:[%s14437_s19 + $0x4dc] ss:$36 sps:$4 sm:$0xff]  }
 0x364   : > { %2602 = vmatprep.subr.bf16.mxu0 %v12241_v36  ;;  %v12318_v36 = vld [vmem:[%s14437_s19 + $0x524] ss:$36 sps:$4 sm:$0xff]  }
 0x366   : > { %2802 = vmatpush1.bf16.msra.mxu1 %v12236_v35  ;;  %v12313_v35 = vld [vmem:[%s14437_s19 + $0x4d8] ss:$36 sps:$4 sm:$0xff]  }
 0x367   : > { %2603 = vmatpush1.bf16.msra.mxu0 %v12239_v37  ;;  %2803 = vmatprep.subr.bf16.mxu1 %v12244_v38  ;;  %v12316_v37 = vld [vmem:[%s14437_s19 + $0x520] ss:$36 sps:$4 sm:$0xff]   ;;  %v12321_v38 = vld [vmem:[%s14437_s19 + $0x56c] ss:$36 sps:$4 sm:$0xff]  }
 0x368   : > { %2604 = vmatprep.subr.bf16.mxu0 %v12247_v39  ;;  %v12319_v39 = vld [vmem:[%s14437_s19 + $0x568] ss:$36 sps:$4 sm:$0xff]  }
 0x36a   : > { %2804 = vmatpush1.bf16.msra.mxu1 %v12242_v40  ;;  %v12324_v40 = vld [vmem:[%s14437_s19 + $0x5b4] ss:$36 sps:$4 sm:$0xff]  }
 0x36b   : > { %2605 = vmatpush1.bf16.msra.mxu0 %v12245_v44  ;;  %2805 = vmatprep.subr.bf16.mxu1 %v12250_v45  ;;  %v12322_v44 = vld [vmem:[%s14437_s19 + $0x5b0] ss:$36 sps:$4 sm:$0xff]   ;;  %v12327_v45 = vld [vmem:[%s14437_s19 + $0x5fc] ss:$36 sps:$4 sm:$0xff]  }
 0x36c   : > { %2606 = vmatprep.subr.bf16.mxu0 %v12253_v46  ;;  %v12325_v46 = vld [vmem:[%s14437_s19 + $0x5f8] ss:$36 sps:$4 sm:$0xff]  }
 0x36e   : > { %2806 = vmatpush1.bf16.msra.mxu1 %v12248_v47  ;;  %v12330_v47 = vld [vmem:[%s14437_s19 + $0x644] ss:$36 sps:$4 sm:$0xff]  }
 0x36f   : > { %2607 = vmatpush1.bf16.msra.mxu0 %v12251_v48  ;;  %11622 = vmatprep.subr.bf16.mxu1 %v13849_v53  ;;  %v12328_v48 = vld [vmem:[%s14437_s19 + $0x640] ss:$36 sps:$4 sm:$0xff]  }
 0x370   : > { %2662 = vmatprep.subr.bf16.mxu0 %v12256_v52  ;;  %v12333_v52 = vld [vmem:[%s14437_s19 + $0x68c] ss:$36 sps:$4 sm:$0xff]  }
 0x371   : > { %2824 = vmatmul.mubr.bf16.vlgmr.msra.gmra.mrb[4].mxu1 %v14627_v2 }
 0x372   : > { %2609 = vmatmul.mubr.bf16.vlgmr.msra.gmra.mrb[4].mxu0 %v14629_v3  ;;  %11623 = vmatpush3.bf16.msra.mxu1 %v12257_v42  ;;  %v12331_v42 = vld [vmem:[%s14437_s19 + $0x688] ss:$36 sps:$4 sm:$0xff]  }
 0x373   : > { %2663 = vmatpush1.bf16.msra.mxu0 %v12254_v43  ;;  %2694 = vmatprep.mubr.bf16.mxu0 %v14625_v1  ;;  %v12334_v43 = vld [vmem:[%s14437_s19 + $0x260] ss:$36 sps:$4 sm:$0xff]  }
 0x374   : > { %11624 = vmatprep.subr.bf16.mxu1 %v13849_v53  ;;  %2664 = vmatprep.subr.bf16.mxu0 %v12260_v54  ;;  %v12335_v54 = vld [vmem:[%s14437_s19 + $0x20] ss:$36 sps:$4 sm:$0xff]  }
 0x375   : > { %11638 = vmatprep.mubr.msk.bf16.mxu1 %vm13850_vm0, %v13849_v53 }
 0x376   : > { %11625 = vmatpush3.bf16.msra.mxu1 %v12261_v55  ;;  %v12336_v55 = vld [vmem:[%s14437_s19 + $0x2a8] ss:$36 sps:$4 sm:$0xff]  }
 0x377   : > { %2665 = vmatpush1.bf16.msra.mxu0 %v12258_v41  ;;  %11626 = vmatprep.subr.bf16.mxu1 %v13849_v53  ;;  %v12337_v41 = vld [vmem:[%s14437_s19 + $0x68] ss:$36 sps:$4 sm:$0xff]  }
 0x378   : > { %2666 = vmatprep.subr.bf16.mxu0 %v12264_v56  ;;  %v12338_v56 = vld [vmem:[%s14437_s19 + $0x2f0] ss:$36 sps:$4 sm:$0xff]  }
 0x37a   : > { %11627 = vmatpush3.bf16.msra.mxu1 %v12265_v57  ;;  %v12339_v57 = vld [vmem:[%s14437_s19 + $0xb0] ss:$36 sps:$4 sm:$0xff]  }
 0x37b   : > { %2667 = vmatpush1.bf16.msra.mxu0 %v12262_v58  ;;  %11628 = vmatprep.subr.bf16.mxu1 %v13849_v53  ;;  %v12340_v58 = vld [vmem:[%s14437_s19 + $0x338] ss:$36 sps:$4 sm:$0xff]  }
 0x37c   : > { %2668 = vmatprep.subr.bf16.mxu0 %v12268_v59  ;;  %v12341_v59 = vld [vmem:[%s14437_s19 + $0xf8] ss:$36 sps:$4 sm:$0xff]  }
 0x37e   : > { %11629 = vmatpush3.bf16.msra.mxu1 %v12269_v60  ;;  %v12342_v60 = vld [vmem:[%s14437_s19 + $0x380] ss:$36 sps:$4 sm:$0xff]  }
 0x37f   : > { %2669 = vmatpush1.bf16.msra.mxu0 %v12266_v61  ;;  %11630 = vmatprep.subr.bf16.mxu1 %v13849_v53  ;;  %v12345_v61 = vld [vmem:[%s14437_s19 + $0x188] ss:$36 sps:$4 sm:$0xff]  }
 0x380   : > { %2670 = vmatprep.subr.bf16.mxu0 %v12272_v50 }
 0x382   : > { %11631 = vmatpush3.bf16.msra.mxu1 %v12273_v62  ;;  %v12346_v62 = vld [vmem:[%s14437_s19 + $0x410] ss:$36 sps:$4 sm:$0xff]  }
 0x383   : > { %2671 = vmatpush1.bf16.msra.mxu0 %v12270_v63  ;;  %11632 = vmatprep.subr.bf16.mxu1 %v13849_v53 }
 0x384   : > { %2672 = vmatprep.subr.bf16.mxu0 %v12276_v51 }
 0x386   : > { %11633 = vmatpush3.bf16.msra.mxu1 %v12277_v0 }
 0x387   : > { %2673 = vmatpush1.bf16.msra.mxu0 %v12274_v49  ;;  %11634 = vmatprep.subr.bf16.mxu1 %v13849_v53  ;;  %v12347_v49 = vld [vmem:[%s14437_s19 + $0x1d0] ss:$36 sps:$4 sm:$0xff]  }
 0x388   : > { %2674 = vmatprep.subr.bf16.mxu0 %v12280_v4  ;;  %v12348_v4 = vld [vmem:[%s14437_s19 + $0x458] ss:$36 sps:$4 sm:$0xff]  }
 0x38a   : > { %11635 = vmatpush3.bf16.msra.mxu1 %v12281_v5  ;;  %v12349_v5 = vld [vmem:[%s14437_s19 + $0x218] ss:$36 sps:$4 sm:$0xff]  }
 0x38b   : > { %2675 = vmatpush1.bf16.msra.mxu0 %v12278_v6  ;;  %11636 = vmatprep.subr.bf16.mxu1 %v13849_v53  ;;  %v14829_v6 = vld [vmem:[%s14440_s4] sm:$0xff] }
 0x38c   : > { %2676 = vmatprep.subr.bf16.mxu0 %v12284_v7 }
 0x38e   : > { %11637 = vmatpush3.bf16.msra.mxu1 %v12285_v8  ;;  %v1344_v8 = vrot.slane %v14829_v6, %v14606_v34 }
 0x38f   : > { %2677 = vmatpush1.bf16.msra.mxu0 %v12282_v9  ;;  %11672 = vmatprep.subr.bf16.mxu1 %v13849_v53 }
 0x390   : > { %2678 = vmatprep.subr.bf16.mxu0 %v12288_v10  ;;  %v14837_v10 = vrot.slane %v14829_v6, %v14600_v32 }
 0x391   : > { %11639 = vmatmul.mubr.bf16.vlgmr.msra.gmra.mrb[8].mxu1 %v14627_v2 }
 0x392   : > { %11674 = vmatprep.mubr.msk.bf16.mxu1 %vm13850_vm0, %v13849_v53 }
 0x393   : > { %2679 = vmatpush1.bf16.msra.mxu0 %v12286_v11 }
 0x394   : > { %2680 = vmatprep.subr.bf16.mxu0 %v12291_v12 }
 0x397   : > { %2681 = vmatpush1.bf16.msra.mxu0 %v12289_v13 }
 0x398   : > { %2682 = vmatprep.subr.bf16.mxu0 %v12294_v14  ;;  %v1371_v14 = vsub.s32 7, %v14595_v30 }
 0x39b   : > { %2683 = vmatpush1.bf16.msra.mxu0 %v12292_v15  ;;  %v14846_v15 = vsub.s32 3, %v14595_v30 }
 0x39c   : > { %2684 = vmatprep.subr.bf16.mxu0 %v12297_v16  ;;  %v1367_v16 = vsub.s32 6, %v14595_v30 }
 0x39f   : > { %2685 = vmatpush1.bf16.msra.mxu0 %v12295_v18  ;;  %v1352_v18 = vrot.slane %v14829_v6, %v14603_v33 }
 0x3a0   : > { %2686 = vmatprep.subr.bf16.mxu0 %v12300_v19  ;;  %v1372_v19 = vrot.slane %v14829_v6, %v1371_v14 }
 0x3a3   : > { %2687 = vmatpush1.bf16.msra.mxu0 %v12298_v20  ;;  %v1356_v20 = vrot.slane %v14829_v6, %v14846_v15 }
 0x3a4   : > { %2688 = vmatprep.subr.bf16.mxu0 %v12303_v21 }
 0x3a7   : > { %2689 = vmatpush1.bf16.msra.mxu0 %v12301_v22  ;;  %v1368_v22 = vrot.slane %v14829_v6, %v1367_v16 }
 0x3a8   : > { %2690 = vmatprep.subr.bf16.mxu0 %v12306_v23 }
 0x3ab   : > { %2691 = vmatpush1.bf16.msra.mxu0 %v12304_v24 }
 0x3ac   : > { %2692 = vmatprep.subr.bf16.mxu0 %v12309_v25 }
 0x3af   : > { %2693 = vmatpush1.bf16.msra.mxu0 %v12307_v27 }
 0x3b0   : > { %2705 = vmatprep.subr.bf16.mxu0 %v12312_v28 }
 0x3b2   : > { %2695 = vmatmul.mubr.bf16.vlgmr.msra.gmra.mrb[8].mxu0 %v14629_v3 }
 0x3b3   : > { %2706 = vmatpush1.bf16.msra.mxu0 %v12310_v29  ;;  %2737 = vmatprep.mubr.bf16.mxu0 %v13848_v17 }
 0x3b4   : > { %2707 = vmatprep.subr.bf16.mxu0 %v12315_v31 }
 0x3b7   : > { %2708 = vmatpush1.bf16.msra.mxu0 %v12313_v35 }
 0x3b8   : > { %2709 = vmatprep.subr.bf16.mxu0 %v12318_v36 }
 0x3bb   : > { %2710 = vmatpush1.bf16.msra.mxu0 %v12316_v37 }
 0x3bc   : > { %2711 = vmatprep.subr.bf16.mxu0 %v12321_v38 }
 0x3bf   : > { %2712 = vmatpush1.bf16.msra.mxu0 %v12319_v39 }
 0x3c0   : > { %2713 = vmatprep.subr.bf16.mxu0 %v12324_v40 }
 0x3c3   : > { %2714 = vmatpush1.bf16.msra.mxu0 %v12322_v44 }
 0x3c4   : > { %2715 = vmatprep.subr.bf16.mxu0 %v12327_v45 }
 0x3c7   : > { %2716 = vmatpush1.bf16.msra.mxu0 %v12325_v46 }
 0x3c8   : > { %2717 = vmatprep.subr.bf16.mxu0 %v12330_v47 }
 0x3cb   : > { %2718 = vmatpush1.bf16.msra.mxu0 %v12328_v48 }
 0x3cc   : > { %2719 = vmatprep.subr.bf16.mxu0 %v12333_v52 }
 0x3cf   : > { %2720 = vmatpush1.bf16.msra.mxu0 %v12331_v42 }
 0x3d0   : > { %11380 = vmatprep.subr.bf16.mxu0 %v12334_v43 }
 0x3d2   : > { %2738 = vmatmul.mubr.bf16.vlgmr.msra.gmra.mrb[8].mxu0 %v14627_v2  ;;  %v12343_v2 = vld [vmem:[%s14437_s19 + $0x140] ss:$36 sps:$4 sm:$0xff]  }
 0x3d3   : > { %11381 = vmatpush3.bf16.msra.mxu0 %v12335_v54  ;;  %2866 = vmatprep.mubr.bf16.mxu0 %v14625_v1  ;;  %v12344_v1 = vld [vmem:[%s14437_s19 + $0x3c8] ss:$36 sps:$4 sm:$0xff]   ;;  %s16360_s19 = scalar_lea.vmem [#allocation11], %s14418_s3 }
 0x3d4   : > { %11382 = vmatprep.subr.bf16.mxu0 %v12336_v55 }
 0x3d7   : > { %11383 = vmatpush3.bf16.msra.mxu0 %v12337_v41 }
 0x3d8   : > { %11384 = vmatprep.subr.bf16.mxu0 %v12338_v56 }
 0x3db   : > { %11385 = vmatpush3.bf16.msra.mxu0 %v12339_v57 }
 0x3dc   : > { %11386 = vmatprep.subr.bf16.mxu0 %v12340_v58 }
 0x3df   : > { %11387 = vmatpush3.bf16.msra.mxu0 %v12341_v59 }
 0x3e0   : > { %11388 = vmatprep.subr.bf16.mxu0 %v12342_v60 }
 0x3e3   : > { %11389 = vmatpush3.bf16.msra.mxu0 %v12343_v2 }
 0x3e4   : > { %v2653_v50 = vpop.f32.mrb[0].mxu1  ;;  %11390 = vmatprep.subr.bf16.mxu0 %v12344_v1 }
 0x3e5   : > { %v2655_v63 = vpop.f32.mrb[1].mxu1 }
 0x3e6   : > { %v2657_v51 = vpop.f32.mrb[2].mxu1 }
 0x3e7   : > { %11391 = vmatpush3.bf16.msra.mxu0 %v12345_v61  ;;  %v2659_v0 = vpop.f32.mrb[3].mxu1 }
 0x3e8   : > { %11392 = vmatprep.subr.bf16.mxu0 %v12346_v62 }
 0x3eb   : > { %11393 = vmatpush3.bf16.msra.mxu0 %v12347_v49  ;;  %v10489_v49 = vld [vmem:[%s14440_s4 + $0x8] ss:$0 sm:$0xff]  ;;  %s16361_s4 = scalar_lea.vmem [#allocation13], %s14418_s3 }
 0x3ec   : > { %11394 = vmatprep.subr.bf16.mxu0 %v12348_v4 }
 0x3ef   : > { %11395 = vmatpush3.bf16.msra.mxu0 %v12349_v5 }
 0x3f0   : > { %11642 = vmatprep.subr.bf16.mxu0 %v13849_v53 }
 0x3f2   : > { %2867 = vmatmul.mubr.bf16.vlgmr.msra.gmra.mrb[12].mxu0 %v14629_v3 }
 0x3f3   : > { %11644 = vmatprep.mubr.msk.bf16.mxu0 %vm13850_vm0, %v13849_v53 }
 0x405   : > { %v2567_v7 = vpop.f32.mrb[0].mxu0 }
 0x406   : > { %v14833_v9 = vpop.f32.mrb[1].mxu0  ;;  %v11806_v42 = vadd.f32 %v2567_v7, %v1344_v8 }
 0x407   : > { %v2571_v11 = vpop.f32.mrb[2].mxu0 }
 0x408   : > { %v14839_v12 = vadd.f32 %v2571_v11, %v1344_v8  ;;  %v2573_v13 = vpop.f32.mrb[3].mxu0  ;;  %v2919_v56 = vmul.f32 0.125, %v11806_v42 }
 0x409   : > { %v14842_v3 = vadd.f32 %v2573_v13, %v14837_v10 }
 0x40a   : > { %v2922_v58 = vpack.c.bf16 %v2919_v56, %v2919_v56 }
 0x444   : > { %v2825_v21 = vpop.f32.mrb[4].mxu1 }
 0x445   : > { %v2610_v23 = vpop.f32.mrb[4].mxu0  ;;  %v2827_v24 = vpop.f32.mrb[5].mxu1  ;;  %v11822_v55 = vadd.f32 %v2825_v21, %v1368_v22  ;;  %v14898_v21 = vand.u32 127, %v1051_v26 }
 0x446   : > { %v2611_v25 = vadd.f32 %v2610_v23, %v1352_v18  ;;  %v11823_v27 = vadd.f32 %v2827_v24, %v1372_v19  ;;  %v2612_v28 = vpop.f32.mrb[5].mxu0  ;;  %v2829_v29 = vpop.f32.mrb[6].mxu1 }
 0x447   : > { %v2613_v31 = vadd.f32 %v2612_v28, %v1356_v20  ;;  %v14859_v35 = vadd.f32 %v2829_v29, %v1368_v22  ;;  %v2614_v36 = vpop.f32.mrb[6].mxu0  ;;  %v2831_v37 = vpop.f32.mrb[7].mxu1  ;;  %v14876_v57 = vpack.c.bf16 %v11822_v55, %v11822_v55  ;;  %vm2918_vm3 = vcmp.lt.s32.totalorder %v14898_v21, 5 }
 0x448   : > { %v14861_v38 = vadd.f32 %v2653_v50, %v2611_v25  ;;  %v14863_v39 = vpack.c.bf16 %v11823_v27, %v11823_v27  ;;  %v2615_v40 = vadd.f32 %v2614_v36, %v1352_v18  ;;  %v14865_v44 = vadd.f32 %v2831_v37, %v1372_v19  ;;  %v2616_v45 = vpop.f32.mrb[7].mxu0 }
 0x449   : > { %v2656_v46 = vadd.f32 %v2655_v63, %v2613_v31  ;;  %v2617_v47 = vadd.f32 %v2616_v45, %v1356_v20  ;;  %v2991_v59 = vsel %vm2989_vm1, %v14876_v57, 0 }
 0x44a   : > { %v3213_v48 = vsel %vm2989_vm1, %v14863_v39, 0  ;;  %v14869_v52 = vadd.f32 %v2657_v51, %v2615_v40 }
 0x44b   : > { %v2923_v43 = vpack.c.bf16 %v2656_v46, %v2656_v46  ;;  %v14871_v54 = vadd.f32 %v2659_v0, %v2617_v47  ;;  %11673 = vmatpush3.bf16.msra.mxu1 %v3213_v48 }
 0x44c   : > { %11684 = vmatprep.subr.bf16.mxu1 %v13849_v53 }
 0x44d   : > { %v2930_v41 = vsel %vm2925_vm2, %v2923_v43, 0 }
 0x44e   : > { %11643 = vmatpush3.bf16.xpose.msra.mxu0 %v2930_v41 }
 0x44f   : > { %11648 = vmatprep.subr.bf16.mxu0 %v13849_v53 }
 0x455   : > { %11645 = vmatmul.mubr.msk.bf16.vlgmr.msra.gmra.mrb[16].mxu0 %vm2925_vm2, %v2922_v58 }
 0x456   : > { %11649 = vmatpush3.bf16.msra.mxu0 %v2991_v59  ;;  %11650 = vmatprep.mubr.msk.bf16.mxu0 %vm13850_vm0, %v13849_v53 }
 0x457   : > { %11654 = vmatprep.subr.bf16.mxu0 %v13849_v53 }
 0x464   : > { %v2909_v60 = vpop.f32.mrb[8].mxu1 }
 0x465   : > { %v11640_v2 = vpop.f32.mrb[9].mxu1 }
 0x466   : > { %v2912_v1 = vpop.f32.mrb[10].mxu1 }
 0x467   : > { %v11641_v61 = vpop.f32.mrb[11].mxu1 }
 0x4a5   : > { %v14884_v50 = vpop.f32.mrb[8].mxu0 }
 0x4a6   : > { %v14886_v62 = vpop.f32.mrb[9].mxu0 }
 0x4a7   : > { %v14888_v63 = vpop.f32.mrb[10].mxu0 }
 0x4a8   : > { %v14890_v51 = vpop.f32.mrb[11].mxu0 }
 0x4c5   : > { %v11396_v0 = vpop.f32.mrb[12].mxu0 }
 0x4c6   : > { %v11397_v4 = vpop.f32.mrb[13].mxu0 }
 0x4c7   : > { %v11398_v5 = vadd.f32 %v11397_v4, %v11396_v0  ;;  %v11399_v7 = vpop.f32.mrb[14].mxu0  ;;  %v1359_v4 = vsub.s32 4, %v14595_v30 }
 0x4c8   : > { %v11400_v8 = vpop.f32.mrb[15].mxu0 }
 0x4c9   : > { %v2869_v11 = vadd.f32 %v11398_v5, %v10489_v49  ;;  %v11401_v13 = vadd.f32 %v11400_v8, %v11399_v7  ;;  %v1360_v5 = vrot.slane %v14829_v6, %v1359_v4  ;;  %v11807_v7 = vadd.f32 %v14833_v9, %v14837_v10 }
 0x4ca   : > { %v3610_v9 = vpack.c.bf16 %v14871_v54, %v14871_v54 }
 0x4cb   : > { %v2872_v18 = vadd.f32 %v11401_v13, %v10489_v49  ;;  %v14893_v19 = vadd.f32 %v2909_v60, %v2869_v11  ;;  %v11818_v8 = vadd.f32 %v14884_v50, %v1360_v5  ;;  %v1363_v11 = vsub.s32 5, %v14595_v30 }
 0x4cc   : > { %v2920_v13 = vmul.f32 0.125, %v11807_v7  ;;  %v11820_v10 = vadd.f32 %v14888_v63, %v1360_v5 }
 0x4cd   : > { %v14895_v20 = vadd.f32 %v2912_v1, %v2872_v18  ;;  %v3148_v18 = vpack.c.bf16 %v11818_v8, %v11818_v8 }
 0x4ce   : > { %v14939_v50 = vpack.c.bf16 %v11820_v10, %v11820_v10 }
 0x4d0   : > { %v3838_v5 = vsel %vm2925_vm2, %v14939_v50, 0 }
 0x528   : > { %v2966_v22 = vpop.f32.mrb[16].mxu0 }
 0x529   : > { %v2972_v23 = vsel %vm2918_vm3, %v2966_v22, -1e+30  ;;  %v11646_v24 = vpop.f32.mrb[17].mxu0  ;;  %v1364_v22 = vrot.slane %v14829_v6, %v1363_v11 }
 0x52a   : > { %v2969_v25 = vpop.f32.mrb[18].mxu0  ;;  %v2974_v27 = vsel %vm2973_vm4, %v2972_v23, -inf }
 0x52b   : > { %2975 = vmax.xlane.f32.xlu0 %v2974_v27  ;;  %v11647_v28 = vpop.f32.mrb[19].mxu0  ;;  %v11819_v24 = vadd.f32 %v14886_v62, %v1364_v22  ;;  %v11821_v6 = vadd.f32 %v14890_v51, %v1364_v22  ;;  %v3606_v51 = vmul.f32 0.125, %v14839_v12 }
 0x52d   : > { %v3370_v25 = vpack.c.bf16 %v11819_v24, %v11819_v24  ;;  %v14944_v62 = vpack.c.bf16 %v11821_v6, %v11821_v6 }
 0x541   : > { %3037 = vrot.lane.b32.xlu0 %v2923_v43, %s13851_s27 }
 0x5b8   : > { %v2976_v29 = vpop.xlane.xlu0 %2975 }
 0x5b9   : > { %v2977_v31 = vsub.f32 %v2972_v23, %v2976_v29  ;;  %v3147_v23 = vpack.c.bf16 %v2920_v13, %v2920_v13 }
 0x5bb   : > { %v2978_v36 = vmul.f32 1.442695, %v2977_v31  ;;  %v2921_v31 = vmul.f32 0.125, %v14861_v38 }
 0x5bc   : > { %v3038_v48 = vpop.permute.xlu0 %3037 }
 0x5bd   : > { %13266 = vpow2.f32 %v2978_v36  ;;  %v3043_v55 = vsel %vm2925_vm2, %v3038_v48, 0  ;;  %v3369_v36 = vpack.c.bf16 %v2921_v31, %v2921_v31 }
 0x5c7   : > { %v13267_v37 = vpop.eup %13266 }
 0x5c8   : > { %v2980_v40 = vsel %vm2973_vm4, %v13267_v37, 0.0 }
 0x5c9   : > { %2981 = vadd.xlane.f32.xlu1 %v2980_v40  ;;  %v3607_v40 = vmul.f32 0.125, %v14842_v3 }
 0x5da   : > { %3034 = vrot.lane.b32.xlu1 %v2922_v58, %s13851_s27 }
 0x656   : > { %v2982_v45 = vpop.xlane.xlu1 %2981 }
 0x657   : > { %13268 = vrcp.f32 %v2982_v45  ;;  %v3831_v45 = vpack.c.bf16 %v3607_v40, %v3607_v40 }
 0x65a   : > { %v3035_v43 = vpop.permute.xlu1 %3034 }
 0x661   : > { %v13269_v46 = vpop.eup %13268 }
 0x662   : > { %v2984_v47 = vmul.f32 %v13269_v46, %v13267_v37  ;;  %v3609_v37 = vpack.c.bf16 %v3606_v51, %v3606_v51  ;;  %v3608_v46 = vmul.f32 0.125, %v14869_v52  ;;  %v3154_v52 = vsel %vm2925_vm2, %v3148_v18, 0 }
 0x664   : > { %v2985_v42 = vpack.c.bf16 %v2984_v47, %v2984_v47  ;;  %v14958_v47 = vpack.c.bf16 %v3608_v46, %v3608_v46 }
 0x666   : > { %11651 = vmatmul.mubr.msk.bf16.vlgmr.msra.gmra.mrb[20].mxu0 %vm2973_vm4, %v2985_v42 }
 0x667   : > { %11655 = vmatpush3.bf16.xpose.msra.mxu0 %v3043_v55  ;;  %11656 = vmatprep.mubr.msk.bf16.mxu0 %vm13850_vm0, %v13849_v53 }
 0x668   : > { %11660 = vmatprep.subr.bf16.mxu0 %v13849_v53 }
 0x66e   : > { %11657 = vmatmul.mubr.msk.bf16.vlgmr.msra.gmra.mrb[24].mxu0 %vm2925_vm2, %v3035_v43 }
 0x66f   : > { %11662 = vmatprep.mubr.msk.bf16.mxu0 %vm13850_vm0, %v13849_v53 }
 0x739   : > { %v14915_v41 = vpop.f32.mrb[20].mxu0 }
 0x73a   : > { %v11652_v56 = vpop.f32.mrb[21].mxu0 }
 0x73b   : > { %v3030_v58 = vpop.f32.mrb[22].mxu0 }
 0x73c   : > { %v11653_v59 = vpop.f32.mrb[23].mxu0  ;;  %v3376_v58 = vsel %vm2925_vm2, %v3370_v25, 0 }
 0x741   : > { %v3079_v60 = vpop.f32.mrb[24].mxu0 }
 0x742   : > { %v3085_v2 = vsel %vm2918_vm3, %v3079_v60, -1e+30  ;;  %v11658_v1 = vpop.f32.mrb[25].mxu0 }
 0x743   : > { %v3082_v61 = vpop.f32.mrb[26].mxu0  ;;  %v3086_v0 = vsel %vm2973_vm4, %v3085_v2, -inf  ;;  %v3616_v1 = vsel %vm2925_vm2, %v3610_v9, 0 }
 0x744   : > { %3087 = vmax.xlane.f32.xlu1 %v3086_v0  ;;  %v11659_v49 = vpop.f32.mrb[27].mxu0 }
 0x755   : > { %3259 = vrot.lane.b32.xlu1 %v3148_v18, %s13851_s27  ;;  %v4060_v18 = vsel %vm2925_vm2, %v14944_v62, 0 }
 0x759   : > { %3256 = vrot.lane.b32.xlu1 %v3147_v23, %s13851_s27 }
 0x75d   : > { %3481 = vrot.lane.b32.xlu1 %v3370_v25, %s13851_s27 }
 0x761   : > { %3721 = vrot.lane.b32.xlu1 %v3610_v9, %s13851_s27 }
 0x765   : > { %3943 = vrot.lane.b32.xlu1 %v14939_v50, %s13851_s27 }
 0x769   : > { %4165 = vrot.lane.b32.xlu1 %v14944_v62, %s13851_s27 }
 0x7d1   : > { %v3088_v27 = vpop.xlane.xlu1 %3087 }
 0x7d2   : > { %v3089_v28 = vsub.f32 %v3085_v2, %v3088_v27 }
 0x7d4   : > { %v3090_v29 = vmul.f32 1.442695, %v3089_v28 }
 0x7d5   : > { %v3260_v55 = vpop.permute.xlu1 %3259 }
 0x7d6   : > { %13270 = vpow2.f32 %v3090_v29  ;;  %v3265_v43 = vsel %vm2925_vm2, %v3260_v55, 0 }
 0x7d9   : > { %v3257_v56 = vpop.permute.xlu1 %3256 }
 0x7dd   : > { %v3482_v59 = vpop.permute.xlu1 %3481 }
 0x7de   : > { %v3487_v60 = vsel %vm2925_vm2, %v3482_v59, 0 }
 0x7e0   : > { %v13271_v54 = vpop.eup %13270 }
 0x7e1   : > { %v3092_v63 = vsel %vm2973_vm4, %v13271_v54, 0.0  ;;  %v3722_v61 = vpop.permute.xlu1 %3721 }
 0x7e2   : > { %3093 = vadd.xlane.f32.xlu0 %v3092_v63  ;;  %v3727_v0 = vsel %vm2925_vm2, %v3722_v61, 0 }
 0x7e5   : > { %v3944_v7 = vpop.permute.xlu1 %3943 }
 0x7e6   : > { %v3949_v8 = vsel %vm2925_vm2, %v3944_v7, 0 }
 0x7e9   : > { %v4166_v22 = vpop.permute.xlu1 %4165 }
 0x7f8   : > { %3099 = vrot.lane.b32.xlu0 %v14876_v57, %s13851_s27 }
 0x7fc   : > { %3478 = vrot.lane.b32.xlu0 %v3369_v36, %s13851_s27 }
 0x800   : > { %3718 = vrot.lane.b32.xlu0 %v3609_v37, %s13851_s27 }
 0x804   : > { %3940 = vrot.lane.b32.xlu0 %v3831_v45, %s13851_s27 }
 0x808   : > { %4162 = vrot.lane.b32.xlu0 %v14958_v47, %s13851_s27 }
 0x86f   : > { %v3094_v38 = vpop.xlane.xlu0 %3093 }
 0x870   : > { %13272 = vrcp.f32 %v3094_v38 }
 0x873   : > { %v3100_v12 = vpop.permute.xlu0 %3099 }
 0x874   : > { %v3105_v57 = vsel %vm2989_vm1, %v3100_v12, 0 }
 0x875   : > { %11661 = vmatpush3.bf16.msra.mxu0 %v3105_v57 }
 0x876   : > { %11666 = vmatprep.subr.bf16.mxu0 %v13849_v53 }
 0x877   : > { %v3479_v2 = vpop.permute.xlu0 %3478 }
 0x87a   : > { %v13273_v3 = vpop.eup %13272 }
 0x87b   : > { %v3096_v48 = vmul.f32 %v13273_v3, %v13271_v54  ;;  %v3719_v49 = vpop.permute.xlu0 %3718 }
 0x87d   : > { %v3097_v42 = vpack.c.bf16 %v3096_v48, %v3096_v48 }
 0x87f   : > { %11663 = vmatmul.mubr.msk.bf16.vlgmr.msra.gmra.mrb[28].mxu0 %vm2973_vm4, %v3097_v42  ;;  %v3941_v13 = vpop.permute.xlu0 %3940 }
 0x880   : > { %11667 = vmatpush3.bf16.xpose.msra.mxu0 %v3154_v52  ;;  %11668 = vmatprep.mubr.msk.bf16.mxu0 %vm13850_vm0, %v13849_v53 }
 0x881   : > { %11678 = vmatprep.subr.bf16.mxu0 %v13849_v53 }
 0x883   : > { %v4163_v24 = vpop.permute.xlu0 %4162 }
 0x887   : > { %11669 = vmatmul.mubr.msk.bf16.vlgmr.msra.gmra.mrb[32].mxu0 %vm2925_vm2, %v3147_v23  ;;  %v4171_v23 = vsel %vm2925_vm2, %v4166_v22, 0 }
 0x888   : > { %11679 = vmatpush3.bf16.xpose.msra.mxu0 %v3265_v43  ;;  %11680 = vmatprep.mubr.msk.bf16.mxu0 %vm13850_vm0, %v13849_v53 }
 0x889   : > { %11690 = vmatprep.subr.bf16.mxu0 %v13849_v53 }
 0x88f   : > { %11681 = vmatmul.mubr.msk.bf16.vlgmr.msra.gmra.mrb[36].mxu0 %vm2925_vm2, %v3257_v56 }
 0x890   : > { %11691 = vmatpush3.bf16.xpose.msra.mxu0 %v3376_v58  ;;  %11692 = vmatprep.mubr.msk.bf16.mxu0 %vm13850_vm0, %v13849_v53 }
 0x891   : > { %11702 = vmatprep.subr.bf16.mxu0 %v13849_v53 }
 0x897   : > { %11693 = vmatmul.mubr.msk.bf16.vlgmr.msra.gmra.mrb[40].mxu0 %vm2925_vm2, %v3369_v36 }
 0x898   : > { %11703 = vmatpush3.bf16.xpose.msra.mxu0 %v3487_v60  ;;  %11704 = vmatprep.mubr.msk.bf16.mxu0 %vm13850_vm0, %v13849_v53 }
 0x899   : > { %11714 = vmatprep.subr.bf16.mxu0 %v13849_v53 }
 0x89f   : > { %11705 = vmatmul.mubr.msk.bf16.vlgmr.msra.gmra.mrb[44].mxu0 %vm2925_vm2, %v3479_v2 }
 0x8a0   : > { %11715 = vmatpush3.bf16.xpose.msra.mxu0 %v3616_v1  ;;  %11716 = vmatprep.mubr.msk.bf16.mxu0 %vm13850_vm0, %v13849_v53 }
 0x8a1   : > { %11726 = vmatprep.subr.bf16.mxu0 %v13849_v53 }
 0x8a7   : > { %11717 = vmatmul.mubr.msk.bf16.vlgmr.msra.gmra.mrb[48].mxu0 %vm2925_vm2, %v3609_v37 }
 0x8a8   : > { %11727 = vmatpush3.bf16.xpose.msra.mxu0 %v3727_v0  ;;  %11728 = vmatprep.mubr.msk.bf16.mxu0 %vm13850_vm0, %v13849_v53 }
 0x8a9   : > { %11738 = vmatprep.subr.bf16.mxu0 %v13849_v53 }
 0x8af   : > { %11729 = vmatmul.mubr.msk.bf16.vlgmr.msra.gmra.mrb[52].mxu0 %vm2925_vm2, %v3719_v49 }
 0x8b0   : > { %11739 = vmatpush3.bf16.xpose.msra.mxu0 %v3838_v5  ;;  %11740 = vmatprep.mubr.msk.bf16.mxu0 %vm13850_vm0, %v13849_v53 }
 0x8b1   : > { %11750 = vmatprep.subr.bf16.mxu0 %v13849_v53 }
 0x8b7   : > { %11741 = vmatmul.mubr.msk.bf16.vlgmr.msra.gmra.mrb[56].mxu0 %vm2925_vm2, %v3831_v45 }
 0x8b8   : > { %11751 = vmatpush3.bf16.xpose.msra.mxu0 %v3949_v8  ;;  %11752 = vmatprep.mubr.msk.bf16.mxu0 %vm13850_vm0, %v13849_v53 }
 0x8b9   : > { %11762 = vmatprep.subr.bf16.mxu0 %v13849_v53 }
 0x8bf   : > { %11753 = vmatmul.mubr.msk.bf16.vlgmr.msra.gmra.mrb[60].mxu0 %vm2925_vm2, %v3941_v13 }
 0x8c0   : > { %11763 = vmatpush3.bf16.xpose.msra.mxu0 %v4060_v18  ;;  %11764 = vmatprep.mubr.msk.bf16.mxu0 %vm13850_vm0, %v13849_v53 }
 0x8c1   : > { %11774 = vmatprep.subr.bf16.mxu0 %v13849_v53 }
 0x8c7   : > { %11765 = vmatmul.mubr.msk.bf16.vlgmr.msra.gmra.mrb[64].mxu0 %vm2925_vm2, %v14958_v47 }
 0x8c8   : > { %11775 = vmatpush3.bf16.xpose.msra.mxu0 %v4171_v23  ;;  %11776 = vmatprep.mubr.msk.bf16.mxu0 %vm13850_vm0, %v13849_v53 }
 0x8cf   : > { %11777 = vmatmul.mubr.msk.bf16.vlgmr.msra.gmra.mrb[68].mxu0 %vm2925_vm2, %v4163_v24 }
 0x952   : > { %v15017_v25 = vpop.f32.mrb[28].mxu0 }
 0x953   : > { %v11664_v9 = vpop.f32.mrb[29].mxu0 }
 0x954   : > { %v3144_v10 = vpop.f32.mrb[30].mxu0 }
 0x955   : > { %v11665_v50 = vpop.f32.mrb[31].mxu0 }
 0x95a   : > { %v3190_v6 = vpop.f32.mrb[32].mxu0 }
 0x95b   : > { %v15021_v62 = vsel %vm2918_vm3, %v3190_v6, -1e+30  ;;  %v11670_v27 = vpop.f32.mrb[33].mxu0 }
 0x95c   : > { %v3193_v28 = vpop.f32.mrb[34].mxu0  ;;  %v3197_v29 = vsel %vm2973_vm4, %v15021_v62, -inf }
 0x95d   : > { %3198 = vmax.xlane.f32.xlu1 %v3197_v29  ;;  %v11671_v54 = vpop.f32.mrb[35].mxu0 }
 0x962   : > { %v3301_v63 = vpop.f32.mrb[36].mxu0 }
 0x963   : > { %v15027_v31 = vsel %vm2918_vm3, %v3301_v63, -1e+30  ;;  %v11682_v51 = vpop.f32.mrb[37].mxu0 }
 0x964   : > { %v3304_v36 = vpop.f32.mrb[38].mxu0  ;;  %v3308_v37 = vsel %vm2973_vm4, %v15027_v31, -inf }
 0x965   : > { %3309 = vmax.xlane.f32.xlu0 %v3308_v37  ;;  %v11683_v40 = vpop.f32.mrb[39].mxu0 }
 0x96a   : > { %v3412_v45 = vpop.f32.mrb[40].mxu0 }
 0x96b   : > { %v15033_v46 = vsel %vm2918_vm3, %v3412_v45, -1e+30  ;;  %v11694_v47 = vpop.f32.mrb[41].mxu0 }
 0x96c   : > { %v3415_v38 = vpop.f32.mrb[42].mxu0  ;;  %v3419_v12 = vsel %vm2973_vm4, %v15033_v46, -inf }
 0x96d   : > { %3420 = vmax.xlane.f32.xlu0 %v3419_v12  ;;  %v11695_v57 = vpop.f32.mrb[43].mxu0 }
 0x972   : > { %v3523_v3 = vpop.f32.mrb[44].mxu0 }
 0x973   : > { %v15039_v48 = vsel %vm2918_vm3, %v3523_v3, -1e+30  ;;  %v11706_v42 = vpop.f32.mrb[45].mxu0 }
 0x974   : > { %v3526_v52 = vpop.f32.mrb[46].mxu0  ;;  %v3530_v55 = vsel %vm2973_vm4, %v15039_v48, -inf }
 0x975   : > { %3531 = vmax.xlane.f32.xlu0 %v3530_v55  ;;  %v11707_v43 = vpop.f32.mrb[47].mxu0 }
 0x97a   : > { %v3652_v56 = vpop.f32.mrb[48].mxu0 }
 0x97b   : > { %v15045_v58 = vsel %vm2918_vm3, %v3652_v56, -1e+30  ;;  %v11718_v59 = vpop.f32.mrb[49].mxu0 }
 0x97c   : > { %v3655_v60 = vpop.f32.mrb[50].mxu0  ;;  %v3659_v2 = vsel %vm2973_vm4, %v15045_v58, -inf }
 0x97d   : > { %3660 = vmax.xlane.f32.xlu1 %v3659_v2  ;;  %v11719_v1 = vpop.f32.mrb[51].mxu0 }
 0x982   : > { %v3763_v61 = vpop.f32.mrb[52].mxu0 }
 0x983   : > { %v15051_v0 = vsel %vm2918_vm3, %v3763_v61, -1e+30  ;;  %v11730_v49 = vpop.f32.mrb[53].mxu0 }
 0x984   : > { %v3766_v5 = vpop.f32.mrb[54].mxu0  ;;  %v3770_v7 = vsel %vm2973_vm4, %v15051_v0, -inf }
 0x985   : > { %3771 = vmax.xlane.f32.xlu0 %v3770_v7  ;;  %v11731_v8 = vpop.f32.mrb[55].mxu0 }
 0x98a   : > { %v3874_v13 = vpop.f32.mrb[56].mxu0 }
 0x98b   : > { %v15057_v18 = vsel %vm2918_vm3, %v3874_v13, -1e+30  ;;  %v11742_v22 = vpop.f32.mrb[57].mxu0 }
 0x98c   : > { %v3877_v23 = vpop.f32.mrb[58].mxu0  ;;  %v3881_v24 = vsel %vm2973_vm4, %v15057_v18, -inf }
 0x98d   : > { %3882 = vmax.xlane.f32.xlu1 %v3881_v24  ;;  %v11743_v9 = vpop.f32.mrb[59].mxu0  ;;  %v15101_v23 = vpack.c.bf16 %v14893_v19, %v14893_v19 }
 0x992   : > { %v3985_v10 = vpop.f32.mrb[60].mxu0 }
 0x993   : > { %v15063_v50 = vsel %vm2918_vm3, %v3985_v10, -1e+30  ;;  %v11754_v6 = vpop.f32.mrb[61].mxu0 }
 0x994   : > { %v3988_v27 = vpop.f32.mrb[62].mxu0  ;;  %v3992_v28 = vsel %vm2973_vm4, %v15063_v50, -inf }
 0x995   : > { %3993 = vmax.xlane.f32.xlu0 %v3992_v28  ;;  %v11755_v29 = vpop.f32.mrb[63].mxu0 }
 0x99a   : > { %v4096_v54 = vpop.f32.mrb[64].mxu0 }
 0x99b   : > { %v15069_v63 = vsel %vm2918_vm3, %v4096_v54, -1e+30  ;;  %v11766_v51 = vpop.f32.mrb[65].mxu0 }
 0x99c   : > { %v4099_v36 = vpop.f32.mrb[66].mxu0  ;;  %v4103_v37 = vsel %vm2973_vm4, %v15069_v63, -inf }
 0x99d   : > { %4104 = vmax.xlane.f32.xlu1 %v4103_v37  ;;  %v11767_v40 = vpop.f32.mrb[67].mxu0 }
 0x9a2   : > { %v4207_v45 = vpop.f32.mrb[68].mxu0 }
 0x9a3   : > { %v15075_v47 = vsel %vm2918_vm3, %v4207_v45, -1e+30  ;;  %v11778_v38 = vpop.f32.mrb[69].mxu0 }
 0x9a4   : > { %v4210_v12 = vpop.f32.mrb[70].mxu0  ;;  %v4214_v57 = vsel %vm2973_vm4, %v15075_v47, -inf  ;;  %v3611_v38 = vpack.c.bf16 %v14859_v35, %v14859_v35 }
 0x9a5   : > { %4215 = vmax.xlane.f32.xlu1 %v4214_v57  ;;  %v11779_v3 = vpop.f32.mrb[71].mxu0  ;;  %v15132_v12 = vpack.c.bf16 %v14865_v44, %v14865_v44 }
 0x9ea   : > { %v3199_v42 = vpop.xlane.xlu1 %3198 }
 0x9eb   : > { %v3200_v52 = vsub.f32 %v15021_v62, %v3199_v42 }
 0x9ed   : > { %v3201_v55 = vmul.f32 1.442695, %v3200_v52 }
 0x9ef   : > { %13274 = vpow2.f32 %v3201_v55 }
 0x9f2   : > { %v3310_v43 = vpop.xlane.xlu0 %3309 }
 0x9f3   : > { %v3311_v56 = vsub.f32 %v15027_v31, %v3310_v43 }
 0x9f5   : > { %v3312_v59 = vmul.f32 1.442695, %v3311_v56 }
 0x9f7   : > { %13276 = vpow2.f32 %v3312_v59 }
 0x9f9   : > { %v15081_v21 = vpop.eup %13274 }
 0x9fa   : > { %v3421_v60 = vpop.xlane.xlu0 %3420  ;;  %v3203_v2 = vsel %vm2973_vm4, %v15081_v21, 0.0 }
 0x9fb   : > { %v3422_v1 = vsub.f32 %v15033_v46, %v3421_v60  ;;  %3204 = vadd.xlane.f32.xlu0 %v3203_v2 }
 0x9fd   : > { %v3423_v61 = vmul.f32 1.442695, %v3422_v1 }
 0x9ff   : > { %13278 = vpow2.f32 %v3423_v61 }
 0xa01   : > { %v15086_v49 = vpop.eup %13276 }
 0xa02   : > { %v3532_v62 = vpop.xlane.xlu0 %3531  ;;  %v3314_v5 = vsel %vm2973_vm4, %v15086_v49, 0.0 }
 0xa03   : > { %v3533_v31 = vsub.f32 %v15039_v48, %v3532_v62  ;;  %3315 = vadd.xlane.f32.xlu0 %v3314_v5 }
 0xa05   : > { %v3534_v7 = vmul.f32 1.442695, %v3533_v31 }
 0xa07   : > { %13280 = vpow2.f32 %v3534_v7 }
 0xa09   : > { %v15091_v8 = vpop.eup %13278 }
 0xa0a   : > { %v3425_v13 = vsel %vm2973_vm4, %v15091_v8, 0.0  ;;  %v3661_v48 = vpop.xlane.xlu1 %3660 }
 0xa0b   : > { %3426 = vadd.xlane.f32.xlu1 %v3425_v13  ;;  %v3662_v24 = vsub.f32 %v15045_v58, %v3661_v48  ;;  %v3435_v48 = vsel %vm2989_vm1, %v15101_v23, 0 }
 0xa0d   : > { %v3663_v10 = vmul.f32 1.442695, %v3662_v24 }
 0xa0f   : > { %13282 = vpow2.f32 %v3663_v10 }
 0xa11   : > { %v15095_v46 = vpop.eup %13280 }
 0xa12   : > { %v3536_v22 = vsel %vm2973_vm4, %v15095_v46, 0.0  ;;  %v3772_v9 = vpop.xlane.xlu0 %3771 }
 0xa13   : > { %3537 = vadd.xlane.f32.xlu0 %v3536_v22  ;;  %v3773_v6 = vsub.f32 %v15051_v0, %v3772_v9 }
 0xa15   : > { %v3774_v19 = vmul.f32 1.442695, %v3773_v6 }
 0xa17   : > { %13284 = vpow2.f32 %v3774_v19 }
 0xa1a   : > { %v3883_v27 = vpop.xlane.xlu1 %3882 }
 0xa1b   : > { %v3884_v29 = vsub.f32 %v15057_v18, %v3883_v27 }
 0xa1c   : > { %3543 = vrot.lane.b32.xlu1 %v15101_v23, %s13851_s27 }
 0xa1d   : > { %v3885_v51 = vmul.f32 1.442695, %v3884_v29 }
 0xa1f   : > { %13286 = vpow2.f32 %v3885_v51 }
 0xa22   : > { %v3994_v28 = vpop.xlane.xlu0 %3993 }
 0xa23   : > { %v3995_v54 = vsub.f32 %v15063_v50, %v3994_v28 }
 0xa25   : > { %v3996_v36 = vmul.f32 1.442695, %v3995_v54 }
 0xa27   : > { %13288 = vpow2.f32 %v3996_v36 }
 0xa29   : > { %3321 = vrot.lane.b32.xlu0 %v14863_v39, %s13851_s27  ;;  %v15111_v39 = vpop.eup %13282 }
 0xa2a   : > { %v3665_v58 = vsel %vm2973_vm4, %v15111_v39, 0.0  ;;  %v15115_v37 = vpop.eup %13284  ;;  %v4105_v57 = vpop.xlane.xlu1 %4104 }
 0xa2b   : > { %v15117_v0 = vpop.eup %13286  ;;  %v3776_v18 = vsel %vm2973_vm4, %v15115_v37, 0.0  ;;  %v4106_v3 = vsub.f32 %v15069_v63, %v4105_v57  ;;  %v3897_v57 = vsel %vm2989_vm1, %v15132_v12, 0 }
 0xa2c   : > { %v3887_v45 = vsel %vm2973_vm4, %v15117_v0, 0.0 }
 0xa2d   : > { %v4107_v52 = vmul.f32 1.442695, %v4106_v3 }
 0xa2f   : > { %13290 = vpow2.f32 %v4107_v52 }
 0xa31   : > { %v15121_v40 = vpop.eup %13288 }
 0xa32   : > { %v3998_v50 = vsel %vm2973_vm4, %v15121_v40, 0.0  ;;  %v4216_v42 = vpop.xlane.xlu1 %4215 }
 0xa33   : > { %v4217_v55 = vsub.f32 %v15075_v47, %v4216_v42  ;;  %v15148_v47 = vpack.c.bf16 %v14895_v20, %v14895_v20 }
 0xa35   : > { %v4218_v43 = vmul.f32 1.442695, %v4217_v55 }
 0xa37   : > { %13292 = vpow2.f32 %v4218_v43 }
 0xa39   : > { %v15138_v35 = vpop.eup %13290 }
 0xa3a   : > { %v4109_v56 = vsel %vm2973_vm4, %v15138_v35, 0.0 }
 0xa40   : > { %3666 = vadd.xlane.f32.xlu1 %v3665_v58 }
 0xa41   : > { %v15142_v44 = vpop.eup %13292 }
 0xa42   : > { %v4220_v59 = vsel %vm2973_vm4, %v15142_v44, 0.0 }
 0xa44   : > { %3777 = vadd.xlane.f32.xlu1 %v3776_v18 }
 0xa48   : > { %3999 = vadd.xlane.f32.xlu0 %v3998_v50  ;;  %3888 = vadd.xlane.f32.xlu1 %v3887_v45 }
 0xa59   : > { %3783 = vrot.lane.b32.xlu1 %v3611_v38, %s13851_s27 }
 0xa5e   : > { %4005 = vrot.lane.b32.xlu0 %v15132_v12, %s13851_s27 }
 0xa7d   : > { %4110 = vadd.xlane.f32.xlu1 %v4109_v56 }
 0xa81   : > { %4221 = vadd.xlane.f32.xlu1 %v4220_v59 }
 0xa88   : > { %v3205_v63 = vpop.xlane.xlu0 %3204 }
 0xa89   : > { %13294 = vrcp.f32 %v3205_v63 }
 0xa90   : > { %v3316_v2 = vpop.xlane.xlu0 %3315 }
 0xa91   : > { %13296 = vrcp.f32 %v3316_v2 }
 0xa92   : > { %4227 = vrot.lane.b32.xlu1 %v15148_v47, %s13851_s27 }
 0xa93   : > { %v13295_v60 = vpop.eup %13294 }
 0xa94   : > { %v3207_v1 = vmul.f32 %v13295_v60, %v15081_v21 }
 0xa96   : > { %v3208_v61 = vpack.c.bf16 %v3207_v1, %v3207_v1 }
 0xa98   : > { %11675 = vmatmul.mubr.msk.bf16.vlgmr.msra.gmra.mrb[12].mxu1 %vm2973_vm4, %v3208_v61  ;;  %v3427_v62 = vpop.xlane.xlu1 %3426 }
 0xa99   : > { %11686 = vmatprep.mubr.msk.bf16.mxu1 %vm13850_vm0, %v13849_v53  ;;  %13298 = vrcp.f32 %v3427_v62 }
 0xa9b   : > { %v13297_v5 = vpop.eup %13296 }
 0xa9c   : > { %v3318_v20 = vmul.f32 %v13297_v5, %v15086_v49  ;;  %v3544_v24 = vpop.permute.xlu1 %3543 }
 0xa9d   : > { %v3549_v6 = vsel %vm2989_vm1, %v3544_v24, 0 }
 0xa9e   : > { %v3319_v22 = vpack.c.bf16 %v3318_v20, %v3318_v20 }
 0xaa0   : > { %v3538_v31 = vpop.xlane.xlu0 %3537 }
 0xaa1   : > { %13300 = vrcp.f32 %v3538_v31 }
 0xaa3   : > { %v13299_v21 = vpop.eup %13298 }
 0xaa4   : > { %v3322_v7 = vpop.permute.xlu0 %3321  ;;  %v3429_v49 = vmul.f32 %v13299_v21, %v15091_v8  ;;  %v3675_v8 = vsel %vm2989_vm1, %v3611_v38, 0  ;;  %v12353_v21 = vld [vmem:[%s14447_s30 + $0x18] ss:$12 sps:$4 sm:$0xff]  }
 0xaa5   : > { %v3327_v13 = vsel %vm2989_vm1, %v3322_v7, 0  ;;  %v12350_v7 = vld [vmem:[%s14447_s30] ss:$12 sps:$4 sm:$0xff]  }
 0xaa6   : > { %11685 = vmatpush3.bf16.msra.mxu1 %v3327_v13  ;;  %v3430_v9 = vpack.c.bf16 %v3429_v49, %v3429_v49  ;;  %v12352_v13 = vld [vmem:[%s14447_s30 + $0x4] ss:$12 sps:$4 sm:$0xff]  }
 0xaa7   : > { %11696 = vmatprep.subr.bf16.mxu1 %v13849_v53  ;;  %4790 = vmatprep.subr.bf16.mxu0 %v12352_v13  ;;  %v12401_v13 = vld [vmem:[%s14447_s30 + $0x13c] ss:$12 sps:$4 sm:$0xff]  }
 0xaa8   : > { %4791 = vmatpush1.bf16.msra.mxu0 %v12350_v7  ;;  %v12394_v7 = vld [vmem:[%s14447_s30 + $0x120] ss:$12 sps:$4 sm:$0xff]  }
 0xaa9   : > { %11687 = vmatmul.mubr.msk.bf16.vlgmr.msra.gmra.mrb[16].mxu1 %vm2973_vm4, %v3319_v22  ;;  %v12355_v22 = vld [vmem:[%s14447_s30 + $0x1c] ss:$12 sps:$4 sm:$0xff]  }
 0xaaa   : > { %11697 = vmatpush3.bf16.msra.mxu1 %v3435_v48  ;;  %11698 = vmatprep.mubr.msk.bf16.mxu1 %vm13850_vm0, %v13849_v53  ;;  %v12358_v48 = vld [vmem:[%s14447_s30 + $0x34] ss:$12 sps:$4 sm:$0xff]  }
 0xaab   : > { %11708 = vmatprep.subr.bf16.mxu1 %v13849_v53  ;;  %v13301_v10 = vpop.eup %13300  ;;  %4792 = vmatprep.subr.bf16.mxu0 %v12355_v22  ;;  %v12399_v22 = vld [vmem:[%s14447_s30 + $0x138] ss:$12 sps:$4 sm:$0xff]  }
 0xaac   : > { %v3540_v23 = vmul.f32 %v13301_v10, %v15095_v46  ;;  %4793 = vmatpush1.bf16.msra.mxu0 %v12353_v21 }
 0xaad   : > { %4794 = vmatprep.subr.bf16.mxu0 %v12358_v48 }
 0xaae   : > { %v3541_v27 = vpack.c.bf16 %v3540_v23, %v3540_v23  ;;  %v12378_v23 = vld [vmem:[%s14447_s30 + $0x8] ss:$12 sps:$4 sm:$0xff]  }
 0xab1   : > { %11699 = vmatmul.mubr.msk.bf16.vlgmr.msra.gmra.mrb[20].mxu1 %vm2973_vm4, %v3430_v9  ;;  %v12356_v9 = vld [vmem:[%s14447_s30 + $0x30] ss:$12 sps:$4 sm:$0xff]  }
 0xab2   : > { %11709 = vmatpush3.bf16.msra.mxu1 %v3549_v6  ;;  %11710 = vmatprep.mubr.msk.bf16.mxu1 %vm13850_vm0, %v13849_v53  ;;  %v12377_v6 = vld [vmem:[%s14447_s30 + $0xc8] ss:$12 sps:$4 sm:$0xff]  }
 0xab3   : > { %11720 = vmatprep.subr.bf16.mxu1 %v13849_v53  ;;  %4795 = vmatpush1.bf16.msra.mxu0 %v12356_v9 }
 0xab9   : > { %11711 = vmatmul.mubr.msk.bf16.vlgmr.msra.gmra.mrb[24].mxu1 %vm2973_vm4, %v3541_v27  ;;  %v12361_v27 = vld [vmem:[%s14447_s30 + $0x4c] ss:$12 sps:$4 sm:$0xff]  }
 0xaba   : > { %11721 = vmatpush3.bf16.msra.mxu1 %v3675_v8  ;;  %11722 = vmatprep.mubr.msk.bf16.mxu1 %vm13850_vm0, %v13849_v53  ;;  %v12382_v8 = vld [vmem:[%s14447_s30 + $0xe0] ss:$12 sps:$4 sm:$0xff]  }
 0xabb   : > { %11732 = vmatprep.subr.bf16.mxu1 %v13849_v53  ;;  %4796 = vmatprep.subr.bf16.mxu0 %v12361_v27 }
 0xacd   : > { %v3667_v28 = vpop.xlane.xlu1 %3666 }
 0xace   : > { %13302 = vrcp.f32 %v3667_v28  ;;  %v12383_v28 = vld [vmem:[%s14447_s30 + $0x20] ss:$12 sps:$4 sm:$0xff]  }
 0xad1   : > { %v3778_v29 = vpop.xlane.xlu1 %3777 }
 0xad2   : > { %13304 = vrcp.f32 %v3778_v29  ;;  %v12359_v29 = vld [vmem:[%s14447_s30 + $0x48] ss:$12 sps:$4 sm:$0xff]  }
 0xad3   : > { %4797 = vmatpush1.bf16.msra.mxu0 %v12359_v29  ;;  %v12407_v29 = vld [vmem:[%s14447_s30 + $0x158] ss:$12 sps:$4 sm:$0xff]  }
 0xad5   : > { %v3889_v19 = vpop.xlane.xlu1 %3888  ;;  %v4000_v45 = vpop.xlane.xlu0 %3999 }
 0xad6   : > { %13306 = vrcp.f32 %v3889_v19  ;;  %v12387_v19 = vld [vmem:[%s14447_s30 + $0xf8] ss:$12 sps:$4 sm:$0xff]  }
 0xad7   : > { %13308 = vrcp.f32 %v4000_v45  ;;  %v12392_v45 = vld [vmem:[%s14447_s30 + $0x110] ss:$12 sps:$4 sm:$0xff]  }
 0xad8   : > { %v13303_v54 = vpop.eup %13302 }
 0xad9   : > { %v3669_v46 = vmul.f32 %v13303_v54, %v15111_v39  ;;  %v3784_v51 = vpop.permute.xlu1 %3783 }
 0xada   : > { %v3789_v18 = vsel %vm2989_vm1, %v3784_v51, 0 }
 0xadb   : > { %v3670_v36 = vpack.c.bf16 %v3669_v46, %v3669_v46  ;;  %v12364_v46 = vld [vmem:[%s14447_s30 + $0x64] ss:$12 sps:$4 sm:$0xff]  }
 0xadc   : > { %v13305_v58 = vpop.eup %13304  ;;  %4798 = vmatprep.subr.bf16.mxu0 %v12364_v46 }
 0xadd   : > { %11723 = vmatmul.mubr.msk.bf16.vlgmr.msra.gmra.mrb[28].mxu1 %vm2973_vm4, %v3670_v36  ;;  %v3780_v50 = vmul.f32 %v13305_v58, %v15115_v37  ;;  %v4006_v37 = vpop.permute.xlu0 %4005  ;;  %v12388_v58 = vld [vmem:[%s14447_s30 + $0x38] ss:$12 sps:$4 sm:$0xff]  }
 0xade   : > { %11733 = vmatpush3.bf16.msra.mxu1 %v3789_v18  ;;  %11734 = vmatprep.mubr.msk.bf16.mxu1 %vm13850_vm0, %v13849_v53  ;;  %v4011_v55 = vsel %vm2989_vm1, %v4006_v37, 0 }
 0xadf   : > { %11744 = vmatprep.subr.bf16.mxu1 %v13849_v53  ;;  %v3781_v38 = vpack.c.bf16 %v3780_v50, %v3780_v50  ;;  %v12362_v50 = vld [vmem:[%s14447_s30 + $0x60] ss:$12 sps:$4 sm:$0xff]  }
 0xae0   : > { %v13307_v39 = vpop.eup %13306  ;;  %4799 = vmatpush1.bf16.msra.mxu0 %v12362_v50  ;;  %v12409_v50 = vld [vmem:[%s14447_s30 + $0x168] ss:$12 sps:$4 sm:$0xff]  }
 0xae1   : > { %v3891_v3 = vmul.f32 %v13307_v39, %v15117_v0  ;;  %v13309_v52 = vpop.eup %13308  ;;  %v4119_v0 = vsel %vm2989_vm1, %v15148_v47, 0  ;;  %v12393_v39 = vld [vmem:[%s14447_s30 + $0x50] ss:$12 sps:$4 sm:$0xff]  }
 0xae2   : > { %v4002_v12 = vmul.f32 %v13309_v52, %v15121_v40 }
 0xae3   : > { %v3892_v42 = vpack.c.bf16 %v3891_v3, %v3891_v3  ;;  %v12397_v3 = vld [vmem:[%s14447_s30 + $0x128] ss:$12 sps:$4 sm:$0xff]  }
 0xae4   : > { %v4003_v43 = vpack.c.bf16 %v4002_v12, %v4002_v12  ;;  %v12398_v12 = vld [vmem:[%s14447_s30 + $0x68] ss:$12 sps:$4 sm:$0xff]  }
 0xae5   : > { %11735 = vmatmul.mubr.msk.bf16.vlgmr.msra.gmra.mrb[32].mxu1 %vm2973_vm4, %v3781_v38  ;;  %v12367_v38 = vld [vmem:[%s14447_s30 + $0x7c] ss:$12 sps:$4 sm:$0xff]  }
 0xae6   : > { %11745 = vmatpush3.bf16.msra.mxu1 %v3897_v57  ;;  %11746 = vmatprep.mubr.msk.bf16.mxu1 %vm13850_vm0, %v13849_v53  ;;  %v12365_v57 = vld [vmem:[%s14447_s30 + $0x78] ss:$12 sps:$4 sm:$0xff]  }
 0xae7   : > { %11756 = vmatprep.subr.bf16.mxu1 %v13849_v53  ;;  %4800 = vmatprep.subr.bf16.mxu0 %v12367_v38  ;;  %v12416_v38 = vld [vmem:[%s14447_s30 + $0x184] ss:$12 sps:$4 sm:$0xff]  }
 0xae8   : > { %4801 = vmatpush1.bf16.msra.mxu0 %v12365_v57 }
 0xaed   : > { %11747 = vmatmul.mubr.msk.bf16.vlgmr.msra.gmra.mrb[36].mxu1 %vm2973_vm4, %v3892_v42  ;;  %v12370_v42 = vld [vmem:[%s14447_s30 + $0x94] ss:$12 sps:$4 sm:$0xff]  }
 0xaee   : > { %11757 = vmatpush3.bf16.msra.mxu1 %v4011_v55  ;;  %11758 = vmatprep.mubr.msk.bf16.mxu1 %vm13850_vm0, %v13849_v53 }
 0xaef   : > { %11768 = vmatprep.subr.bf16.mxu1 %v13849_v53  ;;  %4802 = vmatprep.subr.bf16.mxu0 %v12370_v42 }
 0xaf5   : > { %11759 = vmatmul.mubr.msk.bf16.vlgmr.msra.gmra.mrb[40].mxu1 %vm2973_vm4, %v4003_v43 }
 0xaf6   : > { %11769 = vmatpush3.bf16.msra.mxu1 %v4119_v0  ;;  %11770 = vmatprep.mubr.msk.bf16.mxu1 %vm13850_vm0, %v13849_v53  ;;  %v12368_v0 = vld [vmem:[%s14447_s30 + $0x90] ss:$12 sps:$4 sm:$0xff]  }
 0xaf7   : > { %11780 = vmatprep.subr.bf16.mxu1 %v13849_v53  ;;  %4803 = vmatpush1.bf16.msra.mxu0 %v12368_v0 }
 0xb0a   : > { %v4111_v56 = vpop.xlane.xlu1 %4110 }
 0xb0b   : > { %13310 = vrcp.f32 %v4111_v56  ;;  %v12402_v56 = vld [vmem:[%s14447_s30 + $0x140] ss:$12 sps:$4 sm:$0xff]  }
 0xb0e   : > { %v4222_v59 = vpop.xlane.xlu1 %4221 }
 0xb0f   : > { %13312 = vrcp.f32 %v4222_v59  ;;  %v12373_v59 = vld [vmem:[%s14447_s30 + $0xac] ss:$12 sps:$4 sm:$0xff]  }
 0xb10   : > { %4804 = vmatprep.subr.bf16.mxu0 %v12373_v59 }
 0xb12   : > { %v4228_v60 = vpop.permute.xlu1 %4227 }
 0xb13   : > { %v4233_v47 = vsel %vm2989_vm1, %v4228_v60, 0  ;;  %v12376_v60 = vld [vmem:[%s14447_s30 + $0xc4] ss:$12 sps:$4 sm:$0xff]  }
 0xb15   : > { %v13311_v63 = vpop.eup %13310 }
 0xb16   : > { %v4113_v40 = vmul.f32 %v13311_v63, %v15138_v35  ;;  %v12403_v63 = vld [vmem:[%s14447_s30 + $0x80] ss:$12 sps:$4 sm:$0xff]  }
 0xb18   : > { %v4114_v2 = vpack.c.bf16 %v4113_v40, %v4113_v40  ;;  %v12371_v40 = vld [vmem:[%s14447_s30 + $0xa8] ss:$12 sps:$4 sm:$0xff]  }
 0xb19   : > { %v13313_v1 = vpop.eup %13312  ;;  %4805 = vmatpush1.bf16.msra.mxu0 %v12371_v40 }
 0xb1a   : > { %11771 = vmatmul.mubr.msk.bf16.vlgmr.msra.gmra.mrb[44].mxu1 %vm2973_vm4, %v4114_v2  ;;  %v4224_v61 = vmul.f32 %v13313_v1, %v15142_v44  ;;  %v12374_v2 = vld [vmem:[%s14447_s30 + $0xc0] ss:$12 sps:$4 sm:$0xff]   ;;  %4806 = vmatprep.subr.bf16.mxu0 %v12376_v60  ;;  %v12381_v1 = vld [vmem:[%s14447_s30 + $0xdc] ss:$12 sps:$4 sm:$0xff]  }
 0xb1b   : > { %11781 = vmatpush3.bf16.msra.mxu1 %v4233_v47  ;;  %11782 = vmatprep.mubr.msk.bf16.mxu1 %vm13850_vm0, %v13849_v53  ;;  %v12379_v47 = vld [vmem:[%s14447_s30 + $0xd8] ss:$12 sps:$4 sm:$0xff]  }
 0xb1c   : > { %v4225_v62 = vpack.c.bf16 %v4224_v61, %v4224_v61  ;;  %11459 = vmatprep.subr.bf16.mxu1 %v12377_v6  ;;  %v12386_v61 = vld [vmem:[%s14447_s30 + $0xf4] ss:$12 sps:$4 sm:$0xff]  }
 0xb1d   : > { %4807 = vmatpush1.bf16.msra.mxu0 %v12374_v2 }
 0xb1e   : > { %4808 = vmatprep.subr.bf16.mxu0 %v12381_v1 }
 0xb21   : > { %4809 = vmatpush1.bf16.msra.mxu0 %v12379_v47 }
 0xb22   : > { %11783 = vmatmul.mubr.msk.bf16.vlgmr.msra.gmra.mrb[48].mxu1 %vm2973_vm4, %v4225_v62  ;;  %v12384_v62 = vld [vmem:[%s14447_s30 + $0xf0] ss:$12 sps:$4 sm:$0xff]   ;;  %4810 = vmatprep.subr.bf16.mxu0 %v12386_v61 }
 0xb23   : > { %11460 = vmatpush3.bf16.msra.mxu1 %v12378_v23 }
 0xb24   : > { %11461 = vmatprep.subr.bf16.mxu1 %v12382_v8  ;;  %v12404_v8 = vld [vmem:[%s14447_s30 + $0x150] ss:$12 sps:$4 sm:$0xff]  }
 0xb25   : > { %4811 = vmatpush1.bf16.msra.mxu0 %v12384_v62 }
 0xb27   : > { %11462 = vmatpush3.bf16.msra.mxu1 %v12383_v28  ;;  %v12406_v28 = vld [vmem:[%s14447_s30 + $0x154] ss:$12 sps:$4 sm:$0xff]  }
 0xb28   : > { %11463 = vmatprep.subr.bf16.mxu1 %v12387_v19  ;;  %v12408_v19 = vld [vmem:[%s14447_s30 + $0x98] ss:$12 sps:$4 sm:$0xff]  }
 0xb2b   : > { %11464 = vmatpush3.bf16.msra.mxu1 %v12388_v58  ;;  %v12411_v58 = vld [vmem:[%s14447_s30 + $0x16c] ss:$12 sps:$4 sm:$0xff]  }
 0xb2c   : > { %11465 = vmatprep.subr.bf16.mxu1 %v12392_v45  ;;  %v12413_v45 = vld [vmem:[%s14447_s30 + $0xb0] ss:$12 sps:$4 sm:$0xff]  }
 0xb2f   : > { %11466 = vmatpush3.bf16.msra.mxu1 %v12393_v39 }
 0xb30   : > { %11467 = vmatprep.subr.bf16.mxu1 %v12397_v3 }
 0xb33   : > { %11468 = vmatpush3.bf16.msra.mxu1 %v12398_v12 }
 0xb34   : > { %11469 = vmatprep.subr.bf16.mxu1 %v12402_v56 }
 0xb37   : > { %11470 = vmatpush3.bf16.msra.mxu1 %v12403_v63 }
 0xb38   : > { %11471 = vmatprep.subr.bf16.mxu1 %v12407_v29  ;;  %v12436_v29 = vld [vmem:[%s14447_s30 + $0x1fc] ss:$12 sps:$4 sm:$0xff]  }
 0xb3b   : > { %11472 = vmatpush3.bf16.msra.mxu1 %v12408_v19  ;;  %v12434_v19 = vld [vmem:[%s14447_s30 + $0x1f8] ss:$12 sps:$4 sm:$0xff]  }
 0xb6b   : > { %v15210_v35 = vpop.f32.mrb[12].mxu1 }
 0xb6c   : > { %v11676_v5 = vpop.f32.mrb[13].mxu1 }
 0xb6d   : > { %v3252_v31 = vpop.f32.mrb[14].mxu1  ;;  %v12391_v5 = vld [vmem:[%s14447_s30 + $0x10c] ss:$12 sps:$4 sm:$0xff]  }
 0xb6e   : > { %v11677_v20 = vpop.f32.mrb[15].mxu1  ;;  %v12389_v31 = vld [vmem:[%s14447_s30 + $0x108] ss:$12 sps:$4 sm:$0xff]   ;;  %4812 = vmatprep.subr.bf16.mxu0 %v12391_v5 }
 0xb6f   : > { %v12396_v20 = vld [vmem:[%s14447_s30 + $0x124] ss:$12 sps:$4 sm:$0xff]   ;;  %4813 = vmatpush1.bf16.msra.mxu0 %v12389_v31 }
 0xb70   : > { %4814 = vmatprep.subr.bf16.mxu0 %v12396_v20 }
 0xb73   : > { %4815 = vmatpush1.bf16.msra.mxu0 %v12394_v7 }
 0xb74   : > { %4816 = vmatprep.subr.bf16.mxu0 %v12401_v13  ;;  %v12414_v13 = vld [vmem:[%s14447_s30 + $0x180] ss:$12 sps:$4 sm:$0xff]  }
 0xb77   : > { %4817 = vmatpush1.bf16.msra.mxu0 %v12399_v22  ;;  %v12417_v22 = vld [vmem:[%s14447_s30 + $0x188] ss:$12 sps:$4 sm:$0xff]  }
 0xb78   : > { %4818 = vmatprep.subr.bf16.mxu0 %v12406_v28  ;;  %v12433_v28 = vld [vmem:[%s14447_s30 + $0x1e8] ss:$12 sps:$4 sm:$0xff]  }
 0xb7b   : > { %4819 = vmatpush1.bf16.msra.mxu0 %v12404_v8  ;;  %v12430_v8 = vld [vmem:[%s14447_s30 + $0x1e0] ss:$12 sps:$4 sm:$0xff]  }
 0xb7c   : > { %v15216_v44 = vpop.f32.mrb[16].mxu1  ;;  %4820 = vmatprep.subr.bf16.mxu0 %v12411_v58  ;;  %v12441_v58 = vld [vmem:[%s14447_s30 + $0x218] ss:$12 sps:$4 sm:$0xff]  }
 0xb7d   : > { %v11688_v49 = vpop.f32.mrb[17].mxu1 }
 0xb7e   : > { %v3366_v24 = vpop.f32.mrb[18].mxu1 }
 0xb7f   : > { %v11689_v10 = vpop.f32.mrb[19].mxu1  ;;  %4821 = vmatpush1.bf16.msra.mxu0 %v12409_v50  ;;  %v12445_v50 = vld [vmem:[%s14447_s30 + $0x230] ss:$12 sps:$4 sm:$0xff]  }
 0xb80   : > { %4833 = vmatprep.subr.bf16.mxu0 %v12416_v38 }
 0xb84   : > { %v15227_v54 = vpop.f32.mrb[20].mxu1 }
 0xb85   : > { %v11700_v51 = vpop.f32.mrb[21].mxu1 }
 0xb86   : > { %v3474_v36 = vpop.f32.mrb[22].mxu1 }
 0xb87   : > { %v11701_v18 = vpop.f32.mrb[23].mxu1 }
 0xb8c   : > { %v15237_v37 = vpop.f32.mrb[24].mxu1 }
 0xb8d   : > { %v11712_v52 = vpop.f32.mrb[25].mxu1 }
 0xb8e   : > { %v3588_v55 = vpop.f32.mrb[26].mxu1 }
 0xb8f   : > { %v11713_v43 = vpop.f32.mrb[27].mxu1 }
 0xbb0   : > { %v3711_v21 = vpop.f32.mrb[28].mxu1 }
 0xbb1   : > { %v11724_v48 = vpop.f32.mrb[29].mxu1 }
 0xbb2   : > { %v3714_v49 = vpop.f32.mrb[30].mxu1  ;;  %v12420_v48 = vld [vmem:[%s14447_s30 + $0x19c] ss:$12 sps:$4 sm:$0xff]  }
 0xbb3   : > { %v11725_v24 = vpop.f32.mrb[31].mxu1  ;;  %v12418_v49 = vld [vmem:[%s14447_s30 + $0x198] ss:$12 sps:$4 sm:$0xff]  }
 0xbb4   : > { %v12421_v24 = vld [vmem:[%s14447_s30 + $0x1a0] ss:$12 sps:$4 sm:$0xff]  }
 0xbb8   : > { %v3825_v9 = vpop.f32.mrb[32].mxu1 }
 0xbb9   : > { %v12028_v10 = vpack.i.bf16 %v3825_v9, %v15017_v25  ;;  %v11736_v6 = vpop.f32.mrb[33].mxu1  ;;  %v12412_v25 = vld [vmem:[%s14447_s30 + $0x170] ss:$12 sps:$4 sm:$0xff]   ;;  %v12425_v9 = vld [vmem:[%s14447_s30 + $0x1b8] ss:$12 sps:$4 sm:$0xff]  }
 0xbba   : > { %v3828_v23 = vpop.f32.mrb[34].mxu1  ;;  %11473 = vmatprep.subr.bf16.mxu1 %v12412_v25  ;;  %v12426_v6 = vld [vmem:[%s14447_s30 + $0x1c8] ss:$12 sps:$4 sm:$0xff]   ;;  %v12444_v25 = vld [vmem:[%s14447_s30 + $0x22c] ss:$12 sps:$4 sm:$0xff]  }
 0xbbb   : > { %v11737_v27 = vpop.f32.mrb[35].mxu1  ;;  %11474 = vmatpush3.bf16.msra.mxu1 %v12413_v45  ;;  %v12429_v23 = vld [vmem:[%s14447_s30 + $0x1d0] ss:$12 sps:$4 sm:$0xff]  }
 0xbbc   : > { %11786 = vmatprep.subr.bf16.mxu1 %v13849_v53  ;;  %v12432_v27 = vld [vmem:[%s14447_s30 + $0x1e4] ss:$12 sps:$4 sm:$0xff]  }
 0xbc0   : > { %v3933_v46 = vpop.f32.mrb[36].mxu1 }
 0xbc1   : > { %v11748_v51 = vpop.f32.mrb[37].mxu1 }
 0xbc2   : > { %v3936_v36 = vpop.f32.mrb[38].mxu1  ;;  %v12440_v51 = vld [vmem:[%s14447_s30 + $0x214] ss:$12 sps:$4 sm:$0xff]  }
 0xbc3   : > { %v11749_v18 = vpop.f32.mrb[39].mxu1  ;;  %v12438_v36 = vld [vmem:[%s14447_s30 + $0x210] ss:$12 sps:$4 sm:$0xff]  }
 0xbc4   : > { %v12442_v18 = vld [vmem:[%s14447_s30 + $0x228] ss:$12 sps:$4 sm:$0xff]  }
 0xbc8   : > { %v4047_v39 = vpop.f32.mrb[40].mxu1 }
 0xbc9   : > { %v12023_v57 = vpack.i.bf16 %v4047_v39, %v15216_v44  ;;  %v11760_v3 = vpop.f32.mrb[41].mxu1 }
 0xbca   : > { %v4050_v42 = vpop.f32.mrb[42].mxu1 }
 0xbcb   : > { %12024 = vrot.lane.b32.xlu0 %v12023_v57, %s13851_s27  ;;  %v11761_v52 = vpop.f32.mrb[43].mxu1 }
 0xbcf   : > { %12029 = vrot.lane.b32.xlu0 %v12028_v10, %s13851_s27  ;;  %v12428_v10 = vld [vmem:[%s14447_s30 + $0x1cc] ss:$12 sps:$4 sm:$0xff]  }
 0xbed   : > { %v15272_v55 = vpop.f32.mrb[44].mxu1 }
 0xbee   : > { %v11772_v12 = vpop.f32.mrb[45].mxu1 }
 0xbef   : > { %v4158_v43 = vpop.f32.mrb[46].mxu1 }
 0xbf0   : > { %v11773_v0 = vpop.f32.mrb[47].mxu1 }
 0xbf5   : > { %v4269_v56 = vpop.f32.mrb[48].mxu1 }
 0xbf6   : > { %v12033_v59 = vpack.i.bf16 %v4269_v56, %v15237_v37  ;;  %v11784_v63 = vpop.f32.mrb[49].mxu1 }
 0xbf7   : > { %v4272_v40 = vpop.f32.mrb[50].mxu1 }
 0xbf8   : > { %12034 = vrot.lane.b32.xlu0 %v12033_v59, %s13851_s27  ;;  %v11785_v44 = vpop.f32.mrb[51].mxu1  ;;  %v4389_v59 = vld [vmem:[%s16360_s19] sm:$0x7]  ;;  %v4958_v40 = vld [vmem:[%s16361_s4] sm:$0x7] }
 0xbf9   : > { %v4402_v63 = vrot.slane %v4389_v59, %v14603_v33  ;;  %v4398_v44 = vrot.slane %v4389_v59, %v14600_v32 }
 0xc3d   : > { %v12025_v60 = vpop.permute.xlu0 %12024 }
 0xc3e   : > { %v12027_v2 = vunpack.i.h.bf16 %v12025_v60  ;;  %v12026_v1 = vunpack.i.l.bf16 %v12025_v60 }
 0xc40   : > { %v3604_v47 = vsel %vm2925_vm2, %v15210_v35, %v12026_v1  ;;  %v4288_v61 = vsel %vm2925_vm2, %v3933_v46, %v12027_v2  ;;  %v12437_v46 = vld [vmem:[%s14447_s30 + $0x200] ss:$12 sps:$4 sm:$0xff]  }
 0xc41   : > { %v12030_v62 = vpop.permute.xlu0 %12029  ;;  %v4291_v5 = vpack.c.bf16 %v4288_v61, %v3604_v47  ;;  %v4971_v47 = vrot.slane %v4958_v40, %v14603_v33  ;;  %v4967_v61 = vrot.slane %v4958_v40, %v14600_v32 }
 0xc42   : > { %v12032_v37 = vunpack.i.h.bf16 %v12030_v62  ;;  %v12031_v31 = vunpack.i.l.bf16 %v12030_v62 }
 0xc43   : > { %4822 = vmatprep.mubr.bf16.mxu0 %v4291_v5  ;;  %4908 = vmatprep.mubr.bf16.mxu1 %v4291_v5 }
 0xc44   : > { %v4287_v20 = vsel %vm2925_vm2, %v3711_v21, %v12032_v37  ;;  %v3603_v7 = vsel %vm2925_vm2, %v14915_v41, %v12031_v31  ;;  %v12424_v21 = vld [vmem:[%s14447_s30 + $0x1b4] ss:$12 sps:$4 sm:$0xff]   ;;  %v12422_v41 = vld [vmem:[%s14447_s30 + $0x1b0] ss:$12 sps:$4 sm:$0xff]   ;;  %s16362_s30 = scalar_lea.vmem [#allocation14], %s14418_s3 }
 0xc45   : > { %v4290_v35 = vpack.c.bf16 %v4287_v20, %v3603_v7 }
 0xc47   : > { %4823 = vmatmul.mubr.bf16.vlgmr.msra.gmra.mrb[72].mxu0 %v4290_v35  ;;  %4909 = vmatmul.mubr.bf16.vlgmr.msra.gmra.mrb[52].mxu1 %v4290_v35 }
 0xc48   : > { %4834 = vmatpush1.bf16.msra.mxu0 %v12414_v13  ;;  %11787 = vmatpush3.bf16.msra.mxu1 %v12417_v22 }
 0xc49   : > { %4835 = vmatprep.subr.bf16.mxu0 %v12420_v48  ;;  %11788 = vmatprep.subr.bf16.mxu1 %v13849_v53 }
 0xc4a   : > { %4865 = vmatprep.mubr.bf16.mxu0 %v13848_v17  ;;  %11802 = vmatprep.mubr.msk.bf16.mxu1 %vm13850_vm0, %v13849_v53 }
 0xc4c   : > { %4836 = vmatpush1.bf16.msra.mxu0 %v12418_v49  ;;  %11789 = vmatpush3.bf16.msra.mxu1 %v12421_v24 }
 0xc4d   : > { %4837 = vmatprep.subr.bf16.mxu0 %v12424_v21  ;;  %11790 = vmatprep.subr.bf16.mxu1 %v13849_v53 }
 0xc50   : > { %4838 = vmatpush1.bf16.msra.mxu0 %v12422_v41  ;;  %11791 = vmatpush3.bf16.msra.mxu1 %v12425_v9 }
 0xc51   : > { %4839 = vmatprep.subr.bf16.mxu0 %v12428_v10  ;;  %11792 = vmatprep.subr.bf16.mxu1 %v13849_v53 }
 0xc54   : > { %4840 = vmatpush1.bf16.msra.mxu0 %v12426_v6  ;;  %11793 = vmatpush3.bf16.msra.mxu1 %v12429_v23  ;;  %v13366_v6 = vld [vmem:[#allocation2] sm:$0xff] }
 0xc55   : > { %4841 = vmatprep.subr.bf16.mxu0 %v12432_v27  ;;  %11794 = vmatprep.subr.bf16.mxu1 %v13849_v53 }
 0xc58   : > { %4842 = vmatpush1.bf16.msra.mxu0 %v12430_v8  ;;  %11795 = vmatpush3.bf16.msra.mxu1 %v12433_v28  ;;  %v13367_v8 = vld [vmem:[#allocation2 + $0x8] sm:$0xff] }
 0xc59   : > { %4843 = vmatprep.subr.bf16.mxu0 %v12436_v29  ;;  %11796 = vmatprep.subr.bf16.mxu1 %v13849_v53 }
 0xc5c   : > { %4844 = vmatpush1.bf16.msra.mxu0 %v12434_v19  ;;  %11797 = vmatpush3.bf16.msra.mxu1 %v12437_v46  ;;  %v13368_v46 = vld [vmem:[#allocation2 + $0x18] sm:$0xff] }
 0xc5d   : > { %4845 = vmatprep.subr.bf16.mxu0 %v12440_v51  ;;  %11798 = vmatprep.subr.bf16.mxu1 %v13849_v53 }
 0xc60   : > { %4846 = vmatpush1.bf16.msra.mxu0 %v12438_v36  ;;  %11799 = vmatpush3.bf16.msra.mxu1 %v12441_v58  ;;  %v13369_v36 = vld [vmem:[#allocation2 + $0x10] sm:$0xff] }
 0xc61   : > { %4847 = vmatprep.subr.bf16.mxu0 %v12444_v25  ;;  %11800 = vmatprep.subr.bf16.mxu1 %v13849_v53  ;;  %v13370_v25 = vld [vmem:[#allocation2 + $0x20] sm:$0xff] }
 0xc64   : > { %4848 = vmatpush1.bf16.msra.mxu0 %v12442_v18  ;;  %11801 = vmatpush3.bf16.msra.mxu1 %v12445_v50 }
 0xc6a   : > { %v12035_v45 = vpop.permute.xlu0 %12034 }
 0xc6b   : > { %v12037_v38 = vunpack.i.h.bf16 %v12035_v45  ;;  %v12036_v39 = vunpack.i.l.bf16 %v12035_v45  ;;  %v13371_v45 = vld [vmem:[#allocation2 + $0x28] sm:$0xff] }
 0xc6d   : > { %v4289_v57 = vsel %vm2925_vm2, %v15272_v55, %v12037_v38  ;;  %v3605_v3 = vsel %vm2925_vm2, %v15227_v54, %v12036_v39  ;;  %v4394_v55 = vrot.slane %v4389_v59, %v14606_v34  ;;  %v4963_v54 = vrot.slane %v4958_v40, %v14606_v34  ;;  %v12455_v59 = vld [vmem:[%s14465_s17 + $0x68] ss:$48 sps:$4 sm:$0xff]   ;;  %v12463_v40 = vld [vmem:[%s14465_s17 + $0xcc] ss:$48 sps:$4 sm:$0xff]  }
 0xc6e   : > { %v4292_v42 = vpack.c.bf16 %v4289_v57, %v3605_v3 }
 0xc70   : > { %4866 = vmatmul.mubr.bf16.vlgmr.msra.gmra.mrb[72].mxu0 %v4292_v42  ;;  %11803 = vmatmul.mubr.bf16.vlgmr.msra.gmra.mrb[56].mxu1 %v4292_v42  ;;  %v12446_v42 = vld [vmem:[%s14465_s17] ss:$48 sps:$4 sm:$0xff]  }
 0xd1a   : > { %v11475_v52 = vpop.f32.mrb[52].mxu1 }
 0xd1b   : > { %v11476_v12 = vpop.f32.mrb[53].mxu1 }
 0xd1c   : > { %v11477_v43 = vadd.f32 %v11476_v12, %v11475_v52  ;;  %v11478_v53 = vpop.f32.mrb[54].mxu1  ;;  %v12448_v52 = vld [vmem:[%s14465_s17 + $0x4] ss:$48 sps:$4 sm:$0xff]   ;;  %v12449_v12 = vld [vmem:[%s14465_s17 + $0x8] ss:$48 sps:$4 sm:$0xff]  }
 0xd1d   : > { %v11479_v0 = vpop.f32.mrb[55].mxu1  ;;  %6870 = vmatprep.subr.bf16.mxu1 %v12448_v52 }
 0xd1e   : > { %v11480_v56 = vadd.f32 %v11479_v0, %v11478_v53  ;;  %v4911_v60 = vadd.f32 %v11477_v43, %v4402_v63  ;;  %v12451_v43 = vld [vmem:[%s14465_s17 + $0xc] ss:$48 sps:$4 sm:$0xff]   ;;  %v12454_v53 = vld [vmem:[%s14465_s17 + $0x64] ss:$48 sps:$4 sm:$0xff]   ;;  %6871 = vmatpush1.bf16.msra.mxu1 %v12446_v42 }
 0xd1f   : > { %v12457_v0 = vld [vmem:[%s14465_s17 + $0x6c] ss:$48 sps:$4 sm:$0xff]   ;;  %6956 = vmatprep.subr.bf16.mxu0 %v12451_v43  ;;  %6872 = vmatprep.subr.bf16.mxu1 %v12454_v53 }
 0xd20   : > { %v4914_v20 = vadd.f32 %v11480_v56, %v4402_v63  ;;  %v12452_v56 = vld [vmem:[%s14465_s17 + $0x60] ss:$48 sps:$4 sm:$0xff]   ;;  %6957 = vmatpush1.bf16.msra.mxu0 %v12449_v12  ;;  %v12460_v63 = vld [vmem:[%s14465_s17 + $0xc4] ss:$48 sps:$4 sm:$0xff]  }
 0xd21   : > { %6958 = vmatprep.subr.bf16.mxu0 %v12457_v0 }
 0xd22   : > { %6873 = vmatpush1.bf16.msra.mxu1 %v12452_v56 }
 0xd23   : > { %6874 = vmatprep.subr.bf16.mxu1 %v12460_v63 }
 0xd24   : > { %6959 = vmatpush1.bf16.msra.mxu0 %v12455_v59 }
 0xd25   : > { %6960 = vmatprep.subr.bf16.mxu0 %v12463_v40 }
 0xd43   : > { %v4867_v2 = vpop.f32.mrb[72].mxu0  ;;  %v4951_v1 = vpop.f32.mrb[56].mxu1 }
 0xd44   : > { %v11826_v62 = vadd.f32 %v4867_v2, %v4394_v55  ;;  %v4952_v5 = vadd.f32 %v4951_v1, %v4911_v60  ;;  %v4869_v37 = vpop.f32.mrb[73].mxu0  ;;  %v11804_v31 = vpop.f32.mrb[57].mxu1  ;;  %v12469_v60 = vld [vmem:[%s14465_s17 + $0x12c] ss:$48 sps:$4 sm:$0xff]   ;;  %v12464_v2 = vld [vmem:[%s14465_s17 + $0x120] ss:$48 sps:$4 sm:$0xff]  }
 0xd45   : > { %v11827_v7 = vadd.f32 %v4869_v37, %v4398_v44  ;;  %v4871_v13 = vpop.f32.mrb[74].mxu0  ;;  %v4954_v22 = vpop.f32.mrb[58].mxu1  ;;  %v12467_v1 = vld [vmem:[%s14465_s17 + $0x128] ss:$48 sps:$4 sm:$0xff]   ;;  %v12478_v37 = vld [vmem:[%s14465_s17 + $0x1e4] ss:$48 sps:$4 sm:$0xff]  }
 0xd46   : > { %v4975_v35 = vmul.f32 %v11826_v62, %v4963_v54  ;;  %v11828_v48 = vadd.f32 %v4871_v13, %v4394_v55  ;;  %v4955_v49 = vadd.f32 %v4954_v22, %v4914_v20  ;;  %v4873_v24 = vpop.f32.mrb[75].mxu0  ;;  %v11805_v21 = vpop.f32.mrb[59].mxu1  ;;  %v4977_v41 = vmul.f32 %v4971_v47, %v4952_v5  ;;  %v12458_v55 = vld [vmem:[%s14465_s17 + $0xc0] ss:$48 sps:$4 sm:$0xff]   ;;  %v12473_v5 = vld [vmem:[%s14465_s17 + $0x188] ss:$48 sps:$4 sm:$0xff]  }
 0xd47   : > { %v4976_v9 = vmul.f32 %v11827_v7, %v4967_v61  ;;  %v11829_v10 = vadd.f32 %v4873_v24, %v4398_v44  ;;  %v12461_v44 = vld [vmem:[%s14465_s17 + $0xc8] ss:$48 sps:$4 sm:$0xff]   ;;  %6875 = vmatpush1.bf16.msra.mxu1 %v12458_v55  ;;  %v12470_v62 = vld [vmem:[%s14465_s17 + $0x180] ss:$48 sps:$4 sm:$0xff]   ;;  %v12481_v31 = vld [vmem:[%s14465_s17 + $0x1ec] ss:$48 sps:$4 sm:$0xff]  }
 0xd48   : > { %v15329_v23 = vadd.f32 %v13366_v6, %v4975_v35  ;;  %v4978_v27 = vmul.f32 %v11828_v48, %v4963_v54  ;;  %v4980_v29 = vmul.f32 %v4971_v47, %v4955_v49  ;;  %v15335_v58 = vadd.f32 %v13369_v36, %v4977_v41  ;;  %v12466_v54 = vld [vmem:[%s14465_s17 + $0x124] ss:$48 sps:$4 sm:$0xff]   ;;  %6961 = vmatpush1.bf16.msra.mxu0 %v12461_v44  ;;  %v12476_v20 = vld [vmem:[%s14465_s17 + $0x1e0] ss:$48 sps:$4 sm:$0xff]   ;;  %v12479_v7 = vld [vmem:[%s14465_s17 + $0x1e8] ss:$48 sps:$4 sm:$0xff]  }
 0xd49   : > { %v15331_v28 = vadd.f32 %v13367_v8, %v4976_v9  ;;  %v4979_v19 = vmul.f32 %v11829_v10, %v4967_v61  ;;  %6876 = vmatprep.subr.bf16.mxu1 %v12466_v54  ;;  %v12472_v47 = vld [vmem:[%s14465_s17 + $0x184] ss:$48 sps:$4 sm:$0xff]   ;;  %6962 = vmatprep.subr.bf16.mxu0 %v12469_v60  ;;  %v12475_v61 = vld [vmem:[%s14465_s17 + $0x18c] ss:$48 sps:$4 sm:$0xff]   ;;  %v12482_v35 = vld [vmem:[%s14465_s17 + $0x240] ss:$48 sps:$4 sm:$0xff]  }
 0xd4a   : > { %v15333_v51 = vadd.f32 %v13368_v46, %v4978_v27  ;;  %v15341_v38 = vadd.f32 %v13371_v45, %v4980_v29  ;;  %v12484_v13 = vld [vmem:[%s14465_s17 + $0x244] ss:$48 sps:$4 sm:$0xff]   ;;  %v12487_v22 = vld [vmem:[%s14465_s17 + $0x24c] ss:$48 sps:$4 sm:$0xff]   ;;  %v12485_v48 = vld [vmem:[%s14465_s17 + $0x248] ss:$48 sps:$4 sm:$0xff]  }
 0xd4b   : > { %v15337_v18 = vadd.f32 %v13370_v25, %v4979_v19  ;;  %v4989_v50 = vadd.f32 %v15331_v28, %v15329_v23  ;;  %6877 = vmatpush1.bf16.msra.mxu1 %v12464_v2  ;;  %v12490_v49 = vld [vmem:[%s14465_s17 + $0x2a4] ss:$48 sps:$4 sm:$0xff]   ;;  %v12493_v24 = vld [vmem:[%s14465_s17 + $0x2ac] ss:$48 sps:$4 sm:$0xff]   ;;  %v12488_v21 = vld [vmem:[%s14465_s17 + $0x2a0] ss:$48 sps:$4 sm:$0xff]  }
 0xd4c   : > { %6963 = vmatpush1.bf16.msra.mxu0 %v12467_v1  ;;  %6878 = vmatprep.subr.bf16.mxu1 %v12472_v47  ;;  %v12491_v41 = vld [vmem:[%s14465_s17 + $0x2a8] ss:$48 sps:$4 sm:$0xff]   ;;  %v12496_v9 = vld [vmem:[%s14465_s17 + $0x304] ss:$48 sps:$4 sm:$0xff]   ;;  %v12499_v10 = vld [vmem:[%s14465_s17 + $0x30c] ss:$48 sps:$4 sm:$0xff]  }
 0xd4d   : > { %v4990_v39 = vadd.f32 %v4989_v50, %v15335_v58  ;;  %v4993_v57 = vadd.f32 %v15337_v18, %v15333_v51  ;;  %6964 = vmatprep.subr.bf16.mxu0 %v12475_v61  ;;  %v12494_v6 = vld [vmem:[%s14465_s17 + $0x300] ss:$48 sps:$4 sm:$0xff]   ;;  %v12497_v27 = vld [vmem:[%s14465_s17 + $0x308] ss:$48 sps:$4 sm:$0xff]   ;;  %v12502_v8 = vld [vmem:[%s14465_s17 + $0x364] ss:$48 sps:$4 sm:$0xff]  }
 0xd4e   : > { %v12505_v29 = vld [vmem:[%s14465_s17 + $0x36c] ss:$48 sps:$4 sm:$0xff]   ;;  %v12500_v19 = vld [vmem:[%s14465_s17 + $0x360] ss:$48 sps:$4 sm:$0xff]   ;;  %v12503_v46 = vld [vmem:[%s14465_s17 + $0x368] ss:$48 sps:$4 sm:$0xff]  }
 0xd4f   : > { %4991 = vadd.xlane.f32.xlu1 %v4990_v39  ;;  %v4994_v3 = vadd.f32 %v4993_v57, %v15341_v38  ;;  %6879 = vmatpush1.bf16.msra.mxu1 %v12470_v62  ;;  %v12508_v60 = vld [vmem:[%s14465_s17 + $0x3c4] ss:$48 sps:$4 sm:$0xff]   ;;  %v12511_v2 = vld [vmem:[%s14465_s17 + $0x3cc] ss:$48 sps:$4 sm:$0xff]   ;;  %v12506_v1 = vld [vmem:[%s14465_s17 + $0x3c0] ss:$48 sps:$4 sm:$0xff]  }
 0xd50   : > { %6965 = vmatpush1.bf16.msra.mxu0 %v12473_v5  ;;  %6880 = vmatprep.subr.bf16.mxu1 %v12478_v37  ;;  %v12509_v47 = vld [vmem:[%s14465_s17 + $0x3c8] ss:$48 sps:$4 sm:$0xff]   ;;  %v12514_v61 = vld [vmem:[%s14465_s17 + $0x424] ss:$48 sps:$4 sm:$0xff]   ;;  %v12517_v62 = vld [vmem:[%s14465_s17 + $0x42c] ss:$48 sps:$4 sm:$0xff]  }
 0xd51   : > { %4995 = vadd.xlane.f32.xlu0 %v4994_v3  ;;  %6966 = vmatprep.subr.bf16.mxu0 %v12481_v31  ;;  %v12512_v5 = vld [vmem:[%s14465_s17 + $0x420] ss:$48 sps:$4 sm:$0xff]   ;;  %v12515_v37 = vld [vmem:[%s14465_s17 + $0x428] ss:$48 sps:$4 sm:$0xff]  }
 0xd52   : > { %v12518_v31 = vld [vmem:[%s14465_s17 + $0x480] ss:$48 sps:$4 sm:$0xff]  }
 0xd53   : > { %6881 = vmatpush1.bf16.msra.mxu1 %v12476_v20  ;;  %v12520_v20 = vld [vmem:[%s14465_s17 + $0x484] ss:$48 sps:$4 sm:$0xff]  }
 0xd54   : > { %6967 = vmatpush1.bf16.msra.mxu0 %v12479_v7  ;;  %6882 = vmatprep.subr.bf16.mxu1 %v12484_v13  ;;  %v12521_v7 = vld [vmem:[%s14465_s17 + $0x488] ss:$48 sps:$4 sm:$0xff]   ;;  %v12523_v13 = vld [vmem:[%s14465_s17 + $0x48c] ss:$48 sps:$4 sm:$0xff]  }
 0xd55   : > { %6968 = vmatprep.subr.bf16.mxu0 %v12487_v22  ;;  %v12526_v22 = vld [vmem:[%s14465_s17 + $0x4e4] ss:$48 sps:$4 sm:$0xff]  }
 0xd57   : > { %6883 = vmatpush1.bf16.msra.mxu1 %v12482_v35  ;;  %v12529_v35 = vld [vmem:[%s14465_s17 + $0x4ec] ss:$48 sps:$4 sm:$0xff]  }
 0xd58   : > { %6969 = vmatpush1.bf16.msra.mxu0 %v12485_v48  ;;  %6884 = vmatprep.subr.bf16.mxu1 %v12490_v49  ;;  %v12524_v48 = vld [vmem:[%s14465_s17 + $0x4e0] ss:$48 sps:$4 sm:$0xff]   ;;  %v12527_v49 = vld [vmem:[%s14465_s17 + $0x4e8] ss:$48 sps:$4 sm:$0xff]  }
 0xd59   : > { %6970 = vmatprep.subr.bf16.mxu0 %v12493_v24  ;;  %v12532_v24 = vld [vmem:[%s14465_s17 + $0x544] ss:$48 sps:$4 sm:$0xff]  }
 0xd5b   : > { %6885 = vmatpush1.bf16.msra.mxu1 %v12488_v21  ;;  %v12535_v21 = vld [vmem:[%s14465_s17 + $0x54c] ss:$48 sps:$4 sm:$0xff]  }
 0xd5c   : > { %6971 = vmatpush1.bf16.msra.mxu0 %v12491_v41  ;;  %6886 = vmatprep.subr.bf16.mxu1 %v12496_v9  ;;  %v12530_v41 = vld [vmem:[%s14465_s17 + $0x540] ss:$48 sps:$4 sm:$0xff]   ;;  %v12533_v9 = vld [vmem:[%s14465_s17 + $0x548] ss:$48 sps:$4 sm:$0xff]  }
 0xd5d   : > { %6972 = vmatprep.subr.bf16.mxu0 %v12499_v10  ;;  %v12538_v10 = vld [vmem:[%s14465_s17 + $0x5a4] ss:$48 sps:$4 sm:$0xff]  }
 0xd5f   : > { %6887 = vmatpush1.bf16.msra.mxu1 %v12494_v6  ;;  %v12541_v6 = vld [vmem:[%s14465_s17 + $0x5ac] ss:$48 sps:$4 sm:$0xff]  }
 0xd60   : > { %6973 = vmatpush1.bf16.msra.mxu0 %v12497_v27  ;;  %6888 = vmatprep.subr.bf16.mxu1 %v12502_v8  ;;  %v12536_v27 = vld [vmem:[%s14465_s17 + $0x5a0] ss:$48 sps:$4 sm:$0xff]   ;;  %v12539_v8 = vld [vmem:[%s14465_s17 + $0x5a8] ss:$48 sps:$4 sm:$0xff]  }
 0xd61   : > { %6974 = vmatprep.subr.bf16.mxu0 %v12505_v29  ;;  %v12544_v29 = vld [vmem:[%s14465_s17 + $0x604] ss:$48 sps:$4 sm:$0xff]  }
 0xd63   : > { %6889 = vmatpush1.bf16.msra.mxu1 %v12500_v19  ;;  %v12547_v19 = vld [vmem:[%s14465_s17 + $0x60c] ss:$48 sps:$4 sm:$0xff]  }
 0xd64   : > { %6975 = vmatpush1.bf16.msra.mxu0 %v12503_v46  ;;  %6890 = vmatprep.subr.bf16.mxu1 %v12508_v60 }
 0xd65   : > { %6976 = vmatprep.subr.bf16.mxu0 %v12511_v2 }
 0xd67   : > { %6891 = vmatpush1.bf16.msra.mxu1 %v12506_v1 }
 0xd68   : > { %6977 = vmatpush1.bf16.msra.mxu0 %v12509_v47  ;;  %6892 = vmatprep.subr.bf16.mxu1 %v12514_v61 }
 0xd69   : > { %6978 = vmatprep.subr.bf16.mxu0 %v12517_v62 }
 0xd6b   : > { %6893 = vmatpush1.bf16.msra.mxu1 %v12512_v5 }
 0xd6c   : > { %6979 = vmatpush1.bf16.msra.mxu0 %v12515_v37  ;;  %6894 = vmatprep.subr.bf16.mxu1 %v12520_v20 }
 0xd6d   : > { %6980 = vmatprep.subr.bf16.mxu0 %v12523_v13  ;;  %v12545_v13 = vld [vmem:[%s14465_s17 + $0x608] ss:$48 sps:$4 sm:$0xff]  }
 0xd6f   : > { %6895 = vmatpush1.bf16.msra.mxu1 %v12518_v31 }
 0xd70   : > { %6981 = vmatpush1.bf16.msra.mxu0 %v12521_v7  ;;  %6896 = vmatprep.subr.bf16.mxu1 %v12526_v22  ;;  %v12542_v7 = vld [vmem:[%s14465_s17 + $0x600] ss:$48 sps:$4 sm:$0xff]   ;;  %v12550_v22 = vld [vmem:[%s14465_s17 + $0x664] ss:$48 sps:$4 sm:$0xff]  }
 0xd71   : > { %6982 = vmatprep.subr.bf16.mxu0 %v12529_v35  ;;  %v12553_v35 = vld [vmem:[%s14465_s17 + $0x66c] ss:$48 sps:$4 sm:$0xff]  }
 0xd73   : > { %6897 = vmatpush1.bf16.msra.mxu1 %v12524_v48  ;;  %v12551_v48 = vld [vmem:[%s14465_s17 + $0x668] ss:$48 sps:$4 sm:$0xff]  }
 0xd74   : > { %6983 = vmatpush1.bf16.msra.mxu0 %v12527_v49  ;;  %6898 = vmatprep.subr.bf16.mxu1 %v12532_v24  ;;  %v12556_v49 = vld [vmem:[%s14465_s17 + $0x6c4] ss:$48 sps:$4 sm:$0xff]   ;;  %v12559_v24 = vld [vmem:[%s14465_s17 + $0x6cc] ss:$48 sps:$4 sm:$0xff]  }
 0xd75   : > { %6984 = vmatprep.subr.bf16.mxu0 %v12535_v21  ;;  %v12554_v21 = vld [vmem:[%s14465_s17 + $0x6c0] ss:$48 sps:$4 sm:$0xff]  }
 0xd77   : > { %6899 = vmatpush1.bf16.msra.mxu1 %v12530_v41  ;;  %v12557_v41 = vld [vmem:[%s14465_s17 + $0x6c8] ss:$48 sps:$4 sm:$0xff]  }
 0xd78   : > { %6985 = vmatpush1.bf16.msra.mxu0 %v12533_v9  ;;  %6900 = vmatprep.subr.bf16.mxu1 %v12538_v10  ;;  %v12562_v9 = vld [vmem:[%s14465_s17 + $0x724] ss:$48 sps:$4 sm:$0xff]   ;;  %v12565_v10 = vld [vmem:[%s14465_s17 + $0x72c] ss:$48 sps:$4 sm:$0xff]  }
 0xd79   : > { %6986 = vmatprep.subr.bf16.mxu0 %v12541_v6  ;;  %v12560_v6 = vld [vmem:[%s14465_s17 + $0x720] ss:$48 sps:$4 sm:$0xff]  }
 0xd7b   : > { %6901 = vmatpush1.bf16.msra.mxu1 %v12536_v27  ;;  %v12563_v27 = vld [vmem:[%s14465_s17 + $0x728] ss:$48 sps:$4 sm:$0xff]  }
 0xd7c   : > { %6987 = vmatpush1.bf16.msra.mxu0 %v12539_v8  ;;  %6913 = vmatprep.subr.bf16.mxu1 %v12544_v29  ;;  %v12568_v8 = vld [vmem:[%s14465_s17 + $0x784] ss:$48 sps:$4 sm:$0xff]   ;;  %v12571_v29 = vld [vmem:[%s14465_s17 + $0x78c] ss:$48 sps:$4 sm:$0xff]  }
 0xd7d   : > { %6999 = vmatprep.subr.bf16.mxu0 %v12547_v19  ;;  %v12566_v19 = vld [vmem:[%s14465_s17 + $0x780] ss:$48 sps:$4 sm:$0xff]  }
 0xddc   : > { %v4992_v36 = vpop.xlane.xlu1 %4991 }
 0xddd   : > { %v4997_v25 = vmul.f32 0.0026041667, %v4992_v36 }
 0xdde   : > { %v4996_v50 = vpop.xlane.xlu0 %4995 }
 0xddf   : > { %v15388_v45 = vsub.f32 %v15329_v23, %v4997_v25  ;;  %v15391_v39 = vsub.f32 %v15331_v28, %v4997_v25  ;;  %v4998_v57 = vmul.f32 0.0026041667, %v4996_v50  ;;  %v15394_v3 = vsub.f32 %v15335_v58, %v4997_v25 }
 0xde1   : > { %v15397_v42 = vsub.f32 %v15333_v51, %v4998_v57  ;;  %v15400_v52 = vsub.f32 %v15337_v18, %v4998_v57  ;;  %v5005_v12 = vmul.f32 %v15388_v45, %v15388_v45  ;;  %v5006_v43 = vmul.f32 %v15391_v39, %v15391_v39 }
 0xde2   : > { %v15411_v56 = vsub.f32 %v15341_v38, %v4998_v57  ;;  %v5007_v59 = vmul.f32 %v15394_v3, %v15394_v3 }
 0xde3   : > { %v5008_v53 = vmul.f32 %v15397_v42, %v15397_v42  ;;  %v5009_v0 = vmul.f32 %v15400_v52, %v15400_v52  ;;  %v5011_v63 = vadd.f32 %v5006_v43, %v5005_v12  ;;  %v15445_v43 = vld [vmem:[%s16362_s30] sm:$0x7] }
 0xde4   : > { %v5010_v44 = vmul.f32 %v15411_v56, %v15411_v56 }
 0xde5   : > { %v5012_v40 = vadd.f32 %v5011_v63, %v5007_v59  ;;  %v5015_v55 = vadd.f32 %v5009_v0, %v5008_v53  ;;  %v15451_v0 = vld [vmem:[%s16363_s18] sm:$0x7]  ;;  %v5039_v63 = vrot.slane %v15445_v43, %v14600_v32 }
 0xde7   : > { %5013 = vadd.xlane.f32.xlu0 %v5012_v40  ;;  %v5016_v54 = vadd.f32 %v5015_v55, %v5010_v44  ;;  %v5035_v55 = vrot.slane %v15445_v43, %v14606_v34 }
 0xdeb   : > { %5017 = vadd.xlane.f32.xlu0 %v5016_v54  ;;  %v5061_v54 = vrot.slane %v15451_v0, %v14600_v32 }
 0xe74   : > { %v5014_v46 = vpop.xlane.xlu0 %5013 }
 0xe75   : > { %v5019_v36 = vmul.f32 0.0026041667, %v5014_v46  ;;  %v12569_v46 = vld [vmem:[%s14465_s17 + $0x788] ss:$48 sps:$4 sm:$0xff]  }
 0xe77   : > { %v5021_v25 = vadd.f32 1e-06, %v5019_v36  ;;  %v12574_v36 = vld [vmem:[%s14465_s17 + $0x7e4] ss:$48 sps:$4 sm:$0xff]  }
 0xe78   : > { %v5018_v50 = vpop.xlane.xlu0 %5017 }
 0xe79   : > { %13314 = vrsqrt.f32 %v5021_v25  ;;  %v5020_v57 = vmul.f32 0.0026041667, %v5018_v50  ;;  %v12577_v25 = vld [vmem:[%s14465_s17 + $0x7ec] ss:$48 sps:$4 sm:$0xff]   ;;  %v12572_v50 = vld [vmem:[%s14465_s17 + $0x7e0] ss:$48 sps:$4 sm:$0xff]  }
 0xe7b   : > { %v5022_v12 = vadd.f32 1e-06, %v5020_v57  ;;  %v12575_v57 = vld [vmem:[%s14465_s17 + $0x7e8] ss:$48 sps:$4 sm:$0xff]  }
 0xe7d   : > { %13316 = vrsqrt.f32 %v5022_v12  ;;  %v12580_v12 = vld [vmem:[%s14465_s17 + $0x844] ss:$48 sps:$4 sm:$0xff]  }
 0xe83   : > { %v15447_v53 = vpop.eup %13314 }
 0xe84   : > { %v5026_v59 = vmul.f32 %v15447_v53, %v15391_v39  ;;  %v5025_v40 = vmul.f32 %v15447_v53, %v15388_v45  ;;  %v5057_v39 = vrot.slane %v15451_v0, %v14606_v34 }
 0xe86   : > { %v5048_v2 = vmul.f32 %v5039_v63, %v5026_v59  ;;  %v5047_v1 = vmul.f32 %v5035_v55, %v5025_v40  ;;  %v12583_v59 = vld [vmem:[%s14465_s17 + $0x84c] ss:$48 sps:$4 sm:$0xff]   ;;  %v5027_v40 = vmul.f32 %v15447_v53, %v15394_v3  ;;  %v5065_v3 = vrot.slane %v15451_v0, %v14603_v33  ;;  %v12587_v53 = vld [vmem:[%s14465_s17 + $0x8a8] ss:$48 sps:$4 sm:$0xff]  }
 0xe87   : > { %v15461_v44 = vpop.eup %13316 }
 0xe88   : > { %v5029_v60 = vmul.f32 %v15461_v44, %v15400_v52  ;;  %v5028_v45 = vmul.f32 %v15461_v44, %v15397_v42  ;;  %v5070_v62 = vadd.f32 %v5061_v54, %v5048_v2  ;;  %v5069_v37 = vadd.f32 %v5057_v39, %v5047_v1  ;;  %v12548_v42 = vld [vmem:[%s14465_s17 + $0x660] ss:$48 sps:$4 sm:$0xff]   ;;  %v12589_v2 = vld [vmem:[%s14465_s17 + $0x8ac] ss:$48 sps:$4 sm:$0xff]   ;;  %v12592_v1 = vld [vmem:[%s14465_s17 + $0x14] ss:$48 sps:$4 sm:$0xff]  }
 0xe8a   : > { %v5051_v47 = vmul.f32 %v5039_v63, %v5029_v60  ;;  %v5050_v61 = vmul.f32 %v5035_v55, %v5028_v45  ;;  %v5030_v63 = vmul.f32 %v15461_v44, %v15411_v56  ;;  %v5043_v55 = vrot.slane %v15445_v43, %v14603_v33  ;;  %v12586_v60 = vld [vmem:[%s14465_s17 + $0x8a4] ss:$48 sps:$4 sm:$0xff]   ;;  %v12584_v43 = vld [vmem:[%s14465_s17 + $0x8a0] ss:$48 sps:$4 sm:$0xff]  }
 0xe8c   : > { %v5073_v5 = vadd.f32 %v5061_v54, %v5051_v47  ;;  %v5072_v31 = vadd.f32 %v5057_v39, %v5050_v61  ;;  %v12578_v54 = vld [vmem:[%s14465_s17 + $0x840] ss:$48 sps:$4 sm:$0xff]   ;;  %v12581_v39 = vld [vmem:[%s14465_s17 + $0x848] ss:$48 sps:$4 sm:$0xff]   ;;  %v5052_v56 = vmul.f32 %v5043_v55, %v5030_v63  ;;  %v5049_v44 = vmul.f32 %v5043_v55, %v5027_v40  ;;  %v12595_v47 = vld [vmem:[%s14465_s17 + $0x1c] ss:$48 sps:$4 sm:$0xff]  }
 0xe8d   : > { %v12632_v63 = vld [vmem:[%s14465_s17 + $0x2b0] ss:$48 sps:$4 sm:$0xff]   ;;  %v12635_v40 = vld [vmem:[%s14465_s17 + $0x2b8] ss:$48 sps:$4 sm:$0xff]   ;;  %v12640_v55 = vld [vmem:[%s14465_s17 + $0x314] ss:$48 sps:$4 sm:$0xff]  }
 0xe8e   : > { %v15471_v20 = vpack.c.bf16 %v5073_v5, %v5070_v62  ;;  %v15475_v52 = vpack.c.bf16 %v5072_v31, %v5069_v37  ;;  %v5074_v45 = vadd.f32 %v5065_v3, %v5052_v56  ;;  %v5071_v61 = vadd.f32 %v5065_v3, %v5049_v44  ;;  %v12590_v62 = vld [vmem:[%s14465_s17 + $0x10] ss:$48 sps:$4 sm:$0xff]   ;;  %v12593_v5 = vld [vmem:[%s14465_s17 + $0x18] ss:$48 sps:$4 sm:$0xff]   ;;  %v12598_v37 = vld [vmem:[%s14465_s17 + $0x74] ss:$48 sps:$4 sm:$0xff]  }
 0xe8f   : > { %v12601_v31 = vld [vmem:[%s14465_s17 + $0x7c] ss:$48 sps:$4 sm:$0xff]   ;;  %v12644_v44 = vld [vmem:[%s14465_s17 + $0x370] ss:$48 sps:$4 sm:$0xff]   ;;  %v12647_v3 = vld [vmem:[%s14465_s17 + $0x378] ss:$48 sps:$4 sm:$0xff]  }
 0xe90   : > { %6902 = vmatprep.mubr.bf16.mxu1 %v15471_v20  ;;  %6988 = vmatprep.mubr.bf16.mxu0 %v15471_v20  ;;  %v15522_v0 = vpack.c.bf16 %v5074_v45, %v5071_v61  ;;  %v12649_v56 = vld [vmem:[%s14465_s17 + $0x37c] ss:$48 sps:$4 sm:$0xff]   ;;  %v12650_v45 = vld [vmem:[%s14465_s17 + $0x3d0] ss:$48 sps:$4 sm:$0xff]  }
 0xe91   : > { %6903 = vmatmul.mubr.bf16.vlgmr.msra.gmra.mrb[60].mxu1 %v15475_v52  ;;  %6989 = vmatmul.mubr.bf16.vlgmr.msra.gmra.mrb[76].mxu0 %v15475_v52  ;;  %v12661_v61 = vld [vmem:[%s14465_s17 + $0x43c] ss:$48 sps:$4 sm:$0xff]  }
 0xe92   : > { %6914 = vmatpush1.bf16.msra.mxu1 %v12542_v7  ;;  %7000 = vmatpush1.bf16.msra.mxu0 %v12545_v13  ;;  %v12596_v7 = vld [vmem:[%s14465_s17 + $0x70] ss:$48 sps:$4 sm:$0xff]   ;;  %v12599_v13 = vld [vmem:[%s14465_s17 + $0x78] ss:$48 sps:$4 sm:$0xff]  }
 0xe93   : > { %6915 = vmatprep.subr.bf16.mxu1 %v12550_v22  ;;  %7001 = vmatprep.subr.bf16.mxu0 %v12553_v35  ;;  %v12604_v22 = vld [vmem:[%s14465_s17 + $0xd4] ss:$48 sps:$4 sm:$0xff]   ;;  %v12607_v35 = vld [vmem:[%s14465_s17 + $0xdc] ss:$48 sps:$4 sm:$0xff]  }
 0xe94   : > { %6945 = vmatprep.mubr.bf16.mxu1 %v13848_v17  ;;  %7031 = vmatprep.mubr.bf16.mxu0 %v13848_v17 }
 0xe96   : > { %6916 = vmatpush1.bf16.msra.mxu1 %v12548_v42  ;;  %7002 = vmatpush1.bf16.msra.mxu0 %v12551_v48  ;;  %v12602_v42 = vld [vmem:[%s14465_s17 + $0xd0] ss:$48 sps:$4 sm:$0xff]   ;;  %v12605_v48 = vld [vmem:[%s14465_s17 + $0xd8] ss:$48 sps:$4 sm:$0xff]  }
 0xe97   : > { %6917 = vmatprep.subr.bf16.mxu1 %v12556_v49  ;;  %7003 = vmatprep.subr.bf16.mxu0 %v12559_v24  ;;  %v12610_v49 = vld [vmem:[%s14465_s17 + $0x134] ss:$48 sps:$4 sm:$0xff]   ;;  %v12613_v24 = vld [vmem:[%s14465_s17 + $0x13c] ss:$48 sps:$4 sm:$0xff]  }
 0xe9a   : > { %6918 = vmatpush1.bf16.msra.mxu1 %v12554_v21  ;;  %7004 = vmatpush1.bf16.msra.mxu0 %v12557_v41  ;;  %v12608_v21 = vld [vmem:[%s14465_s17 + $0x130] ss:$48 sps:$4 sm:$0xff]   ;;  %v12611_v41 = vld [vmem:[%s14465_s17 + $0x138] ss:$48 sps:$4 sm:$0xff]  }
 0xe9b   : > { %6919 = vmatprep.subr.bf16.mxu1 %v12562_v9  ;;  %7005 = vmatprep.subr.bf16.mxu0 %v12565_v10  ;;  %v12616_v9 = vld [vmem:[%s14465_s17 + $0x194] ss:$48 sps:$4 sm:$0xff]   ;;  %v12619_v10 = vld [vmem:[%s14465_s17 + $0x19c] ss:$48 sps:$4 sm:$0xff]  }
 0xe9e   : > { %6920 = vmatpush1.bf16.msra.mxu1 %v12560_v6  ;;  %7006 = vmatpush1.bf16.msra.mxu0 %v12563_v27  ;;  %v12614_v6 = vld [vmem:[%s14465_s17 + $0x190] ss:$48 sps:$4 sm:$0xff]   ;;  %v12617_v27 = vld [vmem:[%s14465_s17 + $0x198] ss:$48 sps:$4 sm:$0xff]  }
 0xe9f   : > { %6921 = vmatprep.subr.bf16.mxu1 %v12568_v8  ;;  %7007 = vmatprep.subr.bf16.mxu0 %v12571_v29  ;;  %v12622_v8 = vld [vmem:[%s14465_s17 + $0x1f4] ss:$48 sps:$4 sm:$0xff]   ;;  %v12625_v29 = vld [vmem:[%s14465_s17 + $0x1fc] ss:$48 sps:$4 sm:$0xff]  }
 0xea2   : > { %6922 = vmatpush1.bf16.msra.mxu1 %v12566_v19  ;;  %7008 = vmatpush1.bf16.msra.mxu0 %v12569_v46  ;;  %v12620_v19 = vld [vmem:[%s14465_s17 + $0x1f0] ss:$48 sps:$4 sm:$0xff]   ;;  %v12623_v46 = vld [vmem:[%s14465_s17 + $0x1f8] ss:$48 sps:$4 sm:$0xff]  }
 0xea3   : > { %6923 = vmatprep.subr.bf16.mxu1 %v12574_v36  ;;  %7009 = vmatprep.subr.bf16.mxu0 %v12577_v25  ;;  %v12628_v36 = vld [vmem:[%s14465_s17 + $0x254] ss:$48 sps:$4 sm:$0xff]   ;;  %v12631_v25 = vld [vmem:[%s14465_s17 + $0x25c] ss:$48 sps:$4 sm:$0xff]  }
 0xea6   : > { %6924 = vmatpush1.bf16.msra.mxu1 %v12572_v50  ;;  %7010 = vmatpush1.bf16.msra.mxu0 %v12575_v57  ;;  %v12626_v50 = vld [vmem:[%s14465_s17 + $0x250] ss:$48 sps:$4 sm:$0xff]   ;;  %v12629_v57 = vld [vmem:[%s14465_s17 + $0x258] ss:$48 sps:$4 sm:$0xff]  }
 0xea7   : > { %6925 = vmatprep.subr.bf16.mxu1 %v12580_v12  ;;  %7011 = vmatprep.subr.bf16.mxu0 %v12583_v59  ;;  %v12634_v12 = vld [vmem:[%s14465_s17 + $0x2b4] ss:$48 sps:$4 sm:$0xff]   ;;  %v12637_v59 = vld [vmem:[%s14465_s17 + $0x2bc] ss:$48 sps:$4 sm:$0xff]  }
 0xeaa   : > { %6926 = vmatpush1.bf16.msra.mxu1 %v12578_v54  ;;  %7012 = vmatpush1.bf16.msra.mxu0 %v12581_v39  ;;  %v12643_v54 = vld [vmem:[%s14465_s17 + $0x31c] ss:$48 sps:$4 sm:$0xff]   ;;  %v12638_v39 = vld [vmem:[%s14465_s17 + $0x310] ss:$48 sps:$4 sm:$0xff]  }
 0xeab   : > { %6927 = vmatprep.subr.bf16.mxu1 %v12586_v60  ;;  %7013 = vmatprep.subr.bf16.mxu0 %v12589_v2  ;;  %v12641_v60 = vld [vmem:[%s14465_s17 + $0x318] ss:$48 sps:$4 sm:$0xff]   ;;  %v12646_v2 = vld [vmem:[%s14465_s17 + $0x374] ss:$48 sps:$4 sm:$0xff]  }
 0xeae   : > { %6928 = vmatpush1.bf16.msra.mxu1 %v12584_v43  ;;  %7014 = vmatpush1.bf16.msra.mxu0 %v12587_v53  ;;  %v12652_v43 = vld [vmem:[%s14465_s17 + $0x3d4] ss:$48 sps:$4 sm:$0xff]   ;;  %v12655_v53 = vld [vmem:[%s14465_s17 + $0x3dc] ss:$48 sps:$4 sm:$0xff]  }
 0xeaf   : > { %7042 = vmatprep.subr.bf16.mxu1 %v12592_v1  ;;  %7128 = vmatprep.subr.bf16.mxu0 %v12595_v47  ;;  %v12653_v1 = vld [vmem:[%s14465_s17 + $0x3d8] ss:$48 sps:$4 sm:$0xff]   ;;  %v12658_v47 = vld [vmem:[%s14465_s17 + $0x434] ss:$48 sps:$4 sm:$0xff]  }
 0xeb1   : > { %6946 = vmatmul.mubr.bf16.vlgmr.msra.gmra.mrb[60].mxu1 %v15522_v0  ;;  %7032 = vmatmul.mubr.bf16.vlgmr.msra.gmra.mrb[76].mxu0 %v15522_v0 }
 0xeb2   : > { %7043 = vmatpush1.bf16.msra.mxu1 %v12590_v62  ;;  %7074 = vmatprep.mubr.bf16.mxu1 %v15471_v20  ;;  %v12656_v62 = vld [vmem:[%s14465_s17 + $0x430] ss:$48 sps:$4 sm:$0xff]  }
 0xeb3   : > { %7129 = vmatpush1.bf16.msra.mxu0 %v12593_v5  ;;  %7160 = vmatprep.mubr.bf16.mxu0 %v15471_v20  ;;  %v12659_v5 = vld [vmem:[%s14465_s17 + $0x438] ss:$48 sps:$4 sm:$0xff]  }
 0xeb4   : > { %7044 = vmatprep.subr.bf16.mxu1 %v12598_v37  ;;  %7130 = vmatprep.subr.bf16.mxu0 %v12601_v31  ;;  %v12664_v37 = vld [vmem:[%s14465_s17 + $0x494] ss:$48 sps:$4 sm:$0xff]   ;;  %v12667_v31 = vld [vmem:[%s14465_s17 + $0x49c] ss:$48 sps:$4 sm:$0xff]  }
 0xeb6   : > { %7045 = vmatpush1.bf16.msra.mxu1 %v12596_v7  ;;  %v12662_v7 = vld [vmem:[%s14465_s17 + $0x490] ss:$48 sps:$4 sm:$0xff]  }
 0xeb7   : > { %7131 = vmatpush1.bf16.msra.mxu0 %v12599_v13  ;;  %7046 = vmatprep.subr.bf16.mxu1 %v12604_v22  ;;  %v12665_v13 = vld [vmem:[%s14465_s17 + $0x498] ss:$48 sps:$4 sm:$0xff]   ;;  %v12670_v22 = vld [vmem:[%s14465_s17 + $0x4f4] ss:$48 sps:$4 sm:$0xff]  }
 0xeb8   : > { %7132 = vmatprep.subr.bf16.mxu0 %v12607_v35  ;;  %v12673_v35 = vld [vmem:[%s14465_s17 + $0x4fc] ss:$48 sps:$4 sm:$0xff]  }
 0xeba   : > { %7047 = vmatpush1.bf16.msra.mxu1 %v12602_v42  ;;  %v12668_v42 = vld [vmem:[%s14465_s17 + $0x4f0] ss:$48 sps:$4 sm:$0xff]  }
 0xebb   : > { %7133 = vmatpush1.bf16.msra.mxu0 %v12605_v48  ;;  %7048 = vmatprep.subr.bf16.mxu1 %v12610_v49  ;;  %v12671_v48 = vld [vmem:[%s14465_s17 + $0x4f8] ss:$48 sps:$4 sm:$0xff]   ;;  %v12676_v49 = vld [vmem:[%s14465_s17 + $0x554] ss:$48 sps:$4 sm:$0xff]  }
 0xebc   : > { %7134 = vmatprep.subr.bf16.mxu0 %v12613_v24  ;;  %v12679_v24 = vld [vmem:[%s14465_s17 + $0x55c] ss:$48 sps:$4 sm:$0xff]  }
 0xebe   : > { %7049 = vmatpush1.bf16.msra.mxu1 %v12608_v21  ;;  %v12674_v21 = vld [vmem:[%s14465_s17 + $0x550] ss:$48 sps:$4 sm:$0xff]  }
 0xebf   : > { %7135 = vmatpush1.bf16.msra.mxu0 %v12611_v41  ;;  %7050 = vmatprep.subr.bf16.mxu1 %v12616_v9  ;;  %v12677_v41 = vld [vmem:[%s14465_s17 + $0x558] ss:$48 sps:$4 sm:$0xff]   ;;  %v12682_v9 = vld [vmem:[%s14465_s17 + $0x5b4] ss:$48 sps:$4 sm:$0xff]  }
 0xec0   : > { %7136 = vmatprep.subr.bf16.mxu0 %v12619_v10  ;;  %v12685_v10 = vld [vmem:[%s14465_s17 + $0x5bc] ss:$48 sps:$4 sm:$0xff]  }
 0xec2   : > { %7051 = vmatpush1.bf16.msra.mxu1 %v12614_v6  ;;  %v12680_v6 = vld [vmem:[%s14465_s17 + $0x5b0] ss:$48 sps:$4 sm:$0xff]  }
 0xec3   : > { %7137 = vmatpush1.bf16.msra.mxu0 %v12617_v27  ;;  %7052 = vmatprep.subr.bf16.mxu1 %v12622_v8  ;;  %v12683_v27 = vld [vmem:[%s14465_s17 + $0x5b8] ss:$48 sps:$4 sm:$0xff]   ;;  %v12688_v8 = vld [vmem:[%s14465_s17 + $0x614] ss:$48 sps:$4 sm:$0xff]  }
 0xec4   : > { %7138 = vmatprep.subr.bf16.mxu0 %v12625_v29  ;;  %v12691_v29 = vld [vmem:[%s14465_s17 + $0x61c] ss:$48 sps:$4 sm:$0xff]  }
 0xec6   : > { %7053 = vmatpush1.bf16.msra.mxu1 %v12620_v19  ;;  %v12686_v19 = vld [vmem:[%s14465_s17 + $0x610] ss:$48 sps:$4 sm:$0xff]  }
 0xec7   : > { %7139 = vmatpush1.bf16.msra.mxu0 %v12623_v46  ;;  %7054 = vmatprep.subr.bf16.mxu1 %v12628_v36  ;;  %v12689_v46 = vld [vmem:[%s14465_s17 + $0x618] ss:$48 sps:$4 sm:$0xff]   ;;  %v12694_v36 = vld [vmem:[%s14465_s17 + $0x674] ss:$48 sps:$4 sm:$0xff]  }
 0xec8   : > { %7140 = vmatprep.subr.bf16.mxu0 %v12631_v25  ;;  %v12697_v25 = vld [vmem:[%s14465_s17 + $0x67c] ss:$48 sps:$4 sm:$0xff]  }
 0xeca   : > { %7055 = vmatpush1.bf16.msra.mxu1 %v12626_v50  ;;  %v12692_v50 = vld [vmem:[%s14465_s17 + $0x670] ss:$48 sps:$4 sm:$0xff]  }
 0xecb   : > { %7141 = vmatpush1.bf16.msra.mxu0 %v12629_v57  ;;  %7056 = vmatprep.subr.bf16.mxu1 %v12634_v12  ;;  %v12695_v57 = vld [vmem:[%s14465_s17 + $0x678] ss:$48 sps:$4 sm:$0xff]   ;;  %v12700_v12 = vld [vmem:[%s14465_s17 + $0x6d4] ss:$48 sps:$4 sm:$0xff]  }
 0xecc   : > { %7142 = vmatprep.subr.bf16.mxu0 %v12637_v59  ;;  %v12703_v59 = vld [vmem:[%s14465_s17 + $0x6dc] ss:$48 sps:$4 sm:$0xff]  }
 0xece   : > { %7057 = vmatpush1.bf16.msra.mxu1 %v12632_v63  ;;  %v12698_v63 = vld [vmem:[%s14465_s17 + $0x6d0] ss:$48 sps:$4 sm:$0xff]  }
 0xecf   : > { %7143 = vmatpush1.bf16.msra.mxu0 %v12635_v40  ;;  %7058 = vmatprep.subr.bf16.mxu1 %v12640_v55  ;;  %v12701_v40 = vld [vmem:[%s14465_s17 + $0x6d8] ss:$48 sps:$4 sm:$0xff]   ;;  %v12706_v55 = vld [vmem:[%s14465_s17 + $0x734] ss:$48 sps:$4 sm:$0xff]  }
 0xed0   : > { %7144 = vmatprep.subr.bf16.mxu0 %v12643_v54  ;;  %v12709_v54 = vld [vmem:[%s14465_s17 + $0x73c] ss:$48 sps:$4 sm:$0xff]  }
 0xed2   : > { %7059 = vmatpush1.bf16.msra.mxu1 %v12638_v39  ;;  %v12704_v39 = vld [vmem:[%s14465_s17 + $0x730] ss:$48 sps:$4 sm:$0xff]  }
 0xed3   : > { %7145 = vmatpush1.bf16.msra.mxu0 %v12641_v60  ;;  %7060 = vmatprep.subr.bf16.mxu1 %v12646_v2  ;;  %v12707_v60 = vld [vmem:[%s14465_s17 + $0x738] ss:$48 sps:$4 sm:$0xff]   ;;  %v12712_v2 = vld [vmem:[%s14465_s17 + $0x794] ss:$48 sps:$4 sm:$0xff]  }
 0xed4   : > { %7146 = vmatprep.subr.bf16.mxu0 %v12649_v56  ;;  %v12715_v56 = vld [vmem:[%s14465_s17 + $0x79c] ss:$48 sps:$4 sm:$0xff]  }
 0xed6   : > { %7061 = vmatpush1.bf16.msra.mxu1 %v12644_v44  ;;  %v12710_v44 = vld [vmem:[%s14465_s17 + $0x790] ss:$48 sps:$4 sm:$0xff]  }
 0xed7   : > { %7147 = vmatpush1.bf16.msra.mxu0 %v12647_v3  ;;  %7062 = vmatprep.subr.bf16.mxu1 %v12652_v43  ;;  %v12713_v3 = vld [vmem:[%s14465_s17 + $0x798] ss:$48 sps:$4 sm:$0xff]   ;;  %v12718_v43 = vld [vmem:[%s14465_s17 + $0x7f4] ss:$48 sps:$4 sm:$0xff]  }
 0xed8   : > { %7148 = vmatprep.subr.bf16.mxu0 %v12655_v53  ;;  %v12721_v53 = vld [vmem:[%s14465_s17 + $0x7fc] ss:$48 sps:$4 sm:$0xff]  }
 0xeda   : > { %7063 = vmatpush1.bf16.msra.mxu1 %v12650_v45  ;;  %v12716_v45 = vld [vmem:[%s14465_s17 + $0x7f0] ss:$48 sps:$4 sm:$0xff]  }
 0xedb   : > { %7149 = vmatpush1.bf16.msra.mxu0 %v12653_v1  ;;  %7064 = vmatprep.subr.bf16.mxu1 %v12658_v47  ;;  %v12719_v1 = vld [vmem:[%s14465_s17 + $0x7f8] ss:$48 sps:$4 sm:$0xff]   ;;  %v12724_v47 = vld [vmem:[%s14465_s17 + $0x854] ss:$48 sps:$4 sm:$0xff]  }
 0xedc   : > { %7150 = vmatprep.subr.bf16.mxu0 %v12661_v61  ;;  %v12727_v61 = vld [vmem:[%s14465_s17 + $0x85c] ss:$48 sps:$4 sm:$0xff]  }
 0xede   : > { %7065 = vmatpush1.bf16.msra.mxu1 %v12656_v62  ;;  %v12722_v62 = vld [vmem:[%s14465_s17 + $0x850] ss:$48 sps:$4 sm:$0xff]  }
 0xedf   : > { %7151 = vmatpush1.bf16.msra.mxu0 %v12659_v5  ;;  %7066 = vmatprep.subr.bf16.mxu1 %v12664_v37  ;;  %v12725_v5 = vld [vmem:[%s14465_s17 + $0x858] ss:$48 sps:$4 sm:$0xff]   ;;  %v12730_v37 = vld [vmem:[%s14465_s17 + $0x8b4] ss:$48 sps:$4 sm:$0xff]  }
 0xee0   : > { %7152 = vmatprep.subr.bf16.mxu0 %v12667_v31  ;;  %v12733_v31 = vld [vmem:[%s14465_s17 + $0x8bc] ss:$48 sps:$4 sm:$0xff]  }
 0xee2   : > { %7067 = vmatpush1.bf16.msra.mxu1 %v12662_v7  ;;  %v12728_v7 = vld [vmem:[%s14465_s17 + $0x8b0] ss:$48 sps:$4 sm:$0xff]  }
 0xee3   : > { %7153 = vmatpush1.bf16.msra.mxu0 %v12665_v13  ;;  %7068 = vmatprep.subr.bf16.mxu1 %v12670_v22  ;;  %v12731_v13 = vld [vmem:[%s14465_s17 + $0x8b8] ss:$48 sps:$4 sm:$0xff]   ;;  %v12736_v22 = vld [vmem:[%s14465_s17 + $0x24] ss:$48 sps:$4 sm:$0xff]  }
 0xee4   : > { %7154 = vmatprep.subr.bf16.mxu0 %v12673_v35  ;;  %v12739_v35 = vld [vmem:[%s14465_s17 + $0x2c] ss:$48 sps:$4 sm:$0xff]  }
 0xee6   : > { %7069 = vmatpush1.bf16.msra.mxu1 %v12668_v42  ;;  %v12734_v42 = vld [vmem:[%s14465_s17 + $0x20] ss:$48 sps:$4 sm:$0xff]  }
 0xee7   : > { %7155 = vmatpush1.bf16.msra.mxu0 %v12671_v48  ;;  %7070 = vmatprep.subr.bf16.mxu1 %v12676_v49  ;;  %v12737_v48 = vld [vmem:[%s14465_s17 + $0x28] ss:$48 sps:$4 sm:$0xff]   ;;  %v12742_v49 = vld [vmem:[%s14465_s17 + $0x84] ss:$48 sps:$4 sm:$0xff]  }
 0xee8   : > { %7156 = vmatprep.subr.bf16.mxu0 %v12679_v24  ;;  %v12745_v24 = vld [vmem:[%s14465_s17 + $0x8c] ss:$48 sps:$4 sm:$0xff]  }
 0xeea   : > { %7071 = vmatpush1.bf16.msra.mxu1 %v12674_v21  ;;  %v12740_v21 = vld [vmem:[%s14465_s17 + $0x80] ss:$48 sps:$4 sm:$0xff]  }
 0xeeb   : > { %7157 = vmatpush1.bf16.msra.mxu0 %v12677_v41  ;;  %7072 = vmatprep.subr.bf16.mxu1 %v12682_v9  ;;  %v12743_v41 = vld [vmem:[%s14465_s17 + $0x88] ss:$48 sps:$4 sm:$0xff]   ;;  %v12748_v9 = vld [vmem:[%s14465_s17 + $0xe4] ss:$48 sps:$4 sm:$0xff]  }
 0xeec   : > { %7158 = vmatprep.subr.bf16.mxu0 %v12685_v10  ;;  %v12751_v10 = vld [vmem:[%s14465_s17 + $0xec] ss:$48 sps:$4 sm:$0xff]  }
 0xeee   : > { %7073 = vmatpush1.bf16.msra.mxu1 %v12680_v6  ;;  %v12746_v6 = vld [vmem:[%s14465_s17 + $0xe0] ss:$48 sps:$4 sm:$0xff]  }
 0xeef   : > { %7159 = vmatpush1.bf16.msra.mxu0 %v12683_v27  ;;  %7085 = vmatprep.subr.bf16.mxu1 %v12688_v8  ;;  %v12749_v27 = vld [vmem:[%s14465_s17 + $0xe8] ss:$48 sps:$4 sm:$0xff]   ;;  %v12754_v8 = vld [vmem:[%s14465_s17 + $0x144] ss:$48 sps:$4 sm:$0xff]  }
 0xef0   : > { %7171 = vmatprep.subr.bf16.mxu0 %v12691_v29  ;;  %v12757_v29 = vld [vmem:[%s14465_s17 + $0x14c] ss:$48 sps:$4 sm:$0xff]  }
 0xef1   : > { %7075 = vmatmul.mubr.bf16.vlgmr.msra.gmra.mrb[64].mxu1 %v15475_v52 }
 0xef2   : > { %7161 = vmatmul.mubr.bf16.vlgmr.msra.gmra.mrb[80].mxu0 %v15475_v52  ;;  %7086 = vmatpush1.bf16.msra.mxu1 %v12686_v19  ;;  %v12755_v19 = vld [vmem:[%s14465_s17 + $0x148] ss:$48 sps:$4 sm:$0xff]  }
 0xef3   : > { %7172 = vmatpush1.bf16.msra.mxu0 %v12689_v46  ;;  %7087 = vmatprep.subr.bf16.mxu1 %v12694_v36  ;;  %v12760_v46 = vld [vmem:[%s14465_s17 + $0x1a4] ss:$48 sps:$4 sm:$0xff]   ;;  %v12763_v36 = vld [vmem:[%s14465_s17 + $0x1ac] ss:$48 sps:$4 sm:$0xff]  }
 0xef4   : > { %7173 = vmatprep.subr.bf16.mxu0 %v12697_v25  ;;  %7117 = vmatprep.mubr.bf16.mxu1 %v13848_v17  ;;  %v12758_v25 = vld [vmem:[%s14465_s17 + $0x1a0] ss:$48 sps:$4 sm:$0xff]  }
 0xef5   : > { %7203 = vmatprep.mubr.bf16.mxu0 %v13848_v17 }
 0xef6   : > { %7088 = vmatpush1.bf16.msra.mxu1 %v12692_v50  ;;  %v12761_v50 = vld [vmem:[%s14465_s17 + $0x1a8] ss:$48 sps:$4 sm:$0xff]  }
 0xef7   : > { %7174 = vmatpush1.bf16.msra.mxu0 %v12695_v57  ;;  %7089 = vmatprep.subr.bf16.mxu1 %v12700_v12  ;;  %v12766_v57 = vld [vmem:[%s14465_s17 + $0x204] ss:$48 sps:$4 sm:$0xff]   ;;  %v12769_v12 = vld [vmem:[%s14465_s17 + $0x20c] ss:$48 sps:$4 sm:$0xff]  }
 0xef8   : > { %7175 = vmatprep.subr.bf16.mxu0 %v12703_v59  ;;  %v12764_v59 = vld [vmem:[%s14465_s17 + $0x200] ss:$48 sps:$4 sm:$0xff]  }
 0xefa   : > { %7090 = vmatpush1.bf16.msra.mxu1 %v12698_v63  ;;  %v12767_v63 = vld [vmem:[%s14465_s17 + $0x208] ss:$48 sps:$4 sm:$0xff]  }
 0xefb   : > { %7176 = vmatpush1.bf16.msra.mxu0 %v12701_v40  ;;  %7091 = vmatprep.subr.bf16.mxu1 %v12706_v55  ;;  %v12772_v40 = vld [vmem:[%s14465_s17 + $0x264] ss:$48 sps:$4 sm:$0xff]   ;;  %v12775_v55 = vld [vmem:[%s14465_s17 + $0x26c] ss:$48 sps:$4 sm:$0xff]  }
 0xefc   : > { %7177 = vmatprep.subr.bf16.mxu0 %v12709_v54  ;;  %v12770_v54 = vld [vmem:[%s14465_s17 + $0x260] ss:$48 sps:$4 sm:$0xff]  }
 0xefe   : > { %7092 = vmatpush1.bf16.msra.mxu1 %v12704_v39  ;;  %v12773_v39 = vld [vmem:[%s14465_s17 + $0x268] ss:$48 sps:$4 sm:$0xff]  }
 0xeff   : > { %7178 = vmatpush1.bf16.msra.mxu0 %v12707_v60  ;;  %7093 = vmatprep.subr.bf16.mxu1 %v12712_v2  ;;  %v12778_v60 = vld [vmem:[%s14465_s17 + $0x2c4] ss:$48 sps:$4 sm:$0xff]   ;;  %v12781_v2 = vld [vmem:[%s14465_s17 + $0x2cc] ss:$48 sps:$4 sm:$0xff]  }
 0xf00   : > { %7179 = vmatprep.subr.bf16.mxu0 %v12715_v56  ;;  %v12776_v56 = vld [vmem:[%s14465_s17 + $0x2c0] ss:$48 sps:$4 sm:$0xff]  }
 0xf02   : > { %7094 = vmatpush1.bf16.msra.mxu1 %v12710_v44  ;;  %v12779_v44 = vld [vmem:[%s14465_s17 + $0x2c8] ss:$48 sps:$4 sm:$0xff]  }
 0xf03   : > { %7180 = vmatpush1.bf16.msra.mxu0 %v12713_v3  ;;  %7095 = vmatprep.subr.bf16.mxu1 %v12718_v43  ;;  %v12784_v3 = vld [vmem:[%s14465_s17 + $0x324] ss:$48 sps:$4 sm:$0xff]   ;;  %v12787_v43 = vld [vmem:[%s14465_s17 + $0x32c] ss:$48 sps:$4 sm:$0xff]  }
 0xf04   : > { %7181 = vmatprep.subr.bf16.mxu0 %v12721_v53  ;;  %v12782_v53 = vld [vmem:[%s14465_s17 + $0x320] ss:$48 sps:$4 sm:$0xff]  }
 0xf06   : > { %7096 = vmatpush1.bf16.msra.mxu1 %v12716_v45  ;;  %v12785_v45 = vld [vmem:[%s14465_s17 + $0x328] ss:$48 sps:$4 sm:$0xff]  }
 0xf07   : > { %7182 = vmatpush1.bf16.msra.mxu0 %v12719_v1  ;;  %7097 = vmatprep.subr.bf16.mxu1 %v12724_v47  ;;  %v12790_v1 = vld [vmem:[%s14465_s17 + $0x384] ss:$48 sps:$4 sm:$0xff]   ;;  %v12793_v47 = vld [vmem:[%s14465_s17 + $0x38c] ss:$48 sps:$4 sm:$0xff]  }
 0xf08   : > { %7183 = vmatprep.subr.bf16.mxu0 %v12727_v61  ;;  %v12788_v61 = vld [vmem:[%s14465_s17 + $0x380] ss:$48 sps:$4 sm:$0xff]  }
 0xf0a   : > { %7098 = vmatpush1.bf16.msra.mxu1 %v12722_v62  ;;  %v12791_v62 = vld [vmem:[%s14465_s17 + $0x388] ss:$48 sps:$4 sm:$0xff]  }
 0xf0b   : > { %7184 = vmatpush1.bf16.msra.mxu0 %v12725_v5  ;;  %7099 = vmatprep.subr.bf16.mxu1 %v12730_v37  ;;  %v12796_v5 = vld [vmem:[%s14465_s17 + $0x3e4] ss:$48 sps:$4 sm:$0xff]   ;;  %v12799_v37 = vld [vmem:[%s14465_s17 + $0x3ec] ss:$48 sps:$4 sm:$0xff]  }
 0xf0c   : > { %7185 = vmatprep.subr.bf16.mxu0 %v12733_v31  ;;  %v12794_v31 = vld [vmem:[%s14465_s17 + $0x3e0] ss:$48 sps:$4 sm:$0xff]  }
 0xf0e   : > { %7100 = vmatpush1.bf16.msra.mxu1 %v12728_v7  ;;  %v12797_v7 = vld [vmem:[%s14465_s17 + $0x3e8] ss:$48 sps:$4 sm:$0xff]  }
 0xf0f   : > { %7186 = vmatpush1.bf16.msra.mxu0 %v12731_v13  ;;  %7214 = vmatprep.subr.bf16.mxu1 %v12736_v22  ;;  %v12802_v13 = vld [vmem:[%s14465_s17 + $0x444] ss:$48 sps:$4 sm:$0xff]   ;;  %v12805_v22 = vld [vmem:[%s14465_s17 + $0x44c] ss:$48 sps:$4 sm:$0xff]  }
 0xf10   : > { %7300 = vmatprep.subr.bf16.mxu0 %v12739_v35  ;;  %v12800_v35 = vld [vmem:[%s14465_s17 + $0x440] ss:$48 sps:$4 sm:$0xff]  }
 0xf11   : > { %7118 = vmatmul.mubr.bf16.vlgmr.msra.gmra.mrb[64].mxu1 %v15522_v0 }
 0xf12   : > { %7204 = vmatmul.mubr.bf16.vlgmr.msra.gmra.mrb[80].mxu0 %v15522_v0  ;;  %7215 = vmatpush1.bf16.msra.mxu1 %v12734_v42  ;;  %v12803_v42 = vld [vmem:[%s14465_s17 + $0x448] ss:$48 sps:$4 sm:$0xff]  }
 0xf13   : > { %7246 = vmatprep.mubr.bf16.mxu1 %v15471_v20  ;;  %7301 = vmatpush1.bf16.msra.mxu0 %v12737_v48  ;;  %v12808_v48 = vld [vmem:[%s14465_s17 + $0x4a4] ss:$48 sps:$4 sm:$0xff]  }
 0xf14   : > { %7332 = vmatprep.mubr.bf16.mxu0 %v15471_v20  ;;  %7216 = vmatprep.subr.bf16.mxu1 %v12742_v49  ;;  %v12752_v20 = vld [vmem:[%s14465_s17 + $0x140] ss:$48 sps:$4 sm:$0xff]   ;;  %v12811_v49 = vld [vmem:[%s14465_s17 + $0x4ac] ss:$48 sps:$4 sm:$0xff]  }
 0xf15   : > { %7302 = vmatprep.subr.bf16.mxu0 %v12745_v24  ;;  %v12806_v24 = vld [vmem:[%s14465_s17 + $0x4a0] ss:$48 sps:$4 sm:$0xff]  }
 0xf16   : > { %7217 = vmatpush1.bf16.msra.mxu1 %v12740_v21  ;;  %v12809_v21 = vld [vmem:[%s14465_s17 + $0x4a8] ss:$48 sps:$4 sm:$0xff]  }
 0xf17   : > { %7303 = vmatpush1.bf16.msra.mxu0 %v12743_v41  ;;  %7218 = vmatprep.subr.bf16.mxu1 %v12748_v9  ;;  %v12814_v41 = vld [vmem:[%s14465_s17 + $0x504] ss:$48 sps:$4 sm:$0xff]   ;;  %v12817_v9 = vld [vmem:[%s14465_s17 + $0x50c] ss:$48 sps:$4 sm:$0xff]  }
 0xf18   : > { %7304 = vmatprep.subr.bf16.mxu0 %v12751_v10  ;;  %v12812_v10 = vld [vmem:[%s14465_s17 + $0x500] ss:$48 sps:$4 sm:$0xff]  }
 0xf1a   : > { %7219 = vmatpush1.bf16.msra.mxu1 %v12746_v6  ;;  %v12815_v6 = vld [vmem:[%s14465_s17 + $0x508] ss:$48 sps:$4 sm:$0xff]  }
 0xf1b   : > { %7305 = vmatpush1.bf16.msra.mxu0 %v12749_v27  ;;  %7220 = vmatprep.subr.bf16.mxu1 %v12754_v8  ;;  %v12820_v27 = vld [vmem:[%s14465_s17 + $0x564] ss:$48 sps:$4 sm:$0xff]   ;;  %v12823_v8 = vld [vmem:[%s14465_s17 + $0x56c] ss:$48 sps:$4 sm:$0xff]  }
 0xf1c   : > { %7306 = vmatprep.subr.bf16.mxu0 %v12757_v29  ;;  %v12818_v29 = vld [vmem:[%s14465_s17 + $0x560] ss:$48 sps:$4 sm:$0xff]  }
 0xf1e   : > { %7221 = vmatpush1.bf16.msra.mxu1 %v12752_v20  ;;  %v12821_v20 = vld [vmem:[%s14465_s17 + $0x568] ss:$48 sps:$4 sm:$0xff]  }
 0xf1f   : > { %7307 = vmatpush1.bf16.msra.mxu0 %v12755_v19  ;;  %7222 = vmatprep.subr.bf16.mxu1 %v12760_v46  ;;  %v12826_v19 = vld [vmem:[%s14465_s17 + $0x5c4] ss:$48 sps:$4 sm:$0xff]   ;;  %v12829_v46 = vld [vmem:[%s14465_s17 + $0x5cc] ss:$48 sps:$4 sm:$0xff]  }
 0xf20   : > { %7308 = vmatprep.subr.bf16.mxu0 %v12763_v36  ;;  %v12824_v36 = vld [vmem:[%s14465_s17 + $0x5c0] ss:$48 sps:$4 sm:$0xff]  }
 0xf22   : > { %7223 = vmatpush1.bf16.msra.mxu1 %v12758_v25  ;;  %v12827_v25 = vld [vmem:[%s14465_s17 + $0x5c8] ss:$48 sps:$4 sm:$0xff]  }
 0xf23   : > { %7309 = vmatpush1.bf16.msra.mxu0 %v12761_v50  ;;  %7224 = vmatprep.subr.bf16.mxu1 %v12766_v57  ;;  %v12832_v50 = vld [vmem:[%s14465_s17 + $0x624] ss:$48 sps:$4 sm:$0xff]   ;;  %v12835_v57 = vld [vmem:[%s14465_s17 + $0x62c] ss:$48 sps:$4 sm:$0xff]  }
 0xf24   : > { %7310 = vmatprep.subr.bf16.mxu0 %v12769_v12  ;;  %v12830_v12 = vld [vmem:[%s14465_s17 + $0x620] ss:$48 sps:$4 sm:$0xff]  }
 0xf26   : > { %7225 = vmatpush1.bf16.msra.mxu1 %v12764_v59  ;;  %v12833_v59 = vld [vmem:[%s14465_s17 + $0x628] ss:$48 sps:$4 sm:$0xff]  }
 0xf27   : > { %7311 = vmatpush1.bf16.msra.mxu0 %v12767_v63  ;;  %7226 = vmatprep.subr.bf16.mxu1 %v12772_v40  ;;  %v12838_v63 = vld [vmem:[%s14465_s17 + $0x684] ss:$48 sps:$4 sm:$0xff]   ;;  %v12841_v40 = vld [vmem:[%s14465_s17 + $0x68c] ss:$48 sps:$4 sm:$0xff]  }
 0xf28   : > { %7312 = vmatprep.subr.bf16.mxu0 %v12775_v55  ;;  %v12836_v55 = vld [vmem:[%s14465_s17 + $0x680] ss:$48 sps:$4 sm:$0xff]  }
 0xf2a   : > { %7227 = vmatpush1.bf16.msra.mxu1 %v12770_v54  ;;  %v12839_v54 = vld [vmem:[%s14465_s17 + $0x688] ss:$48 sps:$4 sm:$0xff]  }
 0xf2b   : > { %7313 = vmatpush1.bf16.msra.mxu0 %v12773_v39  ;;  %7228 = vmatprep.subr.bf16.mxu1 %v12778_v60  ;;  %v12844_v39 = vld [vmem:[%s14465_s17 + $0x6e4] ss:$48 sps:$4 sm:$0xff]   ;;  %v12847_v60 = vld [vmem:[%s14465_s17 + $0x6ec] ss:$48 sps:$4 sm:$0xff]  }
 0xf2c   : > { %7314 = vmatprep.subr.bf16.mxu0 %v12781_v2  ;;  %v12845_v2 = vld [vmem:[%s14465_s17 + $0x6e8] ss:$48 sps:$4 sm:$0xff]  }
 0xf2e   : > { %7229 = vmatpush1.bf16.msra.mxu1 %v12776_v56  ;;  %v12850_v56 = vld [vmem:[%s14465_s17 + $0x744] ss:$48 sps:$4 sm:$0xff]  }
 0xf2f   : > { %7315 = vmatpush1.bf16.msra.mxu0 %v12779_v44  ;;  %7230 = vmatprep.subr.bf16.mxu1 %v12784_v3  ;;  %v12853_v44 = vld [vmem:[%s14465_s17 + $0x74c] ss:$48 sps:$4 sm:$0xff]   ;;  %v12848_v3 = vld [vmem:[%s14465_s17 + $0x740] ss:$48 sps:$4 sm:$0xff]  }
 0xf30   : > { %7316 = vmatprep.subr.bf16.mxu0 %v12787_v43  ;;  %v12851_v43 = vld [vmem:[%s14465_s17 + $0x748] ss:$48 sps:$4 sm:$0xff]  }
 0xf32   : > { %7231 = vmatpush1.bf16.msra.mxu1 %v12782_v53  ;;  %v12859_v53 = vld [vmem:[%s14465_s17 + $0x7ac] ss:$48 sps:$4 sm:$0xff]  }
 0xf33   : > { %7317 = vmatpush1.bf16.msra.mxu0 %v12785_v45  ;;  %7232 = vmatprep.subr.bf16.mxu1 %v12790_v1  ;;  %v12854_v45 = vld [vmem:[%s14465_s17 + $0x7a0] ss:$48 sps:$4 sm:$0xff]   ;;  %v12857_v1 = vld [vmem:[%s14465_s17 + $0x7a8] ss:$48 sps:$4 sm:$0xff]  }
 0xf34   : > { %7318 = vmatprep.subr.bf16.mxu0 %v12793_v47  ;;  %v12862_v47 = vld [vmem:[%s14465_s17 + $0x804] ss:$48 sps:$4 sm:$0xff]  }
 0xf36   : > { %7233 = vmatpush1.bf16.msra.mxu1 %v12788_v61  ;;  %v12865_v61 = vld [vmem:[%s14465_s17 + $0x80c] ss:$48 sps:$4 sm:$0xff]  }
 0xf37   : > { %7319 = vmatpush1.bf16.msra.mxu0 %v12791_v62  ;;  %7234 = vmatprep.subr.bf16.mxu1 %v12796_v5  ;;  %v12860_v62 = vld [vmem:[%s14465_s17 + $0x800] ss:$48 sps:$4 sm:$0xff]   ;;  %v12863_v5 = vld [vmem:[%s14465_s17 + $0x808] ss:$48 sps:$4 sm:$0xff]  }
 0xf38   : > { %7320 = vmatprep.subr.bf16.mxu0 %v12799_v37  ;;  %v12868_v37 = vld [vmem:[%s14465_s17 + $0x864] ss:$48 sps:$4 sm:$0xff]  }
 0xf3a   : > { %7235 = vmatpush1.bf16.msra.mxu1 %v12794_v31  ;;  %v12871_v31 = vld [vmem:[%s14465_s17 + $0x86c] ss:$48 sps:$4 sm:$0xff]  }
 0xf3b   : > { %7321 = vmatpush1.bf16.msra.mxu0 %v12797_v7  ;;  %7236 = vmatprep.subr.bf16.mxu1 %v12802_v13  ;;  %v12866_v7 = vld [vmem:[%s14465_s17 + $0x860] ss:$48 sps:$4 sm:$0xff]   ;;  %v12869_v13 = vld [vmem:[%s14465_s17 + $0x868] ss:$48 sps:$4 sm:$0xff]  }
 0xf3c   : > { %7322 = vmatprep.subr.bf16.mxu0 %v12805_v22  ;;  %v12874_v22 = vld [vmem:[%s14465_s17 + $0x8c4] ss:$48 sps:$4 sm:$0xff]  }
 0xf3e   : > { %7237 = vmatpush1.bf16.msra.mxu1 %v12800_v35  ;;  %v12877_v35 = vld [vmem:[%s14465_s17 + $0x8cc] ss:$48 sps:$4 sm:$0xff]  }
 0xf3f   : > { %7323 = vmatpush1.bf16.msra.mxu0 %v12803_v42  ;;  %7238 = vmatprep.subr.bf16.mxu1 %v12808_v48  ;;  %v12872_v42 = vld [vmem:[%s14465_s17 + $0x8c0] ss:$48 sps:$4 sm:$0xff]   ;;  %v12875_v48 = vld [vmem:[%s14465_s17 + $0x8c8] ss:$48 sps:$4 sm:$0xff]  }
 0xf40   : > { %7324 = vmatprep.subr.bf16.mxu0 %v12811_v49  ;;  %v12880_v49 = vld [vmem:[%s14475_s28 + $0x4] ss:$12 sps:$4 sm:$0xff]  }
 0xf42   : > { %7239 = vmatpush1.bf16.msra.mxu1 %v12806_v24  ;;  %v12896_v24 = vld [vmem:[%s14475_s28 + $0xc8] ss:$12 sps:$4 sm:$0xff]  }
 0xf43   : > { %7325 = vmatpush1.bf16.msra.mxu0 %v12809_v21  ;;  %7240 = vmatprep.subr.bf16.mxu1 %v12814_v41  ;;  %v12878_v21 = vld [vmem:[%s14475_s28] ss:$12 sps:$4 sm:$0xff]   ;;  %v12883_v41 = vld [vmem:[%s14475_s28 + $0x1c] ss:$12 sps:$4 sm:$0xff]  }
 0xf44   : > { %7326 = vmatprep.subr.bf16.mxu0 %v12817_v9  ;;  %v12897_v9 = vld [vmem:[%s14475_s28 + $0x8] ss:$12 sps:$4 sm:$0xff]  }
 0xf46   : > { %7241 = vmatpush1.bf16.msra.mxu1 %v12812_v10  ;;  %v12901_v10 = vld [vmem:[%s14475_s28 + $0xe0] ss:$12 sps:$4 sm:$0xff]  }
 0xf47   : > { %7327 = vmatpush1.bf16.msra.mxu0 %v12815_v6  ;;  %7242 = vmatprep.subr.bf16.mxu1 %v12820_v27  ;;  %v12881_v6 = vld [vmem:[%s14475_s28 + $0x18] ss:$12 sps:$4 sm:$0xff]   ;;  %v12886_v27 = vld [vmem:[%s14475_s28 + $0x34] ss:$12 sps:$4 sm:$0xff]  }
 0xf48   : > { %7328 = vmatprep.subr.bf16.mxu0 %v12823_v8  ;;  %v12902_v8 = vld [vmem:[%s14475_s28 + $0x20] ss:$12 sps:$4 sm:$0xff]  }
 0xf4a   : > { %7243 = vmatpush1.bf16.msra.mxu1 %v12818_v29  ;;  %v12906_v29 = vld [vmem:[%s14475_s28 + $0xf8] ss:$12 sps:$4 sm:$0xff]  }
 0xf4b   : > { %7329 = vmatpush1.bf16.msra.mxu0 %v12821_v20  ;;  %7244 = vmatprep.subr.bf16.mxu1 %v12826_v19  ;;  %v12884_v20 = vld [vmem:[%s14475_s28 + $0x30] ss:$12 sps:$4 sm:$0xff]   ;;  %v12889_v19 = vld [vmem:[%s14475_s28 + $0x4c] ss:$12 sps:$4 sm:$0xff]  }
 0xf4c   : > { %7330 = vmatprep.subr.bf16.mxu0 %v12829_v46  ;;  %v12911_v46 = vld [vmem:[%s14475_s28 + $0x110] ss:$12 sps:$4 sm:$0xff]  }
 0xf4e   : > { %7245 = vmatpush1.bf16.msra.mxu1 %v12824_v36  ;;  %v12887_v36 = vld [vmem:[%s14475_s28 + $0x48] ss:$12 sps:$4 sm:$0xff]  }
 0xf4f   : > { %7331 = vmatpush1.bf16.msra.mxu0 %v12827_v25  ;;  %7257 = vmatprep.subr.bf16.mxu1 %v12832_v50  ;;  %v12892_v25 = vld [vmem:[%s14475_s28 + $0x64] ss:$12 sps:$4 sm:$0xff]  }
 0xf50   : > { %7343 = vmatprep.subr.bf16.mxu0 %v12835_v57  ;;  %v12912_v50 = vld [vmem:[%s14475_s28 + $0x50] ss:$12 sps:$4 sm:$0xff]   ;;  %v12916_v57 = vld [vmem:[%s14475_s28 + $0x128] ss:$12 sps:$4 sm:$0xff]  }
 0xf51   : > { %7247 = vmatmul.mubr.bf16.vlgmr.msra.gmra.mrb[68].mxu1 %v15475_v52 }
 0xf52   : > { %7333 = vmatmul.mubr.bf16.vlgmr.msra.gmra.mrb[84].mxu0 %v15475_v52  ;;  %7258 = vmatpush1.bf16.msra.mxu1 %v12830_v12  ;;  %v12842_v52 = vld [vmem:[%s14465_s17 + $0x6e0] ss:$48 sps:$4 sm:$0xff]   ;;  %v12890_v12 = vld [vmem:[%s14475_s28 + $0x60] ss:$12 sps:$4 sm:$0xff]  }
 0xf53   : > { %7344 = vmatpush1.bf16.msra.mxu0 %v12833_v59  ;;  %7259 = vmatprep.subr.bf16.mxu1 %v12838_v63  ;;  %v15751_v59 = vld [vmem:[%s14472_s24] sm:$0xff] }
 0xf54   : > { %7345 = vmatprep.subr.bf16.mxu0 %v12841_v40  ;;  %7289 = vmatprep.mubr.bf16.mxu1 %v13848_v17  ;;  %v12895_v63 = vld [vmem:[%s14475_s28 + $0x7c] ss:$12 sps:$4 sm:$0xff]  }
 0xf55   : > { %7375 = vmatprep.mubr.bf16.mxu0 %v13848_v17  ;;  %v12856_v17 = vld [vmem:[%s14465_s17 + $0x7a4] ss:$48 sps:$4 sm:$0xff]   ;;  %v12917_v40 = vld [vmem:[%s14475_s28 + $0x68] ss:$12 sps:$4 sm:$0xff]   ;;  %s16365_s17 = sld [smem:[#allocation45_spill]] }
 0xf56   : > { %7260 = vmatpush1.bf16.msra.mxu1 %v12836_v55  ;;  %v12921_v55 = vld [vmem:[%s14475_s28 + $0x140] ss:$12 sps:$4 sm:$0xff]  }
 0xf57   : > { %7346 = vmatpush1.bf16.msra.mxu0 %v12839_v54  ;;  %7261 = vmatprep.subr.bf16.mxu1 %v12844_v39  ;;  %v5373_v54 = vrot.slane %v15751_v59, %v14606_v34  ;;  %v5381_v39 = vrot.slane %v15751_v59, %v14603_v33 }
 0xf58   : > { %7347 = vmatprep.subr.bf16.mxu0 %v12847_v60  ;;  %v5377_v60 = vrot.slane %v15751_v59, %v14600_v32 }
 0xf5a   : > { %7262 = vmatpush1.bf16.msra.mxu1 %v12842_v52  ;;  %v5385_v52 = vrot.slane %v15751_v59, %v14846_v15 }
 0xf5b   : > { %7348 = vmatpush1.bf16.msra.mxu0 %v12845_v2  ;;  %7263 = vmatprep.subr.bf16.mxu1 %v12850_v56  ;;  %v12893_v2 = vld [vmem:[%s14475_s28 + $0x78] ss:$12 sps:$4 sm:$0xff]   ;;  %v12900_v56 = vld [vmem:[%s14475_s28 + $0x94] ss:$12 sps:$4 sm:$0xff]  }
 0xf5c   : > { %7349 = vmatprep.subr.bf16.mxu0 %v12853_v44  ;;  %v12922_v44 = vld [vmem:[%s14475_s28 + $0x80] ss:$12 sps:$4 sm:$0xff]  }
 0xf5e   : > { %7264 = vmatpush1.bf16.msra.mxu1 %v12848_v3 }
 0xf5f   : > { %7350 = vmatpush1.bf16.msra.mxu0 %v12851_v43  ;;  %7265 = vmatprep.subr.bf16.mxu1 %v12856_v17  ;;  %v12926_v17 = vld [vmem:[%s14475_s28 + $0x158] ss:$12 sps:$4 sm:$0xff]  }
 0xf60   : > { %7351 = vmatprep.subr.bf16.mxu0 %v12859_v53 }
 0xf62   : > { %7266 = vmatpush1.bf16.msra.mxu1 %v12854_v45 }
 0xf63   : > { %7352 = vmatpush1.bf16.msra.mxu0 %v12857_v1  ;;  %7267 = vmatprep.subr.bf16.mxu1 %v12862_v47 }
 0xf64   : > { %7353 = vmatprep.subr.bf16.mxu0 %v12865_v61 }
 0xf66   : > { %7268 = vmatpush1.bf16.msra.mxu1 %v12860_v62 }
 0xf67   : > { %7354 = vmatpush1.bf16.msra.mxu0 %v12863_v5  ;;  %7269 = vmatprep.subr.bf16.mxu1 %v12868_v37 }
 0xf68   : > { %7355 = vmatprep.subr.bf16.mxu0 %v12871_v31  ;;  %v12898_v31 = vld [vmem:[%s14475_s28 + $0x90] ss:$12 sps:$4 sm:$0xff]  }
 0xf6a   : > { %7270 = vmatpush1.bf16.msra.mxu1 %v12866_v7  ;;  %v12905_v7 = vld [vmem:[%s14475_s28 + $0xac] ss:$12 sps:$4 sm:$0xff]  }
 0xf6b   : > { %7356 = vmatpush1.bf16.msra.mxu0 %v12869_v13  ;;  %7271 = vmatprep.subr.bf16.mxu1 %v12874_v22 }
 0xf6c   : > { %7357 = vmatprep.subr.bf16.mxu0 %v12877_v35 }
 0xf6e   : > { %7272 = vmatpush1.bf16.msra.mxu1 %v12872_v42 }
 0xf6f   : > { %7358 = vmatpush1.bf16.msra.mxu0 %v12875_v48  ;;  %9551 = vmatprep.subr.bf16.mxu1 %v12880_v49 }
 0xf70   : > { %11490 = vmatprep.subr.bf16.mxu0 %v12896_v24 }
 0xf71   : > { %7290 = vmatmul.mubr.bf16.vlgmr.msra.gmra.mrb[68].mxu1 %v15522_v0 }
 0xf72   : > { %7376 = vmatmul.mubr.bf16.vlgmr.msra.gmra.mrb[84].mxu0 %v15522_v0  ;;  %9552 = vmatpush1.bf16.msra.mxu1 %v12878_v21  ;;  %v12907_v0 = vld [vmem:[%s14475_s28 + $0x38] ss:$12 sps:$4 sm:$0xff]  }
 0xf73   : > { %9553 = vmatprep.subr.bf16.mxu1 %v12883_v41  ;;  %11491 = vmatpush3.bf16.msra.mxu0 %v12897_v9 }
 0xf74   : > { %11492 = vmatprep.subr.bf16.mxu0 %v12901_v10  ;;  %v12927_v10 = vld [vmem:[%s14475_s28 + $0x98] ss:$12 sps:$4 sm:$0xff]  }
 0xf76   : > { %9554 = vmatpush1.bf16.msra.mxu1 %v12881_v6 }
 0xf77   : > { %9555 = vmatprep.subr.bf16.mxu1 %v12886_v27  ;;  %11493 = vmatpush3.bf16.msra.mxu0 %v12902_v8 }
 0xf78   : > { %11494 = vmatprep.subr.bf16.mxu0 %v12906_v29 }
 0xf7a   : > { %9556 = vmatpush1.bf16.msra.mxu1 %v12884_v20  ;;  %v12931_v20 = vld [vmem:[%s14475_s28 + $0x170] ss:$12 sps:$4 sm:$0xff]  }
 0xf7b   : > { %9557 = vmatprep.subr.bf16.mxu1 %v12889_v19  ;;  %11495 = vmatpush3.bf16.msra.mxu0 %v12907_v0 }
 0xf7c   : > { %11496 = vmatprep.subr.bf16.mxu0 %v12911_v46 }
 0xf7e   : > { %9558 = vmatpush1.bf16.msra.mxu1 %v12887_v36 }
 0xf7f   : > { %9559 = vmatprep.subr.bf16.mxu1 %v12892_v25  ;;  %11497 = vmatpush3.bf16.msra.mxu0 %v12912_v50  ;;  %v12903_v25 = vld [vmem:[%s14475_s28 + $0xa8] ss:$12 sps:$4 sm:$0xff]  }
 0xf80   : > { %11498 = vmatprep.subr.bf16.mxu0 %v12916_v57 }
 0xf82   : > { %9560 = vmatpush1.bf16.msra.mxu1 %v12890_v12 }
 0xf83   : > { %9561 = vmatprep.subr.bf16.mxu1 %v12895_v63  ;;  %11499 = vmatpush3.bf16.msra.mxu0 %v12917_v40  ;;  %v12910_v40 = vld [vmem:[%s14475_s28 + $0xc4] ss:$12 sps:$4 sm:$0xff]  }
 0xf84   : > { %v6947_v3 = vpop.f32.mrb[60].mxu1  ;;  %v7033_v43 = vpop.f32.mrb[76].mxu0  ;;  %11500 = vmatprep.subr.bf16.mxu0 %v12921_v55 }
 0xf85   : > { %v15768_v53 = vadd.f32 %v6947_v3, %v5373_v54  ;;  %v15770_v45 = vadd.f32 %v7033_v43, %v5381_v39  ;;  %v6949_v1 = vpop.f32.mrb[61].mxu1  ;;  %v7035_v47 = vpop.f32.mrb[77].mxu0  ;;  %v12936_v3 = vld [vmem:[%s14475_s28 + $0x248] ss:$12 sps:$4 sm:$0xff]  }
 0xf86   : > { %v15772_v61 = vadd.f32 %v6949_v1, %v5377_v60  ;;  %v15774_v62 = vadd.f32 %v7035_v47, %v5385_v52  ;;  %v6951_v5 = vpop.f32.mrb[62].mxu1  ;;  %v7037_v37 = vpop.f32.mrb[78].mxu0  ;;  %9562 = vmatpush1.bf16.msra.mxu1 %v12893_v2  ;;  %v12908_v47 = vld [vmem:[%s14475_s28 + $0xc0] ss:$12 sps:$4 sm:$0xff]  }
 0xf87   : > { %v7410_v13 = vmul.f32 0.044715, %v15768_v53  ;;  %v7412_v22 = vmul.f32 0.044715, %v15770_v45  ;;  %v15780_v35 = vadd.f32 %v6951_v5, %v5373_v54  ;;  %v15782_v42 = vadd.f32 %v7037_v37, %v5381_v39  ;;  %v6953_v48 = vpop.f32.mrb[63].mxu1  ;;  %v7039_v49 = vpop.f32.mrb[79].mxu0  ;;  %9563 = vmatprep.subr.bf16.mxu1 %v12900_v56  ;;  %11501 = vmatpush3.bf16.msra.mxu0 %v12922_v44 }
 0xf88   : > { %v7411_v24 = vmul.f32 0.044715, %v15772_v61  ;;  %v7413_v21 = vmul.f32 0.044715, %v15774_v62  ;;  %v15786_v41 = vadd.f32 %v6953_v48, %v5377_v60  ;;  %v15788_v9 = vadd.f32 %v7039_v49, %v5385_v52  ;;  %11502 = vmatprep.subr.bf16.mxu0 %v12926_v17  ;;  %v12932_v60 = vld [vmem:[%s14475_s28 + $0xb0] ss:$12 sps:$4 sm:$0xff]  }
 0xf89   : > { %v7434_v6 = vmul.f32 %v15768_v53, %v7410_v13  ;;  %v7436_v27 = vmul.f32 %v15770_v45, %v7412_v22  ;;  %v7422_v8 = vmul.f32 0.044715, %v15780_v35  ;;  %v7424_v29 = vmul.f32 0.044715, %v15782_v42  ;;  %v12915_v13 = vld [vmem:[%s14475_s28 + $0xdc] ss:$12 sps:$4 sm:$0xff]  }
 0xf8a   : > { %v7435_v19 = vmul.f32 %v15772_v61, %v7411_v24  ;;  %v7437_v0 = vmul.f32 %v15774_v62, %v7413_v21  ;;  %v7423_v46 = vmul.f32 0.044715, %v15786_v41  ;;  %v7425_v36 = vmul.f32 0.044715, %v15788_v9  ;;  %9564 = vmatpush1.bf16.msra.mxu1 %v12898_v31  ;;  %v12913_v21 = vld [vmem:[%s14475_s28 + $0xd8] ss:$12 sps:$4 sm:$0xff]  }
 0xf8b   : > { %v7458_v50 = vmul.f32 %v15768_v53, %v7434_v6  ;;  %v7460_v57 = vmul.f32 %v15770_v45, %v7436_v27  ;;  %v7446_v12 = vmul.f32 %v15780_v35, %v7422_v8  ;;  %v7448_v63 = vmul.f32 %v15782_v42, %v7424_v29  ;;  %9565 = vmatprep.subr.bf16.mxu1 %v12905_v7  ;;  %v12920_v27 = vld [vmem:[%s14475_s28 + $0xf4] ss:$12 sps:$4 sm:$0xff]  }
 0xf8c   : > { %v7459_v55 = vmul.f32 %v15772_v61, %v7435_v19  ;;  %v7447_v54 = vmul.f32 %v15786_v41, %v7423_v46  ;;  %v7449_v39 = vmul.f32 %v15788_v9, %v7425_v36  ;;  %11503 = vmatpush3.bf16.msra.mxu0 %v12927_v10  ;;  %v7461_v43 = vmul.f32 %v15774_v62, %v7437_v0  ;;  %v12918_v0 = vld [vmem:[%s14475_s28 + $0xf0] ss:$12 sps:$4 sm:$0xff]   ;;  %v12925_v46 = vld [vmem:[%s14475_s28 + $0x10c] ss:$12 sps:$4 sm:$0xff]   ;;  %v12923_v36 = vld [vmem:[%s14475_s28 + $0x108] ss:$12 sps:$4 sm:$0xff]  }
 0xf8d   : > { %v7482_v52 = vadd.f32 %v15768_v53, %v7458_v50  ;;  %v7484_v2 = vadd.f32 %v15770_v45, %v7460_v57  ;;  %v7470_v56 = vmul.f32 %v15780_v35, %v7446_v12  ;;  %v7472_v44 = vmul.f32 %v15782_v42, %v7448_v63  ;;  %11504 = vmatprep.subr.bf16.mxu0 %v12931_v20  ;;  %v12930_v50 = vld [vmem:[%s14475_s28 + $0x124] ss:$12 sps:$4 sm:$0xff]  }
 0xf8e   : > { %v7471_v17 = vmul.f32 %v15786_v41, %v7447_v54  ;;  %v7473_v1 = vmul.f32 %v15788_v9, %v7449_v39  ;;  %9566 = vmatpush1.bf16.msra.mxu1 %v12903_v25  ;;  %v7483_v22 = vadd.f32 %v15772_v61, %v7459_v55  ;;  %v7485_v8 = vadd.f32 %v15774_v62, %v7461_v43  ;;  %v12928_v54 = vld [vmem:[%s14475_s28 + $0x120] ss:$12 sps:$4 sm:$0xff]  }
 0xf8f   : > { %v7506_v5 = vmul.f32 0.7978846, %v7482_v52  ;;  %v7508_v37 = vmul.f32 0.7978846, %v7484_v2  ;;  %v7494_v31 = vadd.f32 %v15780_v35, %v7470_v56  ;;  %v7496_v7 = vadd.f32 %v15782_v42, %v7472_v44  ;;  %9567 = vmatprep.subr.bf16.mxu1 %v12910_v40  ;;  %v12935_v56 = vld [vmem:[%s14475_s28 + $0x13c] ss:$12 sps:$4 sm:$0xff]  }
 0xf90   : > { %11505 = vmatpush3.bf16.msra.mxu0 %v12932_v60  ;;  %v7495_v48 = vadd.f32 %v15786_v41, %v7471_v17  ;;  %v7507_v10 = vmul.f32 0.7978846, %v7483_v22  ;;  %v7497_v29 = vadd.f32 %v15788_v9, %v7473_v1  ;;  %v7509_v20 = vmul.f32 0.7978846, %v7485_v8  ;;  %v12937_v8 = vld [vmem:[%s14475_s28 + $0x188] ss:$12 sps:$4 sm:$0xff]  }
 0xf91   : > { %13318 = vtanh.f32 %v7506_v5  ;;  %v7518_v49 = vmul.f32 0.7978846, %v7494_v31  ;;  %v7520_v24 = vmul.f32 0.7978846, %v7496_v7  ;;  %11512 = vmatprep.subr.bf16.mxu0 %v12936_v3  ;;  %v7386_v39 = vmul.f32 0.5, %v15768_v53 }
 0xf92   : > { %13320 = vtanh.f32 %v7508_v37  ;;  %9568 = vmatpush1.bf16.msra.mxu1 %v12908_v47  ;;  %v7519_v6 = vmul.f32 0.7978846, %v7495_v48  ;;  %v7521_v19 = vmul.f32 0.7978846, %v7497_v29  ;;  %v7398_v60 = vmul.f32 0.5, %v15780_v35 }
 0xf93   : > { %13322 = vtanh.f32 %v7518_v49  ;;  %9569 = vmatprep.subr.bf16.mxu1 %v12915_v13  ;;  %v7388_v44 = vmul.f32 0.5, %v15770_v45  ;;  %v7400_v3 = vmul.f32 0.5, %v15782_v42  ;;  %v7387_v1 = vmul.f32 0.5, %v15772_v61  ;;  %v12933_v45 = vld [vmem:[%s14475_s28 + $0x138] ss:$12 sps:$4 sm:$0xff]  }
 0xf94   : > { %13324 = vtanh.f32 %v7520_v24  ;;  %v7399_v53 = vmul.f32 0.5, %v15786_v41  ;;  %v7389_v48 = vmul.f32 0.5, %v15774_v62  ;;  %v7401_v61 = vmul.f32 0.5, %v15788_v9  ;;  %v12938_v62 = vld [vmem:[%s14475_s28 + $0x150] ss:$12 sps:$4 sm:$0xff]  }
 0xf95   : > { %13326 = vtanh.f32 %v7507_v10  ;;  %v12941_v9 = vld [vmem:[%s14475_s28 + $0x260] ss:$12 sps:$4 sm:$0xff]  }
 0xf96   : > { %9570 = vmatpush1.bf16.msra.mxu1 %v12913_v21  ;;  %13328 = vtanh.f32 %v7519_v6  ;;  %v12940_v6 = vld [vmem:[%s14475_s28 + $0x154] ss:$12 sps:$4 sm:$0xff]  }
 0xf97   : > { %9571 = vmatprep.subr.bf16.mxu1 %v12920_v27  ;;  %13330 = vtanh.f32 %v7509_v20 }
 0xf98   : > { %13332 = vtanh.f32 %v7521_v19 }
 0xf9a   : > { %9572 = vmatpush1.bf16.msra.mxu1 %v12918_v0  ;;  %v12945_v0 = vld [vmem:[%s14475_s28 + $0x16c] ss:$12 sps:$4 sm:$0xff]  }
 0xf9b   : > { %v13319_v25 = vpop.eup %13318  ;;  %9573 = vmatprep.subr.bf16.mxu1 %v12925_v46  ;;  %v12942_v46 = vld [vmem:[%s14475_s28 + $0x1a0] ss:$12 sps:$4 sm:$0xff]  }
 0xf9c   : > { %v13321_v57 = vpop.eup %13320  ;;  %v7554_v12 = vadd.f32 1.0, %v13319_v25  ;;  %v12946_v25 = vld [vmem:[%s14475_s28 + $0x278] ss:$12 sps:$4 sm:$0xff]  }
 0xf9d   : > { %v13323_v63 = vpop.eup %13322  ;;  %v7556_v40 = vadd.f32 1.0, %v13321_v57  ;;  %v12947_v57 = vld [vmem:[%s14475_s28 + $0x1b8] ss:$12 sps:$4 sm:$0xff]  }
 0xf9e   : > { %v13325_v55 = vpop.eup %13324  ;;  %9574 = vmatpush1.bf16.msra.mxu1 %v12923_v36  ;;  %v7566_v52 = vadd.f32 1.0, %v13323_v63  ;;  %v7578_v5 = vmul.f32 %v7554_v12, %v7386_v39  ;;  %v12943_v36 = vld [vmem:[%s14475_s28 + $0x168] ss:$12 sps:$4 sm:$0xff]   ;;  %v12948_v12 = vld [vmem:[%s14475_s28 + $0x180] ss:$12 sps:$4 sm:$0xff]  }
 0xf9f   : > { %v13327_v2 = vpop.eup %13326  ;;  %9575 = vmatprep.subr.bf16.mxu1 %v12930_v50  ;;  %v7568_v43 = vadd.f32 1.0, %v13325_v55  ;;  %v7580_v7 = vmul.f32 %v7556_v40, %v7388_v44  ;;  %v12950_v50 = vld [vmem:[%s14475_s28 + $0x184] ss:$12 sps:$4 sm:$0xff]   ;;  %v12955_v40 = vld [vmem:[%s14475_s28 + $0x19c] ss:$12 sps:$4 sm:$0xff]  }
 0xfa0   : > { %v13329_v17 = vpop.eup %13328  ;;  %v7555_v47 = vadd.f32 1.0, %v13327_v2  ;;  %v7590_v37 = vmul.f32 %v7566_v52, %v7398_v60  ;;  %v12951_v63 = vld [vmem:[%s14475_s28 + $0x290] ss:$12 sps:$4 sm:$0xff]   ;;  %v12956_v39 = vld [vmem:[%s14475_s28 + $0x2a8] ss:$12 sps:$4 sm:$0xff]  }
 0xfa1   : > { %v13331_v31 = vpop.eup %13330  ;;  %v7567_v35 = vadd.f32 1.0, %v13329_v17  ;;  %v7592_v13 = vmul.f32 %v7568_v43, %v7400_v3  ;;  %v12952_v55 = vld [vmem:[%s14475_s28 + $0x1d0] ss:$12 sps:$4 sm:$0xff]   ;;  %v12960_v60 = vld [vmem:[%s14475_s28 + $0x1b4] ss:$12 sps:$4 sm:$0xff]  }
 0xfa2   : > { %v13333_v22 = vpop.eup %13332  ;;  %9576 = vmatpush1.bf16.msra.mxu1 %v12928_v54  ;;  %v7602_v42 = vpack.c.bf16 %v7590_v37, %v7578_v5  ;;  %v7557_v49 = vadd.f32 1.0, %v13331_v31  ;;  %v7579_v24 = vmul.f32 %v7555_v47, %v7387_v1  ;;  %v12953_v54 = vld [vmem:[%s14475_s28 + $0x198] ss:$12 sps:$4 sm:$0xff]   ;;  %v12957_v52 = vld [vmem:[%s14475_s28 + $0x1e8] ss:$12 sps:$4 sm:$0xff]  }
 0xfa3   : > { %9577 = vmatprep.subr.bf16.mxu1 %v12935_v56  ;;  %v7591_v41 = vmul.f32 %v7567_v35, %v7399_v53  ;;  %v7569_v21 = vadd.f32 1.0, %v13333_v22  ;;  %v15843_v10 = vpack.c.bf16 %v7592_v13, %v7580_v7  ;;  %v12958_v2 = vld [vmem:[%s14475_s28 + $0x1b0] ss:$12 sps:$4 sm:$0xff]   ;;  %v12961_v56 = vld [vmem:[%s14475_s28 + $0x2c0] ss:$12 sps:$4 sm:$0xff]  }
 0xfa4   : > { %v7581_v29 = vmul.f32 %v7557_v49, %v7389_v48  ;;  %v12965_v44 = vld [vmem:[%s14475_s28 + $0x1cc] ss:$12 sps:$4 sm:$0xff]   ;;  %v12963_v43 = vld [vmem:[%s14475_s28 + $0x1c8] ss:$12 sps:$4 sm:$0xff]   ;;  %v12970_v1 = vld [vmem:[%s14475_s28 + $0x1e4] ss:$12 sps:$4 sm:$0xff]  }
 0xfa5   : > { %v7603_v27 = vpack.c.bf16 %v7591_v41, %v7579_v24  ;;  %v7593_v20 = vmul.f32 %v7569_v21, %v7401_v61  ;;  %v12962_v3 = vld [vmem:[%s14475_s28 + $0x200] ss:$12 sps:$4 sm:$0xff]   ;;  %v12966_v17 = vld [vmem:[%s14475_s28 + $0x2d8] ss:$12 sps:$4 sm:$0xff]   ;;  %v12971_v37 = vld [vmem:[%s14475_s28 + $0x2f0] ss:$12 sps:$4 sm:$0xff]  }
 0xfa6   : > { %9578 = vmatpush1.bf16.msra.mxu1 %v12933_v45  ;;  %v12967_v47 = vld [vmem:[%s14475_s28 + $0x218] ss:$12 sps:$4 sm:$0xff]   ;;  %v12968_v5 = vld [vmem:[%s14475_s28 + $0x1e0] ss:$12 sps:$4 sm:$0xff]   ;;  %v12975_v31 = vld [vmem:[%s14475_s28 + $0x1fc] ss:$12 sps:$4 sm:$0xff]  }
 0xfa7   : > { %9583 = vmatprep.mubr.bf16.mxu1 %v7603_v27  ;;  %9841 = vmatprep.mubr.bf16.mxu0 %v7603_v27  ;;  %v7605_v19 = vpack.c.bf16 %v7593_v20, %v7581_v29  ;;  %v12972_v53 = vld [vmem:[%s14475_s28 + $0x230] ss:$12 sps:$4 sm:$0xff]   ;;  %v12973_v35 = vld [vmem:[%s14475_s28 + $0x1f8] ss:$12 sps:$4 sm:$0xff]   ;;  %v13000_v7 = vld [vmem:[%s14475_s28 + $0x3c8] ss:$12 sps:$4 sm:$0xff]  }
 0xfa8   : > { %9842 = vmatmul.mubr.bf16.vlgmr.msra.gmra.mrb[88].mxu0 %v7602_v42  ;;  %9579 = vmatprep.subr.bf16.mxu1 %v12940_v6  ;;  %v12978_v13 = vld [vmem:[%s14475_s28 + $0x214] ss:$12 sps:$4 sm:$0xff]   ;;  %v12976_v45 = vld [vmem:[%s14475_s28 + $0x210] ss:$12 sps:$4 sm:$0xff]   ;;  %v12981_v48 = vld [vmem:[%s14475_s28 + $0x22c] ss:$12 sps:$4 sm:$0xff]  }
 0xfa9   : > { %11513 = vmatpush3.bf16.msra.mxu0 %v12937_v8  ;;  %9882 = vmatprep.mubr.bf16.mxu0 %v7605_v19  ;;  %v13001_v22 = vld [vmem:[%s14475_s28 + $0x308] ss:$12 sps:$4 sm:$0xff]   ;;  %v13006_v61 = vld [vmem:[%s14475_s28 + $0x320] ss:$12 sps:$4 sm:$0xff]   ;;  %v13010_v24 = vld [vmem:[%s14475_s28 + $0x3f8] ss:$12 sps:$4 sm:$0xff]  }
 0xfaa   : > { %11514 = vmatprep.subr.bf16.mxu0 %v12941_v9  ;;  %9580 = vmatpush1.bf16.msra.mxu1 %v12938_v62  ;;  %v12979_v49 = vld [vmem:[%s14475_s28 + $0x228] ss:$12 sps:$4 sm:$0xff]   ;;  %v12984_v41 = vld [vmem:[%s14475_s28 + $0x244] ss:$12 sps:$4 sm:$0xff]   ;;  %v12982_v6 = vld [vmem:[%s14475_s28 + $0x240] ss:$12 sps:$4 sm:$0xff]  }
 0xfab   : > { %9581 = vmatprep.subr.bf16.mxu1 %v12945_v0  ;;  %v13011_v21 = vld [vmem:[%s14475_s28 + $0x338] ss:$12 sps:$4 sm:$0xff]   ;;  %v13015_v27 = vld [vmem:[%s14475_s28 + $0x410] ss:$12 sps:$4 sm:$0xff]   ;;  %v13020_v62 = vld [vmem:[%s14475_s28 + $0x428] ss:$12 sps:$4 sm:$0xff]  }
 0xfac   : > { %v12987_v8 = vld [vmem:[%s14475_s28 + $0x25c] ss:$12 sps:$4 sm:$0xff]   ;;  %v12985_v20 = vld [vmem:[%s14475_s28 + $0x258] ss:$12 sps:$4 sm:$0xff]   ;;  %v12990_v9 = vld [vmem:[%s14475_s28 + $0x274] ss:$12 sps:$4 sm:$0xff]  }
 0xfad   : > { %11515 = vmatpush3.bf16.msra.mxu0 %v12942_v46  ;;  %v13016_v29 = vld [vmem:[%s14475_s28 + $0x350] ss:$12 sps:$4 sm:$0xff]   ;;  %v13025_v46 = vld [vmem:[%s14475_s28 + $0x440] ss:$12 sps:$4 sm:$0xff]  }
 0xfae   : > { %11516 = vmatprep.subr.bf16.mxu0 %v12946_v25  ;;  %9582 = vmatpush1.bf16.msra.mxu1 %v12943_v36  ;;  %v12988_v0 = vld [vmem:[%s14475_s28 + $0x270] ss:$12 sps:$4 sm:$0xff]   ;;  %v12993_v36 = vld [vmem:[%s14475_s28 + $0x28c] ss:$12 sps:$4 sm:$0xff]  }
 0xfaf   : > { %9594 = vmatprep.subr.bf16.mxu1 %v12950_v50  ;;  %v13026_v25 = vld [vmem:[%s14475_s28 + $0x380] ss:$12 sps:$4 sm:$0xff]   ;;  %v12991_v50 = vld [vmem:[%s14475_s28 + $0x288] ss:$12 sps:$4 sm:$0xff]  }
 0xfb1   : > { %11517 = vmatpush3.bf16.msra.mxu0 %v12947_v57  ;;  %9584 = vmatmul.mubr.bf16.vlgmr.msra.gmra.mrb[72].mxu1 %v7602_v42  ;;  %v13005_v42 = vld [vmem:[%s14475_s28 + $0x3e0] ss:$12 sps:$4 sm:$0xff]   ;;  %v13030_v57 = vld [vmem:[%s14475_s28 + $0x458] ss:$12 sps:$4 sm:$0xff]  }
 0xfb2   : > { %11518 = vmatprep.subr.bf16.mxu0 %v12951_v63  ;;  %9595 = vmatpush1.bf16.msra.mxu1 %v12948_v12  ;;  %v12996_v12 = vld [vmem:[%s14475_s28 + $0x2a4] ss:$12 sps:$4 sm:$0xff]  }
 0xfb3   : > { %9626 = vmatprep.mubr.bf16.mxu1 %v7605_v19  ;;  %9596 = vmatprep.subr.bf16.mxu1 %v12955_v40  ;;  %v13021_v19 = vld [vmem:[%s14475_s28 + $0x368] ss:$12 sps:$4 sm:$0xff]   ;;  %v13031_v63 = vld [vmem:[%s14475_s28 + $0x398] ss:$12 sps:$4 sm:$0xff]   ;;  %v12994_v40 = vld [vmem:[%s14475_s28 + $0x2a0] ss:$12 sps:$4 sm:$0xff]  }
 0xfb5   : > { %11519 = vmatpush3.bf16.msra.mxu0 %v12952_v55  ;;  %v13035_v55 = vld [vmem:[%s14475_s28 + $0x470] ss:$12 sps:$4 sm:$0xff]  }
 0xfb6   : > { %11520 = vmatprep.subr.bf16.mxu0 %v12956_v39  ;;  %9597 = vmatpush1.bf16.msra.mxu1 %v12953_v54  ;;  %v12999_v54 = vld [vmem:[%s14475_s28 + $0x2bc] ss:$12 sps:$4 sm:$0xff]   ;;  %v5389_v39 = vrot.slane %v15751_v59, %v1359_v4  ;;  %v13004_v4 = vld [vmem:[%s14475_s28 + $0x2d4] ss:$12 sps:$4 sm:$0xff]  }
 0xfb7   : > { %9598 = vmatprep.subr.bf16.mxu1 %v12960_v60  ;;  %v13036_v60 = vld [vmem:[%s14475_s28 + $0x3b0] ss:$12 sps:$4 sm:$0xff]  }
 0xfb9   : > { %11521 = vmatpush3.bf16.msra.mxu0 %v12957_v52  ;;  %v5397_v52 = vrot.slane %v15751_v59, %v1367_v16 }
 0xfba   : > { %11522 = vmatprep.subr.bf16.mxu0 %v12961_v56  ;;  %9599 = vmatpush1.bf16.msra.mxu1 %v12958_v2  ;;  %v5393_v2 = vrot.slane %v15751_v59, %v1363_v11  ;;  %v12997_v56 = vld [vmem:[%s14475_s28 + $0x2b8] ss:$12 sps:$4 sm:$0xff]  }
 0xfbb   : > { %9600 = vmatprep.subr.bf16.mxu1 %v12965_v44  ;;  %v13040_v44 = vld [vmem:[%s14475_s28 + $0x548] ss:$12 sps:$4 sm:$0xff]  }
 0xfbd   : > { %11523 = vmatpush3.bf16.msra.mxu0 %v12962_v3  ;;  %v5401_v3 = vrot.slane %v15751_v59, %v1371_v14 }
 0xfbe   : > { %11524 = vmatprep.subr.bf16.mxu0 %v12966_v17  ;;  %9601 = vmatpush1.bf16.msra.mxu1 %v12963_v43 }
 0xfbf   : > { %9602 = vmatprep.subr.bf16.mxu1 %v12970_v1 }
 0xfc1   : > { %11525 = vmatpush3.bf16.msra.mxu0 %v12967_v47 }
 0xfc2   : > { %11526 = vmatprep.subr.bf16.mxu0 %v12971_v37  ;;  %9603 = vmatpush1.bf16.msra.mxu1 %v12968_v5 }
 0xfc3   : > { %9604 = vmatprep.subr.bf16.mxu1 %v12975_v31  ;;  %v13002_v31 = vld [vmem:[%s14475_s28 + $0x2d0] ss:$12 sps:$4 sm:$0xff]  }
 0xfc5   : > { %11527 = vmatpush3.bf16.msra.mxu0 %v12972_v53 }
 0xfc6   : > { %9605 = vmatpush1.bf16.msra.mxu1 %v12973_v35  ;;  %11534 = vmatprep.subr.bf16.mxu0 %v13000_v7 }
 0xfc7   : > { %9606 = vmatprep.subr.bf16.mxu1 %v12978_v13  ;;  %v13009_v13 = vld [vmem:[%s14475_s28 + $0x2ec] ss:$12 sps:$4 sm:$0xff]  }
 0xfc8   : > { %9883 = vmatmul.mubr.bf16.vlgmr.msra.gmra.mrb[92].mxu0 %v15843_v10 }
 0xfc9   : > { %11535 = vmatpush3.bf16.msra.mxu0 %v13001_v22 }
 0xfca   : > { %9607 = vmatpush1.bf16.msra.mxu1 %v12976_v45  ;;  %11536 = vmatprep.subr.bf16.mxu0 %v13005_v42 }
 0xfcb   : > { %9608 = vmatprep.subr.bf16.mxu1 %v12981_v48 }
 0xfcd   : > { %11537 = vmatpush3.bf16.msra.mxu0 %v13006_v61 }
 0xfce   : > { %9609 = vmatpush1.bf16.msra.mxu1 %v12979_v49  ;;  %11538 = vmatprep.subr.bf16.mxu0 %v13010_v24 }
 0xfcf   : > { %9610 = vmatprep.subr.bf16.mxu1 %v12984_v41 }
 0xfd1   : > { %11539 = vmatpush3.bf16.msra.mxu0 %v13011_v21 }
 0xfd2   : > { %9611 = vmatpush1.bf16.msra.mxu1 %v12982_v6  ;;  %11540 = vmatprep.subr.bf16.mxu0 %v13015_v27 }
 0xfd3   : > { %9612 = vmatprep.subr.bf16.mxu1 %v12987_v8 }
 0xfd5   : > { %11541 = vmatpush3.bf16.msra.mxu0 %v13016_v29 }
 0xfd6   : > { %9613 = vmatpush1.bf16.msra.mxu1 %v12985_v20  ;;  %11542 = vmatprep.subr.bf16.mxu0 %v13020_v62  ;;  %v13007_v20 = vld [vmem:[%s14475_s28 + $0x2e8] ss:$12 sps:$4 sm:$0xff]  }
 0xfd7   : > { %9614 = vmatprep.subr.bf16.mxu1 %v12990_v9 }
 0xfd9   : > { %11543 = vmatpush3.bf16.msra.mxu0 %v13021_v19 }
 0xfda   : > { %9615 = vmatpush1.bf16.msra.mxu1 %v12988_v0  ;;  %11544 = vmatprep.subr.bf16.mxu0 %v13025_v46  ;;  %v13014_v46 = vld [vmem:[%s14475_s28 + $0x304] ss:$12 sps:$4 sm:$0xff]  }
 0xfdb   : > { %9616 = vmatprep.subr.bf16.mxu1 %v12993_v36 }
 0xfdd   : > { %11545 = vmatpush3.bf16.msra.mxu0 %v13026_v25 }
 0xfde   : > { %9617 = vmatpush1.bf16.msra.mxu1 %v12991_v50  ;;  %11546 = vmatprep.subr.bf16.mxu0 %v13030_v57 }
 0xfdf   : > { %9618 = vmatprep.subr.bf16.mxu1 %v12996_v12 }
 0xfe1   : > { %11547 = vmatpush3.bf16.msra.mxu0 %v13031_v63 }
 0xfe2   : > { %9619 = vmatpush1.bf16.msra.mxu1 %v12994_v40  ;;  %11548 = vmatprep.subr.bf16.mxu0 %v13035_v55 }
 0xfe3   : > { %9620 = vmatprep.subr.bf16.mxu1 %v12999_v54 }
 0xfe4   : > { %v7119_v43 = vpop.f32.mrb[64].mxu1 }
 0xfe5   : > { %v15923_v17 = vadd.f32 %v7119_v43, %v5389_v39  ;;  %v7205_v1 = vpop.f32.mrb[80].mxu0  ;;  %v7121_v16 = vpop.f32.mrb[65].mxu1  ;;  %11549 = vmatpush3.bf16.msra.mxu0 %v13036_v60  ;;  %v13012_v60 = vld [vmem:[%s14475_s28 + $0x300] ss:$12 sps:$4 sm:$0xff]  }
 0xfe6   : > { %v15925_v47 = vadd.f32 %v7205_v1, %v5397_v52  ;;  %v15927_v11 = vadd.f32 %v7121_v16, %v5393_v2  ;;  %v7207_v5 = vpop.f32.mrb[81].mxu0  ;;  %v7123_v37 = vpop.f32.mrb[66].mxu1  ;;  %9621 = vmatpush1.bf16.msra.mxu1 %v12997_v56  ;;  %11556 = vmatprep.subr.bf16.mxu0 %v13040_v44 }
 0xfe7   : > { %v7414_v14 = vmul.f32 0.044715, %v15923_v17  ;;  %v15931_v59 = vadd.f32 %v7207_v5, %v5401_v3  ;;  %v15933_v53 = vadd.f32 %v7123_v37, %v5389_v39  ;;  %v7209_v35 = vpop.f32.mrb[82].mxu0  ;;  %v7125_v7 = vpop.f32.mrb[67].mxu1  ;;  %9622 = vmatprep.subr.bf16.mxu1 %v13004_v4  ;;  %v13017_v37 = vld [vmem:[%s14475_s28 + $0x318] ss:$12 sps:$4 sm:$0xff]  }
 0xfe8   : > { %v7416_v22 = vmul.f32 0.044715, %v15925_v47  ;;  %v7415_v45 = vmul.f32 0.044715, %v15927_v11  ;;  %v15938_v42 = vadd.f32 %v7209_v35, %v5397_v52  ;;  %v15940_v48 = vadd.f32 %v7125_v7, %v5393_v2  ;;  %v7211_v61 = vpop.f32.mrb[83].mxu0 }
 0xfe9   : > { %v7438_v49 = vmul.f32 %v15923_v17, %v7414_v14  ;;  %v7417_v24 = vmul.f32 0.044715, %v15931_v59  ;;  %v7426_v41 = vmul.f32 0.044715, %v15933_v53  ;;  %v15945_v21 = vadd.f32 %v7211_v61, %v5401_v3  ;;  %v13019_v3 = vld [vmem:[%s14475_s28 + $0x31c] ss:$12 sps:$4 sm:$0xff]  }
 0xfea   : > { %v7440_v6 = vmul.f32 %v15925_v47, %v7416_v22  ;;  %v7439_v27 = vmul.f32 %v15927_v11, %v7415_v45  ;;  %v7428_v8 = vmul.f32 0.044715, %v15938_v42  ;;  %v7427_v29 = vmul.f32 0.044715, %v15940_v48  ;;  %9623 = vmatpush1.bf16.msra.mxu1 %v13002_v31  ;;  %v13024_v7 = vld [vmem:[%s14475_s28 + $0x334] ss:$12 sps:$4 sm:$0xff]  }
 0xfeb   : > { %v7462_v62 = vmul.f32 %v15923_v17, %v7438_v49  ;;  %v7441_v9 = vmul.f32 %v15931_v59, %v7417_v24  ;;  %v7450_v19 = vmul.f32 %v15933_v53, %v7426_v41  ;;  %v7429_v0 = vmul.f32 0.044715, %v15945_v21  ;;  %9624 = vmatprep.subr.bf16.mxu1 %v13009_v13  ;;  %v13022_v61 = vld [vmem:[%s14475_s28 + $0x330] ss:$12 sps:$4 sm:$0xff]   ;;  %v13029_v49 = vld [vmem:[%s14475_s28 + $0x34c] ss:$12 sps:$4 sm:$0xff]  }
 0xfec   : > { %v7464_v36 = vmul.f32 %v15925_v47, %v7440_v6  ;;  %v7463_v25 = vmul.f32 %v15927_v11, %v7439_v27  ;;  %v7452_v50 = vmul.f32 %v15938_v42, %v7428_v8  ;;  %v7451_v57 = vmul.f32 %v15940_v48, %v7427_v29  ;;  %v13027_v24 = vld [vmem:[%s14475_s28 + $0x348] ss:$12 sps:$4 sm:$0xff]   ;;  %v13034_v6 = vld [vmem:[%s14475_s28 + $0x364] ss:$12 sps:$4 sm:$0xff]  }
 0xfed   : > { %v7486_v12 = vadd.f32 %v15923_v17, %v7462_v62  ;;  %v7474_v63 = vmul.f32 %v15933_v53, %v7450_v19  ;;  %v7453_v40 = vmul.f32 %v15945_v21, %v7429_v0  ;;  %v7465_v2 = vmul.f32 %v15931_v59, %v7441_v9  ;;  %v13032_v9 = vld [vmem:[%s14475_s28 + $0x360] ss:$12 sps:$4 sm:$0xff]  }
 0xfee   : > { %v7488_v55 = vadd.f32 %v15925_v47, %v7464_v36  ;;  %v7476_v54 = vmul.f32 %v15938_v42, %v7452_v50  ;;  %v7475_v39 = vmul.f32 %v15940_v48, %v7451_v57  ;;  %9625 = vmatpush1.bf16.msra.mxu1 %v13007_v20  ;;  %v7487_v1 = vadd.f32 %v15927_v11, %v7463_v25  ;;  %v13039_v25 = vld [vmem:[%s14475_s28 + $0x37c] ss:$12 sps:$4 sm:$0xff]  }
 0xfef   : > { %v7510_v52 = vmul.f32 0.7978846, %v7486_v12  ;;  %v7498_v56 = vadd.f32 %v15933_v53, %v7474_v63  ;;  %v7477_v44 = vmul.f32 %v15945_v21, %v7453_v40  ;;  %9637 = vmatprep.subr.bf16.mxu1 %v13014_v46  ;;  %v7489_v13 = vadd.f32 %v15931_v59, %v7465_v2 }
 0xff0   : > { %v7512_v4 = vmul.f32 0.7978846, %v7488_v55  ;;  %v7500_v43 = vadd.f32 %v15938_v42, %v7476_v54  ;;  %v7499_v16 = vadd.f32 %v15940_v48, %v7475_v39  ;;  %v7511_v14 = vmul.f32 0.7978846, %v7487_v1 }
 0xff1   : > { %13334 = vtanh.f32 %v7510_v52  ;;  %v7522_v5 = vmul.f32 0.7978846, %v7498_v56  ;;  %9627 = vmatmul.mubr.bf16.vlgmr.msra.gmra.mrb[72].mxu1 %v15843_v10  ;;  %v7501_v22 = vadd.f32 %v15945_v21, %v7477_v44  ;;  %v7513_v10 = vmul.f32 0.7978846, %v7489_v13  ;;  %v13046_v13 = vld [vmem:[%s14475_s28 + $0x4a0] ss:$12 sps:$4 sm:$0xff]  }
 0xff2   : > { %13336 = vtanh.f32 %v7512_v4  ;;  %v7524_v31 = vmul.f32 0.7978846, %v7500_v43  ;;  %9638 = vmatpush1.bf16.msra.mxu1 %v13012_v60  ;;  %v7523_v35 = vmul.f32 0.7978846, %v7499_v16  ;;  %v7390_v19 = vmul.f32 0.5, %v15923_v17 }
 0xff3   : > { %13338 = vtanh.f32 %v7522_v5  ;;  %9639 = vmatprep.subr.bf16.mxu1 %v13019_v3  ;;  %v7525_v45 = vmul.f32 0.7978846, %v7501_v22  ;;  %v7402_v0 = vmul.f32 0.5, %v15933_v53  ;;  %v7392_v50 = vmul.f32 0.5, %v15925_v47  ;;  %v13037_v47 = vld [vmem:[%s14475_s28 + $0x378] ss:$12 sps:$4 sm:$0xff]  }
 0xff4   : > { %13340 = vtanh.f32 %v7524_v31  ;;  %v7404_v57 = vmul.f32 0.5, %v15938_v42  ;;  %v7391_v40 = vmul.f32 0.5, %v15927_v11  ;;  %v7403_v17 = vmul.f32 0.5, %v15940_v48  ;;  %v13044_v16 = vld [vmem:[%s14475_s28 + $0x394] ss:$12 sps:$4 sm:$0xff]  }
 0xff5   : > { %13342 = vtanh.f32 %v7511_v14  ;;  %v7393_v11 = vmul.f32 0.5, %v15931_v59  ;;  %v7405_v44 = vmul.f32 0.5, %v15945_v21  ;;  %v13042_v59 = vld [vmem:[%s14475_s28 + $0x390] ss:$12 sps:$4 sm:$0xff]   ;;  %v13045_v21 = vld [vmem:[%s14475_s28 + $0x560] ss:$12 sps:$4 sm:$0xff]  }
 0xff6   : > { %9640 = vmatpush1.bf16.msra.mxu1 %v13017_v37  ;;  %13344 = vtanh.f32 %v7523_v35  ;;  %v13041_v37 = vld [vmem:[%s14475_s28 + $0x488] ss:$12 sps:$4 sm:$0xff]  }
 0xff7   : > { %9641 = vmatprep.subr.bf16.mxu1 %v13024_v7  ;;  %13346 = vtanh.f32 %v7513_v10  ;;  %v13049_v7 = vld [vmem:[%s14475_s28 + $0x3ac] ss:$12 sps:$4 sm:$0xff]   ;;  %v13047_v22 = vld [vmem:[%s14475_s28 + $0x3a8] ss:$12 sps:$4 sm:$0xff]  }
 0xff8   : > { %13348 = vtanh.f32 %v7525_v45  ;;  %v13050_v10 = vld [vmem:[%s14475_s28 + $0x578] ss:$12 sps:$4 sm:$0xff]  }
 0xff9   : > { %v13054_v45 = vld [vmem:[%s14475_s28 + $0x3c4] ss:$12 sps:$4 sm:$0xff]  }
 0xffa   : > { %9642 = vmatpush1.bf16.msra.mxu1 %v13022_v61  ;;  %v13051_v61 = vld [vmem:[%s14475_s28 + $0x4b8] ss:$12 sps:$4 sm:$0xff]  }
 0xffb   : > { %v13335_v41 = vpop.eup %13334  ;;  %9643 = vmatprep.subr.bf16.mxu1 %v13029_v49  ;;  %v13052_v49 = vld [vmem:[%s14475_s28 + $0x3c0] ss:$12 sps:$4 sm:$0xff]  }
 0xffc   : > { %v13337_v27 = vpop.eup %13336  ;;  %v7558_v8 = vadd.f32 1.0, %v13335_v41  ;;  %v13059_v41 = vld [vmem:[%s14475_s28 + $0x3dc] ss:$12 sps:$4 sm:$0xff]  }
 0xffd   : > { %v13339_v29 = vpop.eup %13338  ;;  %v7560_v20 = vadd.f32 1.0, %v13337_v27  ;;  %v13057_v27 = vld [vmem:[%s14475_s28 + $0x3d8] ss:$12 sps:$4 sm:$0xff]  }
 0xffe   : > { %v13341_v62 = vpop.eup %13340  ;;  %9644 = vmatpush1.bf16.msra.mxu1 %v13027_v24  ;;  %v7570_v46 = vadd.f32 1.0, %v13339_v29  ;;  %v7582_v54 = vmul.f32 %v7558_v8, %v7390_v19  ;;  %v13055_v24 = vld [vmem:[%s14475_s28 + $0x590] ss:$12 sps:$4 sm:$0xff]   ;;  %v13060_v8 = vld [vmem:[%s14475_s28 + $0x5a8] ss:$12 sps:$4 sm:$0xff]  }
 0xfff   : > { %v13343_v36 = vpop.eup %13342  ;;  %9645 = vmatprep.subr.bf16.mxu1 %v13034_v6  ;;  %v7572_v12 = vadd.f32 1.0, %v13341_v62  ;;  %v7584_v52 = vmul.f32 %v7560_v20, %v7392_v50  ;;  %v13056_v6 = vld [vmem:[%s14475_s28 + $0x4d0] ss:$12 sps:$4 sm:$0xff]   ;;  %v13064_v29 = vld [vmem:[%s14475_s28 + $0x3f4] ss:$12 sps:$4 sm:$0xff]  }
0x1000   : > { %v13345_v63 = vpop.eup %13344  ;;  %v7559_v55 = vadd.f32 1.0, %v13343_v36  ;;  %v7594_v39 = vmul.f32 %v7570_v46, %v7402_v0  ;;  %v13061_v20 = vld [vmem:[%s14475_s28 + $0x4e8] ss:$12 sps:$4 sm:$0xff]   ;;  %v13062_v62 = vld [vmem:[%s14475_s28 + $0x3f0] ss:$12 sps:$4 sm:$0xff]  }
0x1001   : > { %v13347_v60 = vpop.eup %13346  ;;  %v7571_v53 = vadd.f32 1.0, %v13345_v63  ;;  %v7596_v2 = vmul.f32 %v7572_v12, %v7404_v57  ;;  %v13069_v19 = vld [vmem:[%s14475_s28 + $0x40c] ss:$12 sps:$4 sm:$0xff]   ;;  %v13067_v46 = vld [vmem:[%s14475_s28 + $0x408] ss:$12 sps:$4 sm:$0xff]  }
0x1002   : > { %v13349_v56 = vpop.eup %13348  ;;  %9646 = vmatpush1.bf16.msra.mxu1 %v13032_v9  ;;  %v15993_v42 = vpack.c.bf16 %v7594_v39, %v7582_v54  ;;  %v7561_v3 = vadd.f32 1.0, %v13347_v60  ;;  %v7583_v48 = vmul.f32 %v7559_v55, %v7391_v40  ;;  %v13065_v9 = vld [vmem:[%s14475_s28 + $0x5c0] ss:$12 sps:$4 sm:$0xff]   ;;  %v13070_v36 = vld [vmem:[%s14475_s28 + $0x5d8] ss:$12 sps:$4 sm:$0xff]  }
0x1003   : > { %9647 = vmatprep.subr.bf16.mxu1 %v13039_v25  ;;  %v7595_v4 = vmul.f32 %v7571_v53, %v7403_v17  ;;  %v7573_v43 = vadd.f32 1.0, %v13349_v56  ;;  %v15997_v1 = vpack.c.bf16 %v7596_v2, %v7584_v52  ;;  %v13066_v0 = vld [vmem:[%s14475_s28 + $0x500] ss:$12 sps:$4 sm:$0xff]   ;;  %v13074_v25 = vld [vmem:[%s14475_s28 + $0x424] ss:$12 sps:$4 sm:$0xff]  }
0x1004   : > { %v7585_v31 = vmul.f32 %v7561_v3, %v7393_v11  ;;  %v13071_v50 = vld [vmem:[%s14475_s28 + $0x518] ss:$12 sps:$4 sm:$0xff]   ;;  %v13072_v57 = vld [vmem:[%s14475_s28 + $0x420] ss:$12 sps:$4 sm:$0xff]   ;;  %v13075_v12 = vld [vmem:[%s14475_s28 + $0x5f0] ss:$12 sps:$4 sm:$0xff]  }
0x1005   : > { %v7607_v5 = vpack.c.bf16 %v7595_v4, %v7583_v48  ;;  %v7597_v14 = vmul.f32 %v7573_v43, %v7405_v44  ;;  %v13079_v63 = vld [vmem:[%s14475_s28 + $0x43c] ss:$12 sps:$4 sm:$0xff]   ;;  %v13077_v55 = vld [vmem:[%s14475_s28 + $0x438] ss:$12 sps:$4 sm:$0xff]   ;;  %v13082_v39 = vld [vmem:[%s14475_s28 + $0x454] ss:$12 sps:$4 sm:$0xff]  }
0x1006   : > { %9648 = vmatpush1.bf16.msra.mxu1 %v13037_v47  ;;  %v13076_v40 = vld [vmem:[%s14475_s28 + $0x530] ss:$12 sps:$4 sm:$0xff]   ;;  %v13104_v54 = vld [vmem:[%s14475_s28 + $0x6c8] ss:$12 sps:$4 sm:$0xff]   ;;  %v13109_v53 = vld [vmem:[%s14475_s28 + $0x6e0] ss:$12 sps:$4 sm:$0xff]  }
0x1007   : > { %9669 = vmatprep.mubr.bf16.mxu1 %v7607_v5  ;;  %9923 = vmatprep.mubr.bf16.mxu0 %v7607_v5  ;;  %v16003_v35 = vpack.c.bf16 %v7597_v14, %v7585_v31  ;;  %v13105_v60 = vld [vmem:[%s14475_s28 + $0x608] ss:$12 sps:$4 sm:$0xff]   ;;  %v13080_v17 = vld [vmem:[%s14475_s28 + $0x450] ss:$12 sps:$4 sm:$0xff]   ;;  %v13085_v52 = vld [vmem:[%s14475_s28 + $0x46c] ss:$12 sps:$4 sm:$0xff]  }
0x1008   : > { %9924 = vmatmul.mubr.bf16.vlgmr.msra.gmra.mrb[96].mxu0 %v15993_v42  ;;  %9649 = vmatprep.subr.bf16.mxu1 %v13044_v16  ;;  %v13110_v2 = vld [vmem:[%s14475_s28 + $0x620] ss:$12 sps:$4 sm:$0xff]   ;;  %v13083_v56 = vld [vmem:[%s14475_s28 + $0x468] ss:$12 sps:$4 sm:$0xff]   ;;  %v13114_v47 = vld [vmem:[%s14475_s28 + $0x6f8] ss:$12 sps:$4 sm:$0xff]  }
0x1009   : > { %11557 = vmatpush3.bf16.msra.mxu0 %v13041_v37  ;;  %9964 = vmatprep.mubr.bf16.mxu0 %v16003_v35  ;;  %v13088_v11 = vld [vmem:[%s14475_s28 + $0x484] ss:$12 sps:$4 sm:$0xff]   ;;  %v13086_v3 = vld [vmem:[%s14475_s28 + $0x480] ss:$12 sps:$4 sm:$0xff]   ;;  %v13091_v48 = vld [vmem:[%s14475_s28 + $0x49c] ss:$12 sps:$4 sm:$0xff]  }
0x100a   : > { %11558 = vmatprep.subr.bf16.mxu0 %v13045_v21  ;;  %9650 = vmatpush1.bf16.msra.mxu1 %v13042_v59  ;;  %v13115_v44 = vld [vmem:[%s14475_s28 + $0x638] ss:$12 sps:$4 sm:$0xff]   ;;  %v13119_v4 = vld [vmem:[%s14475_s28 + $0x710] ss:$12 sps:$4 sm:$0xff]   ;;  %v13124_v5 = vld [vmem:[%s14475_s28 + $0x728] ss:$12 sps:$4 sm:$0xff]  }
0x100b   : > { %9651 = vmatprep.subr.bf16.mxu1 %v13049_v7  ;;  %v13120_v43 = vld [vmem:[%s14475_s28 + $0x650] ss:$12 sps:$4 sm:$0xff]   ;;  %v13089_v16 = vld [vmem:[%s14475_s28 + $0x498] ss:$12 sps:$4 sm:$0xff]   ;;  %v13094_v37 = vld [vmem:[%s14475_s28 + $0x4b4] ss:$12 sps:$4 sm:$0xff]  }
0x100c   : > { %v13125_v31 = vld [vmem:[%s14475_s28 + $0x668] ss:$12 sps:$4 sm:$0xff]   ;;  %v13129_v14 = vld [vmem:[%s14475_s28 + $0x740] ss:$12 sps:$4 sm:$0xff]   ;;  %v13134_v7 = vld [vmem:[%s14475_s28 + $0x758] ss:$12 sps:$4 sm:$0xff]  }
0x100d   : > { %11559 = vmatpush3.bf16.msra.mxu0 %v13046_v13  ;;  %v13097_v59 = vld [vmem:[%s14475_s28 + $0x4cc] ss:$12 sps:$4 sm:$0xff]   ;;  %v13100_v13 = vld [vmem:[%s14475_s28 + $0x4e4] ss:$12 sps:$4 sm:$0xff]  }
0x100e   : > { %11560 = vmatprep.subr.bf16.mxu0 %v13050_v10  ;;  %9652 = vmatpush1.bf16.msra.mxu1 %v13047_v22  ;;  %v13130_v21 = vld [vmem:[%s14475_s28 + $0x680] ss:$12 sps:$4 sm:$0xff]   ;;  %v13135_v22 = vld [vmem:[%s14475_s28 + $0x698] ss:$12 sps:$4 sm:$0xff]  }
0x100f   : > { %9653 = vmatprep.subr.bf16.mxu1 %v13054_v45  ;;  %v13098_v10 = vld [vmem:[%s14475_s28 + $0x4e0] ss:$12 sps:$4 sm:$0xff]   ;;  %v5367_v45 = vld [vmem:[%s14472_s24 + $0x8] sm:$0xf] }
0x1011   : > { %11561 = vmatpush3.bf16.msra.mxu0 %v13051_v61  ;;  %v13139_v61 = vld [vmem:[%s14475_s28 + $0x770] ss:$12 sps:$4 sm:$0xff]  }
0x1012   : > { %11562 = vmatprep.subr.bf16.mxu0 %v13055_v24  ;;  %9654 = vmatpush1.bf16.msra.mxu1 %v13052_v49  ;;  %v13103_v49 = vld [vmem:[%s14475_s28 + $0x4fc] ss:$12 sps:$4 sm:$0xff]   ;;  %v5405_v24 = vrot.slane %v5367_v45, %v14606_v34 }
0x1013   : > { %9655 = vmatprep.subr.bf16.mxu1 %v13059_v41  ;;  %v13140_v41 = vld [vmem:[%s14475_s28 + $0x6b0] ss:$12 sps:$4 sm:$0xff]  }
0x1015   : > { %11563 = vmatpush3.bf16.msra.mxu0 %v13056_v6  ;;  %v5413_v6 = vrot.slane %v5367_v45, %v14603_v33 }
0x1016   : > { %11564 = vmatprep.subr.bf16.mxu0 %v13060_v8  ;;  %9656 = vmatpush1.bf16.msra.mxu1 %v13057_v27  ;;  %v5409_v27 = vrot.slane %v5367_v45, %v14600_v32  ;;  %v13101_v8 = vld [vmem:[%s14475_s28 + $0x4f8] ss:$12 sps:$4 sm:$0xff]  }
0x1017   : > { %9657 = vmatprep.subr.bf16.mxu1 %v13064_v29  ;;  %v13144_v29 = vld [vmem:[%s14475_s28 + $0x848] ss:$12 sps:$4 sm:$0xff]  }
0x1019   : > { %11565 = vmatpush3.bf16.msra.mxu0 %v13061_v20  ;;  %v5417_v20 = vrot.slane %v5367_v45, %v14846_v15 }
0x101a   : > { %11566 = vmatprep.subr.bf16.mxu0 %v13065_v9  ;;  %9658 = vmatpush1.bf16.msra.mxu1 %v13062_v62  ;;  %v13108_v62 = vld [vmem:[%s14475_s28 + $0x514] ss:$12 sps:$4 sm:$0xff]  }
0x101b   : > { %9659 = vmatprep.subr.bf16.mxu1 %v13069_v19 }
0x101d   : > { %11567 = vmatpush3.bf16.msra.mxu0 %v13066_v0 }
0x101e   : > { %11568 = vmatprep.subr.bf16.mxu0 %v13070_v36  ;;  %9660 = vmatpush1.bf16.msra.mxu1 %v13067_v46 }
0x101f   : > { %9661 = vmatprep.subr.bf16.mxu1 %v13074_v25 }
0x1021   : > { %11569 = vmatpush3.bf16.msra.mxu0 %v13071_v50 }
0x1022   : > { %11570 = vmatprep.subr.bf16.mxu0 %v13075_v12  ;;  %9662 = vmatpush1.bf16.msra.mxu1 %v13072_v57  ;;  %v13106_v12 = vld [vmem:[%s14475_s28 + $0x510] ss:$12 sps:$4 sm:$0xff]  }
0x1023   : > { %9663 = vmatprep.subr.bf16.mxu1 %v13079_v63 }
0x1025   : > { %11571 = vmatpush3.bf16.msra.mxu0 %v13076_v40 }
0x1026   : > { %9664 = vmatpush1.bf16.msra.mxu1 %v13077_v55  ;;  %11578 = vmatprep.subr.bf16.mxu0 %v13104_v54 }
0x1027   : > { %9665 = vmatprep.subr.bf16.mxu1 %v13082_v39  ;;  %v13113_v39 = vld [vmem:[%s14475_s28 + $0x52c] ss:$12 sps:$4 sm:$0xff]  }
0x1028   : > { %9965 = vmatmul.mubr.bf16.vlgmr.msra.gmra.mrb[100].mxu0 %v15997_v1 }
0x1029   : > { %11579 = vmatpush3.bf16.msra.mxu0 %v13105_v60 }
0x102a   : > { %9666 = vmatpush1.bf16.msra.mxu1 %v13080_v17  ;;  %11580 = vmatprep.subr.bf16.mxu0 %v13109_v53 }
0x102b   : > { %9667 = vmatprep.subr.bf16.mxu1 %v13085_v52 }
0x102d   : > { %11581 = vmatpush3.bf16.msra.mxu0 %v13110_v2 }
0x102e   : > { %9668 = vmatpush1.bf16.msra.mxu1 %v13083_v56  ;;  %11582 = vmatprep.subr.bf16.mxu0 %v13114_v47 }
0x102f   : > { %9680 = vmatprep.subr.bf16.mxu1 %v13088_v11 }
0x1031   : > { %9670 = vmatmul.mubr.bf16.vlgmr.msra.gmra.mrb[72].mxu1 %v15993_v42  ;;  %11583 = vmatpush3.bf16.msra.mxu0 %v13115_v44  ;;  %v13092_v42 = vld [vmem:[%s14475_s28 + $0x4b0] ss:$12 sps:$4 sm:$0xff]  }
0x1032   : > { %9681 = vmatpush1.bf16.msra.mxu1 %v13086_v3  ;;  %9712 = vmatprep.mubr.bf16.mxu1 %v16003_v35  ;;  %v13095_v35 = vld [vmem:[%s14475_s28 + $0x4c8] ss:$12 sps:$4 sm:$0xff]  }
0x1033   : > { %9682 = vmatprep.subr.bf16.mxu1 %v13091_v48  ;;  %11584 = vmatprep.subr.bf16.mxu0 %v13119_v4 }
0x1035   : > { %11585 = vmatpush3.bf16.msra.mxu0 %v13120_v43 }
0x1036   : > { %9683 = vmatpush1.bf16.msra.mxu1 %v13089_v16  ;;  %11586 = vmatprep.subr.bf16.mxu0 %v13124_v5  ;;  %v13111_v16 = vld [vmem:[%s14475_s28 + $0x528] ss:$12 sps:$4 sm:$0xff]  }
0x1037   : > { %9684 = vmatprep.subr.bf16.mxu1 %v13094_v37 }
0x1039   : > { %11587 = vmatpush3.bf16.msra.mxu0 %v13125_v31 }
0x103a   : > { %9685 = vmatpush1.bf16.msra.mxu1 %v13092_v42  ;;  %11588 = vmatprep.subr.bf16.mxu0 %v13129_v14  ;;  %v13118_v14 = vld [vmem:[%s14475_s28 + $0x544] ss:$12 sps:$4 sm:$0xff]  }
0x103b   : > { %9686 = vmatprep.subr.bf16.mxu1 %v13097_v59 }
0x103d   : > { %11589 = vmatpush3.bf16.msra.mxu0 %v13130_v21 }
0x103e   : > { %9687 = vmatpush1.bf16.msra.mxu1 %v13095_v35  ;;  %11590 = vmatprep.subr.bf16.mxu0 %v13134_v7 }
0x103f   : > { %9688 = vmatprep.subr.bf16.mxu1 %v13100_v13 }
0x1041   : > { %11591 = vmatpush3.bf16.msra.mxu0 %v13135_v22 }
0x1042   : > { %9689 = vmatpush1.bf16.msra.mxu1 %v13098_v10  ;;  %11592 = vmatprep.subr.bf16.mxu0 %v13139_v61 }
0x1043   : > { %9690 = vmatprep.subr.bf16.mxu1 %v13103_v49 }
0x1044   : > { %v7291_v9 = vpop.f32.mrb[68].mxu1 }
0x1045   : > { %v16076_v19 = vadd.f32 %v7291_v9, %v5405_v24  ;;  %v7377_v0 = vpop.f32.mrb[84].mxu0  ;;  %v7293_v46 = vpop.f32.mrb[69].mxu1  ;;  %11593 = vmatpush3.bf16.msra.mxu0 %v13140_v41 }
0x1046   : > { %v16078_v36 = vadd.f32 %v7377_v0, %v5413_v6  ;;  %v16080_v25 = vadd.f32 %v7293_v46, %v5409_v27  ;;  %v7379_v50 = vpop.f32.mrb[85].mxu0  ;;  %v7295_v57 = vpop.f32.mrb[70].mxu1  ;;  %9691 = vmatpush1.bf16.msra.mxu1 %v13101_v8  ;;  %11600 = vmatprep.subr.bf16.mxu0 %v13144_v29  ;;  %v13123_v29 = vld [vmem:[%s14475_s28 + $0x55c] ss:$12 sps:$4 sm:$0xff]  }
0x1047   : > { %v7418_v15 = vmul.f32 0.044715, %v16076_v19  ;;  %v16084_v63 = vadd.f32 %v7379_v50, %v5417_v20  ;;  %v16086_v40 = vadd.f32 %v7295_v57, %v5405_v24  ;;  %v7381_v55 = vpop.f32.mrb[86].mxu0  ;;  %v7297_v54 = vpop.f32.mrb[71].mxu1  ;;  %9692 = vmatprep.subr.bf16.mxu1 %v13108_v62  ;;  %v13116_v24 = vld [vmem:[%s14475_s28 + $0x540] ss:$12 sps:$4 sm:$0xff]  }
0x1048   : > { %v7420_v60 = vmul.f32 0.044715, %v16078_v36  ;;  %v7419_v17 = vmul.f32 0.044715, %v16080_v25  ;;  %v16091_v53 = vadd.f32 %v7381_v55, %v5413_v6  ;;  %v16093_v52 = vadd.f32 %v7297_v54, %v5409_v27  ;;  %v7383_v2 = vpop.f32.mrb[87].mxu0 }
0x1049   : > { %v7442_v56 = vmul.f32 %v16076_v19, %v7418_v15  ;;  %v7421_v47 = vmul.f32 0.044715, %v16084_v63  ;;  %v7430_v11 = vmul.f32 0.044715, %v16086_v40  ;;  %v16098_v44 = vadd.f32 %v7383_v2, %v5417_v20  ;;  %v13121_v50 = vld [vmem:[%s14475_s28 + $0x558] ss:$12 sps:$4 sm:$0xff]  }
0x104a   : > { %v7444_v3 = vmul.f32 %v16078_v36, %v7420_v60  ;;  %v7443_v48 = vmul.f32 %v16080_v25, %v7419_v17  ;;  %v7432_v4 = vmul.f32 0.044715, %v16091_v53  ;;  %v7431_v43 = vmul.f32 0.044715, %v16093_v52  ;;  %9693 = vmatpush1.bf16.msra.mxu1 %v13106_v12  ;;  %v13128_v55 = vld [vmem:[%s14475_s28 + $0x574] ss:$12 sps:$4 sm:$0xff]  }
0x104b   : > { %v7466_v5 = vmul.f32 %v16076_v19, %v7442_v56  ;;  %v7445_v37 = vmul.f32 %v16084_v63, %v7421_v47  ;;  %v7454_v31 = vmul.f32 %v16086_v40, %v7430_v11  ;;  %v7433_v42 = vmul.f32 0.044715, %v16098_v44  ;;  %9694 = vmatprep.subr.bf16.mxu1 %v13113_v39  ;;  %v13126_v2 = vld [vmem:[%s14475_s28 + $0x570] ss:$12 sps:$4 sm:$0xff]   ;;  %v13133_v56 = vld [vmem:[%s14475_s28 + $0x58c] ss:$12 sps:$4 sm:$0xff]  }
0x104c   : > { %v7468_v59 = vmul.f32 %v16078_v36, %v7444_v3  ;;  %v7467_v21 = vmul.f32 %v16080_v25, %v7443_v48  ;;  %v7456_v35 = vmul.f32 %v16091_v53, %v7432_v4  ;;  %v7455_v7 = vmul.f32 %v16093_v52, %v7431_v43  ;;  %v13131_v47 = vld [vmem:[%s14475_s28 + $0x588] ss:$12 sps:$4 sm:$0xff]   ;;  %v13138_v3 = vld [vmem:[%s14475_s28 + $0x5a4] ss:$12 sps:$4 sm:$0xff]  }
0x104d   : > { %v7490_v13 = vadd.f32 %v16076_v19, %v7466_v5  ;;  %v7478_v22 = vmul.f32 %v16086_v40, %v7454_v31  ;;  %v7457_v10 = vmul.f32 %v16098_v44, %v7433_v42  ;;  %v7469_v6 = vmul.f32 %v16084_v63, %v7445_v37  ;;  %v13136_v37 = vld [vmem:[%s14475_s28 + $0x5a0] ss:$12 sps:$4 sm:$0xff]  }
0x104e   : > { %v7492_v45 = vadd.f32 %v16078_v36, %v7468_v59  ;;  %v7480_v61 = vmul.f32 %v16091_v53, %v7456_v35  ;;  %v7479_v49 = vmul.f32 %v16093_v52, %v7455_v7  ;;  %9695 = vmatpush1.bf16.msra.mxu1 %v13111_v16  ;;  %v7491_v9 = vadd.f32 %v16080_v25, %v7467_v21  ;;  %v13143_v21 = vld [vmem:[%s14475_s28 + $0x5bc] ss:$12 sps:$4 sm:$0xff]  }
0x104f   : > { %v7514_v41 = vmul.f32 0.7978846, %v7490_v13  ;;  %v7502_v27 = vadd.f32 %v16086_v40, %v7478_v22  ;;  %v7481_v8 = vmul.f32 %v16098_v44, %v7457_v10  ;;  %9696 = vmatprep.subr.bf16.mxu1 %v13118_v14  ;;  %v7493_v54 = vadd.f32 %v16084_v63, %v7469_v6 }
0x1050   : > { %v7516_v20 = vmul.f32 0.7978846, %v7492_v45  ;;  %v7504_v62 = vadd.f32 %v16091_v53, %v7480_v61  ;;  %v7503_v0 = vadd.f32 %v16093_v52, %v7479_v49  ;;  %v7515_v12 = vmul.f32 0.7978846, %v7491_v9  ;;  %v13148_v9 = vld [vmem:[%s14475_s28 + $0x5d4] ss:$12 sps:$4 sm:$0xff]  }
0x1051   : > { %13350 = vtanh.f32 %v7514_v41  ;;  %v7526_v46 = vmul.f32 0.7978846, %v7502_v27  ;;  %v7505_v39 = vadd.f32 %v16098_v44, %v7481_v8  ;;  %v7517_v60 = vmul.f32 0.7978846, %v7493_v54  ;;  %v13150_v54 = vld [vmem:[%s14475_s28 + $0x7a0] ss:$12 sps:$4 sm:$0xff]  }
0x1052   : > { %13352 = vtanh.f32 %v7516_v20  ;;  %v7528_v57 = vmul.f32 0.7978846, %v7504_v62  ;;  %9697 = vmatpush1.bf16.msra.mxu1 %v13116_v24  ;;  %v7527_v15 = vmul.f32 0.7978846, %v7503_v0  ;;  %v7394_v31 = vmul.f32 0.5, %v16076_v19 }
0x1053   : > { %13354 = vtanh.f32 %v7526_v46  ;;  %9698 = vmatprep.subr.bf16.mxu1 %v13123_v29  ;;  %v7529_v17 = vmul.f32 0.7978846, %v7505_v39  ;;  %v7406_v42 = vmul.f32 0.5, %v16086_v40  ;;  %v7396_v35 = vmul.f32 0.5, %v16078_v36  ;;  %v13141_v36 = vld [vmem:[%s14475_s28 + $0x5b8] ss:$12 sps:$4 sm:$0xff]  }
0x1054   : > { %13356 = vtanh.f32 %v7528_v57  ;;  %v7408_v7 = vmul.f32 0.5, %v16091_v53  ;;  %v7395_v10 = vmul.f32 0.5, %v16080_v25  ;;  %v7407_v19 = vmul.f32 0.5, %v16093_v52  ;;  %v13151_v39 = vld [vmem:[%s14475_s28 + $0x5e8] ss:$12 sps:$4 sm:$0xff]  }
0x1055   : > { %13358 = vtanh.f32 %v7515_v12  ;;  %v7397_v25 = vmul.f32 0.5, %v16084_v63  ;;  %v7409_v8 = vmul.f32 0.5, %v16098_v44  ;;  %v13146_v63 = vld [vmem:[%s14475_s28 + $0x5d0] ss:$12 sps:$4 sm:$0xff]   ;;  %v13149_v44 = vld [vmem:[%s14475_s28 + $0x860] ss:$12 sps:$4 sm:$0xff]  }
0x1056   : > { %9699 = vmatpush1.bf16.msra.mxu1 %v13121_v50  ;;  %13360 = vtanh.f32 %v7527_v15  ;;  %v13145_v50 = vld [vmem:[%s14475_s28 + $0x788] ss:$12 sps:$4 sm:$0xff]  }
0x1057   : > { %9700 = vmatprep.subr.bf16.mxu1 %v13128_v55  ;;  %13362 = vtanh.f32 %v7517_v60  ;;  %v13153_v55 = vld [vmem:[%s14475_s28 + $0x5ec] ss:$12 sps:$4 sm:$0xff]  }
0x1058   : > { %13364 = vtanh.f32 %v7529_v17  ;;  %v13154_v60 = vld [vmem:[%s14475_s28 + $0x878] ss:$12 sps:$4 sm:$0xff]  }
0x1059   : > { %v13158_v17 = vld [vmem:[%s14475_s28 + $0x604] ss:$12 sps:$4 sm:$0xff]  }
0x105a   : > { %9701 = vmatpush1.bf16.msra.mxu1 %v13126_v2  ;;  %v13155_v2 = vld [vmem:[%s14475_s28 + $0x7b8] ss:$12 sps:$4 sm:$0xff]  }
0x105b   : > { %v13351_v11 = vpop.eup %13350  ;;  %9702 = vmatprep.subr.bf16.mxu1 %v13133_v56  ;;  %v13156_v56 = vld [vmem:[%s14475_s28 + $0x600] ss:$12 sps:$4 sm:$0xff]  }
0x105c   : > { %v13353_v48 = vpop.eup %13352  ;;  %v7562_v4 = vadd.f32 1.0, %v13351_v11  ;;  %v13163_v11 = vld [vmem:[%s14475_s28 + $0x61c] ss:$12 sps:$4 sm:$0xff]  }
0x105d   : > { %v13355_v43 = vpop.eup %13354  ;;  %v7564_v16 = vadd.f32 1.0, %v13353_v48  ;;  %v13161_v48 = vld [vmem:[%s14475_s28 + $0x618] ss:$12 sps:$4 sm:$0xff]  }
0x105e   : > { %v13357_v5 = vpop.eup %13356  ;;  %9703 = vmatpush1.bf16.msra.mxu1 %v13131_v47  ;;  %v7574_v14 = vadd.f32 1.0, %v13355_v43  ;;  %v7586_v61 = vmul.f32 %v7562_v4, %v7394_v31  ;;  %v13159_v47 = vld [vmem:[%s14475_s28 + $0x890] ss:$12 sps:$4 sm:$0xff]   ;;  %v13164_v4 = vld [vmem:[%s14475_s28 + $0x8a8] ss:$12 sps:$4 sm:$0xff]  }
0x105f   : > { %v13359_v59 = vpop.eup %13358  ;;  %9704 = vmatprep.subr.bf16.mxu1 %v13138_v3  ;;  %v7576_v13 = vadd.f32 1.0, %v13357_v5  ;;  %v7588_v41 = vmul.f32 %v7564_v16, %v7396_v35  ;;  %v13160_v3 = vld [vmem:[%s14475_s28 + $0x7d0] ss:$12 sps:$4 sm:$0xff]   ;;  %v13168_v43 = vld [vmem:[%s14475_s28 + $0x634] ss:$12 sps:$4 sm:$0xff]  }
0x1060   : > { %v13361_v22 = vpop.eup %13360  ;;  %v7563_v45 = vadd.f32 1.0, %v13359_v59  ;;  %v7598_v49 = vmul.f32 %v7574_v14, %v7406_v42  ;;  %v13165_v16 = vld [vmem:[%s14475_s28 + $0x7e8] ss:$12 sps:$4 sm:$0xff]   ;;  %v13166_v5 = vld [vmem:[%s14475_s28 + $0x630] ss:$12 sps:$4 sm:$0xff]  }
0x1061   : > { %v13363_v24 = vpop.eup %13362  ;;  %v7575_v40 = vadd.f32 1.0, %v13361_v22  ;;  %v7600_v6 = vmul.f32 %v7576_v13, %v7408_v7  ;;  %v13170_v31 = vld [vmem:[%s14475_s28 + $0x800] ss:$12 sps:$4 sm:$0xff]   ;;  %v13171_v42 = vld [vmem:[%s14475_s28 + $0x648] ss:$12 sps:$4 sm:$0xff]  }
0x1062   : > { %v13365_v27 = vpop.eup %13364  ;;  %9705 = vmatpush1.bf16.msra.mxu1 %v13136_v37  ;;  %v16145_v53 = vpack.c.bf16 %v7598_v49, %v7586_v61  ;;  %v7565_v29 = vadd.f32 1.0, %v13363_v24  ;;  %v7587_v20 = vmul.f32 %v7563_v45, %v7395_v10  ;;  %v13169_v37 = vld [vmem:[%s14475_s28 + $0x8c0] ss:$12 sps:$4 sm:$0xff]   ;;  %v13174_v14 = vld [vmem:[%s14475_s28 + $0x8d8] ss:$12 sps:$4 sm:$0xff]  }
0x1063   : > { %9706 = vmatprep.subr.bf16.mxu1 %v13143_v21  ;;  %v7599_v52 = vmul.f32 %v7575_v40, %v7407_v19  ;;  %v7577_v62 = vadd.f32 1.0, %v13365_v27  ;;  %v16150_v0 = vpack.c.bf16 %v7600_v6, %v7588_v41  ;;  %v13178_v21 = vld [vmem:[%s14475_s28 + $0x664] ss:$12 sps:$4 sm:$0xff]   ;;  %v13176_v45 = vld [vmem:[%s14475_s28 + $0x660] ss:$12 sps:$4 sm:$0xff]  }
0x1064   : > { %v7589_v57 = vmul.f32 %v7565_v29, %v7397_v25  ;;  %v13175_v22 = vld [vmem:[%s14475_s28 + $0x818] ss:$12 sps:$4 sm:$0xff]   ;;  %v13179_v61 = vld [vmem:[%s14475_s28 + $0x8f0] ss:$12 sps:$4 sm:$0xff]   ;;  %v13186_v41 = vld [vmem:[%s14475_s28 + $0x694] ss:$12 sps:$4 sm:$0xff]  }
0x1065   : > { %v7611_v46 = vpack.c.bf16 %v7599_v52, %v7587_v20  ;;  %v7601_v12 = vmul.f32 %v7577_v62, %v7409_v8  ;;  %v13183_v24 = vld [vmem:[%s14475_s28 + $0x67c] ss:$12 sps:$4 sm:$0xff]   ;;  %v13181_v40 = vld [vmem:[%s14475_s28 + $0x678] ss:$12 sps:$4 sm:$0xff]   ;;  %v13190_v8 = vld [vmem:[%s14475_s28 + $0x6c0] ss:$12 sps:$4 sm:$0xff]  }
0x1066   : > { %9707 = vmatpush1.bf16.msra.mxu1 %v13141_v36  ;;  %v13180_v19 = vld [vmem:[%s14475_s28 + $0x830] ss:$12 sps:$4 sm:$0xff]   ;;  %v13189_v27 = vld [vmem:[%s14475_s28 + $0x6ac] ss:$12 sps:$4 sm:$0xff]   ;;  %v13187_v36 = vld [vmem:[%s14475_s28 + $0x6a8] ss:$12 sps:$4 sm:$0xff]  }
0x1067   : > { %10005 = vmatprep.mubr.bf16.mxu0 %v7611_v46  ;;  %v16155_v15 = vpack.c.bf16 %v7601_v12, %v7589_v57  ;;  %9708 = vmatprep.subr.bf16.mxu1 %v13148_v9  ;;  %v13184_v6 = vld [vmem:[%s14475_s28 + $0x690] ss:$12 sps:$4 sm:$0xff]   ;;  %v13193_v20 = vld [vmem:[%s14475_s28 + $0x6d8] ss:$12 sps:$4 sm:$0xff]   ;;  %v13198_v52 = vld [vmem:[%s14475_s28 + $0x6f4] ss:$12 sps:$4 sm:$0xff]  }
0x1068   : > { %10006 = vmatmul.mubr.bf16.vlgmr.msra.gmra.mrb[104].mxu0 %v16145_v53  ;;  %v13192_v25 = vld [vmem:[%s14475_s28 + $0x6c4] ss:$12 sps:$4 sm:$0xff]   ;;  %v13195_v29 = vld [vmem:[%s14475_s28 + $0x6dc] ss:$12 sps:$4 sm:$0xff]  }
0x1069   : > { %11601 = vmatpush3.bf16.msra.mxu0 %v13145_v50  ;;  %10046 = vmatprep.mubr.bf16.mxu0 %v16155_v15  ;;  %v16199_v62 = vld [vmem:[%s16364_s26] sm:$0x7]  ;;  %v13196_v9 = vld [vmem:[%s14475_s28 + $0x6f0] ss:$12 sps:$4 sm:$0xff]   ;;  %v13199_v57 = vld [vmem:[%s14475_s28 + $0x708] ss:$12 sps:$4 sm:$0xff]  }
0x106a   : > { %11602 = vmatprep.subr.bf16.mxu0 %v13149_v44  ;;  %9709 = vmatpush1.bf16.msra.mxu1 %v13146_v63  ;;  %v8011_v50 = vrot.slane %v16199_v62, %v14603_v33  ;;  %v13204_v63 = vld [vmem:[%s14475_s28 + $0x724] ss:$12 sps:$4 sm:$0xff]  }
0x106b   : > { %9710 = vmatprep.subr.bf16.mxu1 %v13153_v55 }
0x106d   : > { %11603 = vmatpush3.bf16.msra.mxu0 %v13150_v54 }
0x106e   : > { %11604 = vmatprep.subr.bf16.mxu0 %v13154_v60  ;;  %9711 = vmatpush1.bf16.msra.mxu1 %v13151_v39 }
0x106f   : > { %9723 = vmatprep.subr.bf16.mxu1 %v13158_v17  ;;  %v13202_v17 = vld [vmem:[%s14475_s28 + $0x720] ss:$12 sps:$4 sm:$0xff]  }
0x1071   : > { %11605 = vmatpush3.bf16.msra.mxu0 %v13155_v2  ;;  %9713 = vmatmul.mubr.bf16.vlgmr.msra.gmra.mrb[72].mxu1 %v15997_v1  ;;  %v13173_v1 = vld [vmem:[%s14475_s28 + $0x64c] ss:$12 sps:$4 sm:$0xff]  }
0x1072   : > { %11606 = vmatprep.subr.bf16.mxu0 %v13159_v47  ;;  %9724 = vmatpush1.bf16.msra.mxu1 %v13156_v56 }
0x1073   : > { %9755 = vmatprep.mubr.bf16.mxu1 %v7611_v46  ;;  %9725 = vmatprep.subr.bf16.mxu1 %v13163_v11  ;;  %v13201_v46 = vld [vmem:[%s14475_s28 + $0x70c] ss:$12 sps:$4 sm:$0xff]   ;;  %v13207_v11 = vld [vmem:[%s14475_s28 + $0x73c] ss:$12 sps:$4 sm:$0xff]  }
0x1075   : > { %11607 = vmatpush3.bf16.msra.mxu0 %v13160_v3 }
0x1076   : > { %11608 = vmatprep.subr.bf16.mxu0 %v13164_v4  ;;  %9726 = vmatpush1.bf16.msra.mxu1 %v13161_v48  ;;  %v13205_v48 = vld [vmem:[%s14475_s28 + $0x738] ss:$12 sps:$4 sm:$0xff]   ;;  %v13210_v4 = vld [vmem:[%s14475_s28 + $0x754] ss:$12 sps:$4 sm:$0xff]  }
0x1077   : > { %9727 = vmatprep.subr.bf16.mxu1 %v13168_v43  ;;  %v13208_v43 = vld [vmem:[%s14475_s28 + $0x750] ss:$12 sps:$4 sm:$0xff]  }
0x1079   : > { %11609 = vmatpush3.bf16.msra.mxu0 %v13165_v16  ;;  %v13213_v16 = vld [vmem:[%s14475_s28 + $0x76c] ss:$12 sps:$4 sm:$0xff]  }
0x107a   : > { %11610 = vmatprep.subr.bf16.mxu0 %v13169_v37  ;;  %9728 = vmatpush1.bf16.msra.mxu1 %v13166_v5  ;;  %v13211_v5 = vld [vmem:[%s14475_s28 + $0x768] ss:$12 sps:$4 sm:$0xff]   ;;  %v13216_v37 = vld [vmem:[%s14475_s28 + $0x784] ss:$12 sps:$4 sm:$0xff]  }
0x107b   : > { %v11506_v59 = vpop.f32.mrb[88].mxu0  ;;  %9729 = vmatprep.subr.bf16.mxu1 %v13173_v1  ;;  %v13214_v1 = vld [vmem:[%s14475_s28 + $0x780] ss:$12 sps:$4 sm:$0xff]  }
0x107c   : > { %v11507_v35 = vpop.f32.mrb[89].mxu0 }
0x107d   : > { %v11508_v7 = vadd.f32 %v11507_v35, %v11506_v59  ;;  %11611 = vmatpush3.bf16.msra.mxu0 %v13170_v31  ;;  %v11509_v13 = vpop.f32.mrb[90].mxu0  ;;  %v13219_v31 = vld [vmem:[%s14475_s28 + $0x79c] ss:$12 sps:$4 sm:$0xff]  }
0x107e   : > { %v11510_v10 = vpop.f32.mrb[91].mxu0  ;;  %11612 = vmatprep.subr.bf16.mxu0 %v13174_v14  ;;  %9730 = vmatpush1.bf16.msra.mxu1 %v13171_v42  ;;  %v13217_v42 = vld [vmem:[%s14475_s28 + $0x798] ss:$12 sps:$4 sm:$0xff]   ;;  %v13222_v14 = vld [vmem:[%s14475_s28 + $0x7b4] ss:$12 sps:$4 sm:$0xff]  }
0x107f   : > { %v11511_v49 = vadd.f32 %v11510_v10, %v11509_v13  ;;  %9731 = vmatprep.subr.bf16.mxu1 %v13178_v21  ;;  %v9844_v55 = vadd.f32 %v11508_v7, %v8011_v50  ;;  %v13220_v59 = vld [vmem:[%s14475_s28 + $0x7b0] ss:$12 sps:$4 sm:$0xff]   ;;  %v13225_v21 = vld [vmem:[%s14475_s28 + $0x7cc] ss:$12 sps:$4 sm:$0xff]   ;;  %v13223_v35 = vld [vmem:[%s14475_s28 + $0x7c8] ss:$12 sps:$4 sm:$0xff]  }
0x1080   : > { %v13226_v7 = vld [vmem:[%s14475_s28 + $0x7e0] ss:$12 sps:$4 sm:$0xff]   ;;  %v13229_v13 = vld [vmem:[%s14475_s28 + $0x7f8] ss:$12 sps:$4 sm:$0xff]   ;;  %v13232_v10 = vld [vmem:[%s14475_s28 + $0x810] ss:$12 sps:$4 sm:$0xff]  }
0x1081   : > { %11613 = vmatpush3.bf16.msra.mxu0 %v13175_v22  ;;  %v9847_v2 = vadd.f32 %v11511_v49, %v8011_v50  ;;  %v13234_v22 = vld [vmem:[%s14475_s28 + $0x814] ss:$12 sps:$4 sm:$0xff]   ;;  %v13240_v49 = vld [vmem:[%s14475_s28 + $0x844] ss:$12 sps:$4 sm:$0xff]  }
0x1082   : > { %11614 = vmatprep.subr.bf16.mxu0 %v13179_v61  ;;  %9732 = vmatpush1.bf16.msra.mxu1 %v13176_v45  ;;  %v13237_v45 = vld [vmem:[%s14475_s28 + $0x82c] ss:$12 sps:$4 sm:$0xff]   ;;  %v13235_v61 = vld [vmem:[%s14475_s28 + $0x828] ss:$12 sps:$4 sm:$0xff]  }
0x1083   : > { %9733 = vmatprep.subr.bf16.mxu1 %v13183_v24  ;;  %v13238_v24 = vld [vmem:[%s14475_s28 + $0x840] ss:$12 sps:$4 sm:$0xff]  }
0x1085   : > { %11615 = vmatpush3.bf16.msra.mxu0 %v13180_v19  ;;  %v13243_v19 = vld [vmem:[%s14475_s28 + $0x85c] ss:$12 sps:$4 sm:$0xff]  }
0x1086   : > { %9734 = vmatpush1.bf16.msra.mxu1 %v13181_v40  ;;  %v13241_v40 = vld [vmem:[%s14475_s28 + $0x858] ss:$12 sps:$4 sm:$0xff]  }
0x1087   : > { %9735 = vmatprep.subr.bf16.mxu1 %v13186_v41  ;;  %v13246_v41 = vld [vmem:[%s14475_s28 + $0x874] ss:$12 sps:$4 sm:$0xff]  }
0x1088   : > { %10047 = vmatmul.mubr.bf16.vlgmr.msra.gmra.mrb[108].mxu0 %v16150_v0 }
0x108a   : > { %9736 = vmatpush1.bf16.msra.mxu1 %v13184_v6  ;;  %v13244_v6 = vld [vmem:[%s14475_s28 + $0x870] ss:$12 sps:$4 sm:$0xff]  }
0x108b   : > { %9737 = vmatprep.subr.bf16.mxu1 %v13189_v27  ;;  %v13249_v27 = vld [vmem:[%s14475_s28 + $0x88c] ss:$12 sps:$4 sm:$0xff]  }
0x108e   : > { %9738 = vmatpush1.bf16.msra.mxu1 %v13187_v36  ;;  %v13247_v36 = vld [vmem:[%s14475_s28 + $0x888] ss:$12 sps:$4 sm:$0xff]  }
0x108f   : > { %9739 = vmatprep.subr.bf16.mxu1 %v13192_v25 }
0x1092   : > { %9740 = vmatpush1.bf16.msra.mxu1 %v13190_v8  ;;  %v13252_v8 = vld [vmem:[%s14475_s28 + $0x8a4] ss:$12 sps:$4 sm:$0xff]  }
0x1093   : > { %9741 = vmatprep.subr.bf16.mxu1 %v13195_v29 }
0x1096   : > { %9742 = vmatpush1.bf16.msra.mxu1 %v13193_v20 }
0x1097   : > { %9743 = vmatprep.subr.bf16.mxu1 %v13198_v52 }
0x109a   : > { %9744 = vmatpush1.bf16.msra.mxu1 %v13196_v9 }
0x109b   : > { %v11528_v12 = vpop.f32.mrb[92].mxu0  ;;  %9745 = vmatprep.subr.bf16.mxu1 %v13201_v46  ;;  %v13250_v46 = vld [vmem:[%s14475_s28 + $0x8a0] ss:$12 sps:$4 sm:$0xff]  }
0x109c   : > { %v11529_v44 = vpop.f32.mrb[93].mxu0 }
0x109d   : > { %v11530_v54 = vadd.f32 %v11529_v44, %v11528_v12  ;;  %v11531_v39 = vpop.f32.mrb[94].mxu0  ;;  %v13255_v12 = vld [vmem:[%s14475_s28 + $0x8bc] ss:$12 sps:$4 sm:$0xff]   ;;  %v13253_v44 = vld [vmem:[%s14475_s28 + $0x8b8] ss:$12 sps:$4 sm:$0xff]  }
0x109e   : > { %v11532_v60 = vpop.f32.mrb[95].mxu0  ;;  %9746 = vmatpush1.bf16.msra.mxu1 %v13199_v57 }
0x109f   : > { %v16208_v56 = vadd.f32 %v11530_v54, %v9844_v55  ;;  %v11533_v47 = vadd.f32 %v11532_v60, %v11531_v39  ;;  %9747 = vmatprep.subr.bf16.mxu1 %v13204_v63  ;;  %v13258_v55 = vld [vmem:[%s14475_s28 + $0x8d4] ss:$12 sps:$4 sm:$0xff]   ;;  %v13256_v54 = vld [vmem:[%s14475_s28 + $0x8d0] ss:$12 sps:$4 sm:$0xff]   ;;  %v13261_v39 = vld [vmem:[%s14475_s28 + $0x8ec] ss:$12 sps:$4 sm:$0xff]  }
0x10a0   : > { %v13259_v60 = vld [vmem:[%s14475_s28 + $0x8e8] ss:$12 sps:$4 sm:$0xff]  }
0x10a1   : > { %v16211_v3 = vadd.f32 %v11533_v47, %v9847_v2 }
0x10a2   : > { %9748 = vmatpush1.bf16.msra.mxu1 %v13202_v17 }
0x10a3   : > { %9749 = vmatprep.subr.bf16.mxu1 %v13207_v11 }
0x10a6   : > { %9750 = vmatpush1.bf16.msra.mxu1 %v13205_v48 }
0x10a7   : > { %9751 = vmatprep.subr.bf16.mxu1 %v13210_v4 }
0x10aa   : > { %9752 = vmatpush1.bf16.msra.mxu1 %v13208_v43 }
0x10ab   : > { %9753 = vmatprep.subr.bf16.mxu1 %v13213_v16 }
0x10ae   : > { %9754 = vmatpush1.bf16.msra.mxu1 %v13211_v5 }
0x10af   : > { %9766 = vmatprep.subr.bf16.mxu1 %v13216_v37 }
0x10b1   : > { %9756 = vmatmul.mubr.bf16.vlgmr.msra.gmra.mrb[72].mxu1 %v16145_v53  ;;  %v13228_v53 = vld [vmem:[%s14475_s28 + $0x7e4] ss:$12 sps:$4 sm:$0xff]  }
0x10b2   : > { %9767 = vmatpush1.bf16.msra.mxu1 %v13214_v1  ;;  %9798 = vmatprep.mubr.bf16.mxu1 %v16155_v15  ;;  %v13231_v15 = vld [vmem:[%s14475_s28 + $0x7fc] ss:$12 sps:$4 sm:$0xff]  }
0x10b3   : > { %9768 = vmatprep.subr.bf16.mxu1 %v13219_v31 }
0x10b6   : > { %9769 = vmatpush1.bf16.msra.mxu1 %v13217_v42 }
0x10b7   : > { %9770 = vmatprep.subr.bf16.mxu1 %v13222_v14 }
0x10ba   : > { %9771 = vmatpush1.bf16.msra.mxu1 %v13220_v59  ;;  %v10055_v59 = vld [vmem:[%s875_s15] sm:$0x7] }
0x10bb   : > { %9772 = vmatprep.subr.bf16.mxu1 %v13225_v21 }
0x10be   : > { %9773 = vmatpush1.bf16.msra.mxu1 %v13223_v35 }
0x10bf   : > { %9774 = vmatprep.subr.bf16.mxu1 %v13228_v53  ;;  %v10068_v53 = vrot.slane %v10055_v59, %v14603_v33  ;;  %v8007_v33 = vrot.slane %v16199_v62, %v14600_v32 }
0x10c2   : > { %9775 = vmatpush1.bf16.msra.mxu1 %v13226_v7 }
0x10c3   : > { %9776 = vmatprep.subr.bf16.mxu1 %v13231_v15 }
0x10c6   : > { %9777 = vmatpush1.bf16.msra.mxu1 %v13229_v13 }
0x10c7   : > { %9778 = vmatprep.subr.bf16.mxu1 %v13234_v22 }
0x10ca   : > { %9779 = vmatpush1.bf16.msra.mxu1 %v13232_v10 }
0x10cb   : > { %9780 = vmatprep.subr.bf16.mxu1 %v13237_v45 }
0x10ce   : > { %9781 = vmatpush1.bf16.msra.mxu1 %v13235_v61 }
0x10cf   : > { %9782 = vmatprep.subr.bf16.mxu1 %v13240_v49 }
0x10d2   : > { %9783 = vmatpush1.bf16.msra.mxu1 %v13238_v24 }
0x10d3   : > { %9784 = vmatprep.subr.bf16.mxu1 %v13243_v19  ;;  %v8003_v19 = vrot.slane %v16199_v62, %v14606_v34 }
0x10d6   : > { %9785 = vmatpush1.bf16.msra.mxu1 %v13241_v40  ;;  %v13852_v40 = vmov 1966171168  }
0x10d7   : > { %9786 = vmatprep.subr.bf16.mxu1 %v13246_v41  ;;  %v10098_v41 = vunpack.c.l.s4 %v13852_v40 }
0x10da   : > { %9787 = vmatpush1.bf16.msra.mxu1 %v13244_v6  ;;  %v10060_v6 = vrot.slane %v10055_v59, %v14606_v34 }
0x10db   : > { %v11550_v25 = vpop.f32.mrb[96].mxu0  ;;  %9788 = vmatprep.subr.bf16.mxu1 %v13249_v27 }
0x10dc   : > { %v11551_v29 = vpop.f32.mrb[97].mxu0 }
0x10dd   : > { %v11552_v20 = vadd.f32 %v11551_v29, %v11550_v25  ;;  %v11553_v52 = vpop.f32.mrb[98].mxu0 }
0x10de   : > { %v11554_v9 = vpop.f32.mrb[99].mxu0  ;;  %9789 = vmatpush1.bf16.msra.mxu1 %v13247_v36  ;;  %v10064_v36 = vrot.slane %v10055_v59, %v14600_v32 }
0x10df   : > { %v9926_v50 = vadd.f32 %v11552_v20, %v16208_v56  ;;  %v11555_v57 = vadd.f32 %v11554_v9, %v11553_v52  ;;  %9790 = vmatprep.subr.bf16.mxu1 %v13252_v8  ;;  %v10099_v8 = vunpack.c.0.s8 %v10098_v41 }
0x10e1   : > { %v9929_v63 = vadd.f32 %v11555_v57, %v16211_v3  ;;  %v10102_v62 = vsub.s32 %v10099_v8, %v14595_v30 }
0x10e2   : > { %9791 = vmatpush1.bf16.msra.mxu1 %v13250_v46 }
0x10e3   : > { %9792 = vmatprep.subr.bf16.mxu1 %v13255_v12 }
0x10e6   : > { %9793 = vmatpush1.bf16.msra.mxu1 %v13253_v44 }
0x10e7   : > { %9794 = vmatprep.subr.bf16.mxu1 %v13258_v55 }
0x10ea   : > { %9795 = vmatpush1.bf16.msra.mxu1 %v13256_v54 }
0x10eb   : > { %9796 = vmatprep.subr.bf16.mxu1 %v13261_v39 }
0x10ee   : > { %9797 = vmatpush1.bf16.msra.mxu1 %v13259_v60 }
0x10f1   : > { %9799 = vmatmul.mubr.bf16.vlgmr.msra.gmra.mrb[72].mxu1 %v16150_v0 }
0x10fb   : > { %v11572_v17 = vpop.f32.mrb[100].mxu0 }
0x10fc   : > { %v11573_v2 = vpop.f32.mrb[101].mxu0 }
0x10fd   : > { %v11574_v56 = vadd.f32 %v11573_v2, %v11572_v17  ;;  %v11575_v47 = vpop.f32.mrb[102].mxu0 }
0x10fe   : > { %v11576_v11 = vpop.f32.mrb[103].mxu0 }
0x10ff   : > { %v9967_v3 = vadd.f32 %v11574_v56, %v9926_v50  ;;  %v11577_v48 = vadd.f32 %v11576_v11, %v11575_v47 }
0x1101   : > { %v9970_v4 = vadd.f32 %v11577_v48, %v9929_v63 }
0x113b   : > { %v11594_v43 = vpop.f32.mrb[104].mxu0 }
0x113c   : > { %v11595_v16 = vpop.f32.mrb[105].mxu0 }
0x113d   : > { %v11596_v5 = vadd.f32 %v11595_v16, %v11594_v43  ;;  %v11597_v37 = vpop.f32.mrb[106].mxu0 }
0x113e   : > { %v11598_v1 = vpop.f32.mrb[107].mxu0 }
0x113f   : > { %v10008_v31 = vadd.f32 %v11596_v5, %v9967_v3  ;;  %v11599_v42 = vadd.f32 %v11598_v1, %v11597_v37 }
0x1141   : > { %v10011_v14 = vadd.f32 %v11599_v42, %v9970_v4 }
0x115b   : > { %v11616_v0 = vpop.f32.mrb[108].mxu0 }
0x115c   : > { %v11617_v21 = vpop.f32.mrb[109].mxu0 }
0x115d   : > { %v11618_v35 = vadd.f32 %v11617_v21, %v11616_v0  ;;  %v11619_v7 = vpop.f32.mrb[110].mxu0 }
0x115e   : > { %v11620_v15 = vpop.f32.mrb[111].mxu0 }
0x115f   : > { %v10049_v13 = vadd.f32 %v11618_v35, %v10008_v31  ;;  %v11621_v22 = vadd.f32 %v11620_v15, %v11619_v7 }
0x1161   : > { %v10074_v10 = vmul.f32 %v10068_v53, %v10049_v13  ;;  %v10052_v45 = vadd.f32 %v11621_v22, %v10011_v14 }
0x1163   : > { %v10080_v61 = vadd.f32 %v10074_v10, %v15335_v58  ;;  %v10077_v49 = vmul.f32 %v10068_v53, %v10052_v45 }
0x1165   : > { %10086 = vst [vmem:[#allocation2 + $0x10] sm:$0xff] %v10080_v61  ;;  %v10083_v24 = vadd.f32 %v10077_v49, %v15341_v38  ;;  %v10110_v54 = vrot.slane %v10080_v61, %v10102_v62 }
0x1167   : > { %10089 = vst [vmem:[#allocation2 + $0x28] sm:$0xff] %v10083_v24  ;;  %v10133_v17 = vrot.slane %v10083_v24, %v10102_v62 }
0x11c4   : > { %v9800_v27 = vpop.f32.mrb[72].mxu1 }
0x11c5   : > { %v11854_v25 = vadd.f32 %v9800_v27, %v8003_v19  ;;  %v9802_v58 = vpop.f32.mrb[73].mxu1 }
0x11c6   : > { %v11855_v29 = vadd.f32 %v9802_v58, %v8007_v33  ;;  %v9804_v20 = vpop.f32.mrb[74].mxu1 }
0x11c7   : > { %v10072_v38 = vmul.f32 %v11854_v25, %v10060_v6  ;;  %v11856_v52 = vadd.f32 %v9804_v20, %v8003_v19  ;;  %v9806_v9 = vpop.f32.mrb[75].mxu1 }
0x11c8   : > { %v10073_v46 = vmul.f32 %v11855_v29, %v10064_v36  ;;  %v11857_v50 = vadd.f32 %v9806_v9, %v8007_v33 }
0x11c9   : > { %v10078_v57 = vadd.f32 %v10072_v38, %v15329_v23  ;;  %v10075_v12 = vmul.f32 %v11856_v52, %v10060_v6 }
0x11ca   : > { %v10079_v34 = vadd.f32 %v10073_v46, %v15331_v28  ;;  %v10076_v63 = vmul.f32 %v11857_v50, %v10064_v36 }
0x11cb   : > { %10084 = vst [vmem:[#allocation2] sm:$0xff] %v10078_v57  ;;  %v10081_v32 = vadd.f32 %v10075_v12, %v15333_v51 }
0x11cc   : > { %10085 = vst [vmem:[#allocation2 + $0x8] sm:$0xff] %v10079_v34  ;;  %v10096_v44 = vcombine.low %v10078_v57, %v10079_v34  ;;  %v10082_v55 = vadd.f32 %v10076_v63, %v15337_v18 }
0x11cd   : > { %10087 = vst [vmem:[#allocation2 + $0x18] sm:$0xff] %v10081_v32 }
0x11ce   : > { %v10103_v39 = vrot.slane %v10096_v44, %v10102_v62  ;;  %10088 = vst [vmem:[#allocation2 + $0x20] sm:$0xff] %v10082_v55  ;;  %v10119_v60 = vcombine.low %v10081_v32, %v10082_v55 }
0x11d0   : > { %v10111_v23 = vcombine.low %v10103_v39, %v10110_v54  ;;  %v10126_v2 = vrot.slane %v10119_v60, %v10102_v62 }
0x11d2   : > { %v10118_v30 = vrot.slane %v10111_v23, %v10102_v62  ;;  %v10134_v28 = vcombine.low %v10126_v2, %v10133_v17 }
0x11d4   : > { %10148 = vst.msk [vmem:[%s16365_s17] sm:$0x7] %vm10146_vm5, %v10118_v30  ;;  %v10141_v51 = vrot.slane %v10134_v28, %v10102_v62 }
0x11d6   : > { %10149 = vst.msk [vmem:[%s16365_s17 + $0x3] sm:$0x7] %vm10146_vm5, %v10141_v51 }
0x11d7 PF: > { %s16366_s21 = sld [smem:[#allocation36_spill]]  ;;  %s16367_s18 = sld [smem:[#allocation33_spill]] }
0x11d8   : > { %s16368_s19 = sld [smem:[#allocation34_spill]]  ;;  %s16369_s20 = sld [smem:[#allocation37_spill]] }
0x11dd   : > { %p46_p6 = scmp.ge.s32.totalorder %s16366_s21, 14  }
0x11df   :  { %48 = sbr.rel (!%p46_p6) target bundleno = 25 (0x19), region = 277 }
0x11e6   :  { %10161 = vsyncpa [#allocation4], 1 }
0x11e7   :  { %10163 = vsyncpa [#allocation4 + $0x1], 1 }
0x11e8   :  { %10164 = vsyncpa [#allocation6], 1 }
0x11e9   :  { %10166 = vsyncpa [#allocation6 + $0x1], 1 }
0x11ea   :  { %10167 = vsyncpa [#allocation9], 1 }
0x11eb   :  { %10169 = vsyncpa [#allocation9 + $0x1], 1 }
0x11ec   :  { %10170 = vsyncpa [#allocation12], 1 }
0x11ed   :  { %10172 = vsyncpa [#allocation12 + $0x1], 1 }
0x11ee   :  { %10173 = vsyncpa [#allocation15], 1 }
0x11ef   :  { %10175 = vsyncpa [#allocation15 + $0x1], 1 }
0x11f0   :  { %10176 = vsyncpa [#allocation18], 1 }
0x11f1   :  { %10178 = vsyncpa [#allocation18 + $0x1], 1 }
0x11f2   :  { %10179 = vsyncpa [#allocation21], 1 }
0x11f3   :  { %10181 = vsyncpa [#allocation21 + $0x1], 1 }
0x11f4   :  { %10182 = vsyncpa [#allocation24], 1 }
0x11f5   :  { %10184 = vsyncpa [#allocation24 + $0x1], 1 }

</bundles_post_ra>
